<compile_context>
chip_gen: v7x
topology: tpu7x:2x2x1
jax: 0.10.0
libtpu: 0.0.40
codegen_flags: <defaults>
</compile_context>

<pallas_src>
import functools

import jax
import jax.numpy as jnp
import numpy as np
from jax.experimental import pallas as pl
from jax.experimental.pallas import tpu as pltpu


# ----------------------------------------------------------------------------
# Static network configuration (matches the PyTorch Decoder)
# ----------------------------------------------------------------------------
LATENT = 64
HID2 = 128          # FC_hidden out
HID = 256           # FC_hidden3 / FC_hidden2 out
C0, H0, W0 = 64, 10, 10                 # .view(-1, 64, 10, 10)
DECONV_CFG = [(64, 32, 3), (32, 16, 5), (16, 1, 5)]   # (Cin, Cout, K)

_LTOP = 8  # top zero-margin rows of each padded activation buffer (>= pad,
           # chosen so output-block stores start on a sublane tile)


def _deconv_geometry():
    geo = []
    hin, win = H0, W0
    for cin, cout, k in DECONV_CFG:
        pad = k - 1
        # left x-margin: smallest count >= pad whose lane offset is 128-aligned
        lleft = pad
        while (lleft * cin) % 128 != 0:
            lleft += 1
        cols = lleft + win + pad                       # padded x extent
        rows = -(-(_LTOP + hin + pad) // 8) * 8        # padded y extent (x8)
        hout, wout = hin + k - 1, win + k - 1
        nout = -(-(wout * cout) // 128) * 128          # lane-padded matmul N
        geo.append(dict(cin=cin, cout=cout, k=k, pad=pad, hin=hin, win=win,
                        hout=hout, wout=wout, lleft=lleft, ltop=_LTOP,
                        rows=rows, cols=cols, nout=nout))
        hin, win = hout, wout
    return geo


GEO = _deconv_geometry()   # final layer -> 20 x 20 output


# ----------------------------------------------------------------------------
# Deterministic parameter init (PyTorch-style uniform bounds)
# ----------------------------------------------------------------------------
def init_decoder_params(key, latent_dim=LATENT, hidden_dim=HID,
                        hidden_dim2=HID2, output_dim=C0 * H0 * W0):
    ks = jax.random.split(key, 14)

    def lin(kw, kb, fan_in, fan_out):
        bound = 1.0 / np.sqrt(fan_in)
        w = jax.random.uniform(kw, (fan_in, fan_out), jnp.float32, -bound, bound)
        b = jax.random.uniform(kb, (fan_out,), jnp.float32, -bound, bound)
        return w, b

    def deconv(kw, kb, cin, cout, k):
        bound = 1.0 / np.sqrt(cout * k * k)
        w = jax.random.uniform(kw, (cin, cout, k, k), jnp.float32, -bound, bound)
        b = jax.random.uniform(kb, (cout,), jnp.float32, -bound, bound)
        return w, b

    return {
        "FC_hidden": lin(ks[0], ks[1], latent_dim, hidden_dim2),
        "FC_hidden3": lin(ks[2], ks[3], hidden_dim2, hidden_dim),
        "FC_hidden2": lin(ks[4], ks[5], hidden_dim, hidden_dim),
        "FC_output": lin(ks[6], ks[7], hidden_dim, output_dim),
        "deConv1": deconv(ks[8], ks[9], 64, 32, 3),
        "deConv2": deconv(ks[10], ks[11], 32, 16, 5),
        "deConv3": deconv(ks[12], ks[13], 16, 1, 5),
    }


# ----------------------------------------------------------------------------
# One-time parameter preparation (column permutation, kernel flip,
# block-Toeplitz assembly, lane padding, bf16 cast)
# ----------------------------------------------------------------------------
def prepare_params(params):
    prep = {}
    for name in ("FC_hidden", "FC_hidden3", "FC_hidden2"):
        w, b = params[name]
        prep[name] = (jnp.asarray(w, jnp.bfloat16),
                      jnp.asarray(b, jnp.float32).reshape(1, -1))

    # FC_output: permute columns so the output is already (y, x, c)-ordered.
    w4, b4 = params["FC_output"]
    w4 = np.asarray(w4, np.float32)
    b4 = np.asarray(b4, np.float32)
    yy = np.arange(H0)[:, None, None]
    xx = np.arange(W0)[None, :, None]
    cc = np.arange(C0)[None, None, :]
    perm = (cc * (H0 * W0) + yy * W0 + xx).reshape(-1)   # new col j -> old col
    prep["FC_output"] = (jnp.asarray(w4[:, perm], jnp.bfloat16),
                         jnp.asarray(b4[perm], jnp.float32).reshape(1, -1))

    # Each ConvTranspose2d -> K banded block-Toeplitz matrices M[ky] such that
    #   out[yo, xo*Cout+co] = sum_ky  xpad_slab_ky[yo, :] @ M[ky][:, xo*Cout+co]
    # The N (output-x) dimension is lane-padded to a multiple of 128.
    for g, name in zip(GEO, ("deConv1", "deConv2", "deConv3")):
        w, b = params[name]
        w = np.asarray(w, np.float32)
        b = np.asarray(b, np.float32)
        cin, cout, k = g["cin"], g["cout"], g["k"]
        wflip = np.transpose(w[:, :, ::-1, ::-1], (2, 3, 0, 1))   # (ky,kx,ci,co)
        shift = g["lleft"] - g["pad"]
        toep = np.zeros((k, g["cols"] * cin, g["nout"]), np.float32)
        for ky in range(k):
            for xo in range(g["wout"]):
                for kx in range(k):
                    xb = xo + kx + shift
                    toep[ky, xb * cin:(xb + 1) * cin,
                         xo * cout:(xo + 1) * cout] = wflip[ky, kx]
        brow = np.zeros((1, g["nout"]), np.float32)
        brow[0, :g["wout"] * cout] = np.tile(b, g["wout"])
        prep[name] = (jnp.asarray(toep, jnp.bfloat16),
                      jnp.asarray(brow, jnp.float32))
    return prep


# ----------------------------------------------------------------------------
# The fused kernel
# ----------------------------------------------------------------------------
def _decoder_kernel(x_ref,
                    w1_ref, b1_ref, w2_ref, b2_ref, w3_ref, b3_ref,
                    w4_hbm, b4_ref,
                    t1_hbm, c1_ref, t2_hbm, c2_ref, t3_hbm, c3_ref,
                    out_ref,
                    w4_vmem, t1_vmem, t2_vmem, t3_vmem,
                    h4_buf, xpad1, xpad2, xpad3, dma_sems,
                    *, batch):
    f32 = jnp.float32
    bf16 = jnp.bfloat16
    g1, g2, g3 = GEO

    # Kick off the big weight DMAs immediately so they overlap the FC compute.
    cp_w4 = pltpu.make_async_copy(w4_hbm, w4_vmem, dma_sems.at[0])
    cp_t1 = pltpu.make_async_copy(t1_hbm, t1_vmem, dma_sems.at[1])
    cp_t2 = pltpu.make_async_copy(t2_hbm, t2_vmem, dma_sems.at[2])
    cp_t3 = pltpu.make_async_copy(t3_hbm, t3_vmem, dma_sems.at[3])
    cp_w4.start()
    cp_t1.start()
    cp_t2.start()
    cp_t3.start()

    def dense_relu(h, w_ref, b_ref):
        # Small layers: keep f32 activations (no extra rounding on the input).
        acc = jnp.dot(h, w_ref[...].astype(f32), preferred_element_type=f32)
        return jnp.maximum(acc + b_ref[...], 0.0)

    # ---------------- FC stack (M = sublane-padded batch) -------------------
    h = dense_relu(x_ref[...], w1_ref, b1_ref)     # (BP, 128)
    h = dense_relu(h, w2_ref, b2_ref)              # (BP, 256)
    h = dense_relu(h, w3_ref, b3_ref)              # (BP, 256)
    h = h.astype(bf16)                             # bf16 operand for MXU

    # ---------------- FC_output: one fused bf16 matmul ----------------------
    cp_w4.wait()
    h4_buf[...] = jnp.maximum(
        jnp.dot(h, w4_vmem[...], preferred_element_type=f32) + b4_ref[...], 0.0)

    # Scatter FC_output rows (columns pre-permuted to (y, x, c) order) into
    # deConv1's zero-padded NHWC buffer; each copy is a lane-aligned (1, 640).
    xpad1[...] = jnp.zeros_like(xpad1)
    row_w = W0 * C0                                # 640 lanes per image row
    col0 = g1["lleft"] * g1["cin"]                 # 128 -> lane-aligned
    for b in range(batch):
        for yy in range(H0):
            r = b * g1["rows"] + g1["ltop"] + yy
            xpad1[r:r + 1, col0:col0 + row_w] = \
                h4_buf[b:b + 1, yy * row_w:(yy + 1) * row_w]

    # -------- deconv stack: one bf16 matmul per ky over the whole buffer ----
    def conv_t(src_ref, toep_vmem, brow_ref, g):
        src = src_ref[...].astype(bf16)            # (B*rows, cols*Cin)
        accs = [jnp.zeros((g["hout"], g["nout"]), f32) for _ in range(batch)]
        for ky in range(g["k"]):
            full = jnp.dot(src, toep_vmem[ky],     # bf16 x bf16 -> f32
                           preferred_element_type=f32)
            for b in range(batch):
                r0 = b * g["rows"] + (g["ltop"] - g["pad"]) + ky
                accs[b] = accs[b] + full[r0:r0 + g["hout"], :]
        return [acc + brow_ref[...] for acc in accs]

    def scatter_next(dst_ref, g_next, g_cur, b, block):
        r0 = b * g_next["rows"] + g_next["ltop"]          # multiple of 8
        c0 = g_next["lleft"] * g_next["cin"]              # multiple of 128
        w = g_cur["wout"] * g_cur["cout"]
        dst_ref[r0:r0 + g_cur["hout"], c0:c0 + w] = block[:, :w]

    # deConv1 -> xpad2
    cp_t1.wait()
    blocks1 = conv_t(xpad1, t1_vmem, c1_ref, g1)
    xpad2[...] = jnp.zeros_like(xpad2)
    for b in range(batch):
        scatter_next(xpad2, g2, g1, b, jnp.maximum(blocks1[b], 0.0))

    # deConv2 -> xpad3
    cp_t2.wait()
    blocks2 = conv_t(xpad2, t2_vmem, c2_ref, g2)
    xpad3[...] = jnp.zeros_like(xpad3)
    for b in range(batch):
        scatter_next(xpad3, g3, g2, b, jnp.maximum(blocks2[b], 0.0))

    # deConv3 -> output (lane-padded to 128 lanes; wrapper slices back to 20)
    cp_t3.wait()
    blocks3 = conv_t(xpad3, t3_vmem, c3_ref, g3)
    for b in range(batch):
        out_ref[b, :, :] = jax.nn.sigmoid(blocks3[b])


# ----------------------------------------------------------------------------
# Wrapper: single ungridded pallas_call; heavy weights streamed via manual DMA
# ----------------------------------------------------------------------------
def decoder_forward(prepared, x):
    """Full Decoder forward.  x: (B, latent_dim) float32 -> (B, 1, 20, 20)."""
    B = x.shape[0]
    g1, g2, g3 = GEO
    bp = max(8, -(-B // 8) * 8)                    # pad batch to a sublane tile
    xp = jnp.zeros((bp, x.shape[1]), jnp.float32).at[:B, :].set(x)

    args = (xp,
            *prepared["FC_hidden"], *prepared["FC_hidden3"],
            *prepared["FC_hidden2"], *prepared["FC_output"],
            *prepared["deConv1"], *prepared["deConv2"], *prepared["deConv3"])

    vmem = pl.BlockSpec(memory_space=pltpu.MemorySpace.VMEM)
    hbm = pl.BlockSpec(memory_space=pl.ANY)        # manual DMA inside kernel
    in_specs = [vmem,          # x
                vmem, vmem,    # FC_hidden   w, b
                vmem, vmem,    # FC_hidden3  w, b
                vmem, vmem,    # FC_hidden2  w, b
                hbm,  vmem,    # FC_output   w (HBM), b
                hbm,  vmem,    # deConv1 toeplitz (HBM), bias row
                hbm,  vmem,    # deConv2 toeplitz (HBM), bias row
                hbm,  vmem]    # deConv3 toeplitz (HBM), bias row

    scratch = [
        pltpu.VMEM(prepared["FC_output"][0].shape, jnp.bfloat16),   # w4 copy
        pltpu.VMEM(prepared["deConv1"][0].shape, jnp.bfloat16),     # t1 copy
        pltpu.VMEM(prepared["deConv2"][0].shape, jnp.bfloat16),     # t2 copy
        pltpu.VMEM(prepared["deConv3"][0].shape, jnp.bfloat16),     # t3 copy
        pltpu.VMEM((bp, C0 * H0 * W0), jnp.float32),                # FC_output act
        pltpu.VMEM((B * g1["rows"], g1["cols"] * g1["cin"]), jnp.float32),
        pltpu.VMEM((B * g2["rows"], g2["cols"] * g2["cin"]), jnp.float32),
        pltpu.VMEM((B * g3["rows"], g3["cols"] * g3["cin"]), jnp.float32),
        pltpu.SemaphoreType.DMA((4,)),
    ]

    out = pl.pallas_call(
        functools.partial(_decoder_kernel, batch=B),
        out_shape=jax.ShapeDtypeStruct((B, g3["hout"], g3["nout"]), jnp.float32),
        in_specs=in_specs,
        out_specs=vmem,
        scratch_shapes=scratch,
        compiler_params=pltpu.CompilerParams(vmem_limit_bytes=32 * 1024 * 1024),
    )(*args)
    return out[:, :, :g3["wout"]].reshape(B, 1, g3["hout"], g3["wout"])


# ----------------------------------------------------------------------------
# Pure-JAX reference with the SAME rounding as the kernel:
#   * all weights rounded to bf16
#   * activations rounded to bf16 only for FC_output and the deconvs
#   * HIGHEST matmul precision elsewhere (matches in-kernel f32 path)
# ----------------------------------------------------------------------------
def decoder_reference(params, x):
    hi = jax.lax.Precision.HIGHEST

    def bf(a):
        return jnp.asarray(a, jnp.float32).astype(jnp.bfloat16).astype(jnp.float32)

    def lin(h, w, b, cast_act=False):
        hh = bf(h) if cast_act else h
        return jnp.maximum(jnp.dot(hh, bf(w), precision=hi) + b, 0.0)

    h = lin(x, *params["FC_hidden"])
    h = lin(h, *params["FC_hidden3"])
    h = lin(h, *params["FC_hidden2"])
    h = lin(h, *params["FC_output"], cast_act=True)
    B = x.shape[0]
    h = jnp.transpose(h.reshape(B, C0, H0, W0), (0, 2, 3, 1))   # NCHW -> NHWC

    def deconv(h, w, b, act):
        k = np.asarray(w).shape[2]
        pad = k - 1
        wf = jnp.transpose(jnp.asarray(w)[:, :, ::-1, ::-1], (2, 3, 0, 1))  # HWIO
        out = jax.lax.conv_general_dilated(
            bf(h), bf(wf), window_strides=(1, 1), padding=((pad, pad), (pad, pad)),
            dimension_numbers=("NHWC", "HWIO", "NHWC"), precision=hi)
        out = out + jnp.asarray(b, jnp.float32)
        return jnp.maximum(out, 0.0) if act == "relu" else jax.nn.sigmoid(out)

    h = deconv(h, *params["deConv1"], "relu")
    h = deconv(h, *params["deConv2"], "relu")
    h = deconv(h, *params["deConv3"], "sigmoid")
    return jnp.transpose(h, (0, 3, 1, 2))


if __name__ == "__main__":
    key = jax.random.PRNGKey(0)
    kp, kx = jax.random.split(key)
    params = init_decoder_params(kp)
    prepared = prepare_params(params)          # one-time weight preparation

    x = jax.random.normal(kx, (2, LATENT), dtype=jnp.float32)

    out = jax.block_until_ready(jax.jit(decoder_forward)(prepared, x))
    assert out.shape == (2, 1, 20, 20), out.shape

    ref = jax.block_until_ready(decoder_reference(params, x))
    np.testing.assert_allclose(np.asarray(out), np.asarray(ref),
                               rtol=2e-3, atol=2e-3)
    print("KERNEL_OK")
</pallas_src>

<mosaic_0001>
module attributes {stable_mosaic.version = 11 : i64} {
  func.func @_decoder_kernel(%arg0: memref<8x64xf32, #tpu.memory_space<vmem>>, %arg1: memref<64x128xbf16, #tpu.memory_space<vmem>>, %arg2: memref<1x128xf32, #tpu.memory_space<vmem>>, %arg3: memref<128x256xbf16, #tpu.memory_space<vmem>>, %arg4: memref<1x256xf32, #tpu.memory_space<vmem>>, %arg5: memref<256x256xbf16, #tpu.memory_space<vmem>>, %arg6: memref<1x256xf32, #tpu.memory_space<vmem>>, %arg7: memref<256x6400xbf16, #tpu.memory_space<any>>, %arg8: memref<1x6400xf32, #tpu.memory_space<vmem>>, %arg9: memref<3x896x384xbf16, #tpu.memory_space<any>>, %arg10: memref<1x384xf32, #tpu.memory_space<vmem>>, %arg11: memref<5x640x256xbf16, #tpu.memory_space<any>>, %arg12: memref<1x256xf32, #tpu.memory_space<vmem>>, %arg13: memref<5x448x128xbf16, #tpu.memory_space<any>>, %arg14: memref<1x128xf32, #tpu.memory_space<vmem>>, %arg15: memref<2x20x128xf32, #tpu.memory_space<vmem>>, %arg16: memref<256x6400xbf16, #tpu.memory_space<vmem>>, %arg17: memref<3x896x384xbf16, #tpu.memory_space<vmem>>, %arg18: memref<5x640x256xbf16, #tpu.memory_space<vmem>>, %arg19: memref<5x448x128xbf16, #tpu.memory_space<vmem>>, %arg20: memref<8x6400xf32, #tpu.memory_space<vmem>>, %arg21: memref<48x896xf32, #tpu.memory_space<vmem>>, %arg22: memref<48x640xf32, #tpu.memory_space<vmem>>, %arg23: memref<64x448xf32, #tpu.memory_space<vmem>>, %arg24: memref<4x!tpu.dma_semaphore, #tpu.memory_space<semaphore_mem>>) attributes {dimension_semantics = [], scalar_prefetch = 0 : i64, scratch_operands = 9 : i64, tpu.core_type = #tpu.core_type<tc>} {
    %c0_i32 = arith.constant 0 : i32
    %0 = tpu.memref_slice %arg24[%c0_i32] : memref<4x!tpu.dma_semaphore, #tpu.memory_space<semaphore_mem>> -> memref<1x!tpu.dma_semaphore, #tpu.memory_space<semaphore_mem>>
    %1 = tpu.memref_squeeze %0 : memref<1x!tpu.dma_semaphore, #tpu.memory_space<semaphore_mem>> -> memref<!tpu.dma_semaphore, #tpu.memory_space<semaphore_mem>>
    tpu.enqueue_dma source(%arg7 : memref<256x6400xbf16, #tpu.memory_space<any>>) target(%arg16 : memref<256x6400xbf16, #tpu.memory_space<vmem>>) target_semaphore(%1 : memref<!tpu.dma_semaphore, #tpu.memory_space<semaphore_mem>>)
    %c1_i32 = arith.constant 1 : i32
    %2 = tpu.memref_slice %arg24[%c1_i32] : memref<4x!tpu.dma_semaphore, #tpu.memory_space<semaphore_mem>> -> memref<1x!tpu.dma_semaphore, #tpu.memory_space<semaphore_mem>>
    %3 = tpu.memref_squeeze %2 : memref<1x!tpu.dma_semaphore, #tpu.memory_space<semaphore_mem>> -> memref<!tpu.dma_semaphore, #tpu.memory_space<semaphore_mem>>
    tpu.enqueue_dma source(%arg9 : memref<3x896x384xbf16, #tpu.memory_space<any>>) target(%arg17 : memref<3x896x384xbf16, #tpu.memory_space<vmem>>) target_semaphore(%3 : memref<!tpu.dma_semaphore, #tpu.memory_space<semaphore_mem>>)
    %c2_i32 = arith.constant 2 : i32
    %4 = tpu.memref_slice %arg24[%c2_i32] : memref<4x!tpu.dma_semaphore, #tpu.memory_space<semaphore_mem>> -> memref<1x!tpu.dma_semaphore, #tpu.memory_space<semaphore_mem>>
    %5 = tpu.memref_squeeze %4 : memref<1x!tpu.dma_semaphore, #tpu.memory_space<semaphore_mem>> -> memref<!tpu.dma_semaphore, #tpu.memory_space<semaphore_mem>>
    tpu.enqueue_dma source(%arg11 : memref<5x640x256xbf16, #tpu.memory_space<any>>) target(%arg18 : memref<5x640x256xbf16, #tpu.memory_space<vmem>>) target_semaphore(%5 : memref<!tpu.dma_semaphore, #tpu.memory_space<semaphore_mem>>)
    %c3_i32 = arith.constant 3 : i32
    %6 = tpu.memref_slice %arg24[%c3_i32] : memref<4x!tpu.dma_semaphore, #tpu.memory_space<semaphore_mem>> -> memref<1x!tpu.dma_semaphore, #tpu.memory_space<semaphore_mem>>
    %7 = tpu.memref_squeeze %6 : memref<1x!tpu.dma_semaphore, #tpu.memory_space<semaphore_mem>> -> memref<!tpu.dma_semaphore, #tpu.memory_space<semaphore_mem>>
    tpu.enqueue_dma source(%arg13 : memref<5x448x128xbf16, #tpu.memory_space<any>>) target(%arg19 : memref<5x448x128xbf16, #tpu.memory_space<vmem>>) target_semaphore(%7 : memref<!tpu.dma_semaphore, #tpu.memory_space<semaphore_mem>>)
    %c0 = arith.constant 0 : index
    %c0_0 = arith.constant 0 : index
    %8 = vector.load %arg0[%c0, %c0_0] : memref<8x64xf32, #tpu.memory_space<vmem>>, vector<8x64xf32>
    %c0_1 = arith.constant 0 : index
    %c0_2 = arith.constant 0 : index
    %9 = vector.load %arg1[%c0_1, %c0_2] : memref<64x128xbf16, #tpu.memory_space<vmem>>, vector<64x128xbf16>
    %10 = arith.extf %9 : vector<64x128xbf16> to vector<64x128xf32>
    %cst = arith.constant dense<0.000000e+00> : vector<8x128xf32>
    %11 = tpu.matmul %8, %10, %cst {dimension_numbers = #tpu.dot_dimension_numbers<[1], [0], [0], [1], [0, 0, 1, 1], [], []>} : vector<8x64xf32>, vector<64x128xf32>, vector<8x128xf32> -> vector<8x128xf32>
    %c0_3 = arith.constant 0 : index
    %c0_4 = arith.constant 0 : index
    %12 = vector.load %arg2[%c0_3, %c0_4] : memref<1x128xf32, #tpu.memory_space<vmem>>, vector<1x128xf32>
    %13 = vector.broadcast %12 : vector<1x128xf32> to vector<8x128xf32>
    %14 = arith.addf %11, %13 : vector<8x128xf32>
    %cst_5 = arith.constant 0.000000e+00 : f32
    %15 = vector.broadcast %cst_5 : f32 to vector<8x128xf32>
    %16 = arith.maximumf %14, %15 : vector<8x128xf32>
    %c0_6 = arith.constant 0 : index
    %c0_7 = arith.constant 0 : index
    %17 = vector.load %arg3[%c0_6, %c0_7] : memref<128x256xbf16, #tpu.memory_space<vmem>>, vector<128x256xbf16>
    %18 = arith.extf %17 : vector<128x256xbf16> to vector<128x256xf32>
    %cst_8 = arith.constant dense<0.000000e+00> : vector<8x256xf32>
    %19 = tpu.matmul %16, %18, %cst_8 {dimension_numbers = #tpu.dot_dimension_numbers<[1], [0], [0], [1], [0, 0, 1, 1], [], []>} : vector<8x128xf32>, vector<128x256xf32>, vector<8x256xf32> -> vector<8x256xf32>
    %c0_9 = arith.constant 0 : index
    %c0_10 = arith.constant 0 : index
    %20 = vector.load %arg4[%c0_9, %c0_10] : memref<1x256xf32, #tpu.memory_space<vmem>>, vector<1x256xf32>
    %21 = vector.broadcast %20 : vector<1x256xf32> to vector<8x256xf32>
    %22 = arith.addf %19, %21 : vector<8x256xf32>
    %cst_11 = arith.constant 0.000000e+00 : f32
    %23 = vector.broadcast %cst_11 : f32 to vector<8x256xf32>
    %24 = arith.maximumf %22, %23 : vector<8x256xf32>
    %c0_12 = arith.constant 0 : index
    %c0_13 = arith.constant 0 : index
    %25 = vector.load %arg5[%c0_12, %c0_13] : memref<256x256xbf16, #tpu.memory_space<vmem>>, vector<256x256xbf16>
    %26 = arith.extf %25 : vector<256x256xbf16> to vector<256x256xf32>
    %cst_14 = arith.constant dense<0.000000e+00> : vector<8x256xf32>
    %27 = tpu.matmul %24, %26, %cst_14 {dimension_numbers = #tpu.dot_dimension_numbers<[1], [0], [0], [1], [0, 0, 1, 1], [], []>} : vector<8x256xf32>, vector<256x256xf32>, vector<8x256xf32> -> vector<8x256xf32>
    %c0_15 = arith.constant 0 : index
    %c0_16 = arith.constant 0 : index
    %28 = vector.load %arg6[%c0_15, %c0_16] : memref<1x256xf32, #tpu.memory_space<vmem>>, vector<1x256xf32>
    %29 = vector.broadcast %28 : vector<1x256xf32> to vector<8x256xf32>
    %30 = arith.addf %27, %29 : vector<8x256xf32>
    %cst_17 = arith.constant 0.000000e+00 : f32
    %31 = vector.broadcast %cst_17 : f32 to vector<8x256xf32>
    %32 = arith.maximumf %30, %31 : vector<8x256xf32>
    %33 = arith.truncf %32 : vector<8x256xf32> to vector<8x256xbf16>
    %c0_i32_18 = arith.constant 0 : i32
    %34 = tpu.memref_slice %arg24[%c0_i32_18] : memref<4x!tpu.dma_semaphore, #tpu.memory_space<semaphore_mem>> -> memref<1x!tpu.dma_semaphore, #tpu.memory_space<semaphore_mem>>
    %35 = tpu.memref_squeeze %34 : memref<1x!tpu.dma_semaphore, #tpu.memory_space<semaphore_mem>> -> memref<!tpu.dma_semaphore, #tpu.memory_space<semaphore_mem>>
    tpu.wait_dma2 semaphore(%35 : memref<!tpu.dma_semaphore, #tpu.memory_space<semaphore_mem>>) src(%arg7 : memref<256x6400xbf16, #tpu.memory_space<any>>) dst(%arg16 : memref<256x6400xbf16, #tpu.memory_space<vmem>>)
    %c0_19 = arith.constant 0 : index
    %c0_20 = arith.constant 0 : index
    %36 = vector.load %arg16[%c0_19, %c0_20] : memref<256x6400xbf16, #tpu.memory_space<vmem>>, vector<256x6400xbf16>
    %cst_21 = arith.constant dense<0.000000e+00> : vector<8x6400xf32>
    %37 = tpu.matmul %33, %36, %cst_21 {dimension_numbers = #tpu.dot_dimension_numbers<[1], [0], [0], [1], [0, 0, 1, 1], [], []>} : vector<8x256xbf16>, vector<256x6400xbf16>, vector<8x6400xf32> -> vector<8x6400xf32>
    %c0_22 = arith.constant 0 : index
    %c0_23 = arith.constant 0 : index
    %38 = vector.load %arg8[%c0_22, %c0_23] : memref<1x6400xf32, #tpu.memory_space<vmem>>, vector<1x6400xf32>
    %39 = vector.broadcast %38 : vector<1x6400xf32> to vector<8x6400xf32>
    %40 = arith.addf %37, %39 : vector<8x6400xf32>
    %cst_24 = arith.constant 0.000000e+00 : f32
    %41 = vector.broadcast %cst_24 : f32 to vector<8x6400xf32>
    %42 = arith.maximumf %40, %41 : vector<8x6400xf32>
    %c0_25 = arith.constant 0 : index
    %c0_26 = arith.constant 0 : index
    %43 = vector.load %arg20[%c0_25, %c0_26] : memref<8x6400xf32, #tpu.memory_space<vmem>>, vector<8x6400xf32>
    tpu.vector_store %arg20[%c0_25, %c0_26], %42 {strides = array<i32>} : memref<8x6400xf32, #tpu.memory_space<vmem>>, vector<8x6400xf32>,
    %cst_27 = arith.constant 0.000000e+00 : f32
    %44 = vector.broadcast %cst_27 : f32 to vector<48x896xf32>
    %c0_28 = arith.constant 0 : index
    %c0_29 = arith.constant 0 : index
    %45 = vector.load %arg21[%c0_28, %c0_29] : memref<48x896xf32, #tpu.memory_space<vmem>>, vector<48x896xf32>
    tpu.vector_store %arg21[%c0_28, %c0_29], %44 {strides = array<i32>} : memref<48x896xf32, #tpu.memory_space<vmem>>, vector<48x896xf32>,
    %c0_30 = arith.constant 0 : index
    %c0_31 = arith.constant 0 : index
    %46 = vector.load %arg20[%c0_30, %c0_31] : memref<8x6400xf32, #tpu.memory_space<vmem>>, vector<1x640xf32>
    %c8 = arith.constant 8 : index
    %c128 = arith.constant 128 : index
    %47 = vector.load %arg21[%c8, %c128] : memref<48x896xf32, #tpu.memory_space<vmem>>, vector<1x640xf32>
    tpu.vector_store %arg21[%c8, %c128], %46 {strides = array<i32>} : memref<48x896xf32, #tpu.memory_space<vmem>>, vector<1x640xf32>,
    %c0_32 = arith.constant 0 : index
    %c640 = arith.constant 640 : index
    %48 = vector.load %arg20[%c0_32, %c640] : memref<8x6400xf32, #tpu.memory_space<vmem>>, vector<1x640xf32>
    %c9 = arith.constant 9 : index
    %c128_33 = arith.constant 128 : index
    %49 = vector.load %arg21[%c9, %c128_33] : memref<48x896xf32, #tpu.memory_space<vmem>>, vector<1x640xf32>
    tpu.vector_store %arg21[%c9, %c128_33], %48 {strides = array<i32>} : memref<48x896xf32, #tpu.memory_space<vmem>>, vector<1x640xf32>,
    %c0_34 = arith.constant 0 : index
    %c1280 = arith.constant 1280 : index
    %50 = vector.load %arg20[%c0_34, %c1280] : memref<8x6400xf32, #tpu.memory_space<vmem>>, vector<1x640xf32>
    %c10 = arith.constant 10 : index
    %c128_35 = arith.constant 128 : index
    %51 = vector.load %arg21[%c10, %c128_35] : memref<48x896xf32, #tpu.memory_space<vmem>>, vector<1x640xf32>
    tpu.vector_store %arg21[%c10, %c128_35], %50 {strides = array<i32>} : memref<48x896xf32, #tpu.memory_space<vmem>>, vector<1x640xf32>,
    %c0_36 = arith.constant 0 : index
    %c1920 = arith.constant 1920 : index
    %52 = vector.load %arg20[%c0_36, %c1920] : memref<8x6400xf32, #tpu.memory_space<vmem>>, vector<1x640xf32>
    %c11 = arith.constant 11 : index
    %c128_37 = arith.constant 128 : index
    %53 = vector.load %arg21[%c11, %c128_37] : memref<48x896xf32, #tpu.memory_space<vmem>>, vector<1x640xf32>
    tpu.vector_store %arg21[%c11, %c128_37], %52 {strides = array<i32>} : memref<48x896xf32, #tpu.memory_space<vmem>>, vector<1x640xf32>,
    %c0_38 = arith.constant 0 : index
    %c2560 = arith.constant 2560 : index
    %54 = vector.load %arg20[%c0_38, %c2560] : memref<8x6400xf32, #tpu.memory_space<vmem>>, vector<1x640xf32>
    %c12 = arith.constant 12 : index
    %c128_39 = arith.constant 128 : index
    %55 = vector.load %arg21[%c12, %c128_39] : memref<48x896xf32, #tpu.memory_space<vmem>>, vector<1x640xf32>
    tpu.vector_store %arg21[%c12, %c128_39], %54 {strides = array<i32>} : memref<48x896xf32, #tpu.memory_space<vmem>>, vector<1x640xf32>,
    %c0_40 = arith.constant 0 : index
    %c3200 = arith.constant 3200 : index
    %56 = vector.load %arg20[%c0_40, %c3200] : memref<8x6400xf32, #tpu.memory_space<vmem>>, vector<1x640xf32>
    %c13 = arith.constant 13 : index
    %c128_41 = arith.constant 128 : index
    %57 = vector.load %arg21[%c13, %c128_41] : memref<48x896xf32, #tpu.memory_space<vmem>>, vector<1x640xf32>
    tpu.vector_store %arg21[%c13, %c128_41], %56 {strides = array<i32>} : memref<48x896xf32, #tpu.memory_space<vmem>>, vector<1x640xf32>,
    %c0_42 = arith.constant 0 : index
    %c3840 = arith.constant 3840 : index
    %58 = vector.load %arg20[%c0_42, %c3840] : memref<8x6400xf32, #tpu.memory_space<vmem>>, vector<1x640xf32>
    %c14 = arith.constant 14 : index
    %c128_43 = arith.constant 128 : index
    %59 = vector.load %arg21[%c14, %c128_43] : memref<48x896xf32, #tpu.memory_space<vmem>>, vector<1x640xf32>
    tpu.vector_store %arg21[%c14, %c128_43], %58 {strides = array<i32>} : memref<48x896xf32, #tpu.memory_space<vmem>>, vector<1x640xf32>,
    %c0_44 = arith.constant 0 : index
    %c4480 = arith.constant 4480 : index
    %60 = vector.load %arg20[%c0_44, %c4480] : memref<8x6400xf32, #tpu.memory_space<vmem>>, vector<1x640xf32>
    %c15 = arith.constant 15 : index
    %c128_45 = arith.constant 128 : index
    %61 = vector.load %arg21[%c15, %c128_45] : memref<48x896xf32, #tpu.memory_space<vmem>>, vector<1x640xf32>
    tpu.vector_store %arg21[%c15, %c128_45], %60 {strides = array<i32>} : memref<48x896xf32, #tpu.memory_space<vmem>>, vector<1x640xf32>,
    %c0_46 = arith.constant 0 : index
    %c5120 = arith.constant 5120 : index
    %62 = vector.load %arg20[%c0_46, %c5120] : memref<8x6400xf32, #tpu.memory_space<vmem>>, vector<1x640xf32>
    %c16 = arith.constant 16 : index
    %c128_47 = arith.constant 128 : index
    %63 = vector.load %arg21[%c16, %c128_47] : memref<48x896xf32, #tpu.memory_space<vmem>>, vector<1x640xf32>
    tpu.vector_store %arg21[%c16, %c128_47], %62 {strides = array<i32>} : memref<48x896xf32, #tpu.memory_space<vmem>>, vector<1x640xf32>,
    %c0_48 = arith.constant 0 : index
    %c5760 = arith.constant 5760 : index
    %64 = vector.load %arg20[%c0_48, %c5760] : memref<8x6400xf32, #tpu.memory_space<vmem>>, vector<1x640xf32>
    %c17 = arith.constant 17 : index
    %c128_49 = arith.constant 128 : index
    %65 = vector.load %arg21[%c17, %c128_49] : memref<48x896xf32, #tpu.memory_space<vmem>>, vector<1x640xf32>
    tpu.vector_store %arg21[%c17, %c128_49], %64 {strides = array<i32>} : memref<48x896xf32, #tpu.memory_space<vmem>>, vector<1x640xf32>,
    %c1 = arith.constant 1 : index
    %c0_50 = arith.constant 0 : index
    %66 = vector.load %arg20[%c1, %c0_50] : memref<8x6400xf32, #tpu.memory_space<vmem>>, vector<1x640xf32>
    %c32 = arith.constant 32 : index
    %c128_51 = arith.constant 128 : index
    %67 = vector.load %arg21[%c32, %c128_51] : memref<48x896xf32, #tpu.memory_space<vmem>>, vector<1x640xf32>
    tpu.vector_store %arg21[%c32, %c128_51], %66 {strides = array<i32>} : memref<48x896xf32, #tpu.memory_space<vmem>>, vector<1x640xf32>,
    %c1_52 = arith.constant 1 : index
    %c640_53 = arith.constant 640 : index
    %68 = vector.load %arg20[%c1_52, %c640_53] : memref<8x6400xf32, #tpu.memory_space<vmem>>, vector<1x640xf32>
    %c33 = arith.constant 33 : index
    %c128_54 = arith.constant 128 : index
    %69 = vector.load %arg21[%c33, %c128_54] : memref<48x896xf32, #tpu.memory_space<vmem>>, vector<1x640xf32>
    tpu.vector_store %arg21[%c33, %c128_54], %68 {strides = array<i32>} : memref<48x896xf32, #tpu.memory_space<vmem>>, vector<1x640xf32>,
    %c1_55 = arith.constant 1 : index
    %c1280_56 = arith.constant 1280 : index
    %70 = vector.load %arg20[%c1_55, %c1280_56] : memref<8x6400xf32, #tpu.memory_space<vmem>>, vector<1x640xf32>
    %c34 = arith.constant 34 : index
    %c128_57 = arith.constant 128 : index
    %71 = vector.load %arg21[%c34, %c128_57] : memref<48x896xf32, #tpu.memory_space<vmem>>, vector<1x640xf32>
    tpu.vector_store %arg21[%c34, %c128_57], %70 {strides = array<i32>} : memref<48x896xf32, #tpu.memory_space<vmem>>, vector<1x640xf32>,
    %c1_58 = arith.constant 1 : index
    %c1920_59 = arith.constant 1920 : index
    %72 = vector.load %arg20[%c1_58, %c1920_59] : memref<8x6400xf32, #tpu.memory_space<vmem>>, vector<1x640xf32>
    %c35 = arith.constant 35 : index
    %c128_60 = arith.constant 128 : index
    %73 = vector.load %arg21[%c35, %c128_60] : memref<48x896xf32, #tpu.memory_space<vmem>>, vector<1x640xf32>
    tpu.vector_store %arg21[%c35, %c128_60], %72 {strides = array<i32>} : memref<48x896xf32, #tpu.memory_space<vmem>>, vector<1x640xf32>,
    %c1_61 = arith.constant 1 : index
    %c2560_62 = arith.constant 2560 : index
    %74 = vector.load %arg20[%c1_61, %c2560_62] : memref<8x6400xf32, #tpu.memory_space<vmem>>, vector<1x640xf32>
    %c36 = arith.constant 36 : index
    %c128_63 = arith.constant 128 : index
    %75 = vector.load %arg21[%c36, %c128_63] : memref<48x896xf32, #tpu.memory_space<vmem>>, vector<1x640xf32>
    tpu.vector_store %arg21[%c36, %c128_63], %74 {strides = array<i32>} : memref<48x896xf32, #tpu.memory_space<vmem>>, vector<1x640xf32>,
    %c1_64 = arith.constant 1 : index
    %c3200_65 = arith.constant 3200 : index
    %76 = vector.load %arg20[%c1_64, %c3200_65] : memref<8x6400xf32, #tpu.memory_space<vmem>>, vector<1x640xf32>
    %c37 = arith.constant 37 : index
    %c128_66 = arith.constant 128 : index
    %77 = vector.load %arg21[%c37, %c128_66] : memref<48x896xf32, #tpu.memory_space<vmem>>, vector<1x640xf32>
    tpu.vector_store %arg21[%c37, %c128_66], %76 {strides = array<i32>} : memref<48x896xf32, #tpu.memory_space<vmem>>, vector<1x640xf32>,
    %c1_67 = arith.constant 1 : index
    %c3840_68 = arith.constant 3840 : index
    %78 = vector.load %arg20[%c1_67, %c3840_68] : memref<8x6400xf32, #tpu.memory_space<vmem>>, vector<1x640xf32>
    %c38 = arith.constant 38 : index
    %c128_69 = arith.constant 128 : index
    %79 = vector.load %arg21[%c38, %c128_69] : memref<48x896xf32, #tpu.memory_space<vmem>>, vector<1x640xf32>
    tpu.vector_store %arg21[%c38, %c128_69], %78 {strides = array<i32>} : memref<48x896xf32, #tpu.memory_space<vmem>>, vector<1x640xf32>,
    %c1_70 = arith.constant 1 : index
    %c4480_71 = arith.constant 4480 : index
    %80 = vector.load %arg20[%c1_70, %c4480_71] : memref<8x6400xf32, #tpu.memory_space<vmem>>, vector<1x640xf32>
    %c39 = arith.constant 39 : index
    %c128_72 = arith.constant 128 : index
    %81 = vector.load %arg21[%c39, %c128_72] : memref<48x896xf32, #tpu.memory_space<vmem>>, vector<1x640xf32>
    tpu.vector_store %arg21[%c39, %c128_72], %80 {strides = array<i32>} : memref<48x896xf32, #tpu.memory_space<vmem>>, vector<1x640xf32>,
    %c1_73 = arith.constant 1 : index
    %c5120_74 = arith.constant 5120 : index
    %82 = vector.load %arg20[%c1_73, %c5120_74] : memref<8x6400xf32, #tpu.memory_space<vmem>>, vector<1x640xf32>
    %c40 = arith.constant 40 : index
    %c128_75 = arith.constant 128 : index
    %83 = vector.load %arg21[%c40, %c128_75] : memref<48x896xf32, #tpu.memory_space<vmem>>, vector<1x640xf32>
    tpu.vector_store %arg21[%c40, %c128_75], %82 {strides = array<i32>} : memref<48x896xf32, #tpu.memory_space<vmem>>, vector<1x640xf32>,
    %c1_76 = arith.constant 1 : index
    %c5760_77 = arith.constant 5760 : index
    %84 = vector.load %arg20[%c1_76, %c5760_77] : memref<8x6400xf32, #tpu.memory_space<vmem>>, vector<1x640xf32>
    %c41 = arith.constant 41 : index
    %c128_78 = arith.constant 128 : index
    %85 = vector.load %arg21[%c41, %c128_78] : memref<48x896xf32, #tpu.memory_space<vmem>>, vector<1x640xf32>
    tpu.vector_store %arg21[%c41, %c128_78], %84 {strides = array<i32>} : memref<48x896xf32, #tpu.memory_space<vmem>>, vector<1x640xf32>,
    %c1_i32_79 = arith.constant 1 : i32
    %86 = tpu.memref_slice %arg24[%c1_i32_79] : memref<4x!tpu.dma_semaphore, #tpu.memory_space<semaphore_mem>> -> memref<1x!tpu.dma_semaphore, #tpu.memory_space<semaphore_mem>>
    %87 = tpu.memref_squeeze %86 : memref<1x!tpu.dma_semaphore, #tpu.memory_space<semaphore_mem>> -> memref<!tpu.dma_semaphore, #tpu.memory_space<semaphore_mem>>
    tpu.wait_dma2 semaphore(%87 : memref<!tpu.dma_semaphore, #tpu.memory_space<semaphore_mem>>) src(%arg9 : memref<3x896x384xbf16, #tpu.memory_space<any>>) dst(%arg17 : memref<3x896x384xbf16, #tpu.memory_space<vmem>>)
    %c0_80 = arith.constant 0 : index
    %c0_81 = arith.constant 0 : index
    %88 = vector.load %arg21[%c0_80, %c0_81] : memref<48x896xf32, #tpu.memory_space<vmem>>, vector<48x896xf32>
    %89 = arith.truncf %88 : vector<48x896xf32> to vector<48x896xbf16>
    %cst_82 = arith.constant 0.000000e+00 : f32
    %90 = vector.broadcast %cst_82 : f32 to vector<12x384xf32>
    %cst_83 = arith.constant 0.000000e+00 : f32
    %91 = vector.broadcast %cst_83 : f32 to vector<12x384xf32>
    %c0_84 = arith.constant 0 : index
    %c0_85 = arith.constant 0 : index
    %c0_86 = arith.constant 0 : index
    %92 = vector.load %arg17[%c0_84, %c0_85, %c0_86] : memref<3x896x384xbf16, #tpu.memory_space<vmem>>, vector<1x896x384xbf16>
    %93 = vector.shape_cast %92 : vector<1x896x384xbf16> to vector<896x384xbf16>
    %cst_87 = arith.constant dense<0.000000e+00> : vector<48x384xf32>
    %94 = tpu.matmul %89, %93, %cst_87 {dimension_numbers = #tpu.dot_dimension_numbers<[1], [0], [0], [1], [0, 0, 1, 1], [], []>} : vector<48x896xbf16>, vector<896x384xbf16>, vector<48x384xf32> -> vector<48x384xf32>
    %95 = vector.extract_strided_slice %94 {offsets = [6, 0], sizes = [12, 384], strides = [1, 1]} : vector<48x384xf32> to vector<12x384xf32>
    %96 = arith.addf %90, %95 : vector<12x384xf32>
    %97 = vector.extract_strided_slice %94 {offsets = [30, 0], sizes = [12, 384], strides = [1, 1]} : vector<48x384xf32> to vector<12x384xf32>
    %98 = arith.addf %91, %97 : vector<12x384xf32>
    %c1_88 = arith.constant 1 : index
    %c0_89 = arith.constant 0 : index
    %c0_90 = arith.constant 0 : index
    %99 = vector.load %arg17[%c1_88, %c0_89, %c0_90] : memref<3x896x384xbf16, #tpu.memory_space<vmem>>, vector<1x896x384xbf16>
    %100 = vector.shape_cast %99 : vector<1x896x384xbf16> to vector<896x384xbf16>
    %cst_91 = arith.constant dense<0.000000e+00> : vector<48x384xf32>
    %101 = tpu.matmul %89, %100, %cst_91 {dimension_numbers = #tpu.dot_dimension_numbers<[1], [0], [0], [1], [0, 0, 1, 1], [], []>} : vector<48x896xbf16>, vector<896x384xbf16>, vector<48x384xf32> -> vector<48x384xf32>
    %102 = vector.extract_strided_slice %101 {offsets = [7, 0], sizes = [12, 384], strides = [1, 1]} : vector<48x384xf32> to vector<12x384xf32>
    %103 = arith.addf %96, %102 : vector<12x384xf32>
    %104 = vector.extract_strided_slice %101 {offsets = [31, 0], sizes = [12, 384], strides = [1, 1]} : vector<48x384xf32> to vector<12x384xf32>
    %105 = arith.addf %98, %104 : vector<12x384xf32>
    %c2 = arith.constant 2 : index
    %c0_92 = arith.constant 0 : index
    %c0_93 = arith.constant 0 : index
    %106 = vector.load %arg17[%c2, %c0_92, %c0_93] : memref<3x896x384xbf16, #tpu.memory_space<vmem>>, vector<1x896x384xbf16>
    %107 = vector.shape_cast %106 : vector<1x896x384xbf16> to vector<896x384xbf16>
    %cst_94 = arith.constant dense<0.000000e+00> : vector<48x384xf32>
    %108 = tpu.matmul %89, %107, %cst_94 {dimension_numbers = #tpu.dot_dimension_numbers<[1], [0], [0], [1], [0, 0, 1, 1], [], []>} : vector<48x896xbf16>, vector<896x384xbf16>, vector<48x384xf32> -> vector<48x384xf32>
    %109 = vector.extract_strided_slice %108 {offsets = [8, 0], sizes = [12, 384], strides = [1, 1]} : vector<48x384xf32> to vector<12x384xf32>
    %110 = arith.addf %103, %109 : vector<12x384xf32>
    %111 = vector.extract_strided_slice %108 {offsets = [32, 0], sizes = [12, 384], strides = [1, 1]} : vector<48x384xf32> to vector<12x384xf32>
    %112 = arith.addf %105, %111 : vector<12x384xf32>
    %c0_95 = arith.constant 0 : index
    %c0_96 = arith.constant 0 : index
    %113 = vector.load %arg10[%c0_95, %c0_96] : memref<1x384xf32, #tpu.memory_space<vmem>>, vector<1x384xf32>
    %114 = vector.broadcast %113 : vector<1x384xf32> to vector<12x384xf32>
    %115 = arith.addf %110, %114 : vector<12x384xf32>
    %c0_97 = arith.constant 0 : index
    %c0_98 = arith.constant 0 : index
    %116 = vector.load %arg10[%c0_97, %c0_98] : memref<1x384xf32, #tpu.memory_space<vmem>>, vector<1x384xf32>
    %117 = vector.broadcast %116 : vector<1x384xf32> to vector<12x384xf32>
    %118 = arith.addf %112, %117 : vector<12x384xf32>
    %cst_99 = arith.constant 0.000000e+00 : f32
    %119 = vector.broadcast %cst_99 : f32 to vector<48x640xf32>
    %c0_100 = arith.constant 0 : index
    %c0_101 = arith.constant 0 : index
    %120 = vector.load %arg22[%c0_100, %c0_101] : memref<48x640xf32, #tpu.memory_space<vmem>>, vector<48x640xf32>
    tpu.vector_store %arg22[%c0_100, %c0_101], %119 {strides = array<i32>} : memref<48x640xf32, #tpu.memory_space<vmem>>, vector<48x640xf32>,
    %cst_102 = arith.constant 0.000000e+00 : f32
    %121 = vector.broadcast %cst_102 : f32 to vector<12x384xf32>
    %122 = arith.maximumf %115, %121 : vector<12x384xf32>
    %c8_103 = arith.constant 8 : index
    %c128_104 = arith.constant 128 : index
    %123 = vector.load %arg22[%c8_103, %c128_104] : memref<48x640xf32, #tpu.memory_space<vmem>>, vector<12x384xf32>
    tpu.vector_store %arg22[%c8_103, %c128_104], %122 {strides = array<i32>} : memref<48x640xf32, #tpu.memory_space<vmem>>, vector<12x384xf32>,
    %cst_105 = arith.constant 0.000000e+00 : f32
    %124 = vector.broadcast %cst_105 : f32 to vector<12x384xf32>
    %125 = arith.maximumf %118, %124 : vector<12x384xf32>
    %c32_106 = arith.constant 32 : index
    %c128_107 = arith.constant 128 : index
    %126 = vector.load %arg22[%c32_106, %c128_107] : memref<48x640xf32, #tpu.memory_space<vmem>>, vector<12x384xf32>
    tpu.vector_store %arg22[%c32_106, %c128_107], %125 {strides = array<i32>} : memref<48x640xf32, #tpu.memory_space<vmem>>, vector<12x384xf32>,
    %c2_i32_108 = arith.constant 2 : i32
    %127 = tpu.memref_slice %arg24[%c2_i32_108] : memref<4x!tpu.dma_semaphore, #tpu.memory_space<semaphore_mem>> -> memref<1x!tpu.dma_semaphore, #tpu.memory_space<semaphore_mem>>
    %128 = tpu.memref_squeeze %127 : memref<1x!tpu.dma_semaphore, #tpu.memory_space<semaphore_mem>> -> memref<!tpu.dma_semaphore, #tpu.memory_space<semaphore_mem>>
    tpu.wait_dma2 semaphore(%128 : memref<!tpu.dma_semaphore, #tpu.memory_space<semaphore_mem>>) src(%arg11 : memref<5x640x256xbf16, #tpu.memory_space<any>>) dst(%arg18 : memref<5x640x256xbf16, #tpu.memory_space<vmem>>)
    %c0_109 = arith.constant 0 : index
    %c0_110 = arith.constant 0 : index
    %129 = vector.load %arg22[%c0_109, %c0_110] : memref<48x640xf32, #tpu.memory_space<vmem>>, vector<48x640xf32>
    %130 = arith.truncf %129 : vector<48x640xf32> to vector<48x640xbf16>
    %cst_111 = arith.constant 0.000000e+00 : f32
    %131 = vector.broadcast %cst_111 : f32 to vector<16x256xf32>
    %cst_112 = arith.constant 0.000000e+00 : f32
    %132 = vector.broadcast %cst_112 : f32 to vector<16x256xf32>
    %c0_113 = arith.constant 0 : index
    %c0_114 = arith.constant 0 : index
    %c0_115 = arith.constant 0 : index
    %133 = vector.load %arg18[%c0_113, %c0_114, %c0_115] : memref<5x640x256xbf16, #tpu.memory_space<vmem>>, vector<1x640x256xbf16>
    %134 = vector.shape_cast %133 : vector<1x640x256xbf16> to vector<640x256xbf16>
    %cst_116 = arith.constant dense<0.000000e+00> : vector<48x256xf32>
    %135 = tpu.matmul %130, %134, %cst_116 {dimension_numbers = #tpu.dot_dimension_numbers<[1], [0], [0], [1], [0, 0, 1, 1], [], []>} : vector<48x640xbf16>, vector<640x256xbf16>, vector<48x256xf32> -> vector<48x256xf32>
    %136 = vector.extract_strided_slice %135 {offsets = [4, 0], sizes = [16, 256], strides = [1, 1]} : vector<48x256xf32> to vector<16x256xf32>
    %137 = arith.addf %131, %136 : vector<16x256xf32>
    %138 = vector.extract_strided_slice %135 {offsets = [28, 0], sizes = [16, 256], strides = [1, 1]} : vector<48x256xf32> to vector<16x256xf32>
    %139 = arith.addf %132, %138 : vector<16x256xf32>
    %c1_117 = arith.constant 1 : index
    %c0_118 = arith.constant 0 : index
    %c0_119 = arith.constant 0 : index
    %140 = vector.load %arg18[%c1_117, %c0_118, %c0_119] : memref<5x640x256xbf16, #tpu.memory_space<vmem>>, vector<1x640x256xbf16>
    %141 = vector.shape_cast %140 : vector<1x640x256xbf16> to vector<640x256xbf16>
    %cst_120 = arith.constant dense<0.000000e+00> : vector<48x256xf32>
    %142 = tpu.matmul %130, %141, %cst_120 {dimension_numbers = #tpu.dot_dimension_numbers<[1], [0], [0], [1], [0, 0, 1, 1], [], []>} : vector<48x640xbf16>, vector<640x256xbf16>, vector<48x256xf32> -> vector<48x256xf32>
    %143 = vector.extract_strided_slice %142 {offsets = [5, 0], sizes = [16, 256], strides = [1, 1]} : vector<48x256xf32> to vector<16x256xf32>
    %144 = arith.addf %137, %143 : vector<16x256xf32>
    %145 = vector.extract_strided_slice %142 {offsets = [29, 0], sizes = [16, 256], strides = [1, 1]} : vector<48x256xf32> to vector<16x256xf32>
    %146 = arith.addf %139, %145 : vector<16x256xf32>
    %c2_121 = arith.constant 2 : index
    %c0_122 = arith.constant 0 : index
    %c0_123 = arith.constant 0 : index
    %147 = vector.load %arg18[%c2_121, %c0_122, %c0_123] : memref<5x640x256xbf16, #tpu.memory_space<vmem>>, vector<1x640x256xbf16>
    %148 = vector.shape_cast %147 : vector<1x640x256xbf16> to vector<640x256xbf16>
    %cst_124 = arith.constant dense<0.000000e+00> : vector<48x256xf32>
    %149 = tpu.matmul %130, %148, %cst_124 {dimension_numbers = #tpu.dot_dimension_numbers<[1], [0], [0], [1], [0, 0, 1, 1], [], []>} : vector<48x640xbf16>, vector<640x256xbf16>, vector<48x256xf32> -> vector<48x256xf32>
    %150 = vector.extract_strided_slice %149 {offsets = [6, 0], sizes = [16, 256], strides = [1, 1]} : vector<48x256xf32> to vector<16x256xf32>
    %151 = arith.addf %144, %150 : vector<16x256xf32>
    %152 = vector.extract_strided_slice %149 {offsets = [30, 0], sizes = [16, 256], strides = [1, 1]} : vector<48x256xf32> to vector<16x256xf32>
    %153 = arith.addf %146, %152 : vector<16x256xf32>
    %c3 = arith.constant 3 : index
    %c0_125 = arith.constant 0 : index
    %c0_126 = arith.constant 0 : index
    %154 = vector.load %arg18[%c3, %c0_125, %c0_126] : memref<5x640x256xbf16, #tpu.memory_space<vmem>>, vector<1x640x256xbf16>
    %155 = vector.shape_cast %154 : vector<1x640x256xbf16> to vector<640x256xbf16>
    %cst_127 = arith.constant dense<0.000000e+00> : vector<48x256xf32>
    %156 = tpu.matmul %130, %155, %cst_127 {dimension_numbers = #tpu.dot_dimension_numbers<[1], [0], [0], [1], [0, 0, 1, 1], [], []>} : vector<48x640xbf16>, vector<640x256xbf16>, vector<48x256xf32> -> vector<48x256xf32>
    %157 = vector.extract_strided_slice %156 {offsets = [7, 0], sizes = [16, 256], strides = [1, 1]} : vector<48x256xf32> to vector<16x256xf32>
    %158 = arith.addf %151, %157 : vector<16x256xf32>
    %159 = vector.extract_strided_slice %156 {offsets = [31, 0], sizes = [16, 256], strides = [1, 1]} : vector<48x256xf32> to vector<16x256xf32>
    %160 = arith.addf %153, %159 : vector<16x256xf32>
    %c4 = arith.constant 4 : index
    %c0_128 = arith.constant 0 : index
    %c0_129 = arith.constant 0 : index
    %161 = vector.load %arg18[%c4, %c0_128, %c0_129] : memref<5x640x256xbf16, #tpu.memory_space<vmem>>, vector<1x640x256xbf16>
    %162 = vector.shape_cast %161 : vector<1x640x256xbf16> to vector<640x256xbf16>
    %cst_130 = arith.constant dense<0.000000e+00> : vector<48x256xf32>
    %163 = tpu.matmul %130, %162, %cst_130 {dimension_numbers = #tpu.dot_dimension_numbers<[1], [0], [0], [1], [0, 0, 1, 1], [], []>} : vector<48x640xbf16>, vector<640x256xbf16>, vector<48x256xf32> -> vector<48x256xf32>
    %164 = vector.extract_strided_slice %163 {offsets = [8, 0], sizes = [16, 256], strides = [1, 1]} : vector<48x256xf32> to vector<16x256xf32>
    %165 = arith.addf %158, %164 : vector<16x256xf32>
    %166 = vector.extract_strided_slice %163 {offsets = [32, 0], sizes = [16, 256], strides = [1, 1]} : vector<48x256xf32> to vector<16x256xf32>
    %167 = arith.addf %160, %166 : vector<16x256xf32>
    %c0_131 = arith.constant 0 : index
    %c0_132 = arith.constant 0 : index
    %168 = vector.load %arg12[%c0_131, %c0_132] : memref<1x256xf32, #tpu.memory_space<vmem>>, vector<1x256xf32>
    %169 = vector.broadcast %168 : vector<1x256xf32> to vector<16x256xf32>
    %170 = arith.addf %165, %169 : vector<16x256xf32>
    %c0_133 = arith.constant 0 : index
    %c0_134 = arith.constant 0 : index
    %171 = vector.load %arg12[%c0_133, %c0_134] : memref<1x256xf32, #tpu.memory_space<vmem>>, vector<1x256xf32>
    %172 = vector.broadcast %171 : vector<1x256xf32> to vector<16x256xf32>
    %173 = arith.addf %167, %172 : vector<16x256xf32>
    %cst_135 = arith.constant 0.000000e+00 : f32
    %174 = vector.broadcast %cst_135 : f32 to vector<64x448xf32>
    %c0_136 = arith.constant 0 : index
    %c0_137 = arith.constant 0 : index
    %175 = vector.load %arg23[%c0_136, %c0_137] : memref<64x448xf32, #tpu.memory_space<vmem>>, vector<64x448xf32>
    tpu.vector_store %arg23[%c0_136, %c0_137], %174 {strides = array<i32>} : memref<64x448xf32, #tpu.memory_space<vmem>>, vector<64x448xf32>,
    %cst_138 = arith.constant 0.000000e+00 : f32
    %176 = vector.broadcast %cst_138 : f32 to vector<16x256xf32>
    %177 = arith.maximumf %170, %176 : vector<16x256xf32>
    %c8_139 = arith.constant 8 : index
    %c128_140 = arith.constant 128 : index
    %178 = vector.load %arg23[%c8_139, %c128_140] : memref<64x448xf32, #tpu.memory_space<vmem>>, vector<16x256xf32>
    tpu.vector_store %arg23[%c8_139, %c128_140], %177 {strides = array<i32>} : memref<64x448xf32, #tpu.memory_space<vmem>>, vector<16x256xf32>,
    %cst_141 = arith.constant 0.000000e+00 : f32
    %179 = vector.broadcast %cst_141 : f32 to vector<16x256xf32>
    %180 = arith.maximumf %173, %179 : vector<16x256xf32>
    %c40_142 = arith.constant 40 : index
    %c128_143 = arith.constant 128 : index
    %181 = vector.load %arg23[%c40_142, %c128_143] : memref<64x448xf32, #tpu.memory_space<vmem>>, vector<16x256xf32>
    tpu.vector_store %arg23[%c40_142, %c128_143], %180 {strides = array<i32>} : memref<64x448xf32, #tpu.memory_space<vmem>>, vector<16x256xf32>,
    %c3_i32_144 = arith.constant 3 : i32
    %182 = tpu.memref_slice %arg24[%c3_i32_144] : memref<4x!tpu.dma_semaphore, #tpu.memory_space<semaphore_mem>> -> memref<1x!tpu.dma_semaphore, #tpu.memory_space<semaphore_mem>>
    %183 = tpu.memref_squeeze %182 : memref<1x!tpu.dma_semaphore, #tpu.memory_space<semaphore_mem>> -> memref<!tpu.dma_semaphore, #tpu.memory_space<semaphore_mem>>
    tpu.wait_dma2 semaphore(%183 : memref<!tpu.dma_semaphore, #tpu.memory_space<semaphore_mem>>) src(%arg13 : memref<5x448x128xbf16, #tpu.memory_space<any>>) dst(%arg19 : memref<5x448x128xbf16, #tpu.memory_space<vmem>>)
    %c0_145 = arith.constant 0 : index
    %c0_146 = arith.constant 0 : index
    %184 = vector.load %arg23[%c0_145, %c0_146] : memref<64x448xf32, #tpu.memory_space<vmem>>, vector<64x448xf32>
    %185 = arith.truncf %184 : vector<64x448xf32> to vector<64x448xbf16>
    %cst_147 = arith.constant 0.000000e+00 : f32
    %186 = vector.broadcast %cst_147 : f32 to vector<20x128xf32>
    %cst_148 = arith.constant 0.000000e+00 : f32
    %187 = vector.broadcast %cst_148 : f32 to vector<20x128xf32>
    %c0_149 = arith.constant 0 : index
    %c0_150 = arith.constant 0 : index
    %c0_151 = arith.constant 0 : index
    %188 = vector.load %arg19[%c0_149, %c0_150, %c0_151] : memref<5x448x128xbf16, #tpu.memory_space<vmem>>, vector<1x448x128xbf16>
    %189 = vector.shape_cast %188 : vector<1x448x128xbf16> to vector<448x128xbf16>
    %cst_152 = arith.constant dense<0.000000e+00> : vector<64x128xf32>
    %190 = tpu.matmul %185, %189, %cst_152 {dimension_numbers = #tpu.dot_dimension_numbers<[1], [0], [0], [1], [0, 0, 1, 1], [], []>} : vector<64x448xbf16>, vector<448x128xbf16>, vector<64x128xf32> -> vector<64x128xf32>
    %191 = vector.extract_strided_slice %190 {offsets = [4, 0], sizes = [20, 128], strides = [1, 1]} : vector<64x128xf32> to vector<20x128xf32>
    %192 = arith.addf %186, %191 : vector<20x128xf32>
    %193 = vector.extract_strided_slice %190 {offsets = [36, 0], sizes = [20, 128], strides = [1, 1]} : vector<64x128xf32> to vector<20x128xf32>
    %194 = arith.addf %187, %193 : vector<20x128xf32>
    %c1_153 = arith.constant 1 : index
    %c0_154 = arith.constant 0 : index
    %c0_155 = arith.constant 0 : index
    %195 = vector.load %arg19[%c1_153, %c0_154, %c0_155] : memref<5x448x128xbf16, #tpu.memory_space<vmem>>, vector<1x448x128xbf16>
    %196 = vector.shape_cast %195 : vector<1x448x128xbf16> to vector<448x128xbf16>
    %cst_156 = arith.constant dense<0.000000e+00> : vector<64x128xf32>
    %197 = tpu.matmul %185, %196, %cst_156 {dimension_numbers = #tpu.dot_dimension_numbers<[1], [0], [0], [1], [0, 0, 1, 1], [], []>} : vector<64x448xbf16>, vector<448x128xbf16>, vector<64x128xf32> -> vector<64x128xf32>
    %198 = vector.extract_strided_slice %197 {offsets = [5, 0], sizes = [20, 128], strides = [1, 1]} : vector<64x128xf32> to vector<20x128xf32>
    %199 = arith.addf %192, %198 : vector<20x128xf32>
    %200 = vector.extract_strided_slice %197 {offsets = [37, 0], sizes = [20, 128], strides = [1, 1]} : vector<64x128xf32> to vector<20x128xf32>
    %201 = arith.addf %194, %200 : vector<20x128xf32>
    %c2_157 = arith.constant 2 : index
    %c0_158 = arith.constant 0 : index
    %c0_159 = arith.constant 0 : index
    %202 = vector.load %arg19[%c2_157, %c0_158, %c0_159] : memref<5x448x128xbf16, #tpu.memory_space<vmem>>, vector<1x448x128xbf16>
    %203 = vector.shape_cast %202 : vector<1x448x128xbf16> to vector<448x128xbf16>
    %cst_160 = arith.constant dense<0.000000e+00> : vector<64x128xf32>
    %204 = tpu.matmul %185, %203, %cst_160 {dimension_numbers = #tpu.dot_dimension_numbers<[1], [0], [0], [1], [0, 0, 1, 1], [], []>} : vector<64x448xbf16>, vector<448x128xbf16>, vector<64x128xf32> -> vector<64x128xf32>
    %205 = vector.extract_strided_slice %204 {offsets = [6, 0], sizes = [20, 128], strides = [1, 1]} : vector<64x128xf32> to vector<20x128xf32>
    %206 = arith.addf %199, %205 : vector<20x128xf32>
    %207 = vector.extract_strided_slice %204 {offsets = [38, 0], sizes = [20, 128], strides = [1, 1]} : vector<64x128xf32> to vector<20x128xf32>
    %208 = arith.addf %201, %207 : vector<20x128xf32>
    %c3_161 = arith.constant 3 : index
    %c0_162 = arith.constant 0 : index
    %c0_163 = arith.constant 0 : index
    %209 = vector.load %arg19[%c3_161, %c0_162, %c0_163] : memref<5x448x128xbf16, #tpu.memory_space<vmem>>, vector<1x448x128xbf16>
    %210 = vector.shape_cast %209 : vector<1x448x128xbf16> to vector<448x128xbf16>
    %cst_164 = arith.constant dense<0.000000e+00> : vector<64x128xf32>
    %211 = tpu.matmul %185, %210, %cst_164 {dimension_numbers = #tpu.dot_dimension_numbers<[1], [0], [0], [1], [0, 0, 1, 1], [], []>} : vector<64x448xbf16>, vector<448x128xbf16>, vector<64x128xf32> -> vector<64x128xf32>
    %212 = vector.extract_strided_slice %211 {offsets = [7, 0], sizes = [20, 128], strides = [1, 1]} : vector<64x128xf32> to vector<20x128xf32>
    %213 = arith.addf %206, %212 : vector<20x128xf32>
    %214 = vector.extract_strided_slice %211 {offsets = [39, 0], sizes = [20, 128], strides = [1, 1]} : vector<64x128xf32> to vector<20x128xf32>
    %215 = arith.addf %208, %214 : vector<20x128xf32>
    %c4_165 = arith.constant 4 : index
    %c0_166 = arith.constant 0 : index
    %c0_167 = arith.constant 0 : index
    %216 = vector.load %arg19[%c4_165, %c0_166, %c0_167] : memref<5x448x128xbf16, #tpu.memory_space<vmem>>, vector<1x448x128xbf16>
    %217 = vector.shape_cast %216 : vector<1x448x128xbf16> to vector<448x128xbf16>
    %cst_168 = arith.constant dense<0.000000e+00> : vector<64x128xf32>
    %218 = tpu.matmul %185, %217, %cst_168 {dimension_numbers = #tpu.dot_dimension_numbers<[1], [0], [0], [1], [0, 0, 1, 1], [], []>} : vector<64x448xbf16>, vector<448x128xbf16>, vector<64x128xf32> -> vector<64x128xf32>
    %219 = vector.extract_strided_slice %218 {offsets = [8, 0], sizes = [20, 128], strides = [1, 1]} : vector<64x128xf32> to vector<20x128xf32>
    %220 = arith.addf %213, %219 : vector<20x128xf32>
    %221 = vector.extract_strided_slice %218 {offsets = [40, 0], sizes = [20, 128], strides = [1, 1]} : vector<64x128xf32> to vector<20x128xf32>
    %222 = arith.addf %215, %221 : vector<20x128xf32>
    %c0_169 = arith.constant 0 : index
    %c0_170 = arith.constant 0 : index
    %223 = vector.load %arg14[%c0_169, %c0_170] : memref<1x128xf32, #tpu.memory_space<vmem>>, vector<1x128xf32>
    %224 = vector.broadcast %223 : vector<1x128xf32> to vector<20x128xf32>
    %225 = arith.addf %220, %224 : vector<20x128xf32>
    %c0_171 = arith.constant 0 : index
    %c0_172 = arith.constant 0 : index
    %226 = vector.load %arg14[%c0_171, %c0_172] : memref<1x128xf32, #tpu.memory_space<vmem>>, vector<1x128xf32>
    %227 = vector.broadcast %226 : vector<1x128xf32> to vector<20x128xf32>
    %228 = arith.addf %222, %227 : vector<20x128xf32>
    %229 = arith.negf %225 : vector<20x128xf32>
    %230 = math.exp %229 : vector<20x128xf32>
    %cst_173 = arith.constant 1.000000e+00 : f32
    %231 = vector.broadcast %cst_173 : f32 to vector<20x128xf32>
    %232 = arith.addf %231, %230 : vector<20x128xf32>
    %233 = arith.divf %231, %232 : vector<20x128xf32>
    %c0_174 = arith.constant 0 : index
    %c0_175 = arith.constant 0 : index
    %c0_176 = arith.constant 0 : index
    %234 = vector.load %arg15[%c0_174, %c0_175, %c0_176] : memref<2x20x128xf32, #tpu.memory_space<vmem>>, vector<1x20x128xf32>
    %235 = vector.shape_cast %234 : vector<1x20x128xf32> to vector<20x128xf32>
    %236 = vector.shape_cast %233 : vector<20x128xf32> to vector<1x20x128xf32>
    tpu.vector_store %arg15[%c0_174, %c0_175, %c0_176], %236 {strides = array<i32>} : memref<2x20x128xf32, #tpu.memory_space<vmem>>, vector<1x20x128xf32>,
    %237 = arith.negf %228 : vector<20x128xf32>
    %238 = math.exp %237 : vector<20x128xf32>
    %cst_177 = arith.constant 1.000000e+00 : f32
    %239 = vector.broadcast %cst_177 : f32 to vector<20x128xf32>
    %240 = arith.addf %239, %238 : vector<20x128xf32>
    %241 = arith.divf %239, %240 : vector<20x128xf32>
    %c1_178 = arith.constant 1 : index
    %c0_179 = arith.constant 0 : index
    %c0_180 = arith.constant 0 : index
    %242 = vector.load %arg15[%c1_178, %c0_179, %c0_180] : memref<2x20x128xf32, #tpu.memory_space<vmem>>, vector<1x20x128xf32>
    %243 = vector.shape_cast %242 : vector<1x20x128xf32> to vector<20x128xf32>
    %244 = vector.shape_cast %241 : vector<20x128xf32> to vector<1x20x128xf32>
    tpu.vector_store %arg15[%c1_178, %c0_179, %c0_180], %244 {strides = array<i32>} : memref<2x20x128xf32, #tpu.memory_space<vmem>>, vector<1x20x128xf32>,
    return
  }
}

</mosaic_0001>

<bundles_post_ra>
// kernel: decoder_forward.1
= control target key start
LH: loop header
LB: loop body
LE: loop exit
PB: predicated region body
PF: predicated region fallthrough
CT: control target
= control target key end

     0   :  { %20 = vsyncpa [#allocation12], 0  ;;  %s11475_s0 = inlined_call_operand.vmem [shape: f32[8,64], index: 0, kind: input, shape index: {}]   ;;  %s11476_s1 = inlined_call_operand.hbm [shape: bf16[64,128], index: 1, kind: input, shape index: {}]   ;;  %s11477_s2 = inlined_call_operand.hbm [shape: f32[1,128], index: 2, kind: input, shape index: {}]   ;;  %s11478_s3 = inlined_call_operand.hbm [shape: bf16[128,256], index: 3, kind: input, shape index: {}]   ;;  %s11479_s4 = inlined_call_operand.hbm [shape: f32[1,256], index: 4, kind: input, shape index: {}]   ;;  %s11480_s5 = inlined_call_operand.hbm [shape: bf16[256,256], index: 5, kind: input, shape index: {}]   ;;  %s11481_s6 = inlined_call_operand.hbm [shape: f32[1,256], index: 6, kind: input, shape index: {}]   ;;  %s11482_s7 = inlined_call_operand.hbm [shape: bf16[256,6400], index: 7, kind: input, shape index: {}]   ;;  %s11483_s8 = inlined_call_operand.hbm [shape: f32[1,6400], index: 8, kind: input, shape index: {}]   ;;  %s11484_s9 = inlined_call_operand.hbm [shape: bf16[3,896,384], index: 9, kind: input, shape index: {}]   ;;  %s11485_s10 = inlined_call_operand.hbm [shape: f32[1,384], index: 10, kind: input, shape index: {}]   ;;  %s11486_s11 = inlined_call_operand.hbm [shape: bf16[5,640,256], index: 11, kind: input, shape index: {}]   ;;  %s11487_s12 = inlined_call_operand.hbm [shape: f32[1,256], index: 12, kind: input, shape index: {}]   ;;  %s11488_s13 = inlined_call_operand.hbm [shape: bf16[5,448,128], index: 13, kind: input, shape index: {}]   ;;  %s11489_s14 = inlined_call_operand.hbm [shape: f32[1,128], index: 14, kind: input, shape index: {}]   ;;  %s11490_s15 = inlined_call_operand.vmem [shape: f32[2,20,128], index: 15, kind: output, shape index: {}]  }
   0x1   :  { %21 = vsyncpa [#allocation14], 0 }
   0x2   :  { %22 = vsyncpa [#allocation17], 0 }
   0x3   :  { %23 = vsyncpa [#allocation20], 0 }
   0x4   :  { %24 = vsyncpa [#allocation23], 0 }
   0x5   :  { %25 = vsyncpa [#allocation26], 0  ;;  %s9714_s18 = smov [#allocation13]   ;;  %s9715_s20 = smov [#allocation16]  }
   0x6   :  { %s46_s19 = sshll.u32 %s9714_s18, 4  ;;  %s68_s21 = sshll.u32 %s9715_s20, 4  ;;  %s47_s19 = int_to_ptr.vmem [resolvable:$true] %s46_s19  ;;  %s69_s21 = int_to_ptr.vmem [resolvable:$true] %s68_s21 }
   0x7   :  { %s9452_s24 = scalar_lea.hbm %s11477_s2, 16 }
   0x8   :  { %p9453_p0 = scmp.ne.s32.totalorder %s11477_s2, %s9452_s24  ;;  %p9456_p1 = scmp.lt.u32.totalorder %s9452_s24, %s11477_s2 }
   0xa   :  { %p9458_p2 = pnand %p9456_p1, %p9453_p0 }
   0xc   :  { %9461 = shalt.err (!%p9458_p2)
}
   0xd   :  { %s9462_s29 = scalar_lea.vmem %s47_s19, 16  ;;  %s9466_s30 = scalar_lea.vmem %s47_s19, 32 }
   0xe   :  { %p9463_p3 = scmp.ne.s32.totalorder %s47_s19, %s9462_s29  ;;  %p9467_p4 = scmp.lt.s32.totalorder %s47_s19, %s47_s19 }
   0xf   :  { %p9468_p5 = scmp.lt.s32.totalorder %s9466_s30, %s9462_s29 }
  0x11   :  { %p9469_p6 = por %p9468_p5, %p9467_p4 }
  0x13   :  { %p9470_p7 = pnand %p9469_p6, %p9463_p3 }
  0x15   :  { %9473 = shalt.err (!%p9470_p7)
}
  0x16   :  { %49 = dma.hbm_to_vmem [thread:$0]  %s11477_s2, 16, %s47_s19, [#allocation14]  }
  0x17   :  { %s9474_s22 = scalar_lea.hbm %s11479_s4, 32 }
  0x18   :  { %p9475_p8 = scmp.ne.s32.totalorder %s11479_s4, %s9474_s22  ;;  %p9478_p9 = scmp.lt.u32.totalorder %s9474_s22, %s11479_s4 }
  0x1a   :  { %p9480_p10 = pnand %p9478_p9, %p9475_p8 }
  0x1c   :  { %9483 = shalt.err (!%p9480_p10)
}
  0x1d   :  { %s9484_s27 = scalar_lea.vmem %s69_s21, 32  ;;  %p9489_p12 = scmp.lt.s32.totalorder %s69_s21, %s69_s21 }
  0x1e   :  { %p9485_p11 = scmp.ne.s32.totalorder %s69_s21, %s9484_s27  ;;  %p9490_p13 = scmp.lt.s32.totalorder %s9484_s27, %s9484_s27 }
  0x20   :  { %p9491_p0 = por %p9490_p13, %p9489_p12 }
  0x22   :  { %p9492_p1 = pnand %p9491_p0, %p9485_p11 }
  0x24   :  { %9495 = shalt.err (!%p9492_p1)
}
  0x25   :  { %71 = dma.hbm_to_vmem [thread:$0]  %s11479_s4, 32, %s69_s21, [#allocation17]  }
  0x26   :  { %s9716_s28 = smov [#allocation19]   ;;  %s9717_s30 = smov [#allocation22]  }
  0x27   :  { %s90_s29 = sshll.u32 %s9716_s28, 4  ;;  %s110_s16 = sshll.u32 %s9717_s30, 4  ;;  %s91_s29 = int_to_ptr.vmem [resolvable:$true] %s90_s29  ;;  %s111_s16 = int_to_ptr.vmem [resolvable:$true] %s110_s16 }
  0x28   :  { %s9496_s20 = scalar_lea.hbm %s11481_s6, 32 }
  0x29   :  { %p9497_p2 = scmp.ne.s32.totalorder %s11481_s6, %s9496_s20  ;;  %p9500_p3 = scmp.lt.u32.totalorder %s9496_s20, %s11481_s6 }
  0x2b   :  { %p9502_p4 = pnand %p9500_p3, %p9497_p2 }
  0x2d   :  { %9505 = shalt.err (!%p9502_p4)
}
  0x2e   :  { %s9506_s4 = scalar_lea.vmem %s91_s29, 32  ;;  %p9511_p6 = scmp.lt.s32.totalorder %s91_s29, %s91_s29 }
  0x2f   :  { %p9507_p5 = scmp.ne.s32.totalorder %s91_s29, %s9506_s4  ;;  %p9512_p7 = scmp.lt.s32.totalorder %s9506_s4, %s9506_s4 }
  0x31   :  { %p9513_p8 = por %p9512_p7, %p9511_p6 }
  0x33   :  { %p9514_p9 = pnand %p9513_p8, %p9507_p5 }
  0x35   :  { %9517 = shalt.err (!%p9514_p9)
}
  0x36   :  { %93 = dma.hbm_to_vmem [thread:$0]  %s11481_s6, 32, %s91_s29, [#allocation20]  }
  0x37   :  { %s9518_s19 = scalar_lea.hbm %s11485_s10, 48 }
  0x38   :  { %p9519_p10 = scmp.ne.s32.totalorder %s11485_s10, %s9518_s19  ;;  %p9522_p11 = scmp.lt.u32.totalorder %s9518_s19, %s11485_s10 }
  0x3a   :  { %p9524_p12 = pnand %p9522_p11, %p9519_p10 }
  0x3c   :  { %9527 = shalt.err (!%p9524_p12)
}
  0x3d   :  { %s9528_s20 = scalar_lea.vmem %s111_s16, 48  ;;  %s9532_s22 = scalar_lea.vmem %s111_s16, 64 }
  0x3e   :  { %p9529_p13 = scmp.ne.s32.totalorder %s111_s16, %s9528_s20  ;;  %p9533_p0 = scmp.lt.s32.totalorder %s111_s16, %s111_s16 }
  0x3f   :  { %p9534_p1 = scmp.lt.s32.totalorder %s9532_s22, %s9528_s20 }
  0x41   :  { %p9535_p2 = por %p9534_p1, %p9533_p0 }
  0x43   :  { %p9536_p3 = pnand %p9535_p2, %p9529_p13 }
  0x45   :  { %9539 = shalt.err (!%p9536_p3)
}
  0x46   :  { %113 = dma.hbm_to_vmem [thread:$0]  %s11485_s10, 48, %s111_s16, [#allocation23]  }
  0x47   :  { %s9718_s23 = smov [#allocation11]   ;;  %s9540_s21 = scalar_lea.hbm %s11476_s1, 512 }
  0x48   :  { %s33_s24 = sshll.u32 %s9718_s23, 4  ;;  %p9541_p4 = scmp.ne.s32.totalorder %s11476_s1, %s9540_s21  ;;  %s34_s24 = int_to_ptr.vmem [resolvable:$true] %s33_s24 }
  0x49   :  { %p9544_p5 = scmp.lt.u32.totalorder %s9540_s21, %s11476_s1 }
  0x4b   :  { %p9546_p6 = pnand %p9544_p5, %p9541_p4 }
  0x4d   :  { %9549 = shalt.err (!%p9546_p6)
}
  0x4e   :  { %s9550_s28 = scalar_lea.vmem %s34_s24, 512  ;;  %p9555_p8 = scmp.lt.s32.totalorder %s34_s24, %s34_s24 }
  0x4f   :  { %p9551_p7 = scmp.ne.s32.totalorder %s34_s24, %s9550_s28  ;;  %p9556_p9 = scmp.lt.s32.totalorder %s9550_s28, %s9550_s28 }
  0x51   :  { %p9557_p10 = por %p9556_p9, %p9555_p8 }
  0x53   :  { %p9558_p11 = pnand %p9557_p10, %p9551_p7 }
  0x55   :  { %9561 = shalt.err (!%p9558_p11)
}
  0x56   :  { %s9719_s10 = smov 64   ;;  %s9720_s16 = smov 4  }
  0x57   :  { %39 = dma.hbm_to_vmem [thread:$0]  %s11476_s1, 512, %s34_s24, [#allocation12], %s9719_s10, %s9719_s10, %s9720_s16  }
  0x58   :  { %s9721_s18 = smov [#allocation15]   ;;  %s9562_s29 = scalar_lea.hbm %s11478_s3, 2048 }
  0x59   :  { %s55_s20 = sshll.u32 %s9721_s18, 4  ;;  %p9563_p12 = scmp.ne.s32.totalorder %s11478_s3, %s9562_s29  ;;  %s56_s20 = int_to_ptr.vmem [resolvable:$true] %s55_s20 }
  0x5a   :  { %p9566_p13 = scmp.lt.u32.totalorder %s9562_s29, %s11478_s3 }
  0x5c   :  { %p9568_p0 = pnand %p9566_p13, %p9563_p12 }
  0x5e   :  { %9571 = shalt.err (!%p9568_p0)
}
  0x5f   :  { %s9572_s26 = scalar_lea.vmem %s56_s20, 2048  ;;  %p9577_p2 = scmp.lt.s32.totalorder %s56_s20, %s56_s20 }
  0x60   :  { %p9573_p1 = scmp.ne.s32.totalorder %s56_s20, %s9572_s26  ;;  %p9578_p3 = scmp.lt.s32.totalorder %s9572_s26, %s9572_s26 }
  0x62   :  { %p9579_p4 = por %p9578_p3, %p9577_p2 }
  0x64   :  { %p9580_p5 = pnand %p9579_p4, %p9573_p1 }
  0x66   :  { %9583 = shalt.err (!%p9580_p5)
}
  0x67   :  { %s9722_s1 = smov 128   ;;  %s9723_s24 = smov 8  }
  0x68   :  { %61 = dma.hbm_to_vmem [thread:$0]  %s11478_s3, 2048, %s56_s20, [#allocation14], %s9722_s1, %s9722_s1, %s9723_s24  }
  0x69   :  { %s9724_s19 = smov [#allocation18]   ;;  %s9725_s30 = smov [#allocation21]  }
  0x6a   :  { %s77_s28 = sshll.u32 %s9724_s19, 4  ;;  %s100_s17 = sshll.u32 %s9725_s30, 4  ;;  %s78_s28 = int_to_ptr.vmem [resolvable:$true] %s77_s28  ;;  %s101_s17 = int_to_ptr.vmem [resolvable:$true] %s100_s17 }
  0x6b   :  { %s9584_s6 = scalar_lea.hbm %s11480_s5, 4096 }
  0x6c   :  { %p9585_p6 = scmp.ne.s32.totalorder %s11480_s5, %s9584_s6  ;;  %p9588_p7 = scmp.lt.u32.totalorder %s9584_s6, %s11480_s5 }
  0x6e   :  { %p9590_p8 = pnand %p9588_p7, %p9585_p6 }
  0x70   :  { %9593 = shalt.err (!%p9590_p8)
}
  0x71   :  { %s9594_s3 = scalar_lea.vmem %s78_s28, 4096  ;;  %p9599_p10 = scmp.lt.s32.totalorder %s78_s28, %s78_s28 }
  0x72   :  { %p9595_p9 = scmp.ne.s32.totalorder %s78_s28, %s9594_s3  ;;  %p9600_p11 = scmp.lt.s32.totalorder %s9594_s3, %s9594_s3 }
  0x74   :  { %p9601_p12 = por %p9600_p11, %p9599_p10 }
  0x76   :  { %p9602_p13 = pnand %p9601_p12, %p9595_p9 }
  0x78   :  { %9605 = shalt.err (!%p9602_p13)
}
  0x79   :  { %83 = dma.hbm_to_vmem [thread:$0]  %s11480_s5, 4096, %s78_s28, [#allocation17], %s9722_s1, %s9722_s1, %s9723_s24  }
  0x7a   :  { %s9606_s2 = scalar_lea.hbm %s11483_s8, 800 }
  0x7b   :  { %p9607_p0 = scmp.ne.s32.totalorder %s11483_s8, %s9606_s2  ;;  %p9610_p1 = scmp.lt.u32.totalorder %s9606_s2, %s11483_s8 }
  0x7d   :  { %p9612_p2 = pnand %p9610_p1, %p9607_p0 }
  0x7f   :  { %9615 = shalt.err (!%p9612_p2)
}
  0x80   :  { %s9616_s6 = scalar_lea.vmem %s101_s17, 800  ;;  %p9621_p4 = scmp.lt.s32.totalorder %s101_s17, %s101_s17 }
  0x81   :  { %p9617_p3 = scmp.ne.s32.totalorder %s101_s17, %s9616_s6  ;;  %p9622_p5 = scmp.lt.s32.totalorder %s9616_s6, %s9616_s6 }
  0x83   :  { %p9623_p6 = por %p9622_p5, %p9621_p4 }
  0x85   :  { %p9624_p7 = pnand %p9623_p6, %p9617_p3 }
  0x87   :  { %9627 = shalt.err (!%p9624_p7)
}
  0x88   :  { %103 = dma.hbm_to_vmem [thread:$0]  %s11483_s8, 800, %s101_s17, [#allocation20]  }
  0x89   :  { %s9726_s28 = smov [#allocation24]   ;;  %s9727_s23 = smov [#allocation25]  }
  0x8a   :  { %s120_s29 = sshll.u32 %s9726_s28, 4  ;;  %s130_s25 = sshll.u32 %s9727_s23, 4  ;;  %s121_s29 = int_to_ptr.vmem [resolvable:$true] %s120_s29  ;;  %s131_s25 = int_to_ptr.vmem [resolvable:$true] %s130_s25 }
  0x8b   :  { %s9628_s20 = scalar_lea.hbm %s11487_s12, 32 }
  0x8c   :  { %p9629_p8 = scmp.ne.s32.totalorder %s11487_s12, %s9628_s20  ;;  %p9632_p9 = scmp.lt.u32.totalorder %s9628_s20, %s11487_s12 }
  0x8e   :  { %p9634_p10 = pnand %p9632_p9, %p9629_p8 }
  0x90   :  { %9637 = shalt.err (!%p9634_p10)
}
  0x91   :  { %s9638_s8 = scalar_lea.vmem %s121_s29, 32  ;;  %p9643_p12 = scmp.lt.s32.totalorder %s121_s29, %s121_s29 }
  0x92   :  { %p9639_p11 = scmp.ne.s32.totalorder %s121_s29, %s9638_s8  ;;  %p9644_p13 = scmp.lt.s32.totalorder %s9638_s8, %s9638_s8 }
  0x94   :  { %p9645_p0 = por %p9644_p13, %p9643_p12 }
  0x96   :  { %p9646_p1 = pnand %p9645_p0, %p9639_p11 }
  0x98   :  { %9649 = shalt.err (!%p9646_p1)
}
  0x99   :  { %123 = dma.hbm_to_vmem [thread:$0]  %s11487_s12, 32, %s121_s29, [#allocation23]  }
  0x9a   :  { %s9650_s22 = scalar_lea.hbm %s11489_s14, 16 }
  0x9b   :  { %p9651_p2 = scmp.ne.s32.totalorder %s11489_s14, %s9650_s22  ;;  %p9654_p3 = scmp.lt.u32.totalorder %s9650_s22, %s11489_s14 }
  0x9d   :  { %p9656_p4 = pnand %p9654_p3, %p9651_p2 }
  0x9f   :  { %9659 = shalt.err (!%p9656_p4)
}
  0xa0   :  { %s9660_s23 = scalar_lea.vmem %s131_s25, 16  ;;  %s9664_s4 = scalar_lea.vmem %s131_s25, 32 }
  0xa1   :  { %p9661_p5 = scmp.ne.s32.totalorder %s131_s25, %s9660_s23  ;;  %p9665_p6 = scmp.lt.s32.totalorder %s131_s25, %s131_s25 }
  0xa2   :  { %p9666_p7 = scmp.lt.s32.totalorder %s9664_s4, %s9660_s23 }
  0xa4   :  { %p9667_p8 = por %p9666_p7, %p9665_p6 }
  0xa6   :  { %p9668_p9 = pnand %p9667_p8, %p9661_p5 }
  0xa8   :  { %9671 = shalt.err (!%p9668_p9)
}
  0xa9   :  { %133 = dma.hbm_to_vmem [thread:$0]  %s11489_s14, 16, %s131_s25, [#allocation26]  }
  0xaa   :  { %9694 = dma.done.wait [#allocation12], 512  }
  0xab   :  { %9695 = vsyncadd [#allocation12], 4294966784 }
  0xac   :  { %9696 = dma.done.wait [#allocation14], 2064  }
  0xad   :  { %9697 = vsyncadd [#allocation14], 4294965232 }
  0xae   :  { %9698 = dma.done.wait [#allocation17], 4128  }
  0xaf   :  { %9699 = vsyncadd [#allocation17], 4294963168 }
  0xb0   :  { %9700 = dma.done.wait [#allocation20], 832  }
  0xb1   :  { %9701 = vsyncadd [#allocation20], 4294966464 }
  0xb2   :  { %9702 = dma.done.wait [#allocation23], 80  }
  0xb3   :  { %9703 = vsyncadd [#allocation23], 4294967216 }
  0xb4   :  { %9704 = dma.done.wait [#allocation26], 16  }
  0xb5   :  { %9705 = vsyncadd [#allocation26], 4294967280  ;;  %s169_s3 = sld [smem:[#allocation0]]   ;;  %s9728_s20 = smov 6400   ;;  %v9729_v0 = vmov 0.0|0.0   ;;  %vm9730_vm0 = vmmov 0   ;;  %v431_v60 = vlaneseq }
  0xb6   :  { %181 = sst [smem:[#allocation28]] %s9728_s20  ;;  %8911 = vmatprep.subr.bf16.mxu0 %v9729_v0  ;;  %v9731_v1 = vmov 0.0   ;;  %s9732_s14 = smov 50   ;;  %vm306_vm1 = vcmask 523264  }
  0xb7   :  { %183 = sst [smem:[#allocation28 + $0x1]] %s9728_s20  ;;  %8824 = vmatprep.mubr.msk.f32.mxu0 %vm9730_vm0, %v9731_v1  ;;  %505 = vmatprep.mubr.f32.mxu1 %v9731_v1  ;;  %s9733_s25 = smov [#allocation2]   ;;  %v10000_v61 = vshrl.u32 %v431_v60, 7 }
  0xb8   :  { %185 = sst [smem:[#allocation28 + $0x2]] %s9732_s14  ;;  %s177_s21 = sshll.u32 %s9733_s25, 4  ;;  %s178_s21 = int_to_ptr.vmem [resolvable:$true] %s177_s21 }
  0xb9   :  { %187 = sst [smem:[#allocation28 + $0x3]] %s9719_s10  ;;  %s9734_s26 = smov 3200   ;;  %v10003_v62 = vsub.s32 0, %v10000_v61 }
  0xba   :  { %189 = sst [smem:[#allocation28 + $0x4]] %s9722_s1  ;;  %s9735_s8 = smov 2  }
  0xbb   :  { %193 = sst [smem:[#allocation28 + $0x6]] %s9734_s26  ;;  %s8199_s27 = sshll.u32 %s169_s3, 26 }
  0xbc   :  { %195 = sst [smem:[#allocation28 + $0x7]] %s9719_s10  ;;  %s9964_s2 = sadd.s32 134217728, %s8199_s27 }
  0xbd   :  { %197 = sst [smem:[#allocation28 + $0x8]] %s9720_s16  ;;  %s9736_s17 = smov [#allocation10]  }
  0xbe   :  { %191 = sst [smem:[#allocation28 + $0x5]] %s9735_s8  ;;  %s9737_s19 = smov [#allocation27]  }
  0xbf   :  { %199 = dma.general %s11482_s7, 102400, %s178_s21, %s9736_s17, %s9737_s19, [#allocation28], %s9964_s2, 0  }
  0xc0   :  { %s9738_s22 = smov 384   ;;  %s9739_s6 = smov 3  }
  0xc1   :  { %216 = sst [smem:[#allocation30]] %s9738_s22  ;;  %s9740_s5 = smov [#allocation3]  }
  0xc2   :  { %218 = sst [smem:[#allocation30 + $0x1]] %s9738_s22  ;;  %s212_s24 = sshll.u32 %s9740_s5, 4  ;;  %s213_s24 = int_to_ptr.vmem [resolvable:$true] %s212_s24 }
  0xc3   :  { %220 = sst [smem:[#allocation30 + $0x2]] %s9739_s6  ;;  %s9741_s28 = smov 192  }
  0xc4   :  { %222 = sst [smem:[#allocation30 + $0x3]] %s9719_s10  ;;  %s9742_s7 = smov [#allocation10 + $0x1]  }
  0xc5   :  { %224 = sst [smem:[#allocation30 + $0x4]] %s9722_s1  ;;  %s9743_s23 = smov [#allocation29]  }
  0xc6   :  { %226 = sst [smem:[#allocation30 + $0x5]] %s9735_s8  ;;  %s9744_s29 = smov 256  }
  0xc7   :  { %228 = sst [smem:[#allocation30 + $0x6]] %s9741_s28  ;;  %s9745_s3 = smov [#allocation4]  }
  0xc8   :  { %230 = sst [smem:[#allocation30 + $0x7]] %s9719_s10  ;;  %s247_s20 = sshll.u32 %s9745_s3, 4  ;;  %s248_s20 = int_to_ptr.vmem [resolvable:$true] %s247_s20 }
  0xc9   :  { %232 = sst [smem:[#allocation30 + $0x8]] %s9720_s16  ;;  %s9747_s14 = smov [#allocation31]  }
  0xca   :  { %234 = dma.general %s11484_s9, 64512, %s213_s24, %s9742_s7, %s9743_s23, [#allocation30], %s9964_s2, 0  }
  0xcb   :  { %251 = sst [smem:[#allocation32]] %s9744_s29  ;;  %s9746_s9 = smov [#allocation10 + $0x2]  }
  0xcc   :  { %253 = sst [smem:[#allocation32 + $0x1]] %s9744_s29  ;;  %s9672_s27 = scalar_lea.hbm %s11488_s13, 17920 }
  0xcd   :  { %255 = sst [smem:[#allocation32 + $0x2]] %s9735_s8  ;;  %p9673_p10 = scmp.ne.s32.totalorder %s11488_s13, %s9672_s27 }
  0xce   :  { %257 = sst [smem:[#allocation32 + $0x3]] %s9719_s10  ;;  %p9676_p11 = scmp.lt.u32.totalorder %s9672_s27, %s11488_s13 }
  0xcf   :  { %259 = sst [smem:[#allocation32 + $0x4]] %s9722_s1 }
  0xd0   :  { %261 = sst [smem:[#allocation32 + $0x5]] %s9735_s8  ;;  %p9678_p12 = pnand %p9676_p11, %p9673_p10 }
  0xd1   :  { %263 = sst [smem:[#allocation32 + $0x6]] %s9722_s1 }
  0xd2   :  { %265 = sst [smem:[#allocation32 + $0x7]] %s9719_s10 }
  0xd3   :  { %267 = sst [smem:[#allocation32 + $0x8]] %s9720_s16 }
  0xd4   :  { %269 = dma.general %s11486_s11, 51200, %s248_s20, %s9746_s9, %s9747_s14, [#allocation32], %s9964_s2, 0  }
  0xd5   :  { %v8242_v2 = vld [vmem:[#allocation11] sm:$0xff]   ;;  %v8257_v3 = vld [vmem:[#allocation11 + $0x8] sm:$0xff]   ;;  %v9360_v7 = vld [vmem:[#allocation15 + $0x10] ss:$8 sps:$4 sm:$0xff]  }
  0xd6   :  { %8913 = vmatpush3.bf16.msra.mxu0 %v8242_v2  ;;  %v9355_v4 = vld [vmem:[#allocation15 + $0x4] ss:$8 sps:$4 sm:$0xff]   ;;  %v9357_v5 = vld [vmem:[#allocation15] ss:$8 sps:$4 sm:$0xff]   ;;  %v9358_v6 = vld [vmem:[#allocation15 + $0x14] ss:$8 sps:$4 sm:$0xff]  }
  0xd7   :  { %8914 = vmatprep.subr.bf16.mxu0 %v9729_v0  ;;  %8924 = vmatprep.subr.bf16.mxu1 %v9355_v4  ;;  %v8258_v8 = vld [vmem:[#allocation11 + $0x10] sm:$0xff]   ;;  %v9363_v10 = vld [vmem:[#allocation15 + $0x20] ss:$8 sps:$4 sm:$0xff]   ;;  %v8259_v11 = vld [vmem:[#allocation11 + $0x18] sm:$0xff]  }
  0xd8   :  { %8926 = vmatpush1.bf16.msra.mxu1 %v9357_v5  ;;  %v9361_v9 = vld [vmem:[#allocation15 + $0x24] ss:$8 sps:$4 sm:$0xff]   ;;  %v9364_v12 = vld [vmem:[#allocation15 + $0x34] ss:$8 sps:$4 sm:$0xff]   ;;  %v9366_v14 = vld [vmem:[#allocation15 + $0x30] ss:$8 sps:$4 sm:$0xff]  }
  0xd9   :  { %8928 = vmatprep.subr.bf16.mxu1 %v9358_v6  ;;  %v282_v13 = vld [vmem:[%s11475_s0] sm:$0xff]  ;;  %v9369_v16 = vld [vmem:[#allocation15 + $0x40] ss:$8 sps:$4 sm:$0xff]   ;;  %v8205_v53 = vld [vmem:[#allocation13] ss:$0 sm:$0xff]  ;;  %s9748_s0 = smov [#allocation5]  }
  0xda   :  { %8916 = vmatpush3.bf16.msra.mxu0 %v8257_v3  ;;  %v9367_v15 = vld [vmem:[#allocation15 + $0x44] ss:$8 sps:$4 sm:$0xff]   ;;  %v9370_v17 = vld [vmem:[#allocation15 + $0x54] ss:$8 sps:$4 sm:$0xff]   ;;  %v9372_v18 = vld [vmem:[#allocation15 + $0x50] ss:$8 sps:$4 sm:$0xff]  }
  0xdb   :  { %8917 = vmatprep.subr.bf16.mxu0 %v9729_v0  ;;  %v9373_v19 = vld [vmem:[#allocation15 + $0x64] ss:$8 sps:$4 sm:$0xff]   ;;  %v9375_v20 = vld [vmem:[#allocation15 + $0x60] ss:$8 sps:$4 sm:$0xff]   ;;  %v9376_v21 = vld [vmem:[#allocation15 + $0x74] ss:$8 sps:$4 sm:$0xff]  }
  0xdc   :  { %8930 = vmatpush1.bf16.msra.mxu1 %v9360_v7  ;;  %v9378_v22 = vld [vmem:[#allocation15 + $0x70] ss:$8 sps:$4 sm:$0xff]   ;;  %v9381_v24 = vld [vmem:[#allocation18] ss:$8 sps:$4 sm:$0xff]   ;;  %v429_v63 = vld [vmem:[#allocation16] sm:$0x3] }
  0xdd   :  { %8932 = vmatprep.subr.bf16.mxu1 %v9361_v9  ;;  %v9379_v23 = vld [vmem:[#allocation18 + $0x4] ss:$8 sps:$4 sm:$0xff]   ;;  %v9382_v25 = vld [vmem:[#allocation18 + $0x14] ss:$8 sps:$4 sm:$0xff]   ;;  %v9384_v26 = vld [vmem:[#allocation18 + $0x10] ss:$8 sps:$4 sm:$0xff]   ;;  %v434_v2 = vrot.slane %v429_v63, %v10003_v62 }
  0xde   :  { %8919 = vmatpush3.bf16.msra.mxu0 %v8258_v8  ;;  %v9385_v27 = vld [vmem:[#allocation18 + $0x24] ss:$8 sps:$4 sm:$0xff]   ;;  %v9387_v28 = vld [vmem:[#allocation18 + $0x20] ss:$8 sps:$4 sm:$0xff]   ;;  %v9388_v29 = vld [vmem:[#allocation18 + $0x34] ss:$8 sps:$4 sm:$0xff]  }
  0xdf   :  { %8920 = vmatprep.subr.bf16.mxu0 %v9729_v0  ;;  %v9390_v30 = vld [vmem:[#allocation18 + $0x30] ss:$8 sps:$4 sm:$0xff]   ;;  %v9391_v31 = vld [vmem:[#allocation18 + $0x44] ss:$8 sps:$4 sm:$0xff]   ;;  %v9393_v32 = vld [vmem:[#allocation18 + $0x40] ss:$8 sps:$4 sm:$0xff]  }
  0xe0   :  { %8934 = vmatpush1.bf16.msra.mxu1 %v9363_v10  ;;  %v9394_v33 = vld [vmem:[#allocation18 + $0x54] ss:$8 sps:$4 sm:$0xff]   ;;  %v9396_v34 = vld [vmem:[#allocation18 + $0x50] ss:$8 sps:$4 sm:$0xff]   ;;  %v9397_v35 = vld [vmem:[#allocation18 + $0x64] ss:$8 sps:$4 sm:$0xff]  }
  0xe1   :  { %8936 = vmatprep.subr.bf16.mxu1 %v9364_v12  ;;  %v9399_v36 = vld [vmem:[#allocation18 + $0x60] ss:$8 sps:$4 sm:$0xff]   ;;  %v9400_v37 = vld [vmem:[#allocation18 + $0x74] ss:$8 sps:$4 sm:$0xff]   ;;  %v9402_v38 = vld [vmem:[#allocation18 + $0x70] ss:$8 sps:$4 sm:$0xff]  }
  0xe2   :  { %8922 = vmatpush3.bf16.msra.mxu0 %v8259_v11  ;;  %v9403_v39 = vld [vmem:[#allocation18 + $0x84] ss:$8 sps:$4 sm:$0xff]   ;;  %v9405_v40 = vld [vmem:[#allocation18 + $0x80] ss:$8 sps:$4 sm:$0xff]   ;;  %v9406_v41 = vld [vmem:[#allocation18 + $0x94] ss:$8 sps:$4 sm:$0xff]  }
  0xe3   :  { %8956 = vmatprep.subr.bf16.mxu0 %v9379_v23  ;;  %v9408_v42 = vld [vmem:[#allocation18 + $0x90] ss:$8 sps:$4 sm:$0xff]   ;;  %v9409_v43 = vld [vmem:[#allocation18 + $0xa4] ss:$8 sps:$4 sm:$0xff]   ;;  %v9411_v44 = vld [vmem:[#allocation18 + $0xa0] ss:$8 sps:$4 sm:$0xff]  }
  0xe4   :  { %8938 = vmatpush1.bf16.msra.mxu1 %v9366_v14  ;;  %v9412_v45 = vld [vmem:[#allocation18 + $0xb4] ss:$8 sps:$4 sm:$0xff]   ;;  %v9414_v46 = vld [vmem:[#allocation18 + $0xb0] ss:$8 sps:$4 sm:$0xff]   ;;  %v9415_v47 = vld [vmem:[#allocation18 + $0xc4] ss:$8 sps:$4 sm:$0xff]  }
  0xe5   :  { %8825 = vmatmul.mubr.msk.f32.vlgmr.msra.gmra.mrb[0].mxu0 %vm306_vm1, %v282_v13  ;;  %8940 = vmatprep.subr.bf16.mxu1 %v9367_v15  ;;  %v9417_v48 = vld [vmem:[#allocation18 + $0xc0] ss:$8 sps:$4 sm:$0xff]   ;;  %v9418_v49 = vld [vmem:[#allocation18 + $0xd4] ss:$8 sps:$4 sm:$0xff]   ;;  %v9420_v50 = vld [vmem:[#allocation18 + $0xd0] ss:$8 sps:$4 sm:$0xff]  }
  0xe6   :  { %8958 = vmatpush1.bf16.msra.mxu0 %v9381_v24  ;;  %v9421_v51 = vld [vmem:[#allocation18 + $0xe4] ss:$8 sps:$4 sm:$0xff]   ;;  %v9423_v52 = vld [vmem:[#allocation18 + $0xe0] ss:$8 sps:$4 sm:$0xff]   ;;  %v9424_v58 = vld [vmem:[#allocation18 + $0xf4] ss:$8 sps:$4 sm:$0xff]  }
  0xe7   :  { %8960 = vmatprep.subr.bf16.mxu0 %v9382_v25  ;;  %v9426_v59 = vld [vmem:[#allocation18 + $0xf0] ss:$8 sps:$4 sm:$0xff]   ;;  %v10006_v0 = vsub.s32 1, %v10000_v61  ;;  %s278_s16 = sshll.u32 %s9748_s0, 4  ;;  %s279_s16 = int_to_ptr.vmem [resolvable:$true] %s278_s16 }
  0xe8   :  { %8942 = vmatpush1.bf16.msra.mxu1 %v9369_v16 }
  0xe9   :  { %8944 = vmatprep.subr.bf16.mxu1 %v9370_v17  ;;  %v438_v3 = vrot.slane %v429_v63, %v10006_v0 }
  0xea   :  { %8962 = vmatpush1.bf16.msra.mxu0 %v9384_v26 }
  0xeb   :  { %8964 = vmatprep.subr.bf16.mxu0 %v9385_v27 }
  0xec   :  { %8946 = vmatpush1.bf16.msra.mxu1 %v9372_v18 }
  0xed   :  { %8948 = vmatprep.subr.bf16.mxu1 %v9373_v19 }
  0xee   :  { %8966 = vmatpush1.bf16.msra.mxu0 %v9387_v28 }
  0xef   :  { %8968 = vmatprep.subr.bf16.mxu0 %v9388_v29 }
  0xf0   :  { %8950 = vmatpush1.bf16.msra.mxu1 %v9375_v20 }
  0xf1   :  { %8952 = vmatprep.subr.bf16.mxu1 %v9376_v21 }
  0xf2   :  { %8970 = vmatpush1.bf16.msra.mxu0 %v9390_v30 }
  0xf3   :  { %8972 = vmatprep.subr.bf16.mxu0 %v9391_v31 }
  0xf4   :  { %8954 = vmatpush1.bf16.msra.mxu1 %v9378_v22 }
  0xf6   :  { %8974 = vmatpush1.bf16.msra.mxu0 %v9393_v32 }
  0xf7   :  { %8976 = vmatprep.subr.bf16.mxu0 %v9394_v33 }
  0xfa   :  { %8978 = vmatpush1.bf16.msra.mxu0 %v9396_v34 }
  0xfb   :  { %8980 = vmatprep.subr.bf16.mxu0 %v9397_v35 }
  0xfe   :  { %8982 = vmatpush1.bf16.msra.mxu0 %v9399_v36 }
  0xff   :  { %8984 = vmatprep.subr.bf16.mxu0 %v9400_v37 }
 0x102   :  { %8986 = vmatpush1.bf16.msra.mxu0 %v9402_v38 }
 0x103   :  { %8988 = vmatprep.subr.bf16.mxu0 %v9403_v39 }
 0x106   :  { %8990 = vmatpush1.bf16.msra.mxu0 %v9405_v40 }
 0x107   :  { %8992 = vmatprep.subr.bf16.mxu0 %v9406_v41 }
 0x10a   :  { %8994 = vmatpush1.bf16.msra.mxu0 %v9408_v42 }
 0x10b   :  { %8996 = vmatprep.subr.bf16.mxu0 %v9409_v43 }
 0x10e   :  { %8998 = vmatpush1.bf16.msra.mxu0 %v9411_v44 }
 0x10f   :  { %9000 = vmatprep.subr.bf16.mxu0 %v9412_v45 }
 0x112   :  { %9002 = vmatpush1.bf16.msra.mxu0 %v9414_v46 }
 0x113   :  { %9004 = vmatprep.subr.bf16.mxu0 %v9415_v47 }
 0x116   :  { %9006 = vmatpush1.bf16.msra.mxu0 %v9417_v48 }
 0x117   :  { %9008 = vmatprep.subr.bf16.mxu0 %v9418_v49 }
 0x11a   :  { %9010 = vmatpush1.bf16.msra.mxu0 %v9420_v50 }
 0x11b   :  { %9012 = vmatprep.subr.bf16.mxu0 %v9421_v51 }
 0x11e   :  { %9014 = vmatpush1.bf16.msra.mxu0 %v9423_v52 }
 0x11f   :  { %9016 = vmatprep.subr.bf16.mxu0 %v9424_v58 }
 0x122   :  { %9018 = vmatpush1.bf16.msra.mxu0 %v9426_v59 }
 0x1b8   :  { %v376_v54 = vpop.f32.mrb[0].mxu0 }
 0x1b9   :  { %v377_v55 = vadd.f32 %v8205_v53, %v376_v54  ;;  %v8826_v56 = vpop.f32.mrb[1].mxu0 }
 0x1bb   :  { %v380_v57 = vmax.f32 %v377_v55, 0.0 }
 0x1bd   :  { %506 = vmatmul.mubr.f32.vlgmr.msra.gmra.mrb[0].mxu1 %v380_v57 }
 0x290   :  { %v507_v4 = vpop.f32.mrb[0].mxu1 }
 0x291   :  { %v508_v5 = vadd.f32 %v507_v4, %v434_v2  ;;  %v509_v6 = vpop.f32.mrb[1].mxu1 }
 0x292   :  { %v510_v7 = vadd.f32 %v509_v6, %v438_v3 }
 0x293   :  { %v512_v9 = vmax.f32 %v508_v5, 0.0 }
 0x294   :  { %v513_v8 = vmax.f32 %v510_v7, 0.0 }
 0x296   :  { %686 = vmatprep.mubr.f32.mxu0 %v513_v8 }
 0x297   :  { %687 = vmatmul.mubr.f32.vlgmr.msra.gmra.mrb[2].mxu0 %v512_v9 }
 0x298   :  { %9681 = shalt.err (!%p9678_p12)  }
 0x299   :  { %s9682_s30 = scalar_lea.vmem %s279_s16, 17920  ;;  %p9687_p0 = scmp.lt.s32.totalorder %s279_s16, %s279_s16 }
 0x29a   :  { %p9683_p13 = scmp.ne.s32.totalorder %s279_s16, %s9682_s30  ;;  %p9688_p1 = scmp.lt.s32.totalorder %s9682_s30, %s9682_s30 }
 0x29c   :  { %p9689_p2 = por %p9688_p1, %p9687_p0 }
 0x29e   :  { %p9690_p3 = pnand %p9689_p2, %p9683_p13 }
 0x2a0   :  { %9693 = shalt.err (!%p9690_p3)  }
 0x2a1   :  { %281 = dma.hbm_to_vmem [thread:$0]  %s11488_s13, 17920, %s279_s16, [#allocation10 + $0x3]  ;;  %v610_v10 = vld [vmem:[#allocation19] sm:$0x3] }
 0x2a2   :  { %v615_v11 = vrot.slane %v610_v10, %v10003_v62  ;;  %v619_v12 = vrot.slane %v610_v10, %v10006_v0 }
 0x36a   :  { %v688_v13 = vpop.f32.mrb[2].mxu0 }
 0x36b   :  { %v689_v14 = vadd.f32 %v688_v13, %v615_v11  ;;  %v690_v15 = vpop.f32.mrb[3].mxu0 }
 0x36c   :  { %v691_v16 = vadd.f32 %v690_v15, %v619_v12 }
 0x36d   :  { %v693_v17 = vmax.f32 %v689_v14, 0.0 }
 0x36e   :  { %v694_v18 = vmax.f32 %v691_v16, 0.0 }
 0x36f   :  { %v10024_v19 = vpack.c.bf16 %v693_v17, %v693_v17 }
 0x370   :  { %v10026_v20 = vpack.c.bf16 %v694_v18, %v694_v18 }
 0x371   :  { %9706 = dma.done.wait [#allocation10], 102400 }
 0x372   :  { %9707 = vsyncadd [#allocation10], 4294864896  ;;  %1797 = vmatprep.mubr.bf16.mxu1 %v10026_v20  ;;  %1838 = vmatprep.mubr.bf16.mxu0 %v10026_v20  ;;  %2890 = vst [vmem:[#allocation7] sm:$0xff] %v9731_v1  ;;  %v702_v21 = vld [vmem:[#allocation2 + $0x8] sm:$0xff]  ;;  %v704_v22 = vld [vmem:[#allocation2 + $0x18] sm:$0xff]  ;;  %vm10129_vm2 = vcmp.lt.s32.totalorder %v431_v60, 640 }
 0x373   :  { %2891 = vst [vmem:[#allocation7 + $0x8] sm:$0xff] %v9731_v1  ;;  %2892 = vst [vmem:[#allocation7 + $0x10] sm:$0xff] %v9731_v1  ;;  %v701_v23 = vld [vmem:[#allocation2] sm:$0xff]  ;;  %1765 = vmatprep.subr.bf16.mxu1 %v702_v21  ;;  %1806 = vmatprep.subr.bf16.mxu0 %v704_v22  ;;  %v703_v24 = vld [vmem:[#allocation2 + $0x10] sm:$0xff] }
 0x374   :  { %2893 = vst [vmem:[#allocation7 + $0x18] sm:$0xff] %v9731_v1  ;;  %2894 = vst [vmem:[#allocation7 + $0x20] sm:$0xff] %v9731_v1  ;;  %v752_v25 = vld [vmem:[#allocation2 + $0x198] sm:$0xff]  ;;  %v754_v26 = vld [vmem:[#allocation2 + $0x1a8] sm:$0xff]  ;;  %1766 = vmatpush1.bf16.msra.mxu1 %v701_v23  ;;  %1807 = vmatpush1.bf16.msra.mxu0 %v703_v24 }
 0x375   :  { %2895 = vst [vmem:[#allocation7 + $0x28] sm:$0xff] %v9731_v1  ;;  %2896 = vst [vmem:[#allocation7 + $0x30] sm:$0xff] %v9731_v1  ;;  %1767 = vmatprep.subr.bf16.mxu1 %v752_v25  ;;  %1808 = vmatprep.subr.bf16.mxu0 %v754_v26  ;;  %v751_v27 = vld [vmem:[#allocation2 + $0x190] sm:$0xff]  ;;  %v753_v28 = vld [vmem:[#allocation2 + $0x1a0] sm:$0xff] }
 0x376   :  { %2897 = vst [vmem:[#allocation7 + $0x38] sm:$0xff] %v9731_v1  ;;  %2903 = vst [vmem:[#allocation7 + $0x68] sm:$0xff] %v9731_v1  ;;  %v802_v29 = vld [vmem:[#allocation2 + $0x328] sm:$0xff]  ;;  %v804_v30 = vld [vmem:[#allocation2 + $0x338] sm:$0xff] }
 0x377   :  { %2904 = vst [vmem:[#allocation7 + $0x70] sm:$0xff] %v9731_v1  ;;  %2910 = vst [vmem:[#allocation7 + $0xa0] sm:$0xff] %v9731_v1  ;;  %v801_v31 = vld [vmem:[#allocation2 + $0x320] sm:$0xff]  ;;  %v803_v32 = vld [vmem:[#allocation2 + $0x330] sm:$0xff] }
 0x378   :  { %2911 = vst [vmem:[#allocation7 + $0xa8] sm:$0xff] %v9731_v1  ;;  %2912 = vst [vmem:[#allocation7 + $0xb0] sm:$0xff] %v9731_v1  ;;  %1768 = vmatpush1.bf16.msra.mxu1 %v751_v27  ;;  %1809 = vmatpush1.bf16.msra.mxu0 %v753_v28  ;;  %v852_v33 = vld [vmem:[#allocation2 + $0x4b8] sm:$0xff]  ;;  %v854_v34 = vld [vmem:[#allocation2 + $0x4c8] sm:$0xff] }
 0x379   :  { %2913 = vst [vmem:[#allocation7 + $0xb8] sm:$0xff] %v9731_v1  ;;  %2914 = vst [vmem:[#allocation7 + $0xc0] sm:$0xff] %v9731_v1  ;;  %1769 = vmatprep.subr.bf16.mxu1 %v802_v29  ;;  %1810 = vmatprep.subr.bf16.mxu0 %v804_v30  ;;  %v851_v35 = vld [vmem:[#allocation2 + $0x4b0] sm:$0xff]  ;;  %v853_v36 = vld [vmem:[#allocation2 + $0x4c0] sm:$0xff] }
 0x37a   :  { %2915 = vst [vmem:[#allocation7 + $0xc8] sm:$0xff] %v9731_v1  ;;  %2916 = vst [vmem:[#allocation7 + $0xd0] sm:$0xff] %v9731_v1  ;;  %v902_v37 = vld [vmem:[#allocation2 + $0x648] sm:$0xff]  ;;  %v904_v38 = vld [vmem:[#allocation2 + $0x658] sm:$0xff] }
 0x37b   :  { %2917 = vst [vmem:[#allocation7 + $0xd8] sm:$0xff] %v9731_v1  ;;  %2918 = vst [vmem:[#allocation7 + $0xe0] sm:$0xff] %v9731_v1  ;;  %v901_v39 = vld [vmem:[#allocation2 + $0x640] sm:$0xff]  ;;  %v903_v40 = vld [vmem:[#allocation2 + $0x650] sm:$0xff] }
 0x37c   :  { %2924 = vst [vmem:[#allocation7 + $0x110] sm:$0xff] %v9731_v1  ;;  %2925 = vst [vmem:[#allocation7 + $0x118] sm:$0xff] %v9731_v1  ;;  %1770 = vmatpush1.bf16.msra.mxu1 %v801_v31  ;;  %1811 = vmatpush1.bf16.msra.mxu0 %v803_v32  ;;  %v952_v41 = vld [vmem:[#allocation2 + $0x7d8] sm:$0xff]  ;;  %v954_v42 = vld [vmem:[#allocation2 + $0x7e8] sm:$0xff] }
 0x37d   :  { %2931 = vst [vmem:[#allocation7 + $0x148] sm:$0xff] %v9731_v1  ;;  %2898 = vst [vmem:[#allocation7 + $0x40] sm:$0xff] %v9731_v1  ;;  %1771 = vmatprep.subr.bf16.mxu1 %v852_v33  ;;  %1812 = vmatprep.subr.bf16.mxu0 %v854_v34  ;;  %v951_v43 = vld [vmem:[#allocation2 + $0x7d0] sm:$0xff]  ;;  %v953_v44 = vld [vmem:[#allocation2 + $0x7e0] sm:$0xff] }
 0x37e   :  { %2899 = vst [vmem:[#allocation7 + $0x48] sm:$0xff] %v9731_v1  ;;  %2900 = vst [vmem:[#allocation7 + $0x50] sm:$0xff] %v9731_v1  ;;  %v1002_v45 = vld [vmem:[#allocation2 + $0x968] sm:$0xff]  ;;  %v1004_v46 = vld [vmem:[#allocation2 + $0x978] sm:$0xff] }
 0x37f   :  { %2901 = vst [vmem:[#allocation7 + $0x58] sm:$0xff] %v9731_v1  ;;  %2902 = vst [vmem:[#allocation7 + $0x60] sm:$0xff] %v9731_v1  ;;  %v1001_v47 = vld [vmem:[#allocation2 + $0x960] sm:$0xff]  ;;  %v1003_v48 = vld [vmem:[#allocation2 + $0x970] sm:$0xff] }
 0x380   :  { %2905 = vst [vmem:[#allocation7 + $0x78] sm:$0xff] %v9731_v1  ;;  %2906 = vst [vmem:[#allocation7 + $0x80] sm:$0xff] %v9731_v1  ;;  %1772 = vmatpush1.bf16.msra.mxu1 %v851_v35  ;;  %1813 = vmatpush1.bf16.msra.mxu0 %v853_v36  ;;  %v1052_v49 = vld [vmem:[#allocation2 + $0xaf8] sm:$0xff]  ;;  %v1054_v50 = vld [vmem:[#allocation2 + $0xb08] sm:$0xff] }
 0x381   :  { %2907 = vst [vmem:[#allocation7 + $0x88] sm:$0xff] %v9731_v1  ;;  %2908 = vst [vmem:[#allocation7 + $0x90] sm:$0xff] %v9731_v1  ;;  %1773 = vmatprep.subr.bf16.mxu1 %v902_v37  ;;  %1814 = vmatprep.subr.bf16.mxu0 %v904_v38  ;;  %v1051_v51 = vld [vmem:[#allocation2 + $0xaf0] sm:$0xff]  ;;  %v1053_v52 = vld [vmem:[#allocation2 + $0xb00] sm:$0xff] }
 0x382   :  { %2909 = vst [vmem:[#allocation7 + $0x98] sm:$0xff] %v9731_v1  ;;  %2919 = vst [vmem:[#allocation7 + $0xe8] sm:$0xff] %v9731_v1  ;;  %v1102_v53 = vld [vmem:[#allocation2 + $0xc88] sm:$0xff]  ;;  %v1104_v54 = vld [vmem:[#allocation2 + $0xc98] sm:$0xff] }
 0x383   :  { %2920 = vst [vmem:[#allocation7 + $0xf0] sm:$0xff] %v9731_v1  ;;  %2921 = vst [vmem:[#allocation7 + $0xf8] sm:$0xff] %v9731_v1  ;;  %v1101_v55 = vld [vmem:[#allocation2 + $0xc80] sm:$0xff]  ;;  %v1103_v56 = vld [vmem:[#allocation2 + $0xc90] sm:$0xff] }
 0x384   :  { %2922 = vst [vmem:[#allocation7 + $0x100] sm:$0xff] %v9731_v1  ;;  %2923 = vst [vmem:[#allocation7 + $0x108] sm:$0xff] %v9731_v1  ;;  %1774 = vmatpush1.bf16.msra.mxu1 %v901_v39  ;;  %1815 = vmatpush1.bf16.msra.mxu0 %v903_v40  ;;  %v1152_v57 = vld [vmem:[#allocation2 + $0xe18] sm:$0xff]  ;;  %v1154_v58 = vld [vmem:[#allocation2 + $0xe28] sm:$0xff] }
 0x385   :  { %2926 = vst [vmem:[#allocation7 + $0x120] sm:$0xff] %v9731_v1  ;;  %2927 = vst [vmem:[#allocation7 + $0x128] sm:$0xff] %v9731_v1  ;;  %1775 = vmatprep.subr.bf16.mxu1 %v952_v41  ;;  %1816 = vmatprep.subr.bf16.mxu0 %v954_v42  ;;  %v1151_v59 = vld [vmem:[#allocation2 + $0xe10] sm:$0xff]  ;;  %v1153_v63 = vld [vmem:[#allocation2 + $0xe20] sm:$0xff] }
 0x386   :  { %2928 = vst [vmem:[#allocation7 + $0x130] sm:$0xff] %v9731_v1  ;;  %2929 = vst [vmem:[#allocation7 + $0x138] sm:$0xff] %v9731_v1  ;;  %v1202_v2 = vld [vmem:[#allocation2 + $0xfa8] sm:$0xff]  ;;  %v1204_v3 = vld [vmem:[#allocation2 + $0xfb8] sm:$0xff] }
 0x387   :  { %2930 = vst [vmem:[#allocation7 + $0x140] sm:$0xff] %v9731_v1  ;;  %v1201_v4 = vld [vmem:[#allocation2 + $0xfa0] sm:$0xff]  ;;  %v1203_v5 = vld [vmem:[#allocation2 + $0xfb0] sm:$0xff]  ;;  %v1252_v6 = vld [vmem:[#allocation2 + $0x1138] sm:$0xff] }
 0x388   :  { %1776 = vmatpush1.bf16.msra.mxu1 %v951_v43  ;;  %1817 = vmatpush1.bf16.msra.mxu0 %v953_v44  ;;  %v1254_v7 = vld [vmem:[#allocation2 + $0x1148] sm:$0xff]  ;;  %v1251_v8 = vld [vmem:[#allocation2 + $0x1130] sm:$0xff]  ;;  %v1253_v9 = vld [vmem:[#allocation2 + $0x1140] sm:$0xff] }
 0x389   :  { %1777 = vmatprep.subr.bf16.mxu1 %v1002_v45  ;;  %1818 = vmatprep.subr.bf16.mxu0 %v1004_v46  ;;  %v1302_v10 = vld [vmem:[#allocation2 + $0x12c8] sm:$0xff]  ;;  %v1304_v11 = vld [vmem:[#allocation2 + $0x12d8] sm:$0xff]  ;;  %v1301_v12 = vld [vmem:[#allocation2 + $0x12c0] sm:$0xff] }
 0x38a   :  { %v1303_v13 = vld [vmem:[#allocation2 + $0x12d0] sm:$0xff]  ;;  %v1352_v14 = vld [vmem:[#allocation2 + $0x1458] sm:$0xff]  ;;  %v1354_v15 = vld [vmem:[#allocation2 + $0x1468] sm:$0xff] }
 0x38b   :  { %v1351_v16 = vld [vmem:[#allocation2 + $0x1450] sm:$0xff]  ;;  %v1353_v17 = vld [vmem:[#allocation2 + $0x1460] sm:$0xff]  ;;  %v1402_v18 = vld [vmem:[#allocation2 + $0x15e8] sm:$0xff] }
 0x38c   :  { %1778 = vmatpush1.bf16.msra.mxu1 %v1001_v47  ;;  %1819 = vmatpush1.bf16.msra.mxu0 %v1003_v48  ;;  %v1404_v21 = vld [vmem:[#allocation2 + $0x15f8] sm:$0xff]  ;;  %v1401_v22 = vld [vmem:[#allocation2 + $0x15e0] sm:$0xff]  ;;  %v1403_v23 = vld [vmem:[#allocation2 + $0x15f0] sm:$0xff] }
 0x38d   :  { %1779 = vmatprep.subr.bf16.mxu1 %v1052_v49  ;;  %1820 = vmatprep.subr.bf16.mxu0 %v1054_v50  ;;  %v1452_v24 = vld [vmem:[#allocation2 + $0x1778] sm:$0xff]  ;;  %v1454_v25 = vld [vmem:[#allocation2 + $0x1788] sm:$0xff]  ;;  %v1451_v26 = vld [vmem:[#allocation2 + $0x1770] sm:$0xff] }
 0x38e   :  { %v1453_v27 = vld [vmem:[#allocation2 + $0x1780] sm:$0xff]  ;;  %v706_v28 = vld [vmem:[#allocation2 + $0x28] sm:$0xff]  ;;  %v708_v29 = vld [vmem:[#allocation2 + $0x38] sm:$0xff] }
 0x38f   :  { %v705_v30 = vld [vmem:[#allocation2 + $0x20] sm:$0xff]  ;;  %v707_v31 = vld [vmem:[#allocation2 + $0x30] sm:$0xff]  ;;  %v756_v32 = vld [vmem:[#allocation2 + $0x1b8] sm:$0xff] }
 0x390   :  { %1780 = vmatpush1.bf16.msra.mxu1 %v1051_v51  ;;  %1821 = vmatpush1.bf16.msra.mxu0 %v1053_v52  ;;  %v758_v33 = vld [vmem:[#allocation2 + $0x1c8] sm:$0xff]  ;;  %v755_v34 = vld [vmem:[#allocation2 + $0x1b0] sm:$0xff]  ;;  %v757_v35 = vld [vmem:[#allocation2 + $0x1c0] sm:$0xff] }
 0x391   :  { %1781 = vmatprep.subr.bf16.mxu1 %v1102_v53  ;;  %1822 = vmatprep.subr.bf16.mxu0 %v1104_v54  ;;  %v806_v36 = vld [vmem:[#allocation2 + $0x348] sm:$0xff]  ;;  %v808_v37 = vld [vmem:[#allocation2 + $0x358] sm:$0xff]  ;;  %v805_v38 = vld [vmem:[#allocation2 + $0x340] sm:$0xff] }
 0x392   :  { %v807_v39 = vld [vmem:[#allocation2 + $0x350] sm:$0xff]  ;;  %v856_v40 = vld [vmem:[#allocation2 + $0x4d8] sm:$0xff]  ;;  %v858_v41 = vld [vmem:[#allocation2 + $0x4e8] sm:$0xff] }
 0x393   :  { %v855_v42 = vld [vmem:[#allocation2 + $0x4d0] sm:$0xff]  ;;  %v857_v43 = vld [vmem:[#allocation2 + $0x4e0] sm:$0xff]  ;;  %v906_v44 = vld [vmem:[#allocation2 + $0x668] sm:$0xff] }
 0x394   :  { %1782 = vmatpush1.bf16.msra.mxu1 %v1101_v55  ;;  %1823 = vmatpush1.bf16.msra.mxu0 %v1103_v56  ;;  %v908_v45 = vld [vmem:[#allocation2 + $0x678] sm:$0xff]  ;;  %v905_v46 = vld [vmem:[#allocation2 + $0x660] sm:$0xff]  ;;  %v907_v47 = vld [vmem:[#allocation2 + $0x670] sm:$0xff] }
 0x395   :  { %1783 = vmatprep.subr.bf16.mxu1 %v1152_v57  ;;  %1824 = vmatprep.subr.bf16.mxu0 %v1154_v58  ;;  %v956_v48 = vld [vmem:[#allocation2 + $0x7f8] sm:$0xff]  ;;  %v958_v49 = vld [vmem:[#allocation2 + $0x808] sm:$0xff]  ;;  %v955_v50 = vld [vmem:[#allocation2 + $0x7f0] sm:$0xff] }
 0x396   :  { %v957_v51 = vld [vmem:[#allocation2 + $0x800] sm:$0xff]  ;;  %v1006_v52 = vld [vmem:[#allocation2 + $0x988] sm:$0xff]  ;;  %v1008_v53 = vld [vmem:[#allocation2 + $0x998] sm:$0xff] }
 0x397   :  { %v1005_v54 = vld [vmem:[#allocation2 + $0x980] sm:$0xff]  ;;  %v1007_v55 = vld [vmem:[#allocation2 + $0x990] sm:$0xff]  ;;  %v1056_v56 = vld [vmem:[#allocation2 + $0xb18] sm:$0xff] }
 0x398   :  { %1784 = vmatpush1.bf16.msra.mxu1 %v1151_v59  ;;  %1825 = vmatpush1.bf16.msra.mxu0 %v1153_v63  ;;  %v1058_v57 = vld [vmem:[#allocation2 + $0xb28] sm:$0xff]  ;;  %v1055_v58 = vld [vmem:[#allocation2 + $0xb10] sm:$0xff]  ;;  %v1057_v59 = vld [vmem:[#allocation2 + $0xb20] sm:$0xff] }
 0x399   :  { %1785 = vmatprep.subr.bf16.mxu1 %v1202_v2  ;;  %1826 = vmatprep.subr.bf16.mxu0 %v1204_v3  ;;  %v1106_v63 = vld [vmem:[#allocation2 + $0xca8] sm:$0xff]  ;;  %v1108_v2 = vld [vmem:[#allocation2 + $0xcb8] sm:$0xff]  ;;  %v1105_v3 = vld [vmem:[#allocation2 + $0xca0] sm:$0xff] }
 0x39a   :  { %v1171_v60 = vld [vmem:[#allocation2 + $0xeb0] sm:$0xff] }
 0x39c   :  { %1786 = vmatpush1.bf16.msra.mxu1 %v1201_v4  ;;  %1827 = vmatpush1.bf16.msra.mxu0 %v1203_v5  ;;  %v1107_v4 = vld [vmem:[#allocation2 + $0xcb0] sm:$0xff]  ;;  %v1156_v5 = vld [vmem:[#allocation2 + $0xe38] sm:$0xff] }
 0x39d   :  { %1787 = vmatprep.subr.bf16.mxu1 %v1252_v6  ;;  %1828 = vmatprep.subr.bf16.mxu0 %v1254_v7  ;;  %v1158_v6 = vld [vmem:[#allocation2 + $0xe48] sm:$0xff]  ;;  %v1155_v7 = vld [vmem:[#allocation2 + $0xe30] sm:$0xff] }
 0x3a0   :  { %1788 = vmatpush1.bf16.msra.mxu1 %v1251_v8  ;;  %1829 = vmatpush1.bf16.msra.mxu0 %v1253_v9  ;;  %v1157_v8 = vld [vmem:[#allocation2 + $0xe40] sm:$0xff]  ;;  %v1206_v9 = vld [vmem:[#allocation2 + $0xfc8] sm:$0xff] }
 0x3a1   :  { %1789 = vmatprep.subr.bf16.mxu1 %v1302_v10  ;;  %1830 = vmatprep.subr.bf16.mxu0 %v1304_v11  ;;  %v1208_v10 = vld [vmem:[#allocation2 + $0xfd8] sm:$0xff]  ;;  %v1205_v11 = vld [vmem:[#allocation2 + $0xfc0] sm:$0xff] }
 0x3a4   :  { %1790 = vmatpush1.bf16.msra.mxu1 %v1301_v12  ;;  %1831 = vmatpush1.bf16.msra.mxu0 %v1303_v13  ;;  %v1207_v12 = vld [vmem:[#allocation2 + $0xfd0] sm:$0xff]  ;;  %v1256_v13 = vld [vmem:[#allocation2 + $0x1158] sm:$0xff] }
 0x3a5   :  { %1791 = vmatprep.subr.bf16.mxu1 %v1352_v14  ;;  %1832 = vmatprep.subr.bf16.mxu0 %v1354_v15  ;;  %v1258_v14 = vld [vmem:[#allocation2 + $0x1168] sm:$0xff]  ;;  %v1255_v15 = vld [vmem:[#allocation2 + $0x1150] sm:$0xff] }
 0x3a8   :  { %1792 = vmatpush1.bf16.msra.mxu1 %v1351_v16  ;;  %1833 = vmatpush1.bf16.msra.mxu0 %v1353_v17  ;;  %v1257_v16 = vld [vmem:[#allocation2 + $0x1160] sm:$0xff]  ;;  %v1306_v17 = vld [vmem:[#allocation2 + $0x12e8] sm:$0xff] }
 0x3a9   :  { %1793 = vmatprep.subr.bf16.mxu1 %v1402_v18  ;;  %1834 = vmatprep.subr.bf16.mxu0 %v1404_v21  ;;  %v1308_v18 = vld [vmem:[#allocation2 + $0x12f8] sm:$0xff]  ;;  %v1305_v21 = vld [vmem:[#allocation2 + $0x12e0] sm:$0xff] }
 0x3ac   :  { %1794 = vmatpush1.bf16.msra.mxu1 %v1401_v22  ;;  %1835 = vmatpush1.bf16.msra.mxu0 %v1403_v23  ;;  %v1307_v22 = vld [vmem:[#allocation2 + $0x12f0] sm:$0xff]  ;;  %v1356_v23 = vld [vmem:[#allocation2 + $0x1478] sm:$0xff] }
 0x3ad   :  { %1795 = vmatprep.subr.bf16.mxu1 %v1452_v24  ;;  %1836 = vmatprep.subr.bf16.mxu0 %v1454_v25  ;;  %v1358_v24 = vld [vmem:[#allocation2 + $0x1488] sm:$0xff]  ;;  %v1355_v25 = vld [vmem:[#allocation2 + $0x1470] sm:$0xff] }
 0x3b0   :  { %1796 = vmatpush1.bf16.msra.mxu1 %v1451_v26  ;;  %1837 = vmatpush1.bf16.msra.mxu0 %v1453_v27  ;;  %v1357_v26 = vld [vmem:[#allocation2 + $0x1480] sm:$0xff]  ;;  %v1406_v27 = vld [vmem:[#allocation2 + $0x1608] sm:$0xff] }
 0x3b1   :  { %1847 = vmatprep.subr.bf16.mxu1 %v706_v28  ;;  %1888 = vmatprep.subr.bf16.mxu0 %v708_v29  ;;  %v1408_v28 = vld [vmem:[#allocation2 + $0x1618] sm:$0xff]  ;;  %v1405_v29 = vld [vmem:[#allocation2 + $0x1600] sm:$0xff] }
 0x3b3   :  { %1798 = vmatmul.mubr.bf16.vlgmr.msra.gmra.mrb[4].mxu1 %v10024_v19  ;;  %1839 = vmatmul.mubr.bf16.vlgmr.msra.gmra.mrb[4].mxu0 %v10024_v19 }
 0x3b4   :  { %1848 = vmatpush1.bf16.msra.mxu1 %v705_v30  ;;  %1889 = vmatpush1.bf16.msra.mxu0 %v707_v31  ;;  %v1407_v30 = vld [vmem:[#allocation2 + $0x1610] sm:$0xff]  ;;  %v1456_v31 = vld [vmem:[#allocation2 + $0x1798] sm:$0xff] }
 0x3b5   :  { %1849 = vmatprep.subr.bf16.mxu1 %v756_v32  ;;  %1890 = vmatprep.subr.bf16.mxu0 %v758_v33  ;;  %v1458_v32 = vld [vmem:[#allocation2 + $0x17a8] sm:$0xff]  ;;  %v1455_v33 = vld [vmem:[#allocation2 + $0x1790] sm:$0xff] }
 0x3b6   :  { %1879 = vmatprep.mubr.bf16.mxu1 %v10026_v20  ;;  %1920 = vmatprep.mubr.bf16.mxu0 %v10026_v20 }
 0x3b8   :  { %1850 = vmatpush1.bf16.msra.mxu1 %v755_v34  ;;  %1891 = vmatpush1.bf16.msra.mxu0 %v757_v35  ;;  %v1457_v34 = vld [vmem:[#allocation2 + $0x17a0] sm:$0xff]  ;;  %v710_v35 = vld [vmem:[#allocation2 + $0x48] sm:$0xff] }
 0x3b9   :  { %1851 = vmatprep.subr.bf16.mxu1 %v806_v36  ;;  %1892 = vmatprep.subr.bf16.mxu0 %v808_v37  ;;  %v712_v36 = vld [vmem:[#allocation2 + $0x58] sm:$0xff]  ;;  %v709_v37 = vld [vmem:[#allocation2 + $0x40] sm:$0xff] }
 0x3bc   :  { %1852 = vmatpush1.bf16.msra.mxu1 %v805_v38  ;;  %1893 = vmatpush1.bf16.msra.mxu0 %v807_v39  ;;  %v711_v38 = vld [vmem:[#allocation2 + $0x50] sm:$0xff]  ;;  %v760_v39 = vld [vmem:[#allocation2 + $0x1d8] sm:$0xff] }
 0x3bd   :  { %1853 = vmatprep.subr.bf16.mxu1 %v856_v40  ;;  %1894 = vmatprep.subr.bf16.mxu0 %v858_v41  ;;  %v762_v40 = vld [vmem:[#allocation2 + $0x1e8] sm:$0xff]  ;;  %v759_v41 = vld [vmem:[#allocation2 + $0x1d0] sm:$0xff] }
 0x3c0   :  { %1854 = vmatpush1.bf16.msra.mxu1 %v855_v42  ;;  %1895 = vmatpush1.bf16.msra.mxu0 %v857_v43  ;;  %v761_v42 = vld [vmem:[#allocation2 + $0x1e0] sm:$0xff]  ;;  %v810_v43 = vld [vmem:[#allocation2 + $0x368] sm:$0xff] }
 0x3c1   :  { %1855 = vmatprep.subr.bf16.mxu1 %v906_v44  ;;  %1896 = vmatprep.subr.bf16.mxu0 %v908_v45  ;;  %v812_v44 = vld [vmem:[#allocation2 + $0x378] sm:$0xff]  ;;  %v809_v45 = vld [vmem:[#allocation2 + $0x360] sm:$0xff] }
 0x3c4   :  { %1856 = vmatpush1.bf16.msra.mxu1 %v905_v46  ;;  %1897 = vmatpush1.bf16.msra.mxu0 %v907_v47  ;;  %v811_v46 = vld [vmem:[#allocation2 + $0x370] sm:$0xff]  ;;  %v860_v47 = vld [vmem:[#allocation2 + $0x4f8] sm:$0xff] }
 0x3c5   :  { %1857 = vmatprep.subr.bf16.mxu1 %v956_v48  ;;  %1898 = vmatprep.subr.bf16.mxu0 %v958_v49  ;;  %v862_v48 = vld [vmem:[#allocation2 + $0x508] sm:$0xff]  ;;  %v859_v49 = vld [vmem:[#allocation2 + $0x4f0] sm:$0xff] }
 0x3c8   :  { %1858 = vmatpush1.bf16.msra.mxu1 %v955_v50  ;;  %1899 = vmatpush1.bf16.msra.mxu0 %v957_v51  ;;  %v861_v50 = vld [vmem:[#allocation2 + $0x500] sm:$0xff]  ;;  %v910_v51 = vld [vmem:[#allocation2 + $0x688] sm:$0xff] }
 0x3c9   :  { %1859 = vmatprep.subr.bf16.mxu1 %v1006_v52  ;;  %1900 = vmatprep.subr.bf16.mxu0 %v1008_v53  ;;  %v912_v52 = vld [vmem:[#allocation2 + $0x698] sm:$0xff]  ;;  %v909_v53 = vld [vmem:[#allocation2 + $0x680] sm:$0xff] }
 0x3cc   :  { %1860 = vmatpush1.bf16.msra.mxu1 %v1005_v54  ;;  %1901 = vmatpush1.bf16.msra.mxu0 %v1007_v55  ;;  %v911_v54 = vld [vmem:[#allocation2 + $0x690] sm:$0xff]  ;;  %v960_v55 = vld [vmem:[#allocation2 + $0x818] sm:$0xff] }
 0x3cd   :  { %1861 = vmatprep.subr.bf16.mxu1 %v1056_v56  ;;  %1902 = vmatprep.subr.bf16.mxu0 %v1058_v57  ;;  %v962_v56 = vld [vmem:[#allocation2 + $0x828] sm:$0xff]  ;;  %v959_v57 = vld [vmem:[#allocation2 + $0x810] sm:$0xff] }
 0x3d0   :  { %1862 = vmatpush1.bf16.msra.mxu1 %v1055_v58  ;;  %1903 = vmatpush1.bf16.msra.mxu0 %v1057_v59  ;;  %v961_v58 = vld [vmem:[#allocation2 + $0x820] sm:$0xff]  ;;  %v1010_v59 = vld [vmem:[#allocation2 + $0x9a8] sm:$0xff] }
 0x3d1   :  { %1863 = vmatprep.subr.bf16.mxu1 %v1106_v63  ;;  %1904 = vmatprep.subr.bf16.mxu0 %v1108_v2  ;;  %v1012_v63 = vld [vmem:[#allocation2 + $0x9b8] sm:$0xff]  ;;  %v1009_v2 = vld [vmem:[#allocation2 + $0x9a0] sm:$0xff] }
 0x3d4   :  { %1864 = vmatpush1.bf16.msra.mxu1 %v1105_v3  ;;  %1905 = vmatpush1.bf16.msra.mxu0 %v1107_v4  ;;  %v1011_v3 = vld [vmem:[#allocation2 + $0x9b0] sm:$0xff]  ;;  %v1060_v4 = vld [vmem:[#allocation2 + $0xb38] sm:$0xff] }
 0x3d5   :  { %1865 = vmatprep.subr.bf16.mxu1 %v1156_v5  ;;  %1906 = vmatprep.subr.bf16.mxu0 %v1158_v6  ;;  %v1062_v5 = vld [vmem:[#allocation2 + $0xb48] sm:$0xff]  ;;  %v1059_v6 = vld [vmem:[#allocation2 + $0xb30] sm:$0xff] }
 0x3d8   :  { %1866 = vmatpush1.bf16.msra.mxu1 %v1155_v7  ;;  %1907 = vmatpush1.bf16.msra.mxu0 %v1157_v8  ;;  %v1061_v7 = vld [vmem:[#allocation2 + $0xb40] sm:$0xff]  ;;  %v1110_v8 = vld [vmem:[#allocation2 + $0xcc8] sm:$0xff] }
 0x3d9   :  { %1867 = vmatprep.subr.bf16.mxu1 %v1206_v9  ;;  %1908 = vmatprep.subr.bf16.mxu0 %v1208_v10  ;;  %v1112_v9 = vld [vmem:[#allocation2 + $0xcd8] sm:$0xff]  ;;  %v1109_v10 = vld [vmem:[#allocation2 + $0xcc0] sm:$0xff] }
 0x3dc   :  { %1868 = vmatpush1.bf16.msra.mxu1 %v1205_v11  ;;  %1909 = vmatpush1.bf16.msra.mxu0 %v1207_v12  ;;  %v1111_v11 = vld [vmem:[#allocation2 + $0xcd0] sm:$0xff]  ;;  %v1160_v12 = vld [vmem:[#allocation2 + $0xe58] sm:$0xff] }
 0x3dd   :  { %1869 = vmatprep.subr.bf16.mxu1 %v1256_v13  ;;  %1910 = vmatprep.subr.bf16.mxu0 %v1258_v14  ;;  %v1162_v13 = vld [vmem:[#allocation2 + $0xe68] sm:$0xff]  ;;  %v1159_v14 = vld [vmem:[#allocation2 + $0xe50] sm:$0xff] }
 0x3e0   :  { %1870 = vmatpush1.bf16.msra.mxu1 %v1255_v15  ;;  %1911 = vmatpush1.bf16.msra.mxu0 %v1257_v16  ;;  %v1161_v15 = vld [vmem:[#allocation2 + $0xe60] sm:$0xff]  ;;  %v1210_v16 = vld [vmem:[#allocation2 + $0xfe8] sm:$0xff] }
 0x3e1   :  { %1871 = vmatprep.subr.bf16.mxu1 %v1306_v17  ;;  %1912 = vmatprep.subr.bf16.mxu0 %v1308_v18  ;;  %v1212_v17 = vld [vmem:[#allocation2 + $0xff8] sm:$0xff]  ;;  %v1209_v18 = vld [vmem:[#allocation2 + $0xfe0] sm:$0xff] }
 0x3e4   :  { %1872 = vmatpush1.bf16.msra.mxu1 %v1305_v21  ;;  %1913 = vmatpush1.bf16.msra.mxu0 %v1307_v22  ;;  %v1211_v21 = vld [vmem:[#allocation2 + $0xff0] sm:$0xff]  ;;  %v1260_v22 = vld [vmem:[#allocation2 + $0x1178] sm:$0xff] }
 0x3e5   :  { %1873 = vmatprep.subr.bf16.mxu1 %v1356_v23  ;;  %1914 = vmatprep.subr.bf16.mxu0 %v1358_v24  ;;  %v1262_v23 = vld [vmem:[#allocation2 + $0x1188] sm:$0xff]  ;;  %v1259_v24 = vld [vmem:[#allocation2 + $0x1170] sm:$0xff] }
 0x3e8   :  { %1874 = vmatpush1.bf16.msra.mxu1 %v1355_v25  ;;  %1915 = vmatpush1.bf16.msra.mxu0 %v1357_v26  ;;  %v1261_v25 = vld [vmem:[#allocation2 + $0x1180] sm:$0xff]  ;;  %v1310_v26 = vld [vmem:[#allocation2 + $0x1308] sm:$0xff] }
 0x3e9   :  { %1875 = vmatprep.subr.bf16.mxu1 %v1406_v27  ;;  %1916 = vmatprep.subr.bf16.mxu0 %v1408_v28  ;;  %v1312_v27 = vld [vmem:[#allocation2 + $0x1318] sm:$0xff]  ;;  %v1309_v28 = vld [vmem:[#allocation2 + $0x1300] sm:$0xff] }
 0x3ec   :  { %1876 = vmatpush1.bf16.msra.mxu1 %v1405_v29  ;;  %1917 = vmatpush1.bf16.msra.mxu0 %v1407_v30  ;;  %v1311_v29 = vld [vmem:[#allocation2 + $0x1310] sm:$0xff]  ;;  %v1360_v30 = vld [vmem:[#allocation2 + $0x1498] sm:$0xff] }
 0x3ed   :  { %1877 = vmatprep.subr.bf16.mxu1 %v1456_v31  ;;  %1918 = vmatprep.subr.bf16.mxu0 %v1458_v32  ;;  %v1362_v31 = vld [vmem:[#allocation2 + $0x14a8] sm:$0xff]  ;;  %v1359_v32 = vld [vmem:[#allocation2 + $0x1490] sm:$0xff] }
 0x3f0   :  { %1878 = vmatpush1.bf16.msra.mxu1 %v1455_v33  ;;  %1919 = vmatpush1.bf16.msra.mxu0 %v1457_v34  ;;  %v1361_v33 = vld [vmem:[#allocation2 + $0x14a0] sm:$0xff]  ;;  %v1410_v34 = vld [vmem:[#allocation2 + $0x1628] sm:$0xff] }
 0x3f1   :  { %1929 = vmatprep.subr.bf16.mxu1 %v710_v35  ;;  %1970 = vmatprep.subr.bf16.mxu0 %v712_v36  ;;  %v1412_v35 = vld [vmem:[#allocation2 + $0x1638] sm:$0xff]  ;;  %v1409_v36 = vld [vmem:[#allocation2 + $0x1620] sm:$0xff] }
 0x3f3   :  { %1880 = vmatmul.mubr.bf16.vlgmr.msra.gmra.mrb[8].mxu1 %v10024_v19  ;;  %1921 = vmatmul.mubr.bf16.vlgmr.msra.gmra.mrb[8].mxu0 %v10024_v19 }
 0x3f4   :  { %1930 = vmatpush1.bf16.msra.mxu1 %v709_v37  ;;  %1971 = vmatpush1.bf16.msra.mxu0 %v711_v38  ;;  %v1411_v37 = vld [vmem:[#allocation2 + $0x1630] sm:$0xff]  ;;  %v1460_v38 = vld [vmem:[#allocation2 + $0x17b8] sm:$0xff] }
 0x3f5   :  { %1931 = vmatprep.subr.bf16.mxu1 %v760_v39  ;;  %1972 = vmatprep.subr.bf16.mxu0 %v762_v40  ;;  %v1462_v39 = vld [vmem:[#allocation2 + $0x17c8] sm:$0xff]  ;;  %v1459_v40 = vld [vmem:[#allocation2 + $0x17b0] sm:$0xff] }
 0x3f6   :  { %1961 = vmatprep.mubr.bf16.mxu1 %v10026_v20  ;;  %2002 = vmatprep.mubr.bf16.mxu0 %v10026_v20 }
 0x3f8   :  { %1932 = vmatpush1.bf16.msra.mxu1 %v759_v41  ;;  %1973 = vmatpush1.bf16.msra.mxu0 %v761_v42  ;;  %v1461_v41 = vld [vmem:[#allocation2 + $0x17c0] sm:$0xff]  ;;  %v714_v42 = vld [vmem:[#allocation2 + $0x68] sm:$0xff] }
 0x3f9   :  { %1933 = vmatprep.subr.bf16.mxu1 %v810_v43  ;;  %1974 = vmatprep.subr.bf16.mxu0 %v812_v44  ;;  %v716_v43 = vld [vmem:[#allocation2 + $0x78] sm:$0xff]  ;;  %v713_v44 = vld [vmem:[#allocation2 + $0x60] sm:$0xff] }
 0x3fc   :  { %1934 = vmatpush1.bf16.msra.mxu1 %v809_v45  ;;  %1975 = vmatpush1.bf16.msra.mxu0 %v811_v46  ;;  %v715_v45 = vld [vmem:[#allocation2 + $0x70] sm:$0xff]  ;;  %v764_v46 = vld [vmem:[#allocation2 + $0x1f8] sm:$0xff] }
 0x3fd   :  { %1935 = vmatprep.subr.bf16.mxu1 %v860_v47  ;;  %1976 = vmatprep.subr.bf16.mxu0 %v862_v48  ;;  %v766_v47 = vld [vmem:[#allocation2 + $0x208] sm:$0xff]  ;;  %v763_v48 = vld [vmem:[#allocation2 + $0x1f0] sm:$0xff] }
 0x400   :  { %1936 = vmatpush1.bf16.msra.mxu1 %v859_v49  ;;  %1977 = vmatpush1.bf16.msra.mxu0 %v861_v50  ;;  %v765_v49 = vld [vmem:[#allocation2 + $0x200] sm:$0xff]  ;;  %v814_v50 = vld [vmem:[#allocation2 + $0x388] sm:$0xff] }
 0x401   :  { %1937 = vmatprep.subr.bf16.mxu1 %v910_v51  ;;  %1978 = vmatprep.subr.bf16.mxu0 %v912_v52  ;;  %v816_v51 = vld [vmem:[#allocation2 + $0x398] sm:$0xff]  ;;  %v813_v52 = vld [vmem:[#allocation2 + $0x380] sm:$0xff] }
 0x404   :  { %1938 = vmatpush1.bf16.msra.mxu1 %v909_v53  ;;  %1979 = vmatpush1.bf16.msra.mxu0 %v911_v54  ;;  %v815_v53 = vld [vmem:[#allocation2 + $0x390] sm:$0xff]  ;;  %v864_v54 = vld [vmem:[#allocation2 + $0x518] sm:$0xff] }
 0x405   :  { %1939 = vmatprep.subr.bf16.mxu1 %v960_v55  ;;  %1980 = vmatprep.subr.bf16.mxu0 %v962_v56  ;;  %v866_v55 = vld [vmem:[#allocation2 + $0x528] sm:$0xff]  ;;  %v863_v56 = vld [vmem:[#allocation2 + $0x510] sm:$0xff] }
 0x408   :  { %1940 = vmatpush1.bf16.msra.mxu1 %v959_v57  ;;  %1981 = vmatpush1.bf16.msra.mxu0 %v961_v58  ;;  %v865_v57 = vld [vmem:[#allocation2 + $0x520] sm:$0xff]  ;;  %v914_v58 = vld [vmem:[#allocation2 + $0x6a8] sm:$0xff] }
 0x409   :  { %1941 = vmatprep.subr.bf16.mxu1 %v1010_v59  ;;  %1982 = vmatprep.subr.bf16.mxu0 %v1012_v63  ;;  %v916_v59 = vld [vmem:[#allocation2 + $0x6b8] sm:$0xff]  ;;  %v913_v63 = vld [vmem:[#allocation2 + $0x6a0] sm:$0xff] }
 0x40c   :  { %1942 = vmatpush1.bf16.msra.mxu1 %v1009_v2  ;;  %1983 = vmatpush1.bf16.msra.mxu0 %v1011_v3  ;;  %v915_v2 = vld [vmem:[#allocation2 + $0x6b0] sm:$0xff]  ;;  %v964_v3 = vld [vmem:[#allocation2 + $0x838] sm:$0xff] }
 0x40d   :  { %1943 = vmatprep.subr.bf16.mxu1 %v1060_v4  ;;  %1984 = vmatprep.subr.bf16.mxu0 %v1062_v5  ;;  %v966_v4 = vld [vmem:[#allocation2 + $0x848] sm:$0xff]  ;;  %v963_v5 = vld [vmem:[#allocation2 + $0x830] sm:$0xff] }
 0x410   :  { %1944 = vmatpush1.bf16.msra.mxu1 %v1059_v6  ;;  %1985 = vmatpush1.bf16.msra.mxu0 %v1061_v7  ;;  %v965_v6 = vld [vmem:[#allocation2 + $0x840] sm:$0xff]  ;;  %v1014_v7 = vld [vmem:[#allocation2 + $0x9c8] sm:$0xff] }
 0x411   :  { %1945 = vmatprep.subr.bf16.mxu1 %v1110_v8  ;;  %1986 = vmatprep.subr.bf16.mxu0 %v1112_v9  ;;  %v1016_v8 = vld [vmem:[#allocation2 + $0x9d8] sm:$0xff]  ;;  %v1013_v9 = vld [vmem:[#allocation2 + $0x9c0] sm:$0xff] }
 0x414   :  { %1946 = vmatpush1.bf16.msra.mxu1 %v1109_v10  ;;  %1987 = vmatpush1.bf16.msra.mxu0 %v1111_v11  ;;  %v1015_v10 = vld [vmem:[#allocation2 + $0x9d0] sm:$0xff]  ;;  %v1064_v11 = vld [vmem:[#allocation2 + $0xb58] sm:$0xff] }
 0x415   :  { %1947 = vmatprep.subr.bf16.mxu1 %v1160_v12  ;;  %1988 = vmatprep.subr.bf16.mxu0 %v1162_v13  ;;  %v1066_v12 = vld [vmem:[#allocation2 + $0xb68] sm:$0xff]  ;;  %v1063_v13 = vld [vmem:[#allocation2 + $0xb50] sm:$0xff] }
 0x418   :  { %1948 = vmatpush1.bf16.msra.mxu1 %v1159_v14  ;;  %1989 = vmatpush1.bf16.msra.mxu0 %v1161_v15  ;;  %v1065_v14 = vld [vmem:[#allocation2 + $0xb60] sm:$0xff]  ;;  %v1114_v15 = vld [vmem:[#allocation2 + $0xce8] sm:$0xff] }
 0x419   :  { %1949 = vmatprep.subr.bf16.mxu1 %v1210_v16  ;;  %1990 = vmatprep.subr.bf16.mxu0 %v1212_v17  ;;  %v1116_v16 = vld [vmem:[#allocation2 + $0xcf8] sm:$0xff]  ;;  %v1113_v17 = vld [vmem:[#allocation2 + $0xce0] sm:$0xff] }
 0x41c   :  { %1950 = vmatpush1.bf16.msra.mxu1 %v1209_v18  ;;  %1991 = vmatpush1.bf16.msra.mxu0 %v1211_v21  ;;  %v1115_v18 = vld [vmem:[#allocation2 + $0xcf0] sm:$0xff]  ;;  %v1164_v21 = vld [vmem:[#allocation2 + $0xe78] sm:$0xff] }
 0x41d   :  { %1951 = vmatprep.subr.bf16.mxu1 %v1260_v22  ;;  %1992 = vmatprep.subr.bf16.mxu0 %v1262_v23  ;;  %v1166_v22 = vld [vmem:[#allocation2 + $0xe88] sm:$0xff]  ;;  %v1163_v23 = vld [vmem:[#allocation2 + $0xe70] sm:$0xff] }
 0x420   :  { %1952 = vmatpush1.bf16.msra.mxu1 %v1259_v24  ;;  %1993 = vmatpush1.bf16.msra.mxu0 %v1261_v25  ;;  %v1165_v24 = vld [vmem:[#allocation2 + $0xe80] sm:$0xff]  ;;  %v1214_v25 = vld [vmem:[#allocation2 + $0x1008] sm:$0xff] }
 0x421   :  { %1953 = vmatprep.subr.bf16.mxu1 %v1310_v26  ;;  %1994 = vmatprep.subr.bf16.mxu0 %v1312_v27  ;;  %v1216_v26 = vld [vmem:[#allocation2 + $0x1018] sm:$0xff]  ;;  %v1213_v27 = vld [vmem:[#allocation2 + $0x1000] sm:$0xff] }
 0x424   :  { %1954 = vmatpush1.bf16.msra.mxu1 %v1309_v28  ;;  %1995 = vmatpush1.bf16.msra.mxu0 %v1311_v29  ;;  %v1215_v28 = vld [vmem:[#allocation2 + $0x1010] sm:$0xff]  ;;  %v1264_v29 = vld [vmem:[#allocation2 + $0x1198] sm:$0xff] }
 0x425   :  { %1955 = vmatprep.subr.bf16.mxu1 %v1360_v30  ;;  %1996 = vmatprep.subr.bf16.mxu0 %v1362_v31  ;;  %v1266_v30 = vld [vmem:[#allocation2 + $0x11a8] sm:$0xff]  ;;  %v1263_v31 = vld [vmem:[#allocation2 + $0x1190] sm:$0xff] }
 0x428   :  { %1956 = vmatpush1.bf16.msra.mxu1 %v1359_v32  ;;  %1997 = vmatpush1.bf16.msra.mxu0 %v1361_v33  ;;  %v1265_v32 = vld [vmem:[#allocation2 + $0x11a0] sm:$0xff]  ;;  %v1314_v33 = vld [vmem:[#allocation2 + $0x1328] sm:$0xff] }
 0x429   :  { %1957 = vmatprep.subr.bf16.mxu1 %v1410_v34  ;;  %1998 = vmatprep.subr.bf16.mxu0 %v1412_v35  ;;  %v1316_v34 = vld [vmem:[#allocation2 + $0x1338] sm:$0xff]  ;;  %v1313_v35 = vld [vmem:[#allocation2 + $0x1320] sm:$0xff] }
 0x42c   :  { %1958 = vmatpush1.bf16.msra.mxu1 %v1409_v36  ;;  %1999 = vmatpush1.bf16.msra.mxu0 %v1411_v37  ;;  %v1315_v36 = vld [vmem:[#allocation2 + $0x1330] sm:$0xff]  ;;  %v1364_v37 = vld [vmem:[#allocation2 + $0x14b8] sm:$0xff] }
 0x42d   :  { %1959 = vmatprep.subr.bf16.mxu1 %v1460_v38  ;;  %2000 = vmatprep.subr.bf16.mxu0 %v1462_v39  ;;  %v1366_v38 = vld [vmem:[#allocation2 + $0x14c8] sm:$0xff]  ;;  %v1363_v39 = vld [vmem:[#allocation2 + $0x14b0] sm:$0xff] }
 0x430   :  { %1960 = vmatpush1.bf16.msra.mxu1 %v1459_v40  ;;  %2001 = vmatpush1.bf16.msra.mxu0 %v1461_v41  ;;  %v1365_v40 = vld [vmem:[#allocation2 + $0x14c0] sm:$0xff]  ;;  %v1414_v41 = vld [vmem:[#allocation2 + $0x1648] sm:$0xff] }
 0x431   :  { %2011 = vmatprep.subr.bf16.mxu1 %v714_v42  ;;  %2052 = vmatprep.subr.bf16.mxu0 %v716_v43  ;;  %v1416_v42 = vld [vmem:[#allocation2 + $0x1658] sm:$0xff]  ;;  %v1413_v43 = vld [vmem:[#allocation2 + $0x1640] sm:$0xff] }
 0x433   :  { %1962 = vmatmul.mubr.bf16.vlgmr.msra.gmra.mrb[12].mxu1 %v10024_v19  ;;  %2003 = vmatmul.mubr.bf16.vlgmr.msra.gmra.mrb[12].mxu0 %v10024_v19 }
 0x434   :  { %2012 = vmatpush1.bf16.msra.mxu1 %v713_v44  ;;  %2053 = vmatpush1.bf16.msra.mxu0 %v715_v45  ;;  %v1415_v44 = vld [vmem:[#allocation2 + $0x1650] sm:$0xff]  ;;  %v1464_v45 = vld [vmem:[#allocation2 + $0x17d8] sm:$0xff] }
 0x435   :  { %2013 = vmatprep.subr.bf16.mxu1 %v764_v46  ;;  %2054 = vmatprep.subr.bf16.mxu0 %v766_v47  ;;  %v1466_v46 = vld [vmem:[#allocation2 + $0x17e8] sm:$0xff]  ;;  %v1463_v47 = vld [vmem:[#allocation2 + $0x17d0] sm:$0xff] }
 0x436   :  { %2043 = vmatprep.mubr.bf16.mxu1 %v10026_v20  ;;  %2084 = vmatprep.mubr.bf16.mxu0 %v10026_v20 }
 0x438   :  { %2014 = vmatpush1.bf16.msra.mxu1 %v763_v48  ;;  %2055 = vmatpush1.bf16.msra.mxu0 %v765_v49  ;;  %v1465_v48 = vld [vmem:[#allocation2 + $0x17e0] sm:$0xff]  ;;  %v718_v49 = vld [vmem:[#allocation2 + $0x88] sm:$0xff] }
 0x439   :  { %2015 = vmatprep.subr.bf16.mxu1 %v814_v50  ;;  %2056 = vmatprep.subr.bf16.mxu0 %v816_v51  ;;  %v720_v50 = vld [vmem:[#allocation2 + $0x98] sm:$0xff]  ;;  %v717_v51 = vld [vmem:[#allocation2 + $0x80] sm:$0xff] }
 0x43c   :  { %2016 = vmatpush1.bf16.msra.mxu1 %v813_v52  ;;  %2057 = vmatpush1.bf16.msra.mxu0 %v815_v53  ;;  %v719_v52 = vld [vmem:[#allocation2 + $0x90] sm:$0xff]  ;;  %v768_v53 = vld [vmem:[#allocation2 + $0x218] sm:$0xff] }
 0x43d   :  { %2017 = vmatprep.subr.bf16.mxu1 %v864_v54  ;;  %2058 = vmatprep.subr.bf16.mxu0 %v866_v55  ;;  %v770_v54 = vld [vmem:[#allocation2 + $0x228] sm:$0xff]  ;;  %v767_v55 = vld [vmem:[#allocation2 + $0x210] sm:$0xff] }
 0x440   :  { %2018 = vmatpush1.bf16.msra.mxu1 %v863_v56  ;;  %2059 = vmatpush1.bf16.msra.mxu0 %v865_v57  ;;  %v769_v56 = vld [vmem:[#allocation2 + $0x220] sm:$0xff]  ;;  %v818_v57 = vld [vmem:[#allocation2 + $0x3a8] sm:$0xff] }
 0x441   :  { %2019 = vmatprep.subr.bf16.mxu1 %v914_v58  ;;  %2060 = vmatprep.subr.bf16.mxu0 %v916_v59  ;;  %v820_v58 = vld [vmem:[#allocation2 + $0x3b8] sm:$0xff]  ;;  %v817_v59 = vld [vmem:[#allocation2 + $0x3a0] sm:$0xff] }
 0x444   :  { %2020 = vmatpush1.bf16.msra.mxu1 %v913_v63  ;;  %2061 = vmatpush1.bf16.msra.mxu0 %v915_v2  ;;  %v819_v63 = vld [vmem:[#allocation2 + $0x3b0] sm:$0xff]  ;;  %v868_v2 = vld [vmem:[#allocation2 + $0x538] sm:$0xff] }
 0x445   :  { %2021 = vmatprep.subr.bf16.mxu1 %v964_v3  ;;  %2062 = vmatprep.subr.bf16.mxu0 %v966_v4  ;;  %v870_v3 = vld [vmem:[#allocation2 + $0x548] sm:$0xff]  ;;  %v867_v4 = vld [vmem:[#allocation2 + $0x530] sm:$0xff] }
 0x448   :  { %2022 = vmatpush1.bf16.msra.mxu1 %v963_v5  ;;  %2063 = vmatpush1.bf16.msra.mxu0 %v965_v6  ;;  %v869_v5 = vld [vmem:[#allocation2 + $0x540] sm:$0xff]  ;;  %v918_v6 = vld [vmem:[#allocation2 + $0x6c8] sm:$0xff] }
 0x449   :  { %2023 = vmatprep.subr.bf16.mxu1 %v1014_v7  ;;  %2064 = vmatprep.subr.bf16.mxu0 %v1016_v8  ;;  %v920_v7 = vld [vmem:[#allocation2 + $0x6d8] sm:$0xff]  ;;  %v10089_v8 = vsub.s32 2, %v10000_v61 }
 0x44c   :  { %2024 = vmatpush1.bf16.msra.mxu1 %v1013_v9  ;;  %2065 = vmatpush1.bf16.msra.mxu0 %v1015_v10  ;;  %v10091_v9 = vld [vmem:[#allocation21] sm:$0xff]  ;;  %v10094_v10 = vsub.s32 3, %v10000_v61 }
 0x44d   :  { %2025 = vmatprep.subr.bf16.mxu1 %v1064_v11  ;;  %2066 = vmatprep.subr.bf16.mxu0 %v1066_v12  ;;  %v917_v11 = vld [vmem:[#allocation2 + $0x6c0] sm:$0xff]  ;;  %v919_v12 = vld [vmem:[#allocation2 + $0x6d0] sm:$0xff] }
 0x450   :  { %2026 = vmatpush1.bf16.msra.mxu1 %v1063_v13  ;;  %2067 = vmatpush1.bf16.msra.mxu0 %v1065_v14  ;;  %v968_v13 = vld [vmem:[#allocation2 + $0x858] sm:$0xff]  ;;  %v970_v14 = vld [vmem:[#allocation2 + $0x868] sm:$0xff] }
 0x451   :  { %2027 = vmatprep.subr.bf16.mxu1 %v1114_v15  ;;  %2068 = vmatprep.subr.bf16.mxu0 %v1116_v16  ;;  %v1518_v15 = vrot.slane %v10091_v9, %v10003_v62  ;;  %v1526_v16 = vrot.slane %v10091_v9, %v10089_v8 }
 0x454   :  { %2028 = vmatpush1.bf16.msra.mxu1 %v1113_v17  ;;  %2069 = vmatpush1.bf16.msra.mxu0 %v1115_v18  ;;  %v1522_v17 = vrot.slane %v10091_v9, %v10006_v0  ;;  %v1530_v18 = vrot.slane %v10091_v9, %v10094_v10 }
 0x455   :  { %2029 = vmatprep.subr.bf16.mxu1 %v1164_v21  ;;  %2070 = vmatprep.subr.bf16.mxu0 %v1166_v22  ;;  %v967_v21 = vld [vmem:[#allocation2 + $0x850] sm:$0xff]  ;;  %v969_v22 = vld [vmem:[#allocation2 + $0x860] sm:$0xff] }
 0x458   :  { %2030 = vmatpush1.bf16.msra.mxu1 %v1163_v23  ;;  %2071 = vmatpush1.bf16.msra.mxu0 %v1165_v24 }
 0x459   :  { %2031 = vmatprep.subr.bf16.mxu1 %v1214_v25  ;;  %2072 = vmatprep.subr.bf16.mxu0 %v1216_v26  ;;  %v1018_v25 = vld [vmem:[#allocation2 + $0x9e8] sm:$0xff]  ;;  %v1020_v26 = vld [vmem:[#allocation2 + $0x9f8] sm:$0xff] }
 0x45c   :  { %2032 = vmatpush1.bf16.msra.mxu1 %v1213_v27  ;;  %2073 = vmatpush1.bf16.msra.mxu0 %v1215_v28 }
 0x45d   :  { %2033 = vmatprep.subr.bf16.mxu1 %v1264_v29  ;;  %2074 = vmatprep.subr.bf16.mxu0 %v1266_v30 }
 0x460   :  { %2034 = vmatpush1.bf16.msra.mxu1 %v1263_v31  ;;  %2075 = vmatpush1.bf16.msra.mxu0 %v1265_v32 }
 0x461   :  { %2035 = vmatprep.subr.bf16.mxu1 %v1314_v33  ;;  %2076 = vmatprep.subr.bf16.mxu0 %v1316_v34 }
 0x464   :  { %2036 = vmatpush1.bf16.msra.mxu1 %v1313_v35  ;;  %2077 = vmatpush1.bf16.msra.mxu0 %v1315_v36 }
 0x465   :  { %2037 = vmatprep.subr.bf16.mxu1 %v1364_v37  ;;  %2078 = vmatprep.subr.bf16.mxu0 %v1366_v38  ;;  %v1017_v38 = vld [vmem:[#allocation2 + $0x9e0] sm:$0xff] }
 0x468   :  { %2038 = vmatpush1.bf16.msra.mxu1 %v1363_v39  ;;  %2079 = vmatpush1.bf16.msra.mxu0 %v1365_v40  ;;  %v1019_v39 = vld [vmem:[#allocation2 + $0x9f0] sm:$0xff] }
 0x469   :  { %2039 = vmatprep.subr.bf16.mxu1 %v1414_v41  ;;  %2080 = vmatprep.subr.bf16.mxu0 %v1416_v42 }
 0x46c   :  { %2040 = vmatpush1.bf16.msra.mxu1 %v1413_v43  ;;  %2081 = vmatpush1.bf16.msra.mxu0 %v1415_v44  ;;  %v1068_v43 = vld [vmem:[#allocation2 + $0xb78] sm:$0xff]  ;;  %v1070_v44 = vld [vmem:[#allocation2 + $0xb88] sm:$0xff] }
 0x46d   :  { %2041 = vmatprep.subr.bf16.mxu1 %v1464_v45  ;;  %2082 = vmatprep.subr.bf16.mxu0 %v1466_v46  ;;  %v1067_v45 = vld [vmem:[#allocation2 + $0xb70] sm:$0xff]  ;;  %v1069_v46 = vld [vmem:[#allocation2 + $0xb80] sm:$0xff] }
 0x470   :  { %2042 = vmatpush1.bf16.msra.mxu1 %v1463_v47  ;;  %2083 = vmatpush1.bf16.msra.mxu0 %v1465_v48  ;;  %v1118_v47 = vld [vmem:[#allocation2 + $0xd08] sm:$0xff]  ;;  %v1120_v48 = vld [vmem:[#allocation2 + $0xd18] sm:$0xff] }
 0x471   :  { %2093 = vmatprep.subr.bf16.mxu1 %v718_v49  ;;  %2134 = vmatprep.subr.bf16.mxu0 %v720_v50  ;;  %v1117_v49 = vld [vmem:[#allocation2 + $0xd00] sm:$0xff]  ;;  %v1119_v50 = vld [vmem:[#allocation2 + $0xd10] sm:$0xff] }
 0x473   :  { %2044 = vmatmul.mubr.bf16.vlgmr.msra.gmra.mrb[16].mxu1 %v10024_v19  ;;  %2085 = vmatmul.mubr.bf16.vlgmr.msra.gmra.mrb[16].mxu0 %v10024_v19 }
 0x474   :  { %2094 = vmatpush1.bf16.msra.mxu1 %v717_v51  ;;  %2135 = vmatpush1.bf16.msra.mxu0 %v719_v52  ;;  %v1168_v51 = vld [vmem:[#allocation2 + $0xe98] sm:$0xff]  ;;  %v1170_v52 = vld [vmem:[#allocation2 + $0xea8] sm:$0xff] }
 0x475   :  { %2095 = vmatprep.subr.bf16.mxu1 %v768_v53  ;;  %2136 = vmatprep.subr.bf16.mxu0 %v770_v54  ;;  %v1167_v53 = vld [vmem:[#allocation2 + $0xe90] sm:$0xff]  ;;  %v1169_v54 = vld [vmem:[#allocation2 + $0xea0] sm:$0xff] }
 0x476   :  { %2125 = vmatprep.mubr.bf16.mxu1 %v10026_v20  ;;  %2166 = vmatprep.mubr.bf16.mxu0 %v10026_v20 }
 0x478   :  { %2096 = vmatpush1.bf16.msra.mxu1 %v767_v55  ;;  %2137 = vmatpush1.bf16.msra.mxu0 %v769_v56  ;;  %v1218_v55 = vld [vmem:[#allocation2 + $0x1028] sm:$0xff]  ;;  %v1220_v56 = vld [vmem:[#allocation2 + $0x1038] sm:$0xff] }
 0x479   :  { %2097 = vmatprep.subr.bf16.mxu1 %v818_v57  ;;  %2138 = vmatprep.subr.bf16.mxu0 %v820_v58  ;;  %v1217_v57 = vld [vmem:[#allocation2 + $0x1020] sm:$0xff]  ;;  %v1219_v58 = vld [vmem:[#allocation2 + $0x1030] sm:$0xff] }
 0x47c   :  { %2098 = vmatpush1.bf16.msra.mxu1 %v817_v59  ;;  %2139 = vmatpush1.bf16.msra.mxu0 %v819_v63  ;;  %v1268_v59 = vld [vmem:[#allocation2 + $0x11b8] sm:$0xff]  ;;  %v1270_v63 = vld [vmem:[#allocation2 + $0x11c8] sm:$0xff] }
 0x47d   :  { %2099 = vmatprep.subr.bf16.mxu1 %v868_v2  ;;  %2140 = vmatprep.subr.bf16.mxu0 %v870_v3  ;;  %v1267_v2 = vld [vmem:[#allocation2 + $0x11b0] sm:$0xff]  ;;  %v1269_v3 = vld [vmem:[#allocation2 + $0x11c0] sm:$0xff] }
 0x480   :  { %2100 = vmatpush1.bf16.msra.mxu1 %v867_v4  ;;  %2141 = vmatpush1.bf16.msra.mxu0 %v869_v5  ;;  %v1318_v4 = vld [vmem:[#allocation2 + $0x1348] sm:$0xff]  ;;  %v1320_v5 = vld [vmem:[#allocation2 + $0x1358] sm:$0xff] }
 0x481   :  { %2101 = vmatprep.subr.bf16.mxu1 %v918_v6  ;;  %2142 = vmatprep.subr.bf16.mxu0 %v920_v7  ;;  %v1317_v6 = vld [vmem:[#allocation2 + $0x1340] sm:$0xff]  ;;  %v1319_v7 = vld [vmem:[#allocation2 + $0x1350] sm:$0xff] }
 0x484   :  { %2102 = vmatpush1.bf16.msra.mxu1 %v917_v11  ;;  %2143 = vmatpush1.bf16.msra.mxu0 %v919_v12  ;;  %v1368_v11 = vld [vmem:[#allocation2 + $0x14d8] sm:$0xff]  ;;  %v1370_v12 = vld [vmem:[#allocation2 + $0x14e8] sm:$0xff] }
 0x485   :  { %2103 = vmatprep.subr.bf16.mxu1 %v968_v13  ;;  %2144 = vmatprep.subr.bf16.mxu0 %v970_v14  ;;  %v1367_v13 = vld [vmem:[#allocation2 + $0x14d0] sm:$0xff]  ;;  %v1369_v14 = vld [vmem:[#allocation2 + $0x14e0] sm:$0xff] }
 0x486   :  { %v1799_v23 = vpop.f32.mrb[4].mxu1  ;;  %v1840_v24 = vpop.f32.mrb[4].mxu0 }
 0x487   :  { %v1800_v27 = vadd.f32 %v1799_v23, %v1518_v15  ;;  %v1841_v28 = vadd.f32 %v1840_v24, %v1526_v16  ;;  %v1801_v29 = vpop.f32.mrb[5].mxu1  ;;  %v1842_v30 = vpop.f32.mrb[5].mxu0  ;;  %v1418_v15 = vld [vmem:[#allocation2 + $0x1668] sm:$0xff]  ;;  %v1420_v16 = vld [vmem:[#allocation2 + $0x1678] sm:$0xff]  ;;  %v1467_v23 = vld [vmem:[#allocation2 + $0x17f0] sm:$0xff] }
 0x488   :  { %v1802_v31 = vadd.f32 %v1801_v29, %v1522_v17  ;;  %v1843_v32 = vadd.f32 %v1842_v30, %v1530_v18  ;;  %v1803_v33 = vpop.f32.mrb[6].mxu1  ;;  %2104 = vmatpush1.bf16.msra.mxu1 %v967_v21  ;;  %2145 = vmatpush1.bf16.msra.mxu0 %v969_v22  ;;  %v1844_v34 = vpop.f32.mrb[6].mxu0  ;;  %v1417_v17 = vld [vmem:[#allocation2 + $0x1660] sm:$0xff]  ;;  %v1419_v18 = vld [vmem:[#allocation2 + $0x1670] sm:$0xff]  ;;  %v1468_v21 = vld [vmem:[#allocation2 + $0x17f8] sm:$0xff] }
 0x489   :  { %v2790_v35 = vmax.f32 %v1800_v27, 0.0  ;;  %v2792_v36 = vmax.f32 %v1841_v28, 0.0  ;;  %v1804_v37 = vpop.f32.mrb[7].mxu1  ;;  %2105 = vmatprep.subr.bf16.mxu1 %v1018_v25  ;;  %2146 = vmatprep.subr.bf16.mxu0 %v1020_v26  ;;  %v1845_v40 = vpop.f32.mrb[7].mxu0  ;;  %v1470_v22 = vld [vmem:[#allocation2 + $0x1808] sm:$0xff]  ;;  %v1469_v24 = vld [vmem:[#allocation2 + $0x1800] sm:$0xff] }
 0x48a   :  { %v2791_v41 = vmax.f32 %v1802_v31, 0.0  ;;  %v2793_v42 = vmax.f32 %v1843_v32, 0.0  ;;  %v722_v25 = vld [vmem:[#allocation2 + $0xa8] sm:$0xff]  ;;  %v724_v26 = vld [vmem:[#allocation2 + $0xb8] sm:$0xff]  ;;  %v721_v27 = vld [vmem:[#allocation2 + $0xa0] sm:$0xff] }
 0x48b   :  { %2840 = vst [vmem:[#allocation6] sm:$0xff] %v2790_v35  ;;  %2842 = vst [vmem:[#allocation6 + $0x10] sm:$0xff] %v2792_v36  ;;  %v723_v28 = vld [vmem:[#allocation2 + $0xb0] sm:$0xff]  ;;  %v772_v29 = vld [vmem:[#allocation2 + $0x238] sm:$0xff] }
 0x48c   :  { %2841 = vst [vmem:[#allocation6 + $0x8] sm:$0xff] %v2791_v41  ;;  %2843 = vst [vmem:[#allocation6 + $0x18] sm:$0xff] %v2793_v42  ;;  %2106 = vmatpush1.bf16.msra.mxu1 %v1017_v38  ;;  %2147 = vmatpush1.bf16.msra.mxu0 %v1019_v39  ;;  %v774_v30 = vld [vmem:[#allocation2 + $0x248] sm:$0xff]  ;;  %v771_v31 = vld [vmem:[#allocation2 + $0x230] sm:$0xff] }
 0x48d   :  { %2107 = vmatprep.subr.bf16.mxu1 %v1068_v43  ;;  %2148 = vmatprep.subr.bf16.mxu0 %v1070_v44  ;;  %v773_v32 = vld [vmem:[#allocation2 + $0x240] sm:$0xff]  ;;  %v822_v33 = vld [vmem:[#allocation2 + $0x3c8] sm:$0xff]  ;;  %v824_v34 = vld [vmem:[#allocation2 + $0x3d8] sm:$0xff]  ;;  %v10109_v43 = vsub.s32 4, %v10000_v61  ;;  %v10112_v44 = vsub.s32 6, %v10000_v61 }
 0x48e   :  { %v821_v35 = vld [vmem:[#allocation2 + $0x3c0] sm:$0xff]  ;;  %v823_v36 = vld [vmem:[#allocation2 + $0x3d0] sm:$0xff]  ;;  %v872_v37 = vld [vmem:[#allocation2 + $0x558] sm:$0xff] }
 0x48f   :  { %v874_v38 = vld [vmem:[#allocation2 + $0x568] sm:$0xff]  ;;  %v871_v39 = vld [vmem:[#allocation2 + $0x550] sm:$0xff]  ;;  %v873_v40 = vld [vmem:[#allocation2 + $0x560] sm:$0xff] }
 0x490   :  { %2108 = vmatpush1.bf16.msra.mxu1 %v1067_v45  ;;  %2149 = vmatpush1.bf16.msra.mxu0 %v1069_v46  ;;  %v922_v41 = vld [vmem:[#allocation2 + $0x6e8] sm:$0xff]  ;;  %v924_v42 = vld [vmem:[#allocation2 + $0x6f8] sm:$0xff]  ;;  %v10115_v45 = vsub.s32 5, %v10000_v61  ;;  %v10118_v46 = vsub.s32 7, %v10000_v61 }
 0x491   :  { %2109 = vmatprep.subr.bf16.mxu1 %v1118_v47  ;;  %2150 = vmatprep.subr.bf16.mxu0 %v1120_v48  ;;  %v921_v47 = vld [vmem:[#allocation2 + $0x6e0] sm:$0xff]  ;;  %v923_v48 = vld [vmem:[#allocation2 + $0x6f0] sm:$0xff] }
 0x492   :  { %v1546_v61 = vrot.slane %v10091_v9, %v10118_v46 }
 0x494   :  { %2110 = vmatpush1.bf16.msra.mxu1 %v1117_v49  ;;  %2151 = vmatpush1.bf16.msra.mxu0 %v1119_v50  ;;  %v972_v49 = vld [vmem:[#allocation2 + $0x878] sm:$0xff]  ;;  %v974_v50 = vld [vmem:[#allocation2 + $0x888] sm:$0xff] }
 0x495   :  { %2111 = vmatprep.subr.bf16.mxu1 %v1168_v51  ;;  %2152 = vmatprep.subr.bf16.mxu0 %v1170_v52  ;;  %v1534_v51 = vrot.slane %v10091_v9, %v10109_v43  ;;  %v1542_v52 = vrot.slane %v10091_v9, %v10112_v44 }
 0x498   :  { %2112 = vmatpush1.bf16.msra.mxu1 %v1167_v53  ;;  %2153 = vmatpush1.bf16.msra.mxu0 %v1169_v54  ;;  %v1538_v53 = vrot.slane %v10091_v9, %v10115_v45  ;;  %v971_v54 = vld [vmem:[#allocation2 + $0x870] sm:$0xff] }
 0x499   :  { %2113 = vmatprep.subr.bf16.mxu1 %v1218_v55  ;;  %2154 = vmatprep.subr.bf16.mxu0 %v1220_v56  ;;  %v973_v55 = vld [vmem:[#allocation2 + $0x880] sm:$0xff] }
 0x49c   :  { %2114 = vmatpush1.bf16.msra.mxu1 %v1217_v57  ;;  %2155 = vmatpush1.bf16.msra.mxu0 %v1219_v58  ;;  %v1022_v57 = vld [vmem:[#allocation2 + $0xa08] sm:$0xff]  ;;  %v1024_v58 = vld [vmem:[#allocation2 + $0xa18] sm:$0xff] }
 0x49d   :  { %2115 = vmatprep.subr.bf16.mxu1 %v1268_v59  ;;  %2156 = vmatprep.subr.bf16.mxu0 %v1270_v63 }
 0x4a0   :  { %2116 = vmatpush1.bf16.msra.mxu1 %v1267_v2  ;;  %2157 = vmatpush1.bf16.msra.mxu0 %v1269_v3 }
 0x4a1   :  { %2117 = vmatprep.subr.bf16.mxu1 %v1318_v4  ;;  %2158 = vmatprep.subr.bf16.mxu0 %v1320_v5 }
 0x4a4   :  { %2118 = vmatpush1.bf16.msra.mxu1 %v1317_v6  ;;  %2159 = vmatpush1.bf16.msra.mxu0 %v1319_v7 }
 0x4a5   :  { %2119 = vmatprep.subr.bf16.mxu1 %v1368_v11  ;;  %2160 = vmatprep.subr.bf16.mxu0 %v1370_v12 }
 0x4a8   :  { %2120 = vmatpush1.bf16.msra.mxu1 %v1367_v13  ;;  %2161 = vmatpush1.bf16.msra.mxu0 %v1369_v14  ;;  %v1021_v13 = vld [vmem:[#allocation2 + $0xa00] sm:$0xff]  ;;  %v1023_v14 = vld [vmem:[#allocation2 + $0xa10] sm:$0xff] }
 0x4a9   :  { %2121 = vmatprep.subr.bf16.mxu1 %v1418_v15  ;;  %2162 = vmatprep.subr.bf16.mxu0 %v1420_v16 }
 0x4ac   :  { %2122 = vmatpush1.bf16.msra.mxu1 %v1417_v17  ;;  %2163 = vmatpush1.bf16.msra.mxu0 %v1419_v18  ;;  %v1072_v18 = vld [vmem:[#allocation2 + $0xb98] sm:$0xff] }
 0x4ad   :  { %2123 = vmatprep.subr.bf16.mxu1 %v1468_v21  ;;  %2164 = vmatprep.subr.bf16.mxu0 %v1470_v22  ;;  %v1074_v21 = vld [vmem:[#allocation2 + $0xba8] sm:$0xff] }
 0x4b0   :  { %2124 = vmatpush1.bf16.msra.mxu1 %v1467_v23  ;;  %2165 = vmatpush1.bf16.msra.mxu0 %v1469_v24  ;;  %v1071_v23 = vld [vmem:[#allocation2 + $0xb90] sm:$0xff]  ;;  %v1073_v24 = vld [vmem:[#allocation2 + $0xba0] sm:$0xff] }
 0x4b1   :  { %2175 = vmatprep.subr.bf16.mxu1 %v722_v25  ;;  %2216 = vmatprep.subr.bf16.mxu0 %v724_v26  ;;  %v1122_v25 = vld [vmem:[#allocation2 + $0xd28] sm:$0xff]  ;;  %v1124_v26 = vld [vmem:[#allocation2 + $0xd38] sm:$0xff] }
 0x4b3   :  { %2126 = vmatmul.mubr.bf16.vlgmr.msra.gmra.mrb[20].mxu1 %v10024_v19  ;;  %2167 = vmatmul.mubr.bf16.vlgmr.msra.gmra.mrb[20].mxu0 %v10024_v19 }
 0x4b4   :  { %2176 = vmatpush1.bf16.msra.mxu1 %v721_v27  ;;  %2217 = vmatpush1.bf16.msra.mxu0 %v723_v28  ;;  %v1121_v27 = vld [vmem:[#allocation2 + $0xd20] sm:$0xff] }
 0x4b5   :  { %2177 = vmatprep.subr.bf16.mxu1 %v772_v29  ;;  %2218 = vmatprep.subr.bf16.mxu0 %v774_v30  ;;  %v1123_v29 = vld [vmem:[#allocation2 + $0xd30] sm:$0xff]  ;;  %v1172_v30 = vld [vmem:[#allocation2 + $0xeb8] sm:$0xff] }
 0x4b6   :  { %2207 = vmatprep.mubr.bf16.mxu1 %v10026_v20  ;;  %2248 = vmatprep.mubr.bf16.mxu0 %v10026_v20 }
 0x4b8   :  { %2178 = vmatpush1.bf16.msra.mxu1 %v771_v31  ;;  %2219 = vmatpush1.bf16.msra.mxu0 %v773_v32  ;;  %v1174_v31 = vld [vmem:[#allocation2 + $0xec8] sm:$0xff] }
 0x4b9   :  { %2179 = vmatprep.subr.bf16.mxu1 %v822_v33  ;;  %2220 = vmatprep.subr.bf16.mxu0 %v824_v34  ;;  %v2932_v32 = vld [vmem:[#allocation6] ss:$8 sm:$0xf]  ;;  %v3006_v33 = vld [vmem:[#allocation6 + $0x1] ss:$8 sm:$0xf] }
 0x4bc   :  { %2180 = vmatpush1.bf16.msra.mxu1 %v821_v35  ;;  %2221 = vmatpush1.bf16.msra.mxu0 %v823_v36 }
 0x4bd   :  { %2181 = vmatprep.subr.bf16.mxu1 %v872_v37  ;;  %2222 = vmatprep.subr.bf16.mxu0 %v874_v38  ;;  %v1173_v38 = vld [vmem:[#allocation2 + $0xec0] sm:$0xff] }
 0x4c0   :  { %2182 = vmatpush1.bf16.msra.mxu1 %v871_v39  ;;  %2223 = vmatpush1.bf16.msra.mxu0 %v873_v40  ;;  %v1222_v39 = vld [vmem:[#allocation2 + $0x1048] sm:$0xff]  ;;  %v1224_v40 = vld [vmem:[#allocation2 + $0x1058] sm:$0xff] }
 0x4c1   :  { %2183 = vmatprep.subr.bf16.mxu1 %v922_v41  ;;  %2224 = vmatprep.subr.bf16.mxu0 %v924_v42  ;;  %v1221_v41 = vld [vmem:[#allocation2 + $0x1040] sm:$0xff]  ;;  %v1223_v42 = vld [vmem:[#allocation2 + $0x1050] sm:$0xff] }
 0x4c4   :  { %2184 = vmatpush1.bf16.msra.mxu1 %v921_v47  ;;  %2225 = vmatpush1.bf16.msra.mxu0 %v923_v48  ;;  %v1272_v47 = vld [vmem:[#allocation2 + $0x11d8] sm:$0xff]  ;;  %v1274_v48 = vld [vmem:[#allocation2 + $0x11e8] sm:$0xff] }
 0x4c5   :  { %2185 = vmatprep.subr.bf16.mxu1 %v972_v49  ;;  %2226 = vmatprep.subr.bf16.mxu0 %v974_v50  ;;  %v1271_v49 = vld [vmem:[#allocation2 + $0x11d0] sm:$0xff]  ;;  %v1273_v50 = vld [vmem:[#allocation2 + $0x11e0] sm:$0xff] }
 0x4c6   :  { %v1881_v56 = vpop.f32.mrb[8].mxu1  ;;  %v1922_v59 = vpop.f32.mrb[8].mxu0 }
 0x4c7   :  { %v1882_v63 = vadd.f32 %v1881_v56, %v1534_v51  ;;  %v1883_v2 = vpop.f32.mrb[9].mxu1  ;;  %v1923_v3 = vadd.f32 %v1922_v59, %v1542_v52  ;;  %v1924_v4 = vpop.f32.mrb[9].mxu0  ;;  %v1322_v51 = vld [vmem:[#allocation2 + $0x1368] sm:$0xff]  ;;  %v1324_v52 = vld [vmem:[#allocation2 + $0x1378] sm:$0xff]  ;;  %v1371_v56 = vld [vmem:[#allocation2 + $0x14f0] sm:$0xff] }
 0x4c8   :  { %v1884_v5 = vadd.f32 %v1883_v2, %v1538_v53  ;;  %v1885_v6 = vpop.f32.mrb[10].mxu1  ;;  %2186 = vmatpush1.bf16.msra.mxu1 %v971_v54  ;;  %2227 = vmatpush1.bf16.msra.mxu0 %v973_v55  ;;  %v1925_v7 = vadd.f32 %v1924_v4, %v1546_v61  ;;  %v1926_v11 = vpop.f32.mrb[10].mxu0  ;;  %v1321_v53 = vld [vmem:[#allocation2 + $0x1360] sm:$0xff]  ;;  %v1323_v61 = vld [vmem:[#allocation2 + $0x1370] sm:$0xff]  ;;  %v1372_v54 = vld [vmem:[#allocation2 + $0x14f8] sm:$0xff] }
 0x4c9   :  { %v2794_v12 = vmax.f32 %v1882_v63, 0.0  ;;  %v1886_v9 = vpop.f32.mrb[11].mxu1  ;;  %2187 = vmatprep.subr.bf16.mxu1 %v1022_v57  ;;  %2228 = vmatprep.subr.bf16.mxu0 %v1024_v58  ;;  %v2796_v15 = vmax.f32 %v1923_v3, 0.0  ;;  %v1927_v16 = vpop.f32.mrb[11].mxu0  ;;  %v1374_v55 = vld [vmem:[#allocation2 + $0x1508] sm:$0xff]  ;;  %v1373_v57 = vld [vmem:[#allocation2 + $0x1500] sm:$0xff] }
 0x4ca   :  { %v2795_v17 = vmax.f32 %v1884_v5, 0.0  ;;  %v2797_v22 = vmax.f32 %v1925_v7, 0.0  ;;  %v1422_v58 = vld [vmem:[#allocation2 + $0x1688] sm:$0xff]  ;;  %v1424_v59 = vld [vmem:[#allocation2 + $0x1698] sm:$0xff]  ;;  %v1421_v63 = vld [vmem:[#allocation2 + $0x1680] sm:$0xff] }
 0x4cb   :  { %2844 = vst [vmem:[#allocation6 + $0x20] sm:$0xff] %v2794_v12  ;;  %2846 = vst [vmem:[#allocation6 + $0x30] sm:$0xff] %v2796_v15  ;;  %v1423_v2 = vld [vmem:[#allocation2 + $0x1690] sm:$0xff]  ;;  %v1472_v3 = vld [vmem:[#allocation2 + $0x1818] sm:$0xff] }
 0x4cc   :  { %2845 = vst [vmem:[#allocation6 + $0x28] sm:$0xff] %v2795_v17  ;;  %2188 = vmatpush1.bf16.msra.mxu1 %v1021_v13  ;;  %2229 = vmatpush1.bf16.msra.mxu0 %v1023_v14  ;;  %2847 = vst [vmem:[#allocation6 + $0x38] sm:$0xff] %v2797_v22  ;;  %v1474_v4 = vld [vmem:[#allocation2 + $0x1828] sm:$0xff]  ;;  %v1471_v5 = vld [vmem:[#allocation2 + $0x1810] sm:$0xff] }
 0x4cd   :  { %2189 = vmatprep.subr.bf16.mxu1 %v1072_v18  ;;  %2230 = vmatprep.subr.bf16.mxu0 %v1074_v21  ;;  %v1473_v6 = vld [vmem:[#allocation2 + $0x1820] sm:$0xff]  ;;  %v726_v7 = vld [vmem:[#allocation2 + $0xc8] sm:$0xff]  ;;  %v728_v11 = vld [vmem:[#allocation2 + $0xd8] sm:$0xff] }
 0x4ce   :  { %v725_v12 = vld [vmem:[#allocation2 + $0xc0] sm:$0xff]  ;;  %v727_v9 = vld [vmem:[#allocation2 + $0xd0] sm:$0xff]  ;;  %v776_v13 = vld [vmem:[#allocation2 + $0x258] sm:$0xff] }
 0x4cf   :  { %v778_v14 = vld [vmem:[#allocation2 + $0x268] sm:$0xff]  ;;  %v775_v15 = vld [vmem:[#allocation2 + $0x250] sm:$0xff]  ;;  %v777_v16 = vld [vmem:[#allocation2 + $0x260] sm:$0xff] }
 0x4d0   :  { %2190 = vmatpush1.bf16.msra.mxu1 %v1071_v23  ;;  %2231 = vmatpush1.bf16.msra.mxu0 %v1073_v24  ;;  %v826_v17 = vld [vmem:[#allocation2 + $0x3e8] sm:$0xff]  ;;  %v828_v18 = vld [vmem:[#allocation2 + $0x3f8] sm:$0xff]  ;;  %v825_v21 = vld [vmem:[#allocation2 + $0x3e0] sm:$0xff] }
 0x4d1   :  { %2191 = vmatprep.subr.bf16.mxu1 %v1122_v25  ;;  %2232 = vmatprep.subr.bf16.mxu0 %v1124_v26  ;;  %v827_v22 = vld [vmem:[#allocation2 + $0x3f0] sm:$0xff]  ;;  %v876_v23 = vld [vmem:[#allocation2 + $0x578] sm:$0xff]  ;;  %v878_v24 = vld [vmem:[#allocation2 + $0x588] sm:$0xff] }
 0x4d2   :  { %v2933_v34 = vld [vmem:[#allocation6] ss:$8 sm:$0x10]  ;;  %v3007_v35 = vld [vmem:[#allocation6 + $0x1] ss:$8 sm:$0x10] }
 0x4d3   :  { %v2934_v36 = vor.u32 %v2933_v34, %v2932_v32  ;;  %v3008_v37 = vor.u32 %v3007_v35, %v3006_v33  ;;  %v875_v25 = vld [vmem:[#allocation2 + $0x570] sm:$0xff]  ;;  %v877_v26 = vld [vmem:[#allocation2 + $0x580] sm:$0xff]  ;;  %v976_v33 = vld [vmem:[#allocation2 + $0x898] sm:$0xff] }
 0x4d4   :  { %2192 = vmatpush1.bf16.msra.mxu1 %v1121_v27  ;;  %2233 = vmatpush1.bf16.msra.mxu0 %v1123_v29  ;;  %v926_v27 = vld [vmem:[#allocation2 + $0x708] sm:$0xff]  ;;  %v928_v29 = vld [vmem:[#allocation2 + $0x718] sm:$0xff]  ;;  %v927_v32 = vld [vmem:[#allocation2 + $0x710] sm:$0xff] }
 0x4d5   :  { %2940 = vst.msk [vmem:[#allocation7 + $0x40] ss:$8 sm:$0xf] %vm10129_vm2, %v2934_v36  ;;  %2941 = vst.msk [vmem:[#allocation7 + $0x40] ss:$8 sm:$0x10] %vm10129_vm2, %v2934_v36  ;;  %2193 = vmatprep.subr.bf16.mxu1 %v1172_v30  ;;  %2234 = vmatprep.subr.bf16.mxu0 %v1174_v31 }
 0x4d6   :  { %3010 = vst.msk [vmem:[#allocation7 + $0xe8] ss:$8 sm:$0xf] %vm10129_vm2, %v3008_v37  ;;  %3011 = vst.msk [vmem:[#allocation7 + $0xe8] ss:$8 sm:$0x10] %vm10129_vm2, %v3008_v37 }
 0x4d7   :  { %v10145_v30 = vld [vmem:[#allocation21 + $0x8] sm:$0xff]  ;;  %v978_v34 = vld [vmem:[#allocation2 + $0x8a8] sm:$0xff] }
 0x4d8   :  { %2194 = vmatpush1.bf16.msra.mxu1 %v1171_v60  ;;  %2235 = vmatpush1.bf16.msra.mxu0 %v1173_v38  ;;  %v925_v31 = vld [vmem:[#allocation2 + $0x700] sm:$0xff]  ;;  %v1550_v35 = vrot.slane %v10145_v30, %v10003_v62  ;;  %v1558_v36 = vrot.slane %v10145_v30, %v10089_v8  ;;  %v1554_v37 = vrot.slane %v10145_v30, %v10006_v0  ;;  %v975_v38 = vld [vmem:[#allocation2 + $0x890] sm:$0xff] }
 0x4d9   :  { %2195 = vmatprep.subr.bf16.mxu1 %v1222_v39  ;;  %2236 = vmatprep.subr.bf16.mxu0 %v1224_v40  ;;  %v1562_v60 = vrot.slane %v10145_v30, %v10094_v10  ;;  %v977_v39 = vld [vmem:[#allocation2 + $0x8a0] sm:$0xff] }
 0x4dc   :  { %2196 = vmatpush1.bf16.msra.mxu1 %v1221_v41  ;;  %2237 = vmatpush1.bf16.msra.mxu0 %v1223_v42  ;;  %v1026_v41 = vld [vmem:[#allocation2 + $0xa28] sm:$0xff]  ;;  %v1028_v42 = vld [vmem:[#allocation2 + $0xa38] sm:$0xff] }
 0x4dd   :  { %2197 = vmatprep.subr.bf16.mxu1 %v1272_v47  ;;  %2238 = vmatprep.subr.bf16.mxu0 %v1274_v48 }
 0x4e0   :  { %2198 = vmatpush1.bf16.msra.mxu1 %v1271_v49  ;;  %2239 = vmatpush1.bf16.msra.mxu0 %v1273_v50 }
 0x4e1   :  { %2199 = vmatprep.subr.bf16.mxu1 %v1322_v51  ;;  %2240 = vmatprep.subr.bf16.mxu0 %v1324_v52 }
 0x4e4   :  { %2200 = vmatpush1.bf16.msra.mxu1 %v1321_v53  ;;  %2241 = vmatpush1.bf16.msra.mxu0 %v1323_v61 }
 0x4e5   :  { %2201 = vmatprep.subr.bf16.mxu1 %v1372_v54  ;;  %2242 = vmatprep.subr.bf16.mxu0 %v1374_v55 }
 0x4e8   :  { %2202 = vmatpush1.bf16.msra.mxu1 %v1371_v56  ;;  %2243 = vmatpush1.bf16.msra.mxu0 %v1373_v57  ;;  %v1025_v57 = vld [vmem:[#allocation2 + $0xa20] sm:$0xff] }
 0x4e9   :  { %2203 = vmatprep.subr.bf16.mxu1 %v1422_v58  ;;  %2244 = vmatprep.subr.bf16.mxu0 %v1424_v59  ;;  %v1027_v58 = vld [vmem:[#allocation2 + $0xa30] sm:$0xff] }
 0x4ec   :  { %2204 = vmatpush1.bf16.msra.mxu1 %v1421_v63  ;;  %2245 = vmatpush1.bf16.msra.mxu0 %v1423_v2 }
 0x4ed   :  { %2205 = vmatprep.subr.bf16.mxu1 %v1472_v3  ;;  %2246 = vmatprep.subr.bf16.mxu0 %v1474_v4  ;;  %v1076_v3 = vld [vmem:[#allocation2 + $0xbb8] sm:$0xff]  ;;  %v1078_v4 = vld [vmem:[#allocation2 + $0xbc8] sm:$0xff] }
 0x4f0   :  { %2206 = vmatpush1.bf16.msra.mxu1 %v1471_v5  ;;  %2247 = vmatpush1.bf16.msra.mxu0 %v1473_v6  ;;  %v1075_v6 = vld [vmem:[#allocation2 + $0xbb0] sm:$0xff] }
 0x4f1   :  { %2257 = vmatprep.subr.bf16.mxu1 %v726_v7  ;;  %2298 = vmatprep.subr.bf16.mxu0 %v728_v11  ;;  %v1077_v7 = vld [vmem:[#allocation2 + $0xbc0] sm:$0xff]  ;;  %v1126_v11 = vld [vmem:[#allocation2 + $0xd48] sm:$0xff] }
 0x4f3   :  { %2208 = vmatmul.mubr.bf16.vlgmr.msra.gmra.mrb[24].mxu1 %v10024_v19  ;;  %2249 = vmatmul.mubr.bf16.vlgmr.msra.gmra.mrb[24].mxu0 %v10024_v19 }
 0x4f4   :  { %2258 = vmatpush1.bf16.msra.mxu1 %v725_v12  ;;  %2299 = vmatpush1.bf16.msra.mxu0 %v727_v9  ;;  %v1128_v12 = vld [vmem:[#allocation2 + $0xd58] sm:$0xff]  ;;  %v1125_v9 = vld [vmem:[#allocation2 + $0xd40] sm:$0xff] }
 0x4f5   :  { %2259 = vmatprep.subr.bf16.mxu1 %v776_v13  ;;  %2300 = vmatprep.subr.bf16.mxu0 %v778_v14  ;;  %v1127_v13 = vld [vmem:[#allocation2 + $0xd50] sm:$0xff]  ;;  %v1176_v14 = vld [vmem:[#allocation2 + $0xed8] sm:$0xff] }
 0x4f6   :  { %2289 = vmatprep.mubr.bf16.mxu1 %v10026_v20  ;;  %2330 = vmatprep.mubr.bf16.mxu0 %v10026_v20 }
 0x4f8   :  { %2260 = vmatpush1.bf16.msra.mxu1 %v775_v15  ;;  %2301 = vmatpush1.bf16.msra.mxu0 %v777_v16  ;;  %v1178_v15 = vld [vmem:[#allocation2 + $0xee8] sm:$0xff] }
 0x4f9   :  { %2261 = vmatprep.subr.bf16.mxu1 %v826_v17  ;;  %2302 = vmatprep.subr.bf16.mxu0 %v828_v18 }
 0x4fc   :  { %2262 = vmatpush1.bf16.msra.mxu1 %v825_v21  ;;  %2303 = vmatpush1.bf16.msra.mxu0 %v827_v22 }
 0x4fd   :  { %2263 = vmatprep.subr.bf16.mxu1 %v876_v23  ;;  %2304 = vmatprep.subr.bf16.mxu0 %v878_v24  ;;  %v1175_v24 = vld [vmem:[#allocation2 + $0xed0] sm:$0xff] }
 0x500   :  { %2264 = vmatpush1.bf16.msra.mxu1 %v875_v25  ;;  %2305 = vmatpush1.bf16.msra.mxu0 %v877_v26  ;;  %v1177_v25 = vld [vmem:[#allocation2 + $0xee0] sm:$0xff]  ;;  %v1226_v26 = vld [vmem:[#allocation2 + $0x1068] sm:$0xff] }
 0x501   :  { %2265 = vmatprep.subr.bf16.mxu1 %v926_v27  ;;  %2306 = vmatprep.subr.bf16.mxu0 %v928_v29  ;;  %v1228_v27 = vld [vmem:[#allocation2 + $0x1078] sm:$0xff]  ;;  %v1225_v29 = vld [vmem:[#allocation2 + $0x1060] sm:$0xff] }
 0x504   :  { %2266 = vmatpush1.bf16.msra.mxu1 %v925_v31  ;;  %2307 = vmatpush1.bf16.msra.mxu0 %v927_v32  ;;  %v1227_v31 = vld [vmem:[#allocation2 + $0x1070] sm:$0xff]  ;;  %v1276_v32 = vld [vmem:[#allocation2 + $0x11f8] sm:$0xff] }
 0x505   :  { %2267 = vmatprep.subr.bf16.mxu1 %v976_v33  ;;  %2308 = vmatprep.subr.bf16.mxu0 %v978_v34  ;;  %v1278_v33 = vld [vmem:[#allocation2 + $0x1208] sm:$0xff]  ;;  %v1275_v34 = vld [vmem:[#allocation2 + $0x11f0] sm:$0xff] }
 0x506   :  { %v1963_v40 = vpop.f32.mrb[12].mxu1  ;;  %v2004_v47 = vpop.f32.mrb[12].mxu0 }
 0x507   :  { %v1964_v48 = vadd.f32 %v1963_v40, %v1550_v35  ;;  %v1965_v49 = vpop.f32.mrb[13].mxu1  ;;  %v2005_v50 = vadd.f32 %v2004_v47, %v1558_v36  ;;  %v2006_v51 = vpop.f32.mrb[13].mxu0  ;;  %v1277_v35 = vld [vmem:[#allocation2 + $0x1200] sm:$0xff]  ;;  %v1326_v36 = vld [vmem:[#allocation2 + $0x1388] sm:$0xff] }
 0x508   :  { %v1966_v52 = vadd.f32 %v1965_v49, %v1554_v37  ;;  %v1967_v53 = vpop.f32.mrb[14].mxu1  ;;  %2268 = vmatpush1.bf16.msra.mxu1 %v975_v38  ;;  %2309 = vmatpush1.bf16.msra.mxu0 %v977_v39  ;;  %v2007_v61 = vadd.f32 %v2006_v51, %v1562_v60  ;;  %v2008_v54 = vpop.f32.mrb[14].mxu0  ;;  %v1328_v37 = vld [vmem:[#allocation2 + $0x1398] sm:$0xff]  ;;  %v1325_v60 = vld [vmem:[#allocation2 + $0x1380] sm:$0xff]  ;;  %v1327_v38 = vld [vmem:[#allocation2 + $0x1390] sm:$0xff] }
 0x509   :  { %v2798_v55 = vmax.f32 %v1964_v48, 0.0  ;;  %v1968_v56 = vpop.f32.mrb[15].mxu1  ;;  %2269 = vmatprep.subr.bf16.mxu1 %v1026_v41  ;;  %2310 = vmatprep.subr.bf16.mxu0 %v1028_v42  ;;  %v2800_v59 = vmax.f32 %v2005_v50, 0.0  ;;  %v2009_v63 = vpop.f32.mrb[15].mxu0  ;;  %v1376_v39 = vld [vmem:[#allocation2 + $0x1518] sm:$0xff]  ;;  %v1378_v40 = vld [vmem:[#allocation2 + $0x1528] sm:$0xff] }
 0x50a   :  { %v2799_v2 = vmax.f32 %v1966_v52, 0.0  ;;  %v2801_v5 = vmax.f32 %v2007_v61, 0.0  ;;  %v1375_v41 = vld [vmem:[#allocation2 + $0x1510] sm:$0xff]  ;;  %v1377_v42 = vld [vmem:[#allocation2 + $0x1520] sm:$0xff]  ;;  %v1426_v47 = vld [vmem:[#allocation2 + $0x16a8] sm:$0xff] }
 0x50b   :  { %2848 = vst [vmem:[#allocation6 + $0x40] sm:$0xff] %v2798_v55  ;;  %2850 = vst [vmem:[#allocation6 + $0x50] sm:$0xff] %v2800_v59  ;;  %v1428_v48 = vld [vmem:[#allocation2 + $0x16b8] sm:$0xff]  ;;  %v1425_v49 = vld [vmem:[#allocation2 + $0x16a0] sm:$0xff] }
 0x50c   :  { %2849 = vst [vmem:[#allocation6 + $0x48] sm:$0xff] %v2799_v2  ;;  %2270 = vmatpush1.bf16.msra.mxu1 %v1025_v57  ;;  %2311 = vmatpush1.bf16.msra.mxu0 %v1027_v58  ;;  %2851 = vst [vmem:[#allocation6 + $0x58] sm:$0xff] %v2801_v5  ;;  %v1427_v50 = vld [vmem:[#allocation2 + $0x16b0] sm:$0xff]  ;;  %v1476_v51 = vld [vmem:[#allocation2 + $0x1838] sm:$0xff] }
 0x50d   :  { %2271 = vmatprep.subr.bf16.mxu1 %v1076_v3  ;;  %2312 = vmatprep.subr.bf16.mxu0 %v1078_v4  ;;  %v1478_v52 = vld [vmem:[#allocation2 + $0x1848] sm:$0xff]  ;;  %v1475_v53 = vld [vmem:[#allocation2 + $0x1830] sm:$0xff]  ;;  %v1477_v61 = vld [vmem:[#allocation2 + $0x1840] sm:$0xff] }
 0x50e   :  { %v730_v54 = vld [vmem:[#allocation2 + $0xe8] sm:$0xff]  ;;  %v732_v55 = vld [vmem:[#allocation2 + $0xf8] sm:$0xff]  ;;  %v729_v56 = vld [vmem:[#allocation2 + $0xe0] sm:$0xff] }
 0x50f   :  { %v731_v57 = vld [vmem:[#allocation2 + $0xf0] sm:$0xff]  ;;  %v780_v58 = vld [vmem:[#allocation2 + $0x278] sm:$0xff]  ;;  %v782_v59 = vld [vmem:[#allocation2 + $0x288] sm:$0xff] }
 0x510   :  { %2272 = vmatpush1.bf16.msra.mxu1 %v1075_v6  ;;  %2313 = vmatpush1.bf16.msra.mxu0 %v1077_v7  ;;  %v779_v63 = vld [vmem:[#allocation2 + $0x270] sm:$0xff]  ;;  %v781_v2 = vld [vmem:[#allocation2 + $0x280] sm:$0xff]  ;;  %v830_v3 = vld [vmem:[#allocation2 + $0x408] sm:$0xff] }
 0x511   :  { %2273 = vmatprep.subr.bf16.mxu1 %v1126_v11  ;;  %2314 = vmatprep.subr.bf16.mxu0 %v1128_v12  ;;  %v832_v4 = vld [vmem:[#allocation2 + $0x418] sm:$0xff]  ;;  %v829_v5 = vld [vmem:[#allocation2 + $0x400] sm:$0xff]  ;;  %v831_v6 = vld [vmem:[#allocation2 + $0x410] sm:$0xff] }
 0x512   :  { %v2943_v16 = vld [vmem:[#allocation6 + $0x28] ss:$8 sm:$0xf]  ;;  %v3013_v17 = vld [vmem:[#allocation6 + $0x29] ss:$8 sm:$0xf] }
 0x513   :  { %v2944_v18 = vld [vmem:[#allocation6 + $0x28] ss:$8 sm:$0x10]  ;;  %v3014_v21 = vld [vmem:[#allocation6 + $0x29] ss:$8 sm:$0x10] }
 0x514   :  { %v2945_v22 = vor.u32 %v2944_v18, %v2943_v16  ;;  %v3015_v23 = vor.u32 %v3014_v21, %v3013_v17  ;;  %2274 = vmatpush1.bf16.msra.mxu1 %v1125_v9  ;;  %2315 = vmatpush1.bf16.msra.mxu0 %v1127_v13  ;;  %v880_v7 = vld [vmem:[#allocation2 + $0x598] sm:$0xff]  ;;  %v882_v11 = vld [vmem:[#allocation2 + $0x5a8] sm:$0xff]  ;;  %v879_v12 = vld [vmem:[#allocation2 + $0x590] sm:$0xff]  ;;  %v1566_v21 = vrot.slane %v10145_v30, %v10109_v43 }
 0x515   :  { %2275 = vmatprep.subr.bf16.mxu1 %v1176_v14  ;;  %2316 = vmatprep.subr.bf16.mxu0 %v1178_v15  ;;  %v881_v9 = vld [vmem:[#allocation2 + $0x5a0] sm:$0xff]  ;;  %v930_v13 = vld [vmem:[#allocation2 + $0x728] sm:$0xff]  ;;  %v932_v14 = vld [vmem:[#allocation2 + $0x738] sm:$0xff] }
 0x516   :  { %2947 = vst.msk [vmem:[#allocation7 + $0x41] ss:$8 sm:$0xf] %vm10129_vm2, %v2945_v22  ;;  %2948 = vst.msk [vmem:[#allocation7 + $0x41] ss:$8 sm:$0x10] %vm10129_vm2, %v2945_v22  ;;  %v1574_v22 = vrot.slane %v10145_v30, %v10112_v44 }
 0x517   :  { %3017 = vst.msk [vmem:[#allocation7 + $0xe9] ss:$8 sm:$0xf] %vm10129_vm2, %v3015_v23  ;;  %3018 = vst.msk [vmem:[#allocation7 + $0xe9] ss:$8 sm:$0x10] %vm10129_vm2, %v3015_v23  ;;  %v1570_v23 = vrot.slane %v10145_v30, %v10115_v45 }
 0x518   :  { %2276 = vmatpush1.bf16.msra.mxu1 %v1175_v24  ;;  %2317 = vmatpush1.bf16.msra.mxu0 %v1177_v25  ;;  %v929_v15 = vld [vmem:[#allocation2 + $0x720] sm:$0xff]  ;;  %v931_v16 = vld [vmem:[#allocation2 + $0x730] sm:$0xff]  ;;  %v980_v17 = vld [vmem:[#allocation2 + $0x8b8] sm:$0xff]  ;;  %v1578_v24 = vrot.slane %v10145_v30, %v10118_v46 }
 0x519   :  { %2277 = vmatprep.subr.bf16.mxu1 %v1226_v26  ;;  %2318 = vmatprep.subr.bf16.mxu0 %v1228_v27  ;;  %v982_v18 = vld [vmem:[#allocation2 + $0x8c8] sm:$0xff]  ;;  %v979_v25 = vld [vmem:[#allocation2 + $0x8b0] sm:$0xff]  ;;  %v981_v26 = vld [vmem:[#allocation2 + $0x8c0] sm:$0xff] }
 0x51c   :  { %2278 = vmatpush1.bf16.msra.mxu1 %v1225_v29  ;;  %2319 = vmatpush1.bf16.msra.mxu0 %v1227_v31  ;;  %v1030_v31 = vld [vmem:[#allocation2 + $0xa48] sm:$0xff] }
 0x51d   :  { %2279 = vmatprep.subr.bf16.mxu1 %v1276_v32  ;;  %2320 = vmatprep.subr.bf16.mxu0 %v1278_v33  ;;  %v1032_v32 = vld [vmem:[#allocation2 + $0xa58] sm:$0xff] }
 0x520   :  { %2280 = vmatpush1.bf16.msra.mxu1 %v1275_v34  ;;  %2321 = vmatpush1.bf16.msra.mxu0 %v1277_v35 }
 0x521   :  { %2281 = vmatprep.subr.bf16.mxu1 %v1326_v36  ;;  %2322 = vmatprep.subr.bf16.mxu0 %v1328_v37 }
 0x524   :  { %2282 = vmatpush1.bf16.msra.mxu1 %v1325_v60  ;;  %2323 = vmatpush1.bf16.msra.mxu0 %v1327_v38 }
 0x525   :  { %2283 = vmatprep.subr.bf16.mxu1 %v1376_v39  ;;  %2324 = vmatprep.subr.bf16.mxu0 %v1378_v40 }
 0x528   :  { %2284 = vmatpush1.bf16.msra.mxu1 %v1375_v41  ;;  %2325 = vmatpush1.bf16.msra.mxu0 %v1377_v42  ;;  %v1029_v42 = vld [vmem:[#allocation2 + $0xa40] sm:$0xff] }
 0x529   :  { %2285 = vmatprep.subr.bf16.mxu1 %v1426_v47  ;;  %2326 = vmatprep.subr.bf16.mxu0 %v1428_v48  ;;  %v1031_v47 = vld [vmem:[#allocation2 + $0xa50] sm:$0xff] }
 0x52c   :  { %2286 = vmatpush1.bf16.msra.mxu1 %v1425_v49  ;;  %2327 = vmatpush1.bf16.msra.mxu0 %v1427_v50  ;;  %v1080_v50 = vld [vmem:[#allocation2 + $0xbd8] sm:$0xff] }
 0x52d   :  { %2287 = vmatprep.subr.bf16.mxu1 %v1476_v51  ;;  %2328 = vmatprep.subr.bf16.mxu0 %v1478_v52  ;;  %v1082_v51 = vld [vmem:[#allocation2 + $0xbe8] sm:$0xff] }
 0x530   :  { %2288 = vmatpush1.bf16.msra.mxu1 %v1475_v53  ;;  %2329 = vmatpush1.bf16.msra.mxu0 %v1477_v61  ;;  %v1079_v53 = vld [vmem:[#allocation2 + $0xbd0] sm:$0xff]  ;;  %v1081_v61 = vld [vmem:[#allocation2 + $0xbe0] sm:$0xff] }
 0x531   :  { %2339 = vmatprep.subr.bf16.mxu1 %v730_v54  ;;  %2380 = vmatprep.subr.bf16.mxu0 %v732_v55  ;;  %v1130_v54 = vld [vmem:[#allocation2 + $0xd68] sm:$0xff]  ;;  %v1132_v55 = vld [vmem:[#allocation2 + $0xd78] sm:$0xff] }
 0x533   :  { %2290 = vmatmul.mubr.bf16.vlgmr.msra.gmra.mrb[28].mxu1 %v10024_v19  ;;  %2331 = vmatmul.mubr.bf16.vlgmr.msra.gmra.mrb[28].mxu0 %v10024_v19 }
 0x534   :  { %2340 = vmatpush1.bf16.msra.mxu1 %v729_v56  ;;  %2381 = vmatpush1.bf16.msra.mxu0 %v731_v57  ;;  %v1129_v56 = vld [vmem:[#allocation2 + $0xd60] sm:$0xff]  ;;  %v1131_v57 = vld [vmem:[#allocation2 + $0xd70] sm:$0xff] }
 0x535   :  { %2341 = vmatprep.subr.bf16.mxu1 %v780_v58  ;;  %2382 = vmatprep.subr.bf16.mxu0 %v782_v59  ;;  %v1180_v58 = vld [vmem:[#allocation2 + $0xef8] sm:$0xff]  ;;  %v1182_v59 = vld [vmem:[#allocation2 + $0xf08] sm:$0xff] }
 0x536   :  { %2371 = vmatprep.mubr.bf16.mxu1 %v10026_v20  ;;  %2412 = vmatprep.mubr.bf16.mxu0 %v10026_v20 }
 0x538   :  { %2342 = vmatpush1.bf16.msra.mxu1 %v779_v63  ;;  %2383 = vmatpush1.bf16.msra.mxu0 %v781_v2 }
 0x539   :  { %2343 = vmatprep.subr.bf16.mxu1 %v830_v3  ;;  %2384 = vmatprep.subr.bf16.mxu0 %v832_v4 }
 0x53c   :  { %2344 = vmatpush1.bf16.msra.mxu1 %v829_v5  ;;  %2385 = vmatpush1.bf16.msra.mxu0 %v831_v6 }
 0x53d   :  { %2345 = vmatprep.subr.bf16.mxu1 %v880_v7  ;;  %2386 = vmatprep.subr.bf16.mxu0 %v882_v11  ;;  %v1179_v7 = vld [vmem:[#allocation2 + $0xef0] sm:$0xff]  ;;  %v1181_v11 = vld [vmem:[#allocation2 + $0xf00] sm:$0xff] }
 0x540   :  { %2346 = vmatpush1.bf16.msra.mxu1 %v879_v12  ;;  %2387 = vmatpush1.bf16.msra.mxu0 %v881_v9  ;;  %v1230_v12 = vld [vmem:[#allocation2 + $0x1088] sm:$0xff]  ;;  %v1232_v9 = vld [vmem:[#allocation2 + $0x1098] sm:$0xff] }
 0x541   :  { %2347 = vmatprep.subr.bf16.mxu1 %v930_v13  ;;  %2388 = vmatprep.subr.bf16.mxu0 %v932_v14  ;;  %v1229_v13 = vld [vmem:[#allocation2 + $0x1080] sm:$0xff]  ;;  %v1231_v14 = vld [vmem:[#allocation2 + $0x1090] sm:$0xff] }
 0x544   :  { %2348 = vmatpush1.bf16.msra.mxu1 %v929_v15  ;;  %2389 = vmatpush1.bf16.msra.mxu0 %v931_v16  ;;  %v1280_v15 = vld [vmem:[#allocation2 + $0x1218] sm:$0xff]  ;;  %v1282_v16 = vld [vmem:[#allocation2 + $0x1228] sm:$0xff] }
 0x545   :  { %2349 = vmatprep.subr.bf16.mxu1 %v980_v17  ;;  %2390 = vmatprep.subr.bf16.mxu0 %v982_v18  ;;  %v1279_v17 = vld [vmem:[#allocation2 + $0x1210] sm:$0xff]  ;;  %v1281_v18 = vld [vmem:[#allocation2 + $0x1220] sm:$0xff] }
 0x546   :  { %v2045_v27 = vpop.f32.mrb[16].mxu1  ;;  %v2086_v29 = vpop.f32.mrb[16].mxu0 }
 0x547   :  { %v2046_v33 = vadd.f32 %v2045_v27, %v1566_v21  ;;  %v2047_v34 = vpop.f32.mrb[17].mxu1  ;;  %v2087_v35 = vadd.f32 %v2086_v29, %v1574_v22  ;;  %v2088_v36 = vpop.f32.mrb[17].mxu0  ;;  %v1330_v21 = vld [vmem:[#allocation2 + $0x13a8] sm:$0xff]  ;;  %v1332_v22 = vld [vmem:[#allocation2 + $0x13b8] sm:$0xff]  ;;  %v1379_v27 = vld [vmem:[#allocation2 + $0x1530] sm:$0xff] }
 0x548   :  { %v2048_v37 = vadd.f32 %v2047_v34, %v1570_v23  ;;  %v2049_v60 = vpop.f32.mrb[18].mxu1  ;;  %2350 = vmatpush1.bf16.msra.mxu1 %v979_v25  ;;  %2391 = vmatpush1.bf16.msra.mxu0 %v981_v26  ;;  %v2089_v38 = vadd.f32 %v2088_v36, %v1578_v24  ;;  %v2090_v39 = vpop.f32.mrb[18].mxu0  ;;  %v1329_v23 = vld [vmem:[#allocation2 + $0x13a0] sm:$0xff]  ;;  %v1331_v24 = vld [vmem:[#allocation2 + $0x13b0] sm:$0xff]  ;;  %v1380_v25 = vld [vmem:[#allocation2 + $0x1538] sm:$0xff] }
 0x549   :  { %v2802_v40 = vmax.f32 %v2046_v33, 0.0  ;;  %v2804_v30 = vmax.f32 %v2087_v35, 0.0  ;;  %v2050_v41 = vpop.f32.mrb[19].mxu1  ;;  %2351 = vmatprep.subr.bf16.mxu1 %v1030_v31  ;;  %2392 = vmatprep.subr.bf16.mxu0 %v1032_v32  ;;  %v2091_v48 = vpop.f32.mrb[19].mxu0  ;;  %v1382_v26 = vld [vmem:[#allocation2 + $0x1548] sm:$0xff]  ;;  %v1381_v29 = vld [vmem:[#allocation2 + $0x1540] sm:$0xff] }
 0x54a   :  { %v2803_v49 = vmax.f32 %v2048_v37, 0.0  ;;  %v2805_v52 = vmax.f32 %v2089_v38, 0.0  ;;  %v1430_v31 = vld [vmem:[#allocation2 + $0x16c8] sm:$0xff]  ;;  %v1432_v32 = vld [vmem:[#allocation2 + $0x16d8] sm:$0xff]  ;;  %v1429_v33 = vld [vmem:[#allocation2 + $0x16c0] sm:$0xff] }
 0x54b   :  { %2852 = vst [vmem:[#allocation6 + $0x60] sm:$0xff] %v2802_v40  ;;  %2854 = vst [vmem:[#allocation6 + $0x70] sm:$0xff] %v2804_v30  ;;  %v1431_v34 = vld [vmem:[#allocation2 + $0x16d0] sm:$0xff]  ;;  %v1480_v35 = vld [vmem:[#allocation2 + $0x1858] sm:$0xff] }
 0x54c   :  { %2853 = vst [vmem:[#allocation6 + $0x68] sm:$0xff] %v2803_v49  ;;  %2352 = vmatpush1.bf16.msra.mxu1 %v1029_v42  ;;  %2393 = vmatpush1.bf16.msra.mxu0 %v1031_v47  ;;  %2855 = vst [vmem:[#allocation6 + $0x78] sm:$0xff] %v2805_v52  ;;  %v1482_v36 = vld [vmem:[#allocation2 + $0x1868] sm:$0xff]  ;;  %v1479_v37 = vld [vmem:[#allocation2 + $0x1850] sm:$0xff] }
 0x54d   :  { %2353 = vmatprep.subr.bf16.mxu1 %v1080_v50  ;;  %2394 = vmatprep.subr.bf16.mxu0 %v1082_v51  ;;  %v1481_v60 = vld [vmem:[#allocation2 + $0x1860] sm:$0xff]  ;;  %v734_v38 = vld [vmem:[#allocation2 + $0x108] sm:$0xff]  ;;  %v736_v39 = vld [vmem:[#allocation2 + $0x118] sm:$0xff] }
 0x54e   :  { %v733_v40 = vld [vmem:[#allocation2 + $0x100] sm:$0xff]  ;;  %v735_v30 = vld [vmem:[#allocation2 + $0x110] sm:$0xff]  ;;  %v784_v41 = vld [vmem:[#allocation2 + $0x298] sm:$0xff] }
 0x54f   :  { %v786_v42 = vld [vmem:[#allocation2 + $0x2a8] sm:$0xff]  ;;  %v783_v47 = vld [vmem:[#allocation2 + $0x290] sm:$0xff]  ;;  %v785_v48 = vld [vmem:[#allocation2 + $0x2a0] sm:$0xff] }
 0x550   :  { %2354 = vmatpush1.bf16.msra.mxu1 %v1079_v53  ;;  %2395 = vmatpush1.bf16.msra.mxu0 %v1081_v61  ;;  %v834_v49 = vld [vmem:[#allocation2 + $0x428] sm:$0xff]  ;;  %v836_v50 = vld [vmem:[#allocation2 + $0x438] sm:$0xff]  ;;  %v833_v51 = vld [vmem:[#allocation2 + $0x420] sm:$0xff] }
 0x551   :  { %2355 = vmatprep.subr.bf16.mxu1 %v1130_v54  ;;  %2396 = vmatprep.subr.bf16.mxu0 %v1132_v55  ;;  %v835_v52 = vld [vmem:[#allocation2 + $0x430] sm:$0xff]  ;;  %v884_v53 = vld [vmem:[#allocation2 + $0x5b8] sm:$0xff]  ;;  %v886_v61 = vld [vmem:[#allocation2 + $0x5c8] sm:$0xff] }
 0x552   :  { %v2951_v63 = vld [vmem:[#allocation6 + $0x50] ss:$8 sm:$0x10]  ;;  %v3021_v2 = vld [vmem:[#allocation6 + $0x51] ss:$8 sm:$0x10] }
 0x553   :  { %v2950_v3 = vld [vmem:[#allocation6 + $0x50] ss:$8 sm:$0xf]  ;;  %v3020_v4 = vld [vmem:[#allocation6 + $0x51] ss:$8 sm:$0xf] }
 0x554   :  { %v2952_v5 = vor.u32 %v2951_v63, %v2950_v3  ;;  %v3022_v6 = vor.u32 %v3021_v2, %v3020_v4  ;;  %2356 = vmatpush1.bf16.msra.mxu1 %v1129_v56  ;;  %2397 = vmatpush1.bf16.msra.mxu0 %v1131_v57  ;;  %v883_v54 = vld [vmem:[#allocation2 + $0x5b0] sm:$0xff]  ;;  %v885_v55 = vld [vmem:[#allocation2 + $0x5c0] sm:$0xff]  ;;  %v934_v56 = vld [vmem:[#allocation2 + $0x748] sm:$0xff] }
 0x555   :  { %2357 = vmatprep.subr.bf16.mxu1 %v1180_v58  ;;  %2398 = vmatprep.subr.bf16.mxu0 %v1182_v59  ;;  %v936_v57 = vld [vmem:[#allocation2 + $0x758] sm:$0xff]  ;;  %v10187_v58 = vld [vmem:[#allocation21 + $0x10] sm:$0xff]  ;;  %v935_v63 = vld [vmem:[#allocation2 + $0x750] sm:$0xff] }
 0x556   :  { %2954 = vst.msk [vmem:[#allocation7 + $0x42] ss:$8 sm:$0xf] %vm10129_vm2, %v2952_v5  ;;  %2955 = vst.msk [vmem:[#allocation7 + $0x42] ss:$8 sm:$0x10] %vm10129_vm2, %v2952_v5  ;;  %v1582_v4 = vrot.slane %v10187_v58, %v10003_v62  ;;  %v1590_v5 = vrot.slane %v10187_v58, %v10089_v8 }
 0x557   :  { %3024 = vst.msk [vmem:[#allocation7 + $0xea] ss:$8 sm:$0xf] %vm10129_vm2, %v3022_v6  ;;  %3025 = vst.msk [vmem:[#allocation7 + $0xea] ss:$8 sm:$0x10] %vm10129_vm2, %v3022_v6  ;;  %v1586_v6 = vrot.slane %v10187_v58, %v10006_v0 }
 0x558   :  { %2358 = vmatpush1.bf16.msra.mxu1 %v1179_v7  ;;  %2399 = vmatpush1.bf16.msra.mxu0 %v1181_v11  ;;  %v933_v59 = vld [vmem:[#allocation2 + $0x740] sm:$0xff]  ;;  %v984_v2 = vld [vmem:[#allocation2 + $0x8d8] sm:$0xff]  ;;  %v986_v3 = vld [vmem:[#allocation2 + $0x8e8] sm:$0xff]  ;;  %v1594_v7 = vrot.slane %v10187_v58, %v10094_v10 }
 0x559   :  { %2359 = vmatprep.subr.bf16.mxu1 %v1230_v12  ;;  %2400 = vmatprep.subr.bf16.mxu0 %v1232_v9  ;;  %v983_v11 = vld [vmem:[#allocation2 + $0x8d0] sm:$0xff]  ;;  %v985_v12 = vld [vmem:[#allocation2 + $0x8e0] sm:$0xff] }
 0x55c   :  { %2360 = vmatpush1.bf16.msra.mxu1 %v1229_v13  ;;  %2401 = vmatpush1.bf16.msra.mxu0 %v1231_v14  ;;  %v1034_v14 = vld [vmem:[#allocation2 + $0xa68] sm:$0xff] }
 0x55d   :  { %2361 = vmatprep.subr.bf16.mxu1 %v1280_v15  ;;  %2402 = vmatprep.subr.bf16.mxu0 %v1282_v16  ;;  %v1036_v15 = vld [vmem:[#allocation2 + $0xa78] sm:$0xff] }
 0x560   :  { %2362 = vmatpush1.bf16.msra.mxu1 %v1279_v17  ;;  %2403 = vmatpush1.bf16.msra.mxu0 %v1281_v18 }
 0x561   :  { %2363 = vmatprep.subr.bf16.mxu1 %v1330_v21  ;;  %2404 = vmatprep.subr.bf16.mxu0 %v1332_v22 }
 0x564   :  { %2364 = vmatpush1.bf16.msra.mxu1 %v1329_v23  ;;  %2405 = vmatpush1.bf16.msra.mxu0 %v1331_v24 }
 0x565   :  { %2365 = vmatprep.subr.bf16.mxu1 %v1380_v25  ;;  %2406 = vmatprep.subr.bf16.mxu0 %v1382_v26 }
 0x568   :  { %2366 = vmatpush1.bf16.msra.mxu1 %v1379_v27  ;;  %2407 = vmatpush1.bf16.msra.mxu0 %v1381_v29 }
 0x569   :  { %2367 = vmatprep.subr.bf16.mxu1 %v1430_v31  ;;  %2408 = vmatprep.subr.bf16.mxu0 %v1432_v32  ;;  %v1033_v31 = vld [vmem:[#allocation2 + $0xa60] sm:$0xff]  ;;  %v1035_v32 = vld [vmem:[#allocation2 + $0xa70] sm:$0xff] }
 0x56c   :  { %2368 = vmatpush1.bf16.msra.mxu1 %v1429_v33  ;;  %2409 = vmatpush1.bf16.msra.mxu0 %v1431_v34 }
 0x56d   :  { %2369 = vmatprep.subr.bf16.mxu1 %v1480_v35  ;;  %2410 = vmatprep.subr.bf16.mxu0 %v1482_v36  ;;  %v1084_v36 = vld [vmem:[#allocation2 + $0xbf8] sm:$0xff] }
 0x570   :  { %2370 = vmatpush1.bf16.msra.mxu1 %v1479_v37  ;;  %2411 = vmatpush1.bf16.msra.mxu0 %v1481_v60  ;;  %v1086_v37 = vld [vmem:[#allocation2 + $0xc08] sm:$0xff]  ;;  %v1083_v60 = vld [vmem:[#allocation2 + $0xbf0] sm:$0xff] }
 0x571   :  { %2421 = vmatprep.subr.bf16.mxu1 %v734_v38  ;;  %2462 = vmatprep.subr.bf16.mxu0 %v736_v39  ;;  %v1085_v38 = vld [vmem:[#allocation2 + $0xc00] sm:$0xff]  ;;  %v1134_v39 = vld [vmem:[#allocation2 + $0xd88] sm:$0xff] }
 0x573   :  { %2372 = vmatmul.mubr.bf16.vlgmr.msra.gmra.mrb[32].mxu1 %v10024_v19  ;;  %2413 = vmatmul.mubr.bf16.vlgmr.msra.gmra.mrb[32].mxu0 %v10024_v19 }
 0x574   :  { %2422 = vmatpush1.bf16.msra.mxu1 %v733_v40  ;;  %2463 = vmatpush1.bf16.msra.mxu0 %v735_v30  ;;  %v1136_v40 = vld [vmem:[#allocation2 + $0xd98] sm:$0xff]  ;;  %v1133_v30 = vld [vmem:[#allocation2 + $0xd80] sm:$0xff] }
 0x575   :  { %2423 = vmatprep.subr.bf16.mxu1 %v784_v41  ;;  %2464 = vmatprep.subr.bf16.mxu0 %v786_v42  ;;  %v1135_v41 = vld [vmem:[#allocation2 + $0xd90] sm:$0xff]  ;;  %v1184_v42 = vld [vmem:[#allocation2 + $0xf18] sm:$0xff] }
 0x576   :  { %2453 = vmatprep.mubr.bf16.mxu1 %v10026_v20  ;;  %2494 = vmatprep.mubr.bf16.mxu0 %v10026_v20 }
 0x578   :  { %2424 = vmatpush1.bf16.msra.mxu1 %v783_v47  ;;  %2465 = vmatpush1.bf16.msra.mxu0 %v785_v48  ;;  %v1186_v47 = vld [vmem:[#allocation2 + $0xf28] sm:$0xff] }
 0x579   :  { %2425 = vmatprep.subr.bf16.mxu1 %v834_v49  ;;  %2466 = vmatprep.subr.bf16.mxu0 %v836_v50 }
 0x57c   :  { %2426 = vmatpush1.bf16.msra.mxu1 %v833_v51  ;;  %2467 = vmatpush1.bf16.msra.mxu0 %v835_v52 }
 0x57d   :  { %2427 = vmatprep.subr.bf16.mxu1 %v884_v53  ;;  %2468 = vmatprep.subr.bf16.mxu0 %v886_v61  ;;  %v1183_v61 = vld [vmem:[#allocation2 + $0xf10] sm:$0xff] }
 0x580   :  { %2428 = vmatpush1.bf16.msra.mxu1 %v883_v54  ;;  %2469 = vmatpush1.bf16.msra.mxu0 %v885_v55  ;;  %v1185_v54 = vld [vmem:[#allocation2 + $0xf20] sm:$0xff]  ;;  %v1234_v55 = vld [vmem:[#allocation2 + $0x10a8] sm:$0xff] }
 0x581   :  { %2429 = vmatprep.subr.bf16.mxu1 %v934_v56  ;;  %2470 = vmatprep.subr.bf16.mxu0 %v936_v57  ;;  %v1236_v56 = vld [vmem:[#allocation2 + $0x10b8] sm:$0xff]  ;;  %v1233_v57 = vld [vmem:[#allocation2 + $0x10a0] sm:$0xff] }
 0x584   :  { %2430 = vmatpush1.bf16.msra.mxu1 %v933_v59  ;;  %2471 = vmatpush1.bf16.msra.mxu0 %v935_v63  ;;  %v1235_v59 = vld [vmem:[#allocation2 + $0x10b0] sm:$0xff]  ;;  %v1284_v63 = vld [vmem:[#allocation2 + $0x1238] sm:$0xff] }
 0x585   :  { %2431 = vmatprep.subr.bf16.mxu1 %v984_v2  ;;  %2472 = vmatprep.subr.bf16.mxu0 %v986_v3  ;;  %v1286_v2 = vld [vmem:[#allocation2 + $0x1248] sm:$0xff]  ;;  %v1283_v3 = vld [vmem:[#allocation2 + $0x1230] sm:$0xff] }
 0x586   :  { %v2127_v9 = vpop.f32.mrb[20].mxu1  ;;  %v2168_v13 = vpop.f32.mrb[20].mxu0 }
 0x587   :  { %v2128_v16 = vadd.f32 %v2127_v9, %v1582_v4  ;;  %v2169_v17 = vadd.f32 %v2168_v13, %v1590_v5  ;;  %v2129_v18 = vpop.f32.mrb[21].mxu1  ;;  %v2170_v21 = vpop.f32.mrb[21].mxu0  ;;  %v1285_v4 = vld [vmem:[#allocation2 + $0x1240] sm:$0xff]  ;;  %v1334_v5 = vld [vmem:[#allocation2 + $0x13c8] sm:$0xff]  ;;  %v1383_v13 = vld [vmem:[#allocation2 + $0x1550] sm:$0xff] }
 0x588   :  { %v2130_v22 = vadd.f32 %v2129_v18, %v1586_v6  ;;  %v2171_v23 = vadd.f32 %v2170_v21, %v1594_v7  ;;  %v2131_v24 = vpop.f32.mrb[22].mxu1  ;;  %2432 = vmatpush1.bf16.msra.mxu1 %v983_v11  ;;  %2473 = vmatpush1.bf16.msra.mxu0 %v985_v12  ;;  %v2172_v25 = vpop.f32.mrb[22].mxu0  ;;  %v1336_v6 = vld [vmem:[#allocation2 + $0x13d8] sm:$0xff]  ;;  %v1333_v7 = vld [vmem:[#allocation2 + $0x13c0] sm:$0xff]  ;;  %v1335_v11 = vld [vmem:[#allocation2 + $0x13d0] sm:$0xff] }
 0x589   :  { %v2806_v26 = vmax.f32 %v2128_v16, 0.0  ;;  %v2808_v27 = vmax.f32 %v2169_v17, 0.0  ;;  %v2132_v29 = vpop.f32.mrb[23].mxu1  ;;  %2433 = vmatprep.subr.bf16.mxu1 %v1034_v14  ;;  %2474 = vmatprep.subr.bf16.mxu0 %v1036_v15  ;;  %v2173_v33 = vpop.f32.mrb[23].mxu0  ;;  %v1384_v12 = vld [vmem:[#allocation2 + $0x1558] sm:$0xff]  ;;  %v1386_v9 = vld [vmem:[#allocation2 + $0x1568] sm:$0xff] }
 0x58a   :  { %v2807_v34 = vmax.f32 %v2130_v22, 0.0  ;;  %v2809_v35 = vmax.f32 %v2171_v23, 0.0  ;;  %v1385_v14 = vld [vmem:[#allocation2 + $0x1560] sm:$0xff]  ;;  %v1434_v15 = vld [vmem:[#allocation2 + $0x16e8] sm:$0xff]  ;;  %v1436_v16 = vld [vmem:[#allocation2 + $0x16f8] sm:$0xff] }
 0x58b   :  { %2856 = vst [vmem:[#allocation6 + $0x80] sm:$0xff] %v2806_v26  ;;  %2858 = vst [vmem:[#allocation6 + $0x90] sm:$0xff] %v2808_v27  ;;  %v1433_v17 = vld [vmem:[#allocation2 + $0x16e0] sm:$0xff]  ;;  %v1435_v18 = vld [vmem:[#allocation2 + $0x16f0] sm:$0xff] }
 0x58c   :  { %2857 = vst [vmem:[#allocation6 + $0x88] sm:$0xff] %v2807_v34  ;;  %2859 = vst [vmem:[#allocation6 + $0x98] sm:$0xff] %v2809_v35  ;;  %2434 = vmatpush1.bf16.msra.mxu1 %v1033_v31  ;;  %2475 = vmatpush1.bf16.msra.mxu0 %v1035_v32  ;;  %v1484_v21 = vld [vmem:[#allocation2 + $0x1878] sm:$0xff]  ;;  %v1486_v22 = vld [vmem:[#allocation2 + $0x1888] sm:$0xff] }
 0x58d   :  { %2435 = vmatprep.subr.bf16.mxu1 %v1084_v36  ;;  %2476 = vmatprep.subr.bf16.mxu0 %v1086_v37  ;;  %v1483_v23 = vld [vmem:[#allocation2 + $0x1870] sm:$0xff]  ;;  %v1485_v24 = vld [vmem:[#allocation2 + $0x1880] sm:$0xff]  ;;  %v738_v25 = vld [vmem:[#allocation2 + $0x128] sm:$0xff] }
 0x58e   :  { %v740_v26 = vld [vmem:[#allocation2 + $0x138] sm:$0xff]  ;;  %v737_v27 = vld [vmem:[#allocation2 + $0x120] sm:$0xff]  ;;  %v739_v29 = vld [vmem:[#allocation2 + $0x130] sm:$0xff] }
 0x58f   :  { %v788_v31 = vld [vmem:[#allocation2 + $0x2b8] sm:$0xff]  ;;  %v790_v32 = vld [vmem:[#allocation2 + $0x2c8] sm:$0xff]  ;;  %v787_v33 = vld [vmem:[#allocation2 + $0x2b0] sm:$0xff] }
 0x590   :  { %2436 = vmatpush1.bf16.msra.mxu1 %v1083_v60  ;;  %2477 = vmatpush1.bf16.msra.mxu0 %v1085_v38  ;;  %v789_v34 = vld [vmem:[#allocation2 + $0x2c0] sm:$0xff]  ;;  %v838_v35 = vld [vmem:[#allocation2 + $0x448] sm:$0xff]  ;;  %v840_v36 = vld [vmem:[#allocation2 + $0x458] sm:$0xff] }
 0x591   :  { %2437 = vmatprep.subr.bf16.mxu1 %v1134_v39  ;;  %2478 = vmatprep.subr.bf16.mxu0 %v1136_v40  ;;  %v837_v37 = vld [vmem:[#allocation2 + $0x440] sm:$0xff]  ;;  %v839_v60 = vld [vmem:[#allocation2 + $0x450] sm:$0xff]  ;;  %v888_v38 = vld [vmem:[#allocation2 + $0x5d8] sm:$0xff] }
 0x592   :  { %v890_v39 = vld [vmem:[#allocation2 + $0x5e8] sm:$0xff]  ;;  %v887_v40 = vld [vmem:[#allocation2 + $0x5d0] sm:$0xff] }
 0x593   :  { %v2957_v48 = vld [vmem:[#allocation6 + $0x78] ss:$8 sm:$0xf]  ;;  %v3027_v49 = vld [vmem:[#allocation6 + $0x79] ss:$8 sm:$0xf] }
 0x594   :  { %v2958_v50 = vld [vmem:[#allocation6 + $0x78] ss:$8 sm:$0x10]  ;;  %v3028_v51 = vld [vmem:[#allocation6 + $0x79] ss:$8 sm:$0x10]  ;;  %2438 = vmatpush1.bf16.msra.mxu1 %v1133_v30  ;;  %2479 = vmatpush1.bf16.msra.mxu0 %v1135_v41 }
 0x595   :  { %v2959_v52 = vor.u32 %v2958_v50, %v2957_v48  ;;  %v3029_v53 = vor.u32 %v3028_v51, %v3027_v49  ;;  %2439 = vmatprep.subr.bf16.mxu1 %v1184_v42  ;;  %2480 = vmatprep.subr.bf16.mxu0 %v1186_v47  ;;  %v889_v30 = vld [vmem:[#allocation2 + $0x5e0] sm:$0xff]  ;;  %v938_v41 = vld [vmem:[#allocation2 + $0x768] sm:$0xff]  ;;  %v940_v42 = vld [vmem:[#allocation2 + $0x778] sm:$0xff]  ;;  %v1598_v51 = vrot.slane %v10187_v58, %v10109_v43 }
 0x596   :  { %v937_v47 = vld [vmem:[#allocation2 + $0x760] sm:$0xff]  ;;  %v939_v48 = vld [vmem:[#allocation2 + $0x770] sm:$0xff]  ;;  %v988_v49 = vld [vmem:[#allocation2 + $0x8f8] sm:$0xff] }
 0x597   :  { %2961 = vst.msk [vmem:[#allocation7 + $0x43] ss:$8 sm:$0xf] %vm10129_vm2, %v2959_v52  ;;  %2962 = vst.msk [vmem:[#allocation7 + $0x43] ss:$8 sm:$0x10] %vm10129_vm2, %v2959_v52  ;;  %v1606_v52 = vrot.slane %v10187_v58, %v10112_v44 }
 0x598   :  { %3031 = vst.msk [vmem:[#allocation7 + $0xeb] ss:$8 sm:$0xf] %vm10129_vm2, %v3029_v53  ;;  %3032 = vst.msk [vmem:[#allocation7 + $0xeb] ss:$8 sm:$0x10] %vm10129_vm2, %v3029_v53  ;;  %2440 = vmatpush1.bf16.msra.mxu1 %v1183_v61  ;;  %2481 = vmatpush1.bf16.msra.mxu0 %v1185_v54  ;;  %v1602_v53 = vrot.slane %v10187_v58, %v10115_v45  ;;  %v1610_v61 = vrot.slane %v10187_v58, %v10118_v46 }
 0x599   :  { %2441 = vmatprep.subr.bf16.mxu1 %v1234_v55  ;;  %2482 = vmatprep.subr.bf16.mxu0 %v1236_v56  ;;  %v990_v50 = vld [vmem:[#allocation2 + $0x908] sm:$0xff]  ;;  %v987_v54 = vld [vmem:[#allocation2 + $0x8f0] sm:$0xff]  ;;  %v989_v55 = vld [vmem:[#allocation2 + $0x900] sm:$0xff] }
 0x59c   :  { %2442 = vmatpush1.bf16.msra.mxu1 %v1233_v57  ;;  %2483 = vmatpush1.bf16.msra.mxu0 %v1235_v59  ;;  %v1038_v59 = vld [vmem:[#allocation2 + $0xa88] sm:$0xff] }
 0x59d   :  { %2443 = vmatprep.subr.bf16.mxu1 %v1284_v63  ;;  %2484 = vmatprep.subr.bf16.mxu0 %v1286_v2  ;;  %v1040_v63 = vld [vmem:[#allocation2 + $0xa98] sm:$0xff] }
 0x5a0   :  { %2444 = vmatpush1.bf16.msra.mxu1 %v1283_v3  ;;  %2485 = vmatpush1.bf16.msra.mxu0 %v1285_v4 }
 0x5a1   :  { %2445 = vmatprep.subr.bf16.mxu1 %v1334_v5  ;;  %2486 = vmatprep.subr.bf16.mxu0 %v1336_v6 }
 0x5a4   :  { %2446 = vmatpush1.bf16.msra.mxu1 %v1333_v7  ;;  %2487 = vmatpush1.bf16.msra.mxu0 %v1335_v11 }
 0x5a5   :  { %2447 = vmatprep.subr.bf16.mxu1 %v1384_v12  ;;  %2488 = vmatprep.subr.bf16.mxu0 %v1386_v9 }
 0x5a8   :  { %2448 = vmatpush1.bf16.msra.mxu1 %v1383_v13  ;;  %2489 = vmatpush1.bf16.msra.mxu0 %v1385_v14  ;;  %v1037_v14 = vld [vmem:[#allocation2 + $0xa80] sm:$0xff] }
 0x5a9   :  { %2449 = vmatprep.subr.bf16.mxu1 %v1434_v15  ;;  %2490 = vmatprep.subr.bf16.mxu0 %v1436_v16  ;;  %v1039_v15 = vld [vmem:[#allocation2 + $0xa90] sm:$0xff] }
 0x5ac   :  { %2450 = vmatpush1.bf16.msra.mxu1 %v1433_v17  ;;  %2491 = vmatpush1.bf16.msra.mxu0 %v1435_v18 }
 0x5ad   :  { %2451 = vmatprep.subr.bf16.mxu1 %v1484_v21  ;;  %2492 = vmatprep.subr.bf16.mxu0 %v1486_v22  ;;  %v1088_v21 = vld [vmem:[#allocation2 + $0xc18] sm:$0xff]  ;;  %v1090_v22 = vld [vmem:[#allocation2 + $0xc28] sm:$0xff] }
 0x5b0   :  { %2452 = vmatpush1.bf16.msra.mxu1 %v1483_v23  ;;  %2493 = vmatpush1.bf16.msra.mxu0 %v1485_v24  ;;  %v1087_v23 = vld [vmem:[#allocation2 + $0xc10] sm:$0xff]  ;;  %v1089_v24 = vld [vmem:[#allocation2 + $0xc20] sm:$0xff] }
 0x5b1   :  { %2503 = vmatprep.subr.bf16.mxu1 %v738_v25  ;;  %2544 = vmatprep.subr.bf16.mxu0 %v740_v26  ;;  %v1138_v25 = vld [vmem:[#allocation2 + $0xda8] sm:$0xff]  ;;  %v1140_v26 = vld [vmem:[#allocation2 + $0xdb8] sm:$0xff] }
 0x5b3   :  { %2454 = vmatmul.mubr.bf16.vlgmr.msra.gmra.mrb[36].mxu1 %v10024_v19  ;;  %2495 = vmatmul.mubr.bf16.vlgmr.msra.gmra.mrb[36].mxu0 %v10024_v19 }
 0x5b4   :  { %2504 = vmatpush1.bf16.msra.mxu1 %v737_v27  ;;  %2545 = vmatpush1.bf16.msra.mxu0 %v739_v29  ;;  %v1137_v27 = vld [vmem:[#allocation2 + $0xda0] sm:$0xff]  ;;  %v1139_v29 = vld [vmem:[#allocation2 + $0xdb0] sm:$0xff] }
 0x5b5   :  { %2505 = vmatprep.subr.bf16.mxu1 %v788_v31  ;;  %2546 = vmatprep.subr.bf16.mxu0 %v790_v32  ;;  %v1188_v31 = vld [vmem:[#allocation2 + $0xf38] sm:$0xff]  ;;  %v1190_v32 = vld [vmem:[#allocation2 + $0xf48] sm:$0xff] }
 0x5b6   :  { %2535 = vmatprep.mubr.bf16.mxu1 %v10026_v20  ;;  %2576 = vmatprep.mubr.bf16.mxu0 %v10026_v20 }
 0x5b8   :  { %2506 = vmatpush1.bf16.msra.mxu1 %v787_v33  ;;  %2547 = vmatpush1.bf16.msra.mxu0 %v789_v34  ;;  %v1187_v33 = vld [vmem:[#allocation2 + $0xf30] sm:$0xff]  ;;  %v1189_v34 = vld [vmem:[#allocation2 + $0xf40] sm:$0xff] }
 0x5b9   :  { %2507 = vmatprep.subr.bf16.mxu1 %v838_v35  ;;  %2548 = vmatprep.subr.bf16.mxu0 %v840_v36  ;;  %v1238_v35 = vld [vmem:[#allocation2 + $0x10c8] sm:$0xff]  ;;  %v1240_v36 = vld [vmem:[#allocation2 + $0x10d8] sm:$0xff] }
 0x5bc   :  { %2508 = vmatpush1.bf16.msra.mxu1 %v837_v37  ;;  %2549 = vmatpush1.bf16.msra.mxu0 %v839_v60  ;;  %v1237_v37 = vld [vmem:[#allocation2 + $0x10c0] sm:$0xff]  ;;  %v1239_v60 = vld [vmem:[#allocation2 + $0x10d0] sm:$0xff] }
 0x5bd   :  { %2509 = vmatprep.subr.bf16.mxu1 %v888_v38  ;;  %2550 = vmatprep.subr.bf16.mxu0 %v890_v39  ;;  %v1288_v38 = vld [vmem:[#allocation2 + $0x1258] sm:$0xff]  ;;  %v1290_v39 = vld [vmem:[#allocation2 + $0x1268] sm:$0xff] }
 0x5c0   :  { %2510 = vmatpush1.bf16.msra.mxu1 %v887_v40  ;;  %2551 = vmatpush1.bf16.msra.mxu0 %v889_v30  ;;  %v1287_v40 = vld [vmem:[#allocation2 + $0x1250] sm:$0xff]  ;;  %v1289_v30 = vld [vmem:[#allocation2 + $0x1260] sm:$0xff] }
 0x5c1   :  { %2511 = vmatprep.subr.bf16.mxu1 %v938_v41  ;;  %2552 = vmatprep.subr.bf16.mxu0 %v940_v42  ;;  %v1338_v41 = vld [vmem:[#allocation2 + $0x13e8] sm:$0xff]  ;;  %v1340_v42 = vld [vmem:[#allocation2 + $0x13f8] sm:$0xff] }
 0x5c4   :  { %2512 = vmatpush1.bf16.msra.mxu1 %v937_v47  ;;  %2553 = vmatpush1.bf16.msra.mxu0 %v939_v48  ;;  %v1337_v47 = vld [vmem:[#allocation2 + $0x13e0] sm:$0xff]  ;;  %v1339_v48 = vld [vmem:[#allocation2 + $0x13f0] sm:$0xff] }
 0x5c5   :  { %2513 = vmatprep.subr.bf16.mxu1 %v988_v49  ;;  %2554 = vmatprep.subr.bf16.mxu0 %v990_v50  ;;  %v1388_v49 = vld [vmem:[#allocation2 + $0x1578] sm:$0xff]  ;;  %v1390_v50 = vld [vmem:[#allocation2 + $0x1588] sm:$0xff] }
 0x5c6   :  { %v2209_v56 = vpop.f32.mrb[24].mxu1  ;;  %v2250_v57 = vpop.f32.mrb[24].mxu0 }
 0x5c7   :  { %v2210_v2 = vadd.f32 %v2209_v56, %v1598_v51  ;;  %v2251_v3 = vadd.f32 %v2250_v57, %v1606_v52  ;;  %v2211_v4 = vpop.f32.mrb[25].mxu1  ;;  %v2252_v5 = vpop.f32.mrb[25].mxu0  ;;  %v1387_v51 = vld [vmem:[#allocation2 + $0x1570] sm:$0xff]  ;;  %v1389_v52 = vld [vmem:[#allocation2 + $0x1580] sm:$0xff]  ;;  %v1488_v56 = vld [vmem:[#allocation2 + $0x1898] sm:$0xff] }
 0x5c8   :  { %v2212_v6 = vadd.f32 %v2211_v4, %v1602_v53  ;;  %v2253_v7 = vadd.f32 %v2252_v5, %v1610_v61  ;;  %v2213_v11 = vpop.f32.mrb[26].mxu1  ;;  %2514 = vmatpush1.bf16.msra.mxu1 %v987_v54  ;;  %2555 = vmatpush1.bf16.msra.mxu0 %v989_v55  ;;  %v2254_v12 = vpop.f32.mrb[26].mxu0  ;;  %v1438_v53 = vld [vmem:[#allocation2 + $0x1708] sm:$0xff]  ;;  %v1440_v61 = vld [vmem:[#allocation2 + $0x1718] sm:$0xff]  ;;  %v1437_v54 = vld [vmem:[#allocation2 + $0x1700] sm:$0xff] }
 0x5c9   :  { %v2810_v9 = vmax.f32 %v2210_v2, 0.0  ;;  %v2812_v58 = vmax.f32 %v2251_v3, 0.0  ;;  %v2214_v13 = vpop.f32.mrb[27].mxu1  ;;  %2515 = vmatprep.subr.bf16.mxu1 %v1038_v59  ;;  %2556 = vmatprep.subr.bf16.mxu0 %v1040_v63  ;;  %v2255_v16 = vpop.f32.mrb[27].mxu0  ;;  %v1439_v55 = vld [vmem:[#allocation2 + $0x1710] sm:$0xff]  ;;  %v1490_v57 = vld [vmem:[#allocation2 + $0x18a8] sm:$0xff] }
 0x5ca   :  { %v2811_v17 = vmax.f32 %v2212_v6, 0.0  ;;  %v2813_v18 = vmax.f32 %v2253_v7, 0.0  ;;  %v1487_v59 = vld [vmem:[#allocation2 + $0x1890] sm:$0xff]  ;;  %v1489_v63 = vld [vmem:[#allocation2 + $0x18a0] sm:$0xff]  ;;  %v742_v2 = vld [vmem:[#allocation2 + $0x148] sm:$0xff] }
 0x5cb   :  { %2860 = vst [vmem:[#allocation6 + $0xa0] sm:$0xff] %v2810_v9  ;;  %2862 = vst [vmem:[#allocation6 + $0xb0] sm:$0xff] %v2812_v58  ;;  %v744_v3 = vld [vmem:[#allocation2 + $0x158] sm:$0xff]  ;;  %v741_v4 = vld [vmem:[#allocation2 + $0x140] sm:$0xff] }
 0x5cc   :  { %2861 = vst [vmem:[#allocation6 + $0xa8] sm:$0xff] %v2811_v17  ;;  %2863 = vst [vmem:[#allocation6 + $0xb8] sm:$0xff] %v2813_v18  ;;  %2516 = vmatpush1.bf16.msra.mxu1 %v1037_v14  ;;  %2557 = vmatpush1.bf16.msra.mxu0 %v1039_v15  ;;  %v743_v5 = vld [vmem:[#allocation2 + $0x150] sm:$0xff]  ;;  %v792_v6 = vld [vmem:[#allocation2 + $0x2d8] sm:$0xff] }
 0x5cd   :  { %2517 = vmatprep.subr.bf16.mxu1 %v1088_v21  ;;  %2558 = vmatprep.subr.bf16.mxu0 %v1090_v22  ;;  %v794_v7 = vld [vmem:[#allocation2 + $0x2e8] sm:$0xff]  ;;  %v791_v11 = vld [vmem:[#allocation2 + $0x2d0] sm:$0xff]  ;;  %v793_v12 = vld [vmem:[#allocation2 + $0x2e0] sm:$0xff] }
 0x5ce   :  { %v842_v9 = vld [vmem:[#allocation2 + $0x468] sm:$0xff]  ;;  %v844_v58 = vld [vmem:[#allocation2 + $0x478] sm:$0xff]  ;;  %v841_v13 = vld [vmem:[#allocation2 + $0x460] sm:$0xff] }
 0x5cf   :  { %v843_v14 = vld [vmem:[#allocation2 + $0x470] sm:$0xff]  ;;  %v892_v15 = vld [vmem:[#allocation2 + $0x5f8] sm:$0xff]  ;;  %v894_v16 = vld [vmem:[#allocation2 + $0x608] sm:$0xff] }
 0x5d0   :  { %2518 = vmatpush1.bf16.msra.mxu1 %v1087_v23  ;;  %2559 = vmatpush1.bf16.msra.mxu0 %v1089_v24  ;;  %v891_v17 = vld [vmem:[#allocation2 + $0x5f0] sm:$0xff]  ;;  %v893_v18 = vld [vmem:[#allocation2 + $0x600] sm:$0xff]  ;;  %v942_v21 = vld [vmem:[#allocation2 + $0x788] sm:$0xff] }
 0x5d1   :  { %2519 = vmatprep.subr.bf16.mxu1 %v1138_v25  ;;  %2560 = vmatprep.subr.bf16.mxu0 %v1140_v26  ;;  %v944_v22 = vld [vmem:[#allocation2 + $0x798] sm:$0xff]  ;;  %v10221_v23 = vld [vmem:[#allocation21 + $0x18] sm:$0xff]  ;;  %v941_v24 = vld [vmem:[#allocation2 + $0x780] sm:$0xff] }
 0x5d2   :  { %v943_v25 = vld [vmem:[#allocation2 + $0x790] sm:$0xff]  ;;  %v992_v26 = vld [vmem:[#allocation2 + $0x918] sm:$0xff] }
 0x5d4   :  { %2520 = vmatpush1.bf16.msra.mxu1 %v1137_v27  ;;  %2561 = vmatpush1.bf16.msra.mxu0 %v1139_v29  ;;  %v994_v27 = vld [vmem:[#allocation2 + $0x928] sm:$0xff]  ;;  %v1614_v29 = vrot.slane %v10221_v23, %v10003_v62 }
 0x5d5   :  { %2521 = vmatprep.subr.bf16.mxu1 %v1188_v31  ;;  %2562 = vmatprep.subr.bf16.mxu0 %v1190_v32  ;;  %v1622_v31 = vrot.slane %v10221_v23, %v10089_v8  ;;  %v1618_v32 = vrot.slane %v10221_v23, %v10006_v0 }
 0x5d8   :  { %2522 = vmatpush1.bf16.msra.mxu1 %v1187_v33  ;;  %2563 = vmatpush1.bf16.msra.mxu0 %v1189_v34  ;;  %v1626_v33 = vrot.slane %v10221_v23, %v10094_v10  ;;  %v991_v34 = vld [vmem:[#allocation2 + $0x910] sm:$0xff] }
 0x5d9   :  { %2523 = vmatprep.subr.bf16.mxu1 %v1238_v35  ;;  %2564 = vmatprep.subr.bf16.mxu0 %v1240_v36  ;;  %v993_v35 = vld [vmem:[#allocation2 + $0x920] sm:$0xff] }
 0x5dc   :  { %2524 = vmatpush1.bf16.msra.mxu1 %v1237_v37  ;;  %2565 = vmatpush1.bf16.msra.mxu0 %v1239_v60  ;;  %v1042_v37 = vld [vmem:[#allocation2 + $0xaa8] sm:$0xff]  ;;  %v1044_v60 = vld [vmem:[#allocation2 + $0xab8] sm:$0xff] }
 0x5dd   :  { %2525 = vmatprep.subr.bf16.mxu1 %v1288_v38  ;;  %2566 = vmatprep.subr.bf16.mxu0 %v1290_v39 }
 0x5e0   :  { %2526 = vmatpush1.bf16.msra.mxu1 %v1287_v40  ;;  %2567 = vmatpush1.bf16.msra.mxu0 %v1289_v30 }
 0x5e1   :  { %2527 = vmatprep.subr.bf16.mxu1 %v1338_v41  ;;  %2568 = vmatprep.subr.bf16.mxu0 %v1340_v42 }
 0x5e4   :  { %2528 = vmatpush1.bf16.msra.mxu1 %v1337_v47  ;;  %2569 = vmatpush1.bf16.msra.mxu0 %v1339_v48 }
 0x5e5   :  { %2529 = vmatprep.subr.bf16.mxu1 %v1388_v49  ;;  %2570 = vmatprep.subr.bf16.mxu0 %v1390_v50 }
 0x5e8   :  { %2530 = vmatpush1.bf16.msra.mxu1 %v1387_v51  ;;  %2571 = vmatpush1.bf16.msra.mxu0 %v1389_v52  ;;  %v1041_v52 = vld [vmem:[#allocation2 + $0xaa0] sm:$0xff] }
 0x5e9   :  { %2531 = vmatprep.subr.bf16.mxu1 %v1438_v53  ;;  %2572 = vmatprep.subr.bf16.mxu0 %v1440_v61  ;;  %v1043_v53 = vld [vmem:[#allocation2 + $0xab0] sm:$0xff] }
 0x5ec   :  { %2532 = vmatpush1.bf16.msra.mxu1 %v1437_v54  ;;  %2573 = vmatpush1.bf16.msra.mxu0 %v1439_v55 }
 0x5ed   :  { %2533 = vmatprep.subr.bf16.mxu1 %v1488_v56  ;;  %2574 = vmatprep.subr.bf16.mxu0 %v1490_v57  ;;  %v1092_v56 = vld [vmem:[#allocation2 + $0xc38] sm:$0xff]  ;;  %v1094_v57 = vld [vmem:[#allocation2 + $0xc48] sm:$0xff] }
 0x5f0   :  { %2534 = vmatpush1.bf16.msra.mxu1 %v1487_v59  ;;  %2575 = vmatpush1.bf16.msra.mxu0 %v1489_v63  ;;  %v1091_v63 = vld [vmem:[#allocation2 + $0xc30] sm:$0xff] }
 0x5f1   :  { %2585 = vmatprep.subr.bf16.mxu1 %v742_v2  ;;  %2626 = vmatprep.subr.bf16.mxu0 %v744_v3  ;;  %v1093_v2 = vld [vmem:[#allocation2 + $0xc40] sm:$0xff]  ;;  %v1142_v3 = vld [vmem:[#allocation2 + $0xdc8] sm:$0xff] }
 0x5f3   :  { %2536 = vmatmul.mubr.bf16.vlgmr.msra.gmra.mrb[40].mxu1 %v10024_v19  ;;  %2577 = vmatmul.mubr.bf16.vlgmr.msra.gmra.mrb[40].mxu0 %v10024_v19 }
 0x5f4   :  { %2586 = vmatpush1.bf16.msra.mxu1 %v741_v4  ;;  %2627 = vmatpush1.bf16.msra.mxu0 %v743_v5  ;;  %v1144_v4 = vld [vmem:[#allocation2 + $0xdd8] sm:$0xff]  ;;  %v1141_v5 = vld [vmem:[#allocation2 + $0xdc0] sm:$0xff] }
 0x5f5   :  { %2587 = vmatprep.subr.bf16.mxu1 %v792_v6  ;;  %2628 = vmatprep.subr.bf16.mxu0 %v794_v7  ;;  %v1143_v6 = vld [vmem:[#allocation2 + $0xdd0] sm:$0xff]  ;;  %v1192_v7 = vld [vmem:[#allocation2 + $0xf58] sm:$0xff] }
 0x5f6   :  { %2617 = vmatprep.mubr.bf16.mxu1 %v10026_v20  ;;  %2658 = vmatprep.mubr.bf16.mxu0 %v10026_v20 }
 0x5f8   :  { %2588 = vmatpush1.bf16.msra.mxu1 %v791_v11  ;;  %2629 = vmatpush1.bf16.msra.mxu0 %v793_v12  ;;  %v1194_v11 = vld [vmem:[#allocation2 + $0xf68] sm:$0xff] }
 0x5f9   :  { %2589 = vmatprep.subr.bf16.mxu1 %v842_v9  ;;  %2630 = vmatprep.subr.bf16.mxu0 %v844_v58  ;;  %v2964_v12 = vld [vmem:[#allocation6 + $0xa0] ss:$8 sm:$0xf]  ;;  %v3034_v9 = vld [vmem:[#allocation6 + $0xa1] ss:$8 sm:$0xf] }
 0x5fc   :  { %2590 = vmatpush1.bf16.msra.mxu1 %v841_v13  ;;  %2631 = vmatpush1.bf16.msra.mxu0 %v843_v14 }
 0x5fd   :  { %2591 = vmatprep.subr.bf16.mxu1 %v892_v15  ;;  %2632 = vmatprep.subr.bf16.mxu0 %v894_v16  ;;  %v1191_v16 = vld [vmem:[#allocation2 + $0xf50] sm:$0xff] }
 0x600   :  { %2592 = vmatpush1.bf16.msra.mxu1 %v891_v17  ;;  %2633 = vmatpush1.bf16.msra.mxu0 %v893_v18  ;;  %v1193_v17 = vld [vmem:[#allocation2 + $0xf60] sm:$0xff]  ;;  %v1242_v18 = vld [vmem:[#allocation2 + $0x10e8] sm:$0xff] }
 0x601   :  { %2593 = vmatprep.subr.bf16.mxu1 %v942_v21  ;;  %2634 = vmatprep.subr.bf16.mxu0 %v944_v22  ;;  %v1244_v21 = vld [vmem:[#allocation2 + $0x10f8] sm:$0xff]  ;;  %v1241_v22 = vld [vmem:[#allocation2 + $0x10e0] sm:$0xff] }
 0x604   :  { %2594 = vmatpush1.bf16.msra.mxu1 %v941_v24  ;;  %2635 = vmatpush1.bf16.msra.mxu0 %v943_v25  ;;  %v1243_v24 = vld [vmem:[#allocation2 + $0x10f0] sm:$0xff]  ;;  %v1292_v25 = vld [vmem:[#allocation2 + $0x1278] sm:$0xff] }
 0x605   :  { %2595 = vmatprep.subr.bf16.mxu1 %v992_v26  ;;  %2636 = vmatprep.subr.bf16.mxu0 %v994_v27  ;;  %v1294_v26 = vld [vmem:[#allocation2 + $0x1288] sm:$0xff]  ;;  %v1291_v27 = vld [vmem:[#allocation2 + $0x1270] sm:$0xff] }
 0x606   :  { %v2291_v36 = vpop.f32.mrb[28].mxu1  ;;  %v2332_v38 = vpop.f32.mrb[28].mxu0 }
 0x607   :  { %v2292_v39 = vadd.f32 %v2291_v36, %v1614_v29  ;;  %v2293_v40 = vpop.f32.mrb[29].mxu1  ;;  %v2333_v30 = vadd.f32 %v2332_v38, %v1622_v31  ;;  %v2334_v41 = vpop.f32.mrb[29].mxu0  ;;  %v1293_v29 = vld [vmem:[#allocation2 + $0x1280] sm:$0xff]  ;;  %v1342_v31 = vld [vmem:[#allocation2 + $0x1408] sm:$0xff] }
 0x608   :  { %v2294_v42 = vadd.f32 %v2293_v40, %v1618_v32  ;;  %v2295_v47 = vpop.f32.mrb[30].mxu1  ;;  %2596 = vmatpush1.bf16.msra.mxu1 %v991_v34  ;;  %2637 = vmatpush1.bf16.msra.mxu0 %v993_v35  ;;  %v2335_v48 = vadd.f32 %v2334_v41, %v1626_v33  ;;  %v2336_v49 = vpop.f32.mrb[30].mxu0  ;;  %v1344_v32 = vld [vmem:[#allocation2 + $0x1418] sm:$0xff]  ;;  %v1341_v33 = vld [vmem:[#allocation2 + $0x1400] sm:$0xff]  ;;  %v1343_v34 = vld [vmem:[#allocation2 + $0x1410] sm:$0xff] }
 0x609   :  { %v2814_v50 = vmax.f32 %v2292_v39, 0.0  ;;  %v2296_v51 = vpop.f32.mrb[31].mxu1  ;;  %2597 = vmatprep.subr.bf16.mxu1 %v1042_v37  ;;  %2638 = vmatprep.subr.bf16.mxu0 %v1044_v60  ;;  %v2816_v61 = vmax.f32 %v2333_v30, 0.0  ;;  %v2337_v54 = vpop.f32.mrb[31].mxu0  ;;  %v1392_v35 = vld [vmem:[#allocation2 + $0x1598] sm:$0xff]  ;;  %v1394_v36 = vld [vmem:[#allocation2 + $0x15a8] sm:$0xff] }
 0x60a   :  { %v2815_v55 = vmax.f32 %v2294_v42, 0.0  ;;  %v2817_v59 = vmax.f32 %v2335_v48, 0.0  ;;  %v1391_v37 = vld [vmem:[#allocation2 + $0x1590] sm:$0xff]  ;;  %v1393_v60 = vld [vmem:[#allocation2 + $0x15a0] sm:$0xff]  ;;  %v1442_v38 = vld [vmem:[#allocation2 + $0x1728] sm:$0xff] }
 0x60b   :  { %2864 = vst [vmem:[#allocation6 + $0xc0] sm:$0xff] %v2814_v50  ;;  %2866 = vst [vmem:[#allocation6 + $0xd0] sm:$0xff] %v2816_v61  ;;  %v1444_v39 = vld [vmem:[#allocation2 + $0x1738] sm:$0xff]  ;;  %v1441_v40 = vld [vmem:[#allocation2 + $0x1720] sm:$0xff] }
 0x60c   :  { %2865 = vst [vmem:[#allocation6 + $0xc8] sm:$0xff] %v2815_v55  ;;  %2598 = vmatpush1.bf16.msra.mxu1 %v1041_v52  ;;  %2639 = vmatpush1.bf16.msra.mxu0 %v1043_v53  ;;  %2867 = vst [vmem:[#allocation6 + $0xd8] sm:$0xff] %v2817_v59  ;;  %v1443_v30 = vld [vmem:[#allocation2 + $0x1730] sm:$0xff]  ;;  %v1492_v41 = vld [vmem:[#allocation2 + $0x18b8] sm:$0xff] }
 0x60d   :  { %2599 = vmatprep.subr.bf16.mxu1 %v1092_v56  ;;  %2640 = vmatprep.subr.bf16.mxu0 %v1094_v57  ;;  %v1494_v42 = vld [vmem:[#allocation2 + $0x18c8] sm:$0xff]  ;;  %v1491_v47 = vld [vmem:[#allocation2 + $0x18b0] sm:$0xff]  ;;  %v1493_v48 = vld [vmem:[#allocation2 + $0x18c0] sm:$0xff] }
 0x60e   :  { %v746_v49 = vld [vmem:[#allocation2 + $0x168] sm:$0xff]  ;;  %v748_v50 = vld [vmem:[#allocation2 + $0x178] sm:$0xff]  ;;  %v745_v51 = vld [vmem:[#allocation2 + $0x160] sm:$0xff] }
 0x60f   :  { %v747_v52 = vld [vmem:[#allocation2 + $0x170] sm:$0xff]  ;;  %v796_v53 = vld [vmem:[#allocation2 + $0x2f8] sm:$0xff]  ;;  %v798_v61 = vld [vmem:[#allocation2 + $0x308] sm:$0xff] }
 0x610   :  { %2600 = vmatpush1.bf16.msra.mxu1 %v1091_v63  ;;  %2641 = vmatpush1.bf16.msra.mxu0 %v1093_v2  ;;  %v795_v54 = vld [vmem:[#allocation2 + $0x2f0] sm:$0xff]  ;;  %v797_v55 = vld [vmem:[#allocation2 + $0x300] sm:$0xff]  ;;  %v846_v56 = vld [vmem:[#allocation2 + $0x488] sm:$0xff] }
 0x611   :  { %2601 = vmatprep.subr.bf16.mxu1 %v1142_v3  ;;  %2642 = vmatprep.subr.bf16.mxu0 %v1144_v4  ;;  %v848_v57 = vld [vmem:[#allocation2 + $0x498] sm:$0xff]  ;;  %v845_v59 = vld [vmem:[#allocation2 + $0x480] sm:$0xff]  ;;  %v847_v63 = vld [vmem:[#allocation2 + $0x490] sm:$0xff] }
 0x612   :  { %v2965_v58 = vld [vmem:[#allocation6 + $0xa0] ss:$8 sm:$0x10]  ;;  %v3035_v13 = vld [vmem:[#allocation6 + $0xa1] ss:$8 sm:$0x10] }
 0x613   :  { %v2966_v14 = vor.u32 %v2965_v58, %v2964_v12  ;;  %v3036_v15 = vor.u32 %v3035_v13, %v3034_v9  ;;  %v896_v2 = vld [vmem:[#allocation2 + $0x618] sm:$0xff]  ;;  %v898_v3 = vld [vmem:[#allocation2 + $0x628] sm:$0xff]  ;;  %v895_v4 = vld [vmem:[#allocation2 + $0x610] sm:$0xff]  ;;  %v1630_v13 = vrot.slane %v10221_v23, %v10109_v43 }
 0x614   :  { %2602 = vmatpush1.bf16.msra.mxu1 %v1141_v5  ;;  %2643 = vmatpush1.bf16.msra.mxu0 %v1143_v6  ;;  %v897_v5 = vld [vmem:[#allocation2 + $0x620] sm:$0xff]  ;;  %v946_v6 = vld [vmem:[#allocation2 + $0x7a8] sm:$0xff]  ;;  %v947_v12 = vld [vmem:[#allocation2 + $0x7b0] sm:$0xff] }
 0x615   :  { %2968 = vst.msk [vmem:[#allocation7 + $0x44] ss:$8 sm:$0xf] %vm10129_vm2, %v2966_v14  ;;  %2969 = vst.msk [vmem:[#allocation7 + $0x44] ss:$8 sm:$0x10] %vm10129_vm2, %v2966_v14  ;;  %2603 = vmatprep.subr.bf16.mxu1 %v1192_v7  ;;  %2644 = vmatprep.subr.bf16.mxu0 %v1194_v11  ;;  %v1638_v14 = vrot.slane %v10221_v23, %v10112_v44 }
 0x616   :  { %3038 = vst.msk [vmem:[#allocation7 + $0xec] ss:$8 sm:$0xf] %vm10129_vm2, %v3036_v15  ;;  %3039 = vst.msk [vmem:[#allocation7 + $0xec] ss:$8 sm:$0x10] %vm10129_vm2, %v3036_v15  ;;  %v1634_v15 = vrot.slane %v10221_v23, %v10115_v45 }
 0x617   :  { %v948_v7 = vld [vmem:[#allocation2 + $0x7b8] sm:$0xff]  ;;  %v945_v11 = vld [vmem:[#allocation2 + $0x7a0] sm:$0xff]  ;;  %v998_v58 = vld [vmem:[#allocation2 + $0x948] sm:$0xff] }
 0x618   :  { %2604 = vmatpush1.bf16.msra.mxu1 %v1191_v16  ;;  %2645 = vmatpush1.bf16.msra.mxu0 %v1193_v17  ;;  %v996_v9 = vld [vmem:[#allocation2 + $0x938] sm:$0xff]  ;;  %v1642_v16 = vrot.slane %v10221_v23, %v10118_v46  ;;  %v995_v17 = vld [vmem:[#allocation2 + $0x930] sm:$0xff] }
 0x619   :  { %2605 = vmatprep.subr.bf16.mxu1 %v1242_v18  ;;  %2646 = vmatprep.subr.bf16.mxu0 %v1244_v21  ;;  %v997_v18 = vld [vmem:[#allocation2 + $0x940] sm:$0xff] }
 0x61c   :  { %2606 = vmatpush1.bf16.msra.mxu1 %v1241_v22  ;;  %2647 = vmatpush1.bf16.msra.mxu0 %v1243_v24  ;;  %v1046_v22 = vld [vmem:[#allocation2 + $0xac8] sm:$0xff] }
 0x61d   :  { %2607 = vmatprep.subr.bf16.mxu1 %v1292_v25  ;;  %2648 = vmatprep.subr.bf16.mxu0 %v1294_v26  ;;  %v1048_v25 = vld [vmem:[#allocation2 + $0xad8] sm:$0xff] }
 0x620   :  { %2608 = vmatpush1.bf16.msra.mxu1 %v1291_v27  ;;  %2649 = vmatpush1.bf16.msra.mxu0 %v1293_v29 }
 0x621   :  { %2609 = vmatprep.subr.bf16.mxu1 %v1342_v31  ;;  %2650 = vmatprep.subr.bf16.mxu0 %v1344_v32 }
 0x624   :  { %2610 = vmatpush1.bf16.msra.mxu1 %v1341_v33  ;;  %2651 = vmatpush1.bf16.msra.mxu0 %v1343_v34 }
 0x625   :  { %2611 = vmatprep.subr.bf16.mxu1 %v1392_v35  ;;  %2652 = vmatprep.subr.bf16.mxu0 %v1394_v36 }
 0x628   :  { %2612 = vmatpush1.bf16.msra.mxu1 %v1391_v37  ;;  %2653 = vmatpush1.bf16.msra.mxu0 %v1393_v60  ;;  %v1045_v37 = vld [vmem:[#allocation2 + $0xac0] sm:$0xff] }
 0x629   :  { %2613 = vmatprep.subr.bf16.mxu1 %v1442_v38  ;;  %2654 = vmatprep.subr.bf16.mxu0 %v1444_v39  ;;  %v1047_v39 = vld [vmem:[#allocation2 + $0xad0] sm:$0xff] }
 0x62c   :  { %2614 = vmatpush1.bf16.msra.mxu1 %v1441_v40  ;;  %2655 = vmatpush1.bf16.msra.mxu0 %v1443_v30  ;;  %v1096_v30 = vld [vmem:[#allocation2 + $0xc58] sm:$0xff] }
 0x62d   :  { %2615 = vmatprep.subr.bf16.mxu1 %v1492_v41  ;;  %2656 = vmatprep.subr.bf16.mxu0 %v1494_v42  ;;  %v1098_v42 = vld [vmem:[#allocation2 + $0xc68] sm:$0xff] }
 0x630   :  { %2616 = vmatpush1.bf16.msra.mxu1 %v1491_v47  ;;  %2657 = vmatpush1.bf16.msra.mxu0 %v1493_v48  ;;  %v1095_v47 = vld [vmem:[#allocation2 + $0xc50] sm:$0xff]  ;;  %v1097_v48 = vld [vmem:[#allocation2 + $0xc60] sm:$0xff] }
 0x631   :  { %2667 = vmatprep.subr.bf16.mxu1 %v746_v49  ;;  %2708 = vmatprep.subr.bf16.mxu0 %v748_v50  ;;  %v1146_v49 = vld [vmem:[#allocation2 + $0xde8] sm:$0xff]  ;;  %v1148_v50 = vld [vmem:[#allocation2 + $0xdf8] sm:$0xff] }
 0x633   :  { %2618 = vmatmul.mubr.bf16.vlgmr.msra.gmra.mrb[44].mxu1 %v10024_v19  ;;  %2659 = vmatmul.mubr.bf16.vlgmr.msra.gmra.mrb[44].mxu0 %v10024_v19 }
 0x634   :  { %2668 = vmatpush1.bf16.msra.mxu1 %v745_v51  ;;  %2709 = vmatpush1.bf16.msra.mxu0 %v747_v52  ;;  %v1145_v51 = vld [vmem:[#allocation2 + $0xde0] sm:$0xff]  ;;  %v1196_v52 = vld [vmem:[#allocation2 + $0xf78] sm:$0xff] }
 0x635   :  { %2669 = vmatprep.subr.bf16.mxu1 %v796_v53  ;;  %2699 = vmatprep.mubr.bf16.mxu1 %v10026_v20  ;;  %v1147_v53 = vld [vmem:[#allocation2 + $0xdf0] sm:$0xff] }
 0x636   :  { %2710 = vmatprep.subr.bf16.mxu0 %v798_v61  ;;  %2740 = vmatprep.mubr.bf16.mxu0 %v10026_v20  ;;  %v1198_v61 = vld [vmem:[#allocation2 + $0xf88] sm:$0xff] }
 0x638   :  { %2670 = vmatpush1.bf16.msra.mxu1 %v795_v54  ;;  %2711 = vmatpush1.bf16.msra.mxu0 %v797_v55 }
 0x639   :  { %2671 = vmatprep.subr.bf16.mxu1 %v846_v56  ;;  %2712 = vmatprep.subr.bf16.mxu0 %v848_v57 }
 0x63c   :  { %2672 = vmatpush1.bf16.msra.mxu1 %v845_v59  ;;  %2713 = vmatpush1.bf16.msra.mxu0 %v847_v63 }
 0x63d   :  { %2673 = vmatprep.subr.bf16.mxu1 %v896_v2  ;;  %2714 = vmatprep.subr.bf16.mxu0 %v898_v3  ;;  %v1195_v2 = vld [vmem:[#allocation2 + $0xf70] sm:$0xff]  ;;  %v1197_v3 = vld [vmem:[#allocation2 + $0xf80] sm:$0xff] }
 0x640   :  { %2674 = vmatpush1.bf16.msra.mxu1 %v895_v4  ;;  %2715 = vmatpush1.bf16.msra.mxu0 %v897_v5  ;;  %v1246_v4 = vld [vmem:[#allocation2 + $0x1108] sm:$0xff]  ;;  %v1248_v5 = vld [vmem:[#allocation2 + $0x1118] sm:$0xff] }
 0x641   :  { %2675 = vmatprep.subr.bf16.mxu1 %v946_v6  ;;  %2716 = vmatprep.subr.bf16.mxu0 %v948_v7  ;;  %v1245_v6 = vld [vmem:[#allocation2 + $0x1100] sm:$0xff]  ;;  %v1247_v7 = vld [vmem:[#allocation2 + $0x1110] sm:$0xff] }
 0x644   :  { %2676 = vmatpush1.bf16.msra.mxu1 %v945_v11  ;;  %2717 = vmatpush1.bf16.msra.mxu0 %v947_v12  ;;  %v1296_v11 = vld [vmem:[#allocation2 + $0x1298] sm:$0xff]  ;;  %v1298_v12 = vld [vmem:[#allocation2 + $0x12a8] sm:$0xff] }
 0x645   :  { %2677 = vmatprep.subr.bf16.mxu1 %v996_v9  ;;  %2718 = vmatprep.subr.bf16.mxu0 %v998_v58  ;;  %v1295_v9 = vld [vmem:[#allocation2 + $0x1290] sm:$0xff]  ;;  %v1297_v58 = vld [vmem:[#allocation2 + $0x12a0] sm:$0xff] }
 0x646   :  { %v2373_v21 = vpop.f32.mrb[32].mxu1  ;;  %v2414_v24 = vpop.f32.mrb[32].mxu0 }
 0x647   :  { %v2374_v26 = vadd.f32 %v2373_v21, %v1630_v13  ;;  %v2375_v27 = vpop.f32.mrb[33].mxu1  ;;  %v2415_v29 = vadd.f32 %v2414_v24, %v1638_v14  ;;  %v2416_v31 = vpop.f32.mrb[33].mxu0  ;;  %v1346_v13 = vld [vmem:[#allocation2 + $0x1428] sm:$0xff]  ;;  %v1348_v14 = vld [vmem:[#allocation2 + $0x1438] sm:$0xff]  ;;  %v1395_v21 = vld [vmem:[#allocation2 + $0x15b0] sm:$0xff] }
 0x648   :  { %v2376_v32 = vadd.f32 %v2375_v27, %v1634_v15  ;;  %v2377_v33 = vpop.f32.mrb[34].mxu1  ;;  %2678 = vmatpush1.bf16.msra.mxu1 %v995_v17  ;;  %v2417_v34 = vadd.f32 %v2416_v31, %v1642_v16  ;;  %v2418_v35 = vpop.f32.mrb[34].mxu0  ;;  %2719 = vmatpush1.bf16.msra.mxu0 %v997_v18  ;;  %v1345_v15 = vld [vmem:[#allocation2 + $0x1420] sm:$0xff]  ;;  %v1347_v16 = vld [vmem:[#allocation2 + $0x1430] sm:$0xff]  ;;  %v1396_v17 = vld [vmem:[#allocation2 + $0x15b8] sm:$0xff] }
 0x649   :  { %v2818_v36 = vmax.f32 %v2374_v26, 0.0  ;;  %v2378_v23 = vpop.f32.mrb[35].mxu1  ;;  %2679 = vmatprep.subr.bf16.mxu1 %v1046_v22  ;;  %v2820_v60 = vmax.f32 %v2415_v29, 0.0  ;;  %v2419_v38 = vpop.f32.mrb[35].mxu0  ;;  %2720 = vmatprep.subr.bf16.mxu0 %v1048_v25  ;;  %v1398_v18 = vld [vmem:[#allocation2 + $0x15c8] sm:$0xff]  ;;  %v1397_v22 = vld [vmem:[#allocation2 + $0x15c0] sm:$0xff] }
 0x64a   :  { %v2819_v40 = vmax.f32 %v2376_v32, 0.0  ;;  %v2821_v41 = vmax.f32 %v2417_v34, 0.0  ;;  %v1446_v24 = vld [vmem:[#allocation2 + $0x1748] sm:$0xff]  ;;  %v1448_v25 = vld [vmem:[#allocation2 + $0x1758] sm:$0xff]  ;;  %v1445_v26 = vld [vmem:[#allocation2 + $0x1740] sm:$0xff] }
 0x64b   :  { %2868 = vst [vmem:[#allocation6 + $0xe0] sm:$0xff] %v2818_v36  ;;  %2870 = vst [vmem:[#allocation6 + $0xf0] sm:$0xff] %v2820_v60  ;;  %v1447_v27 = vld [vmem:[#allocation2 + $0x1750] sm:$0xff]  ;;  %v1496_v29 = vld [vmem:[#allocation2 + $0x18d8] sm:$0xff] }
 0x64c   :  { %2869 = vst [vmem:[#allocation6 + $0xe8] sm:$0xff] %v2819_v40  ;;  %2680 = vmatpush1.bf16.msra.mxu1 %v1045_v37  ;;  %2871 = vst [vmem:[#allocation6 + $0xf8] sm:$0xff] %v2821_v41  ;;  %2721 = vmatpush1.bf16.msra.mxu0 %v1047_v39  ;;  %v1498_v31 = vld [vmem:[#allocation2 + $0x18e8] sm:$0xff]  ;;  %v1495_v32 = vld [vmem:[#allocation2 + $0x18d0] sm:$0xff] }
 0x64d   :  { %2681 = vmatprep.subr.bf16.mxu1 %v1096_v30  ;;  %2722 = vmatprep.subr.bf16.mxu0 %v1098_v42  ;;  %v1497_v33 = vld [vmem:[#allocation2 + $0x18e0] sm:$0xff]  ;;  %v750_v34 = vld [vmem:[#allocation2 + $0x188] sm:$0xff]  ;;  %v800_v36 = vld [vmem:[#allocation2 + $0x318] sm:$0xff] }
 0x64e   :  { %v749_v35 = vld [vmem:[#allocation2 + $0x180] sm:$0xff]  ;;  %v799_v23 = vld [vmem:[#allocation2 + $0x310] sm:$0xff]  ;;  %v850_v37 = vld [vmem:[#allocation2 + $0x4a8] sm:$0xff] }
 0x64f   :  { %v849_v60 = vld [vmem:[#allocation2 + $0x4a0] sm:$0xff]  ;;  %v900_v38 = vld [vmem:[#allocation2 + $0x638] sm:$0xff]  ;;  %v899_v39 = vld [vmem:[#allocation2 + $0x630] sm:$0xff] }
 0x650   :  { %2682 = vmatpush1.bf16.msra.mxu1 %v1095_v47  ;;  %2723 = vmatpush1.bf16.msra.mxu0 %v1097_v48  ;;  %v950_v40 = vld [vmem:[#allocation2 + $0x7c8] sm:$0xff]  ;;  %v10262_v30 = vld [vmem:[#allocation21 + $0x20] sm:$0xff]  ;;  %v949_v41 = vld [vmem:[#allocation2 + $0x7c0] sm:$0xff] }
 0x651   :  { %2683 = vmatprep.subr.bf16.mxu1 %v1146_v49  ;;  %2724 = vmatprep.subr.bf16.mxu0 %v1148_v50  ;;  %v1000_v42 = vld [vmem:[#allocation2 + $0x958] sm:$0xff]  ;;  %v1654_v47 = vrot.slane %v10262_v30, %v10089_v8  ;;  %v1650_v48 = vrot.slane %v10262_v30, %v10006_v0  ;;  %v1658_v49 = vrot.slane %v10262_v30, %v10094_v10  ;;  %v999_v50 = vld [vmem:[#allocation2 + $0x950] sm:$0xff] }
 0x652   :  { %v2971_v54 = vld [vmem:[#allocation6 + $0xc8] ss:$8 sm:$0xf]  ;;  %v3041_v55 = vld [vmem:[#allocation6 + $0xc9] ss:$8 sm:$0xf] }
 0x653   :  { %v2972_v56 = vld [vmem:[#allocation6 + $0xc8] ss:$8 sm:$0x10]  ;;  %v3042_v57 = vld [vmem:[#allocation6 + $0xc9] ss:$8 sm:$0x10] }
 0x654   :  { %v2973_v59 = vor.u32 %v2972_v56, %v2971_v54  ;;  %v3043_v63 = vor.u32 %v3042_v57, %v3041_v55  ;;  %2684 = vmatpush1.bf16.msra.mxu1 %v1145_v51  ;;  %2725 = vmatpush1.bf16.msra.mxu0 %v1147_v53  ;;  %v1050_v53 = vld [vmem:[#allocation2 + $0xae8] sm:$0xff] }
 0x655   :  { %2685 = vmatprep.subr.bf16.mxu1 %v1196_v52  ;;  %2726 = vmatprep.subr.bf16.mxu0 %v1198_v61 }
 0x656   :  { %2975 = vst.msk [vmem:[#allocation7 + $0x45] ss:$8 sm:$0xf] %vm10129_vm2, %v2973_v59  ;;  %2976 = vst.msk [vmem:[#allocation7 + $0x45] ss:$8 sm:$0x10] %vm10129_vm2, %v2973_v59 }
 0x657   :  { %3045 = vst.msk [vmem:[#allocation7 + $0xed] ss:$8 sm:$0xf] %vm10129_vm2, %v3043_v63  ;;  %3046 = vst.msk [vmem:[#allocation7 + $0xed] ss:$8 sm:$0x10] %vm10129_vm2, %v3043_v63 }
 0x658   :  { %2686 = vmatpush1.bf16.msra.mxu1 %v1195_v2  ;;  %2727 = vmatpush1.bf16.msra.mxu0 %v1197_v3 }
 0x659   :  { %2687 = vmatprep.subr.bf16.mxu1 %v1246_v4  ;;  %2728 = vmatprep.subr.bf16.mxu0 %v1248_v5 }
 0x65c   :  { %2688 = vmatpush1.bf16.msra.mxu1 %v1245_v6  ;;  %2729 = vmatpush1.bf16.msra.mxu0 %v1247_v7  ;;  %v1049_v6 = vld [vmem:[#allocation2 + $0xae0] sm:$0xff] }
 0x65d   :  { %2689 = vmatprep.subr.bf16.mxu1 %v1296_v11  ;;  %2730 = vmatprep.subr.bf16.mxu0 %v1298_v12  ;;  %v1100_v12 = vld [vmem:[#allocation2 + $0xc78] sm:$0xff] }
 0x660   :  { %2690 = vmatpush1.bf16.msra.mxu1 %v1295_v9  ;;  %2731 = vmatpush1.bf16.msra.mxu0 %v1297_v58  ;;  %v1099_v58 = vld [vmem:[#allocation2 + $0xc70] sm:$0xff] }
 0x661   :  { %2691 = vmatprep.subr.bf16.mxu1 %v1346_v13  ;;  %2732 = vmatprep.subr.bf16.mxu0 %v1348_v14  ;;  %v1150_v13 = vld [vmem:[#allocation2 + $0xe08] sm:$0xff]  ;;  %v1149_v14 = vld [vmem:[#allocation2 + $0xe00] sm:$0xff] }
 0x664   :  { %2692 = vmatpush1.bf16.msra.mxu1 %v1345_v15  ;;  %2733 = vmatpush1.bf16.msra.mxu0 %v1347_v16  ;;  %v1200_v15 = vld [vmem:[#allocation2 + $0xf98] sm:$0xff] }
 0x665   :  { %2693 = vmatprep.subr.bf16.mxu1 %v1396_v17  ;;  %2734 = vmatprep.subr.bf16.mxu0 %v1398_v18 }
 0x668   :  { %2694 = vmatpush1.bf16.msra.mxu1 %v1395_v21  ;;  %2735 = vmatpush1.bf16.msra.mxu0 %v1397_v22 }
 0x669   :  { %2695 = vmatprep.subr.bf16.mxu1 %v1446_v24  ;;  %2736 = vmatprep.subr.bf16.mxu0 %v1448_v25  ;;  %v1199_v25 = vld [vmem:[#allocation2 + $0xf90] sm:$0xff] }
 0x66c   :  { %2696 = vmatpush1.bf16.msra.mxu1 %v1445_v26  ;;  %2737 = vmatpush1.bf16.msra.mxu0 %v1447_v27  ;;  %v1250_v26 = vld [vmem:[#allocation2 + $0x1128] sm:$0xff]  ;;  %v1249_v27 = vld [vmem:[#allocation2 + $0x1120] sm:$0xff] }
 0x66d   :  { %2697 = vmatprep.subr.bf16.mxu1 %v1496_v29  ;;  %2738 = vmatprep.subr.bf16.mxu0 %v1498_v31  ;;  %v1300_v29 = vld [vmem:[#allocation2 + $0x12b8] sm:$0xff]  ;;  %v1299_v31 = vld [vmem:[#allocation2 + $0x12b0] sm:$0xff] }
 0x670   :  { %2698 = vmatpush1.bf16.msra.mxu1 %v1495_v32  ;;  %2739 = vmatpush1.bf16.msra.mxu0 %v1497_v33  ;;  %v1350_v32 = vld [vmem:[#allocation2 + $0x1448] sm:$0xff]  ;;  %v1349_v33 = vld [vmem:[#allocation2 + $0x1440] sm:$0xff] }
 0x671   :  { %2749 = vmatprep.subr.bf16.mxu1 %v750_v34  ;;  %v1400_v34 = vld [vmem:[#allocation2 + $0x15d8] sm:$0xff] }
 0x673   :  { %2700 = vmatmul.mubr.bf16.vlgmr.msra.gmra.mrb[48].mxu1 %v10024_v19  ;;  %2741 = vmatmul.mubr.bf16.vlgmr.msra.gmra.mrb[48].mxu0 %v10024_v19 }
 0x674   :  { %2750 = vmatpush1.bf16.msra.mxu1 %v749_v35  ;;  %2781 = vmatprep.mubr.bf16.mxu1 %v10026_v20  ;;  %v1646_v20 = vrot.slane %v10262_v30, %v10003_v62  ;;  %v1399_v35 = vld [vmem:[#allocation2 + $0x15d0] sm:$0xff] }
 0x675   :  { %2751 = vmatprep.subr.bf16.mxu1 %v800_v36  ;;  %v1450_v36 = vld [vmem:[#allocation2 + $0x1768] sm:$0xff] }
 0x678   :  { %2752 = vmatpush1.bf16.msra.mxu1 %v799_v23  ;;  %v1449_v23 = vld [vmem:[#allocation2 + $0x1760] sm:$0xff] }
 0x679   :  { %2753 = vmatprep.subr.bf16.mxu1 %v850_v37  ;;  %v1500_v37 = vld [vmem:[#allocation2 + $0x18f8] sm:$0xff] }
 0x67c   :  { %2754 = vmatpush1.bf16.msra.mxu1 %v849_v60  ;;  %v1499_v60 = vld [vmem:[#allocation2 + $0x18f0] sm:$0xff] }
 0x67d   :  { %2755 = vmatprep.subr.bf16.mxu1 %v900_v38  ;;  %v1662_v38 = vrot.slane %v10262_v30, %v10109_v43 }
 0x680   :  { %2756 = vmatpush1.bf16.msra.mxu1 %v899_v39  ;;  %v1670_v39 = vrot.slane %v10262_v30, %v10112_v44 }
 0x681   :  { %2757 = vmatprep.subr.bf16.mxu1 %v950_v40  ;;  %v1666_v40 = vrot.slane %v10262_v30, %v10115_v45 }
 0x684   :  { %2758 = vmatpush1.bf16.msra.mxu1 %v949_v41  ;;  %v1674_v41 = vrot.slane %v10262_v30, %v10118_v46 }
 0x685   :  { %2759 = vmatprep.subr.bf16.mxu1 %v1000_v42 }
 0x686   :  { %v2455_v51 = vpop.f32.mrb[36].mxu1  ;;  %v2496_v52 = vpop.f32.mrb[36].mxu0 }
 0x687   :  { %v2456_v61 = vadd.f32 %v2455_v51, %v1646_v20  ;;  %v2457_v54 = vpop.f32.mrb[37].mxu1  ;;  %v2497_v55 = vadd.f32 %v2496_v52, %v1654_v47  ;;  %v2498_v56 = vpop.f32.mrb[37].mxu0 }
 0x688   :  { %v2458_v57 = vadd.f32 %v2457_v54, %v1650_v48  ;;  %v2459_v59 = vpop.f32.mrb[38].mxu1  ;;  %2760 = vmatpush1.bf16.msra.mxu1 %v999_v50  ;;  %v2499_v63 = vadd.f32 %v2498_v56, %v1658_v49  ;;  %v2500_v2 = vpop.f32.mrb[38].mxu0 }
 0x689   :  { %v2822_v3 = vmax.f32 %v2456_v61, 0.0  ;;  %v2824_v4 = vmax.f32 %v2497_v55, 0.0  ;;  %v2460_v5 = vpop.f32.mrb[39].mxu1  ;;  %2761 = vmatprep.subr.bf16.mxu1 %v1050_v53  ;;  %v2501_v7 = vpop.f32.mrb[39].mxu0 }
 0x68a   :  { %v2823_v11 = vmax.f32 %v2458_v57, 0.0  ;;  %v2825_v9 = vmax.f32 %v2499_v63, 0.0 }
 0x68b   :  { %2872 = vst [vmem:[#allocation6 + $0x100] sm:$0xff] %v2822_v3  ;;  %2874 = vst [vmem:[#allocation6 + $0x110] sm:$0xff] %v2824_v4 }
 0x68c   :  { %2873 = vst [vmem:[#allocation6 + $0x108] sm:$0xff] %v2823_v11  ;;  %2762 = vmatpush1.bf16.msra.mxu1 %v1049_v6  ;;  %2875 = vst [vmem:[#allocation6 + $0x118] sm:$0xff] %v2825_v9  ;;  %v1506_v6 = vld [vmem:[#allocation21 + $0x28] sm:$0xff] }
 0x68d   :  { %2763 = vmatprep.subr.bf16.mxu1 %v1100_v12  ;;  %v1678_v7 = vrot.slane %v1506_v6, %v10003_v62  ;;  %v1686_v11 = vrot.slane %v1506_v6, %v10089_v8  ;;  %v1682_v12 = vrot.slane %v1506_v6, %v10006_v0  ;;  %v1690_v9 = vrot.slane %v1506_v6, %v10094_v10 }
 0x68e   :  { %v1694_v10 = vrot.slane %v1506_v6, %v10109_v43 }
 0x690   :  { %2764 = vmatpush1.bf16.msra.mxu1 %v1099_v58 }
 0x691   :  { %2765 = vmatprep.subr.bf16.mxu1 %v1150_v13 }
 0x692   :  { %v2979_v16 = vld [vmem:[#allocation6 + $0xf0] ss:$8 sm:$0x10]  ;;  %v3049_v17 = vld [vmem:[#allocation6 + $0xf1] ss:$8 sm:$0x10] }
 0x693   :  { %v2978_v18 = vld [vmem:[#allocation6 + $0xf0] ss:$8 sm:$0xf]  ;;  %v3048_v21 = vld [vmem:[#allocation6 + $0xf1] ss:$8 sm:$0xf] }
 0x694   :  { %v2980_v22 = vor.u32 %v2979_v16, %v2978_v18  ;;  %v3050_v24 = vor.u32 %v3049_v17, %v3048_v21  ;;  %2766 = vmatpush1.bf16.msra.mxu1 %v1149_v14 }
 0x695   :  { %2767 = vmatprep.subr.bf16.mxu1 %v1200_v15 }
 0x696   :  { %2982 = vst.msk [vmem:[#allocation7 + $0x46] ss:$8 sm:$0xf] %vm10129_vm2, %v2980_v22  ;;  %2983 = vst.msk [vmem:[#allocation7 + $0x46] ss:$8 sm:$0x10] %vm10129_vm2, %v2980_v22 }
 0x697   :  { %3052 = vst.msk [vmem:[#allocation7 + $0xee] ss:$8 sm:$0xf] %vm10129_vm2, %v3050_v24  ;;  %3053 = vst.msk [vmem:[#allocation7 + $0xee] ss:$8 sm:$0x10] %vm10129_vm2, %v3050_v24 }
 0x698   :  { %2768 = vmatpush1.bf16.msra.mxu1 %v1199_v25 }
 0x699   :  { %2769 = vmatprep.subr.bf16.mxu1 %v1250_v26 }
 0x69c   :  { %2770 = vmatpush1.bf16.msra.mxu1 %v1249_v27 }
 0x69d   :  { %2771 = vmatprep.subr.bf16.mxu1 %v1300_v29 }
 0x6a0   :  { %2772 = vmatpush1.bf16.msra.mxu1 %v1299_v31 }
 0x6a1   :  { %2773 = vmatprep.subr.bf16.mxu1 %v1350_v32 }
 0x6a4   :  { %2774 = vmatpush1.bf16.msra.mxu1 %v1349_v33  ;;  %v1702_v33 = vrot.slane %v1506_v6, %v10112_v44 }
 0x6a5   :  { %2775 = vmatprep.subr.bf16.mxu1 %v1400_v34  ;;  %v1698_v34 = vrot.slane %v1506_v6, %v10115_v45 }
 0x6a8   :  { %2776 = vmatpush1.bf16.msra.mxu1 %v1399_v35  ;;  %v1706_v35 = vrot.slane %v1506_v6, %v10118_v46 }
 0x6a9   :  { %2777 = vmatprep.subr.bf16.mxu1 %v1450_v36 }
 0x6ac   :  { %2778 = vmatpush1.bf16.msra.mxu1 %v1449_v23 }
 0x6ad   :  { %2779 = vmatprep.subr.bf16.mxu1 %v1500_v37 }
 0x6b0   :  { %2780 = vmatpush1.bf16.msra.mxu1 %v1499_v60 }
 0x6b3   :  { %2782 = vmatmul.mubr.bf16.vlgmr.msra.gmra.mrb[52].mxu1 %v10024_v19 }
 0x6c6   :  { %v2537_v42 = vpop.f32.mrb[40].mxu1  ;;  %v2578_v20 = vpop.f32.mrb[40].mxu0 }
 0x6c7   :  { %v2538_v47 = vadd.f32 %v2537_v42, %v1662_v38  ;;  %v2579_v48 = vadd.f32 %v2578_v20, %v1670_v39  ;;  %v2539_v49 = vpop.f32.mrb[41].mxu1  ;;  %v2580_v50 = vpop.f32.mrb[41].mxu0 }
 0x6c8   :  { %v2540_v51 = vadd.f32 %v2539_v49, %v1666_v40  ;;  %v2581_v19 = vadd.f32 %v2580_v50, %v1674_v41  ;;  %v2541_v52 = vpop.f32.mrb[42].mxu1  ;;  %v2582_v53 = vpop.f32.mrb[42].mxu0 }
 0x6c9   :  { %v2826_v61 = vmax.f32 %v2538_v47, 0.0  ;;  %v2828_v54 = vmax.f32 %v2579_v48, 0.0  ;;  %v2542_v55 = vpop.f32.mrb[43].mxu1  ;;  %v2583_v56 = vpop.f32.mrb[43].mxu0 }
 0x6ca   :  { %v2827_v57 = vmax.f32 %v2540_v51, 0.0  ;;  %v2829_v59 = vmax.f32 %v2581_v19, 0.0 }
 0x6cb   :  { %2876 = vst [vmem:[#allocation6 + $0x120] sm:$0xff] %v2826_v61  ;;  %2878 = vst [vmem:[#allocation6 + $0x130] sm:$0xff] %v2828_v54  ;;  %v1507_v61 = vld [vmem:[#allocation21 + $0x30] sm:$0x3] }
 0x6cc   :  { %2877 = vst [vmem:[#allocation6 + $0x128] sm:$0xff] %v2827_v57  ;;  %2879 = vst [vmem:[#allocation6 + $0x138] sm:$0xff] %v2829_v59  ;;  %v1710_v54 = vrot.slane %v1507_v61, %v10003_v62  ;;  %v1714_v55 = vrot.slane %v1507_v61, %v10006_v0 }
 0x6d3   :  { %v2985_v30 = vld [vmem:[#allocation6 + $0x118] ss:$8 sm:$0xf]  ;;  %v3055_v63 = vld [vmem:[#allocation6 + $0x119] ss:$8 sm:$0xf] }
 0x6d4   :  { %v2986_v2 = vld [vmem:[#allocation6 + $0x118] ss:$8 sm:$0x10]  ;;  %v3056_v3 = vld [vmem:[#allocation6 + $0x119] ss:$8 sm:$0x10] }
 0x6d5   :  { %v2987_v4 = vor.u32 %v2986_v2, %v2985_v30  ;;  %v3057_v5 = vor.u32 %v3056_v3, %v3055_v63 }
 0x6d7   :  { %2989 = vst.msk [vmem:[#allocation7 + $0x47] ss:$8 sm:$0xf] %vm10129_vm2, %v2987_v4  ;;  %2990 = vst.msk [vmem:[#allocation7 + $0x47] ss:$8 sm:$0x10] %vm10129_vm2, %v2987_v4 }
 0x6d8   :  { %3059 = vst.msk [vmem:[#allocation7 + $0xef] ss:$8 sm:$0xf] %vm10129_vm2, %v3057_v5  ;;  %3060 = vst.msk [vmem:[#allocation7 + $0xef] ss:$8 sm:$0x10] %vm10129_vm2, %v3057_v5 }
 0x706   :  { %v2619_v58 = vpop.f32.mrb[44].mxu1  ;;  %v2660_v13 = vpop.f32.mrb[44].mxu0 }
 0x707   :  { %v2620_v14 = vadd.f32 %v2619_v58, %v1678_v7  ;;  %v2661_v15 = vadd.f32 %v2660_v13, %v1686_v11  ;;  %v2621_v16 = vpop.f32.mrb[45].mxu1  ;;  %v2662_v17 = vpop.f32.mrb[45].mxu0 }
 0x708   :  { %v2622_v18 = vadd.f32 %v2621_v16, %v1682_v12  ;;  %v2663_v21 = vadd.f32 %v2662_v17, %v1690_v9  ;;  %v2623_v22 = vpop.f32.mrb[46].mxu1  ;;  %v2664_v24 = vpop.f32.mrb[46].mxu0 }
 0x709   :  { %v2830_v25 = vmax.f32 %v2620_v14, 0.0  ;;  %v2832_v26 = vmax.f32 %v2661_v15, 0.0  ;;  %v2624_v27 = vpop.f32.mrb[47].mxu1  ;;  %v2665_v29 = vpop.f32.mrb[47].mxu0 }
 0x70a   :  { %v2831_v31 = vmax.f32 %v2622_v18, 0.0  ;;  %v2833_v32 = vmax.f32 %v2663_v21, 0.0 }
 0x70b   :  { %2880 = vst [vmem:[#allocation6 + $0x140] sm:$0xff] %v2830_v25  ;;  %2882 = vst [vmem:[#allocation6 + $0x150] sm:$0xff] %v2832_v26 }
 0x70c   :  { %2881 = vst [vmem:[#allocation6 + $0x148] sm:$0xff] %v2831_v31  ;;  %2883 = vst [vmem:[#allocation6 + $0x158] sm:$0xff] %v2833_v32 }
 0x713   :  { %v2992_v45 = vld [vmem:[#allocation6 + $0x140] ss:$8 sm:$0xf]  ;;  %v3062_v46 = vld [vmem:[#allocation6 + $0x141] ss:$8 sm:$0xf] }
 0x746   :  { %v2701_v36 = vpop.f32.mrb[48].mxu1  ;;  %v2742_v23 = vpop.f32.mrb[48].mxu0 }
 0x747   :  { %v2702_v37 = vadd.f32 %v2701_v36, %v1694_v10  ;;  %v2703_v60 = vpop.f32.mrb[49].mxu1  ;;  %v2743_v38 = vadd.f32 %v2742_v23, %v1702_v33  ;;  %v2744_v39 = vpop.f32.mrb[49].mxu0 }
 0x748   :  { %v2704_v40 = vadd.f32 %v2703_v60, %v1698_v34  ;;  %v2705_v41 = vpop.f32.mrb[50].mxu1  ;;  %v2745_v42 = vadd.f32 %v2744_v39, %v1706_v35  ;;  %v2746_v20 = vpop.f32.mrb[50].mxu0 }
 0x749   :  { %v2834_v47 = vmax.f32 %v2702_v37, 0.0  ;;  %v2706_v48 = vpop.f32.mrb[51].mxu1  ;;  %v2836_v49 = vmax.f32 %v2743_v38, 0.0  ;;  %v2747_v43 = vpop.f32.mrb[51].mxu0 }
 0x74a   :  { %v2835_v50 = vmax.f32 %v2704_v40, 0.0  ;;  %v2837_v44 = vmax.f32 %v2745_v42, 0.0 }
 0x74b   :  { %2884 = vst [vmem:[#allocation6 + $0x160] sm:$0xff] %v2834_v47  ;;  %2886 = vst [vmem:[#allocation6 + $0x170] sm:$0xff] %v2836_v49 }
 0x74c   :  { %2885 = vst [vmem:[#allocation6 + $0x168] sm:$0xff] %v2835_v50  ;;  %2887 = vst [vmem:[#allocation6 + $0x178] sm:$0xff] %v2837_v44 }
 0x752   :  { %v2993_v51 = vld [vmem:[#allocation6 + $0x140] ss:$8 sm:$0x10]  ;;  %v3063_v19 = vld [vmem:[#allocation6 + $0x141] ss:$8 sm:$0x10] }
 0x753   :  { %v2994_v52 = vor.u32 %v2993_v51, %v2992_v45  ;;  %v3064_v53 = vor.u32 %v3063_v19, %v3062_v46 }
 0x755   :  { %2996 = vst.msk [vmem:[#allocation7 + $0x78] ss:$8 sm:$0xf] %vm10129_vm2, %v2994_v52  ;;  %2997 = vst.msk [vmem:[#allocation7 + $0x78] ss:$8 sm:$0x10] %vm10129_vm2, %v2994_v52 }
 0x756   :  { %3066 = vst.msk [vmem:[#allocation7 + $0x120] ss:$8 sm:$0xf] %vm10129_vm2, %v3064_v53  ;;  %3067 = vst.msk [vmem:[#allocation7 + $0x120] ss:$8 sm:$0x10] %vm10129_vm2, %v3064_v53 }
 0x786   :  { %v2783_v56 = vpop.f32.mrb[52].mxu1 }
 0x787   :  { %v2784_v57 = vadd.f32 %v2783_v56, %v1710_v54  ;;  %v2785_v59 = vpop.f32.mrb[53].mxu1 }
 0x788   :  { %v2786_v30 = vadd.f32 %v2785_v59, %v1714_v55  ;;  %v2787_v63 = vpop.f32.mrb[54].mxu1 }
 0x789   :  { %v2838_v2 = vmax.f32 %v2784_v57, 0.0  ;;  %v2788_v3 = vpop.f32.mrb[55].mxu1 }
 0x78a   :  { %v2839_v4 = vmax.f32 %v2786_v30, 0.0 }
 0x78b   :  { %2888 = vst [vmem:[#allocation6 + $0x180] sm:$0xff] %v2838_v2 }
 0x78c   :  { %2889 = vst [vmem:[#allocation6 + $0x188] sm:$0xff] %v2839_v4 }
 0x792   :  { %v2999_v5 = vld [vmem:[#allocation6 + $0x168] ss:$8 sm:$0xf]  ;;  %v3069_v6 = vld [vmem:[#allocation6 + $0x169] ss:$8 sm:$0xf] }
 0x793   :  { %v3000_v7 = vld [vmem:[#allocation6 + $0x168] ss:$8 sm:$0x10]  ;;  %v3070_v11 = vld [vmem:[#allocation6 + $0x169] ss:$8 sm:$0x10] }
 0x794   :  { %v3001_v12 = vor.u32 %v3000_v7, %v2999_v5  ;;  %v3071_v9 = vor.u32 %v3070_v11, %v3069_v6 }
 0x796   :  { %3003 = vst.msk [vmem:[#allocation7 + $0x79] ss:$8 sm:$0xf] %vm10129_vm2, %v3001_v12  ;;  %3004 = vst.msk [vmem:[#allocation7 + $0x79] ss:$8 sm:$0x10] %vm10129_vm2, %v3001_v12 }
 0x797   :  { %3073 = vst.msk [vmem:[#allocation7 + $0x121] ss:$8 sm:$0xf] %vm10129_vm2, %v3071_v9  ;;  %3074 = vst.msk [vmem:[#allocation7 + $0x121] ss:$8 sm:$0x10] %vm10129_vm2, %v3071_v9 }
 0x798   :  { %9708 = dma.done.wait [#allocation10 + $0x1], 64512 }
 0x799   :  { %9709 = vsyncadd [#allocation10 + $0x1], 4294902784  ;;  %5270 = vst [vmem:[#allocation8] sm:$0xff] %v9731_v1  ;;  %v3144_v28 = vld [vmem:[#allocation3 + $0x8] sm:$0xff]  ;;  %v3169_v58 = vld [vmem:[#allocation3 + $0xd0] sm:$0xff]  ;;  %vm4467_vm3 = vcmask 1046528  }
 0x79a   :  { %5271 = vst [vmem:[#allocation8 + $0x8] sm:$0xff] %v9731_v1  ;;  %5272 = vst [vmem:[#allocation8 + $0x10] sm:$0xff] %v9731_v1  ;;  %v3143_v13 = vld [vmem:[#allocation3] sm:$0xff]  ;;  %3311 = vmatprep.subr.bf16.mxu0 %v3144_v28  ;;  %8269 = vmatprep.subr.bf16.mxu1 %v3169_v58  ;;  %v3145_v14 = vld [vmem:[#allocation3 + $0x10] sm:$0xff]  ;;  %vm5174_vm4 = vcmask 1045504   ;;  %vm5318_vm5 = vcmask 1041408  }
 0x79b   :  { %5273 = vst [vmem:[#allocation8 + $0x18] sm:$0xff] %v9731_v1  ;;  %5274 = vst [vmem:[#allocation8 + $0x20] sm:$0xff] %v9731_v1  ;;  %v3147_v15 = vld [vmem:[#allocation3 + $0x20] sm:$0xff]  ;;  %v3172_v16 = vld [vmem:[#allocation3 + $0xe8] sm:$0xff]  ;;  %3312 = vmatpush1.bf16.msra.mxu0 %v3143_v13  ;;  %8270 = vmatpush3.bf16.msra.mxu1 %v3145_v14 }
 0x79c   :  { %5275 = vst [vmem:[#allocation8 + $0x28] sm:$0xff] %v9731_v1  ;;  %5279 = vst [vmem:[#allocation8 + $0x48] sm:$0xff] %v9731_v1  ;;  %3313 = vmatprep.subr.bf16.mxu0 %v3147_v15  ;;  %8271 = vmatprep.subr.bf16.mxu1 %v3172_v16  ;;  %v3146_v17 = vld [vmem:[#allocation3 + $0x18] sm:$0xff]  ;;  %v3148_v18 = vld [vmem:[#allocation3 + $0x28] sm:$0xff] }
 0x79d   :  { %5280 = vst [vmem:[#allocation8 + $0x50] sm:$0xff] %v9731_v1  ;;  %5284 = vst [vmem:[#allocation8 + $0x70] sm:$0xff] %v9731_v1  ;;  %v3150_v21 = vld [vmem:[#allocation3 + $0x38] sm:$0xff]  ;;  %v3175_v22 = vld [vmem:[#allocation3 + $0x100] sm:$0xff] }
 0x79e   :  { %5285 = vst [vmem:[#allocation8 + $0x78] sm:$0xff] %v9731_v1  ;;  %5286 = vst [vmem:[#allocation8 + $0x80] sm:$0xff] %v9731_v1  ;;  %v3149_v24 = vld [vmem:[#allocation3 + $0x30] sm:$0xff]  ;;  %v3151_v25 = vld [vmem:[#allocation3 + $0x40] sm:$0xff] }
 0x79f   :  { %5287 = vst [vmem:[#allocation8 + $0x88] sm:$0xff] %v9731_v1  ;;  %5288 = vst [vmem:[#allocation8 + $0x90] sm:$0xff] %v9731_v1  ;;  %3314 = vmatpush1.bf16.msra.mxu0 %v3146_v17  ;;  %8272 = vmatpush3.bf16.msra.mxu1 %v3148_v18  ;;  %v3153_v26 = vld [vmem:[#allocation3 + $0x50] sm:$0xff]  ;;  %v3178_v27 = vld [vmem:[#allocation3 + $0x118] sm:$0xff] }
 0x7a0   :  { %5289 = vst [vmem:[#allocation8 + $0x98] sm:$0xff] %v9731_v1  ;;  %5290 = vst [vmem:[#allocation8 + $0xa0] sm:$0xff] %v9731_v1  ;;  %3315 = vmatprep.subr.bf16.mxu0 %v3150_v21  ;;  %8273 = vmatprep.subr.bf16.mxu1 %v3175_v22  ;;  %v3152_v29 = vld [vmem:[#allocation3 + $0x48] sm:$0xff]  ;;  %v3154_v31 = vld [vmem:[#allocation3 + $0x58] sm:$0xff] }
 0x7a1   :  { %5294 = vst [vmem:[#allocation8 + $0xc0] sm:$0xff] %v9731_v1  ;;  %5295 = vst [vmem:[#allocation8 + $0xc8] sm:$0xff] %v9731_v1  ;;  %v3081_v32 = vld [vmem:[#allocation7 + $0x8] sm:$0xff]  ;;  %v3088_v10 = vld [vmem:[#allocation7 + $0x40] sm:$0xff] }
 0x7a2   :  { %5299 = vst [vmem:[#allocation8 + $0xe8] sm:$0xff] %v9731_v1  ;;  %5281 = vst [vmem:[#allocation8 + $0x58] sm:$0xff] %v9731_v1  ;;  %v3156_v33 = vld [vmem:[#allocation3 + $0x68] sm:$0xff]  ;;  %v3181_v34 = vld [vmem:[#allocation3 + $0x130] sm:$0xff]  ;;  %v10347_v35 = vpack.c.bf16 %v3088_v10, %v3081_v32 }
 0x7a3   :  { %5282 = vst [vmem:[#allocation8 + $0x60] sm:$0xff] %v9731_v1  ;;  %5283 = vst [vmem:[#allocation8 + $0x68] sm:$0xff] %v9731_v1  ;;  %3316 = vmatpush1.bf16.msra.mxu0 %v3149_v24  ;;  %8274 = vmatpush3.bf16.msra.mxu1 %v3151_v25  ;;  %v3155_v36 = vld [vmem:[#allocation3 + $0x60] sm:$0xff]  ;;  %v3157_v23 = vld [vmem:[#allocation3 + $0x70] sm:$0xff] }
 0x7a4   :  { %5296 = vst [vmem:[#allocation8 + $0xd0] sm:$0xff] %v9731_v1  ;;  %5297 = vst [vmem:[#allocation8 + $0xd8] sm:$0xff] %v9731_v1  ;;  %3317 = vmatprep.subr.bf16.mxu0 %v3153_v26  ;;  %8275 = vmatprep.subr.bf16.mxu1 %v3178_v27  ;;  %v3159_v37 = vld [vmem:[#allocation3 + $0x80] sm:$0xff]  ;;  %v3184_v60 = vld [vmem:[#allocation3 + $0x148] sm:$0xff] }
 0x7a5   :  { %5298 = vst [vmem:[#allocation8 + $0xe0] sm:$0xff] %v9731_v1  ;;  %3595 = vmatprep.mubr.bf16.mxu1 %v10347_v35  ;;  %3343 = vmatprep.mubr.bf16.mxu0 %v10347_v35  ;;  %v3158_v38 = vld [vmem:[#allocation3 + $0x78] sm:$0xff]  ;;  %v3160_v39 = vld [vmem:[#allocation3 + $0x88] sm:$0xff]  ;;  %v3187_v41 = vld [vmem:[#allocation3 + $0x160] sm:$0xff] }
 0x7a6   :  { %v3162_v40 = vld [vmem:[#allocation3 + $0x98] sm:$0xff]  ;;  %v3161_v42 = vld [vmem:[#allocation3 + $0x90] sm:$0xff]  ;;  %v3163_v20 = vld [vmem:[#allocation3 + $0xa0] sm:$0xff] }
 0x7a7   :  { %3318 = vmatpush1.bf16.msra.mxu0 %v3152_v29  ;;  %8276 = vmatpush3.bf16.msra.mxu1 %v3154_v31  ;;  %v3165_v47 = vld [vmem:[#allocation3 + $0xb0] sm:$0xff]  ;;  %v3190_v48 = vld [vmem:[#allocation3 + $0x178] sm:$0xff]  ;;  %v3087_v43 = vld [vmem:[#allocation7 + $0x38] sm:$0xff] }
 0x7a8   :  { %3319 = vmatprep.subr.bf16.mxu0 %v3156_v33  ;;  %8277 = vmatprep.subr.bf16.mxu1 %v3181_v34  ;;  %v3080_v49 = vld [vmem:[#allocation7] sm:$0xff]  ;;  %v3164_v50 = vld [vmem:[#allocation3 + $0xa8] sm:$0xff]  ;;  %v3166_v44 = vld [vmem:[#allocation3 + $0xb8] sm:$0xff] }
 0x7a9   :  { %v3168_v45 = vld [vmem:[#allocation3 + $0xc8] sm:$0xff]  ;;  %v3217_v46 = vld [vmem:[#allocation3 + $0x250] sm:$0xff]  ;;  %v10351_v51 = vpack.c.bf16 %v3087_v43, %v3080_v49  ;;  %v3102_v52 = vld [vmem:[#allocation7 + $0xb0] sm:$0xff] }
 0x7aa   :  { %v3095_v19 = vld [vmem:[#allocation7 + $0x78] sm:$0xff]  ;;  %v3167_v53 = vld [vmem:[#allocation3 + $0xc0] sm:$0xff]  ;;  %v3193_v61 = vld [vmem:[#allocation3 + $0x190] sm:$0xff] }
 0x7ab   :  { %3320 = vmatpush1.bf16.msra.mxu0 %v3155_v36  ;;  %8278 = vmatpush3.bf16.msra.mxu1 %v3157_v23  ;;  %v3171_v54 = vld [vmem:[#allocation3 + $0xe0] sm:$0xff]  ;;  %v3220_v55 = vld [vmem:[#allocation3 + $0x268] sm:$0xff]  ;;  %v10353_v56 = vpack.c.bf16 %v3102_v52, %v3095_v19  ;;  %v3101_v59 = vld [vmem:[#allocation7 + $0xa8] sm:$0xff] }
 0x7ac   :  { %3321 = vmatprep.subr.bf16.mxu0 %v3159_v37  ;;  %8279 = vmatprep.subr.bf16.mxu1 %v3184_v60  ;;  %v3094_v57 = vld [vmem:[#allocation7 + $0x70] sm:$0xff]  ;;  %v3170_v30 = vld [vmem:[#allocation3 + $0xd8] sm:$0xff]  ;;  %v3196_v63 = vld [vmem:[#allocation3 + $0x1a8] sm:$0xff] }
 0x7ad   :  { %v3174_v2 = vld [vmem:[#allocation3 + $0xf8] sm:$0xff]  ;;  %v3223_v3 = vld [vmem:[#allocation3 + $0x280] sm:$0xff]  ;;  %v10357_v4 = vpack.c.bf16 %v3101_v59, %v3094_v57  ;;  %v3116_v6 = vld [vmem:[#allocation7 + $0x120] sm:$0xff] }
 0x7ae   :  { %v3109_v5 = vld [vmem:[#allocation7 + $0xe8] sm:$0xff]  ;;  %v3173_v7 = vld [vmem:[#allocation3 + $0xf0] sm:$0xff]  ;;  %v3199_v11 = vld [vmem:[#allocation3 + $0x1c0] sm:$0xff] }
 0x7af   :  { %3322 = vmatpush1.bf16.msra.mxu0 %v3158_v38  ;;  %8280 = vmatpush3.bf16.msra.mxu1 %v3160_v39  ;;  %v3177_v12 = vld [vmem:[#allocation3 + $0x110] sm:$0xff]  ;;  %v3226_v9 = vld [vmem:[#allocation3 + $0x298] sm:$0xff]  ;;  %v10359_v28 = vpack.c.bf16 %v3116_v6, %v3109_v5  ;;  %v3115_v13 = vld [vmem:[#allocation7 + $0x118] sm:$0xff] }
 0x7b0   :  { %3323 = vmatprep.subr.bf16.mxu0 %v3162_v40  ;;  %8281 = vmatprep.subr.bf16.mxu1 %v3187_v41  ;;  %v3108_v58 = vld [vmem:[#allocation7 + $0xe0] sm:$0xff]  ;;  %v3176_v14 = vld [vmem:[#allocation3 + $0x108] sm:$0xff]  ;;  %v3202_v15 = vld [vmem:[#allocation3 + $0x1d8] sm:$0xff] }
 0x7b1   :  { %v3180_v16 = vld [vmem:[#allocation3 + $0x128] sm:$0xff]  ;;  %v3229_v17 = vld [vmem:[#allocation3 + $0x2b0] sm:$0xff]  ;;  %v10363_v18 = vpack.c.bf16 %v3115_v13, %v3108_v58  ;;  %v3090_v22 = vld [vmem:[#allocation7 + $0x50] sm:$0xff] }
 0x7b2   :  { %v3083_v21 = vld [vmem:[#allocation7 + $0x18] sm:$0xff]  ;;  %v3179_v24 = vld [vmem:[#allocation3 + $0x120] sm:$0xff]  ;;  %v3205_v25 = vld [vmem:[#allocation3 + $0x1f0] sm:$0xff] }
 0x7b3   :  { %3324 = vmatpush1.bf16.msra.mxu0 %v3161_v42  ;;  %8282 = vmatpush3.bf16.msra.mxu1 %v3163_v20  ;;  %v3183_v26 = vld [vmem:[#allocation3 + $0x140] sm:$0xff]  ;;  %v3232_v27 = vld [vmem:[#allocation3 + $0x2c8] sm:$0xff]  ;;  %v10365_v29 = vpack.c.bf16 %v3090_v22, %v3083_v21  ;;  %v3182_v31 = vld [vmem:[#allocation3 + $0x138] sm:$0xff] }
 0x7b4   :  { %3325 = vmatprep.subr.bf16.mxu0 %v3165_v47  ;;  %8283 = vmatprep.subr.bf16.mxu1 %v3190_v48  ;;  %v3208_v32 = vld [vmem:[#allocation3 + $0x208] sm:$0xff]  ;;  %v3186_v10 = vld [vmem:[#allocation3 + $0x158] sm:$0xff]  ;;  %v3235_v33 = vld [vmem:[#allocation3 + $0x2e0] sm:$0xff] }
 0x7b5   :  { %v3185_v34 = vld [vmem:[#allocation3 + $0x150] sm:$0xff]  ;;  %v3211_v36 = vld [vmem:[#allocation3 + $0x220] sm:$0xff]  ;;  %v3238_v37 = vld [vmem:[#allocation3 + $0x2f8] sm:$0xff] }
 0x7b6   :  { %v3189_v23 = vld [vmem:[#allocation3 + $0x170] sm:$0xff]  ;;  %v3082_v60 = vld [vmem:[#allocation7 + $0x10] sm:$0xff]  ;;  %v3089_v38 = vld [vmem:[#allocation7 + $0x48] sm:$0xff] }
 0x7b7   :  { %3326 = vmatpush1.bf16.msra.mxu0 %v3164_v50  ;;  %8284 = vmatpush3.bf16.msra.mxu1 %v3166_v44  ;;  %v3188_v39 = vld [vmem:[#allocation3 + $0x168] sm:$0xff]  ;;  %v3214_v40 = vld [vmem:[#allocation3 + $0x238] sm:$0xff]  ;;  %v3265_v42 = vld [vmem:[#allocation3 + $0x3d0] sm:$0xff]  ;;  %v10369_v20 = vpack.c.bf16 %v3089_v38, %v3082_v60 }
 0x7b8   :  { %3327 = vmatprep.subr.bf16.mxu0 %v3168_v45  ;;  %8303 = vmatprep.subr.bf16.mxu1 %v3217_v46  ;;  %v3192_v41 = vld [vmem:[#allocation3 + $0x188] sm:$0xff]  ;;  %v3097_v47 = vld [vmem:[#allocation7 + $0x88] sm:$0xff]  ;;  %v3104_v48 = vld [vmem:[#allocation7 + $0xc0] sm:$0xff] }
 0x7b9   :  { %v3191_v49 = vld [vmem:[#allocation3 + $0x180] sm:$0xff]  ;;  %v3241_v43 = vld [vmem:[#allocation3 + $0x310] sm:$0xff]  ;;  %v3268_v44 = vld [vmem:[#allocation3 + $0x3e8] sm:$0xff]  ;;  %v10371_v45 = vpack.c.bf16 %v3104_v48, %v3097_v47 }
 0x7ba   :  { %3596 = vmatmul.mubr.bf16.vlgmr.msra.gmra.mrb[56].mxu1 %v10351_v51  ;;  %v3195_v50 = vld [vmem:[#allocation3 + $0x1a0] sm:$0xff]  ;;  %v3096_v46 = vld [vmem:[#allocation7 + $0x80] sm:$0xff]  ;;  %v3103_v19 = vld [vmem:[#allocation7 + $0xb8] sm:$0xff] }
 0x7bb   :  { %3328 = vmatpush1.bf16.msra.mxu0 %v3167_v53  ;;  %8304 = vmatpush3.bf16.msra.mxu1 %v3193_v61  ;;  %v3194_v52 = vld [vmem:[#allocation3 + $0x198] sm:$0xff]  ;;  %v3244_v53 = vld [vmem:[#allocation3 + $0x328] sm:$0xff]  ;;  %v3118_v59 = vld [vmem:[#allocation7 + $0x130] sm:$0xff] }
 0x7bc   :  { %3329 = vmatprep.subr.bf16.mxu0 %v3171_v54  ;;  %8305 = vmatprep.subr.bf16.mxu1 %v3220_v55  ;;  %v3198_v61 = vld [vmem:[#allocation3 + $0x1b8] sm:$0xff]  ;;  %v3271_v54 = vld [vmem:[#allocation3 + $0x400] sm:$0xff]  ;;  %v10377_v55 = vpack.c.bf16 %v3103_v19, %v3096_v46  ;;  %v3111_v57 = vld [vmem:[#allocation7 + $0xf8] sm:$0xff] }
 0x7bd   :  { %3603 = vmatprep.mubr.bf16.mxu1 %v10353_v56  ;;  %v10379_v5 = vpack.c.bf16 %v3118_v59, %v3111_v57  ;;  %v3110_v6 = vld [vmem:[#allocation7 + $0xf0] sm:$0xff]  ;;  %v3277_v58 = vld [vmem:[#allocation3 + $0x430] sm:$0xff]  ;;  %v3280_v22 = vld [vmem:[#allocation3 + $0x448] sm:$0xff] }
 0x7be   :  { %v3207_v21 = vld [vmem:[#allocation3 + $0x200] sm:$0xff]  ;;  %v3262_v60 = vld [vmem:[#allocation3 + $0x3b8] sm:$0xff]  ;;  %v3216_v38 = vld [vmem:[#allocation3 + $0x248] sm:$0xff] }
 0x7bf   :  { %3330 = vmatpush1.bf16.msra.mxu0 %v3170_v30  ;;  %8306 = vmatpush3.bf16.msra.mxu1 %v3196_v63  ;;  %v3197_v30 = vld [vmem:[#allocation3 + $0x1b0] sm:$0xff]  ;;  %v3247_v63 = vld [vmem:[#allocation3 + $0x340] sm:$0xff]  ;;  %v3292_v46 = vld [vmem:[#allocation3 + $0x4a8] sm:$0xff] }
 0x7c0   :  { %3331 = vmatprep.subr.bf16.mxu0 %v3174_v2  ;;  %8307 = vmatprep.subr.bf16.mxu1 %v3223_v3  ;;  %v3201_v2 = vld [vmem:[#allocation3 + $0x1d0] sm:$0xff]  ;;  %v3274_v3 = vld [vmem:[#allocation3 + $0x418] sm:$0xff]  ;;  %v3219_v48 = vld [vmem:[#allocation3 + $0x260] sm:$0xff] }
 0x7c1   :  { %v3289_v47 = vld [vmem:[#allocation3 + $0x490] sm:$0xff]  ;;  %v3222_v19 = vld [vmem:[#allocation3 + $0x278] sm:$0xff]  ;;  %v3295_v57 = vld [vmem:[#allocation3 + $0x4c0] sm:$0xff] }
 0x7c2   :  { %3604 = vmatmul.mubr.bf16.gmra.mrb[60].mxu1 %v10357_v4  ;;  %v3225_v59 = vld [vmem:[#allocation3 + $0x290] sm:$0xff] }
 0x7c3   :  { %3332 = vmatpush1.bf16.msra.mxu0 %v3173_v7  ;;  %8308 = vmatpush3.bf16.msra.mxu1 %v3199_v11  ;;  %v3117_v7 = vld [vmem:[#allocation7 + $0x128] sm:$0xff]  ;;  %v3200_v11 = vld [vmem:[#allocation3 + $0x1c8] sm:$0xff] }
 0x7c4   :  { %3333 = vmatprep.subr.bf16.mxu0 %v3177_v12  ;;  %8309 = vmatprep.subr.bf16.mxu1 %v3226_v9  ;;  %v3250_v12 = vld [vmem:[#allocation3 + $0x358] sm:$0xff]  ;;  %v3204_v9 = vld [vmem:[#allocation3 + $0x1e8] sm:$0xff]  ;;  %v10385_v13 = vpack.c.bf16 %v3117_v7, %v3110_v6 }
 0x7c5   :  { %3611 = vmatprep.mubr.bf16.mxu1 %v10359_v28  ;;  %v3298_v6 = vld [vmem:[#allocation3 + $0x4d8] sm:$0xff]  ;;  %v3228_v7 = vld [vmem:[#allocation3 + $0x2a8] sm:$0xff] }
 0x7c7   :  { %3334 = vmatpush1.bf16.msra.mxu0 %v3176_v14  ;;  %8310 = vmatpush3.bf16.msra.mxu1 %v3202_v15  ;;  %v3085_v14 = vld [vmem:[#allocation7 + $0x28] sm:$0xff]  ;;  %v3092_v15 = vld [vmem:[#allocation7 + $0x60] sm:$0xff] }
 0x7c8   :  { %3335 = vmatprep.subr.bf16.mxu0 %v3180_v16  ;;  %8311 = vmatprep.subr.bf16.mxu1 %v3229_v17  ;;  %v3203_v16 = vld [vmem:[#allocation3 + $0x1e0] sm:$0xff]  ;;  %v3253_v17 = vld [vmem:[#allocation3 + $0x370] sm:$0xff] }
 0x7ca   :  { %3612 = vmatmul.mubr.bf16.gmra.mrb[64].mxu1 %v10363_v18 }
 0x7cb   :  { %3336 = vmatpush1.bf16.msra.mxu0 %v3179_v24  ;;  %8312 = vmatpush3.bf16.msra.mxu1 %v3205_v25  ;;  %v10387_v24 = vpack.c.bf16 %v3092_v15, %v3085_v14  ;;  %v3206_v25 = vld [vmem:[#allocation3 + $0x1f8] sm:$0xff]  ;;  %v3304_v15 = vld [vmem:[#allocation3 + $0x508] sm:$0xff] }
 0x7cc   :  { %3337 = vmatprep.subr.bf16.mxu0 %v3183_v26  ;;  %8313 = vmatprep.subr.bf16.mxu1 %v3232_v27  ;;  %v3256_v26 = vld [vmem:[#allocation3 + $0x388] sm:$0xff]  ;;  %v3210_v27 = vld [vmem:[#allocation3 + $0x218] sm:$0xff] }
 0x7cd   :  { %3652 = vmatprep.mubr.bf16.mxu1 %v10365_v29  ;;  %v3230_v14 = vld [vmem:[#allocation3 + $0x2b8] sm:$0xff] }
 0x7cf   :  { %3338 = vmatpush1.bf16.msra.mxu0 %v3182_v31  ;;  %8314 = vmatpush3.bf16.msra.mxu1 %v3208_v32  ;;  %v3283_v31 = vld [vmem:[#allocation3 + $0x460] sm:$0xff]  ;;  %v3209_v32 = vld [vmem:[#allocation3 + $0x210] sm:$0xff] }
 0x7d0   :  { %3339 = vmatprep.subr.bf16.mxu0 %v3186_v10  ;;  %8315 = vmatprep.subr.bf16.mxu1 %v3235_v33  ;;  %v3259_v10 = vld [vmem:[#allocation3 + $0x3a0] sm:$0xff]  ;;  %v3213_v33 = vld [vmem:[#allocation3 + $0x230] sm:$0xff] }
 0x7d3   :  { %3340 = vmatpush1.bf16.msra.mxu0 %v3185_v34  ;;  %8316 = vmatpush3.bf16.msra.mxu1 %v3211_v36  ;;  %v3286_v34 = vld [vmem:[#allocation3 + $0x478] sm:$0xff]  ;;  %v3084_v36 = vld [vmem:[#allocation7 + $0x20] sm:$0xff] }
 0x7d4   :  { %3341 = vmatprep.subr.bf16.mxu0 %v3189_v23  ;;  %8317 = vmatprep.subr.bf16.mxu1 %v3238_v37  ;;  %v3091_v23 = vld [vmem:[#allocation7 + $0x58] sm:$0xff] }
 0x7d5   :  { %v3212_v37 = vld [vmem:[#allocation3 + $0x228] sm:$0xff] }
 0x7d7   :  { %3342 = vmatpush1.bf16.msra.mxu0 %v3188_v39  ;;  %8318 = vmatpush3.bf16.msra.mxu1 %v3214_v40  ;;  %v10393_v39 = vpack.c.bf16 %v3091_v23, %v3084_v36  ;;  %v3099_v40 = vld [vmem:[#allocation7 + $0x98] sm:$0xff]  ;;  %v3810_v36 = vld [vmem:[#allocation3 + $0x540] sm:$0xff] }
 0x7d8   :  { %3374 = vmatprep.subr.bf16.mxu0 %v3192_v41  ;;  %8337 = vmatprep.subr.bf16.mxu1 %v3265_v42  ;;  %v3106_v41 = vld [vmem:[#allocation7 + $0xd0] sm:$0xff] }
 0x7d9   :  { %v3215_v42 = vld [vmem:[#allocation3 + $0x240] sm:$0xff] }
 0x7da   :  { %3344 = vmatmul.mubr.bf16.vlgmr.msra.gmra.mrb[52].mxu0 %v10351_v51  ;;  %3653 = vmatmul.mubr.bf16.vlgmr.msra.gmra.mrb[68].mxu1 %v10369_v20  ;;  %v3243_v23 = vld [vmem:[#allocation3 + $0x320] sm:$0xff] }
 0x7db   :  { %3375 = vmatpush1.bf16.msra.mxu0 %v3191_v49  ;;  %8338 = vmatpush3.bf16.msra.mxu1 %v3241_v43  ;;  %v10396_v49 = vpack.c.bf16 %v3106_v41, %v3099_v40  ;;  %v3098_v43 = vld [vmem:[#allocation7 + $0x90] sm:$0xff]  ;;  %v3242_v40 = vld [vmem:[#allocation3 + $0x318] sm:$0xff] }
 0x7dc   :  { %3376 = vmatprep.subr.bf16.mxu0 %v3195_v50  ;;  %8339 = vmatprep.subr.bf16.mxu1 %v3268_v44  ;;  %v3105_v50 = vld [vmem:[#allocation7 + $0xc8] sm:$0xff] }
 0x7dd   :  { %3660 = vmatprep.mubr.bf16.mxu1 %v10371_v45  ;;  %3353 = vmatprep.mubr.bf16.mxu0 %v10353_v56  ;;  %v3218_v44 = vld [vmem:[#allocation3 + $0x258] sm:$0xff] }
 0x7de   :  { %v3813_v41 = vld [vmem:[#allocation3 + $0x558] sm:$0xff] }
 0x7df   :  { %3377 = vmatpush1.bf16.msra.mxu0 %v3194_v52  ;;  %8340 = vmatpush3.bf16.msra.mxu1 %v3244_v53  ;;  %v10401_v52 = vpack.c.bf16 %v3105_v50, %v3098_v43  ;;  %v3113_v53 = vld [vmem:[#allocation7 + $0x108] sm:$0xff]  ;;  %v3245_v43 = vld [vmem:[#allocation3 + $0x330] sm:$0xff] }
 0x7e0   :  { %3378 = vmatprep.subr.bf16.mxu0 %v3198_v61  ;;  %8341 = vmatprep.subr.bf16.mxu1 %v3271_v54  ;;  %v3120_v61 = vld [vmem:[#allocation7 + $0x140] sm:$0xff] }
 0x7e1   :  { %v3221_v54 = vld [vmem:[#allocation3 + $0x270] sm:$0xff] }
 0x7e2   :  { %3661 = vmatmul.mubr.bf16.gmra.mrb[72].mxu1 %v10377_v55  ;;  %3354 = vmatmul.mubr.bf16.gmra.mrb[56].mxu0 %v10357_v4  ;;  %v3816_v50 = vld [vmem:[#allocation3 + $0x570] sm:$0xff] }
 0x7e3   :  { %3379 = vmatpush1.bf16.msra.mxu0 %v3197_v30  ;;  %8342 = vmatpush3.bf16.msra.mxu1 %v3247_v63  ;;  %v10404_v30 = vpack.c.bf16 %v3120_v61, %v3113_v53  ;;  %v3112_v63 = vld [vmem:[#allocation7 + $0x100] sm:$0xff]  ;;  %v3121_v53 = vld [vmem:[#allocation7 + $0x148] sm:$0xff]  ;;  %v3248_v61 = vld [vmem:[#allocation3 + $0x348] sm:$0xff] }
 0x7e4   :  { %3380 = vmatprep.subr.bf16.mxu0 %v3201_v2  ;;  %8343 = vmatprep.subr.bf16.mxu1 %v3274_v3  ;;  %v3119_v2 = vld [vmem:[#allocation7 + $0x138] sm:$0xff] }
 0x7e5   :  { %3668 = vmatprep.mubr.bf16.mxu1 %v10379_v5  ;;  %3363 = vmatprep.mubr.bf16.mxu0 %v10359_v28  ;;  %v3224_v3 = vld [vmem:[#allocation3 + $0x288] sm:$0xff] }
 0x7e7   :  { %3381 = vmatpush1.bf16.msra.mxu0 %v3200_v11  ;;  %8344 = vmatpush3.bf16.msra.mxu1 %v3250_v12  ;;  %v10409_v11 = vpack.c.bf16 %v3119_v2, %v3112_v63  ;;  %v3227_v12 = vld [vmem:[#allocation3 + $0x2a0] sm:$0xff] }
 0x7e8   :  { %3382 = vmatprep.subr.bf16.mxu0 %v3204_v9  ;;  %8345 = vmatprep.subr.bf16.mxu1 %v3277_v58  ;;  %v3301_v9 = vld [vmem:[#allocation3 + $0x4f0] sm:$0xff]  ;;  %v3231_v58 = vld [vmem:[#allocation3 + $0x2c0] sm:$0xff] }
 0x7e9   :  { %v3251_v2 = vld [vmem:[#allocation3 + $0x360] sm:$0xff] }
 0x7ea   :  { %3669 = vmatmul.mubr.bf16.gmra.mrb[76].mxu1 %v10385_v13  ;;  %3364 = vmatmul.mubr.bf16.gmra.mrb[60].mxu0 %v10363_v18 }
 0x7eb   :  { %3383 = vmatpush1.bf16.msra.mxu0 %v3203_v16  ;;  %8346 = vmatpush3.bf16.msra.mxu1 %v3253_v17  ;;  %v3234_v16 = vld [vmem:[#allocation3 + $0x2d8] sm:$0xff]  ;;  %v3233_v17 = vld [vmem:[#allocation3 + $0x2d0] sm:$0xff] }
 0x7ec   :  { %3384 = vmatprep.subr.bf16.mxu0 %v3207_v21  ;;  %8347 = vmatprep.subr.bf16.mxu1 %v3280_v22  ;;  %v3307_v21 = vld [vmem:[#allocation3 + $0x520] sm:$0xff]  ;;  %v3237_v22 = vld [vmem:[#allocation3 + $0x2f0] sm:$0xff] }
 0x7ed   :  { %3709 = vmatprep.mubr.bf16.mxu1 %v10387_v24  ;;  %3406 = vmatprep.mubr.bf16.mxu0 %v10365_v29 }
 0x7ef   :  { %3385 = vmatpush1.bf16.msra.mxu0 %v3206_v25  ;;  %8348 = vmatpush3.bf16.msra.mxu1 %v3256_v26  ;;  %v3086_v25 = vld [vmem:[#allocation7 + $0x30] sm:$0xff]  ;;  %v3093_v26 = vld [vmem:[#allocation7 + $0x68] sm:$0xff] }
 0x7f0   :  { %3386 = vmatprep.subr.bf16.mxu0 %v3210_v27  ;;  %8349 = vmatprep.subr.bf16.mxu1 %v3283_v31  ;;  %v3236_v27 = vld [vmem:[#allocation3 + $0x2e8] sm:$0xff]  ;;  %v3310_v31 = vld [vmem:[#allocation3 + $0x538] sm:$0xff] }
 0x7f3   :  { %3387 = vmatpush1.bf16.msra.mxu0 %v3209_v32  ;;  %8350 = vmatpush3.bf16.msra.mxu1 %v3259_v10  ;;  %v3240_v32 = vld [vmem:[#allocation3 + $0x308] sm:$0xff] }
 0x7f4   :  { %3388 = vmatprep.subr.bf16.mxu0 %v3213_v33  ;;  %8351 = vmatprep.subr.bf16.mxu1 %v3286_v34  ;;  %v3811_v10 = vld [vmem:[#allocation3 + $0x548] sm:$0xff]  ;;  %v10418_v33 = vpack.c.bf16 %v3093_v26, %v3086_v25  ;;  %v3239_v34 = vld [vmem:[#allocation3 + $0x300] sm:$0xff] }
 0x7f5   :  { %v3831_v25 = vld [vmem:[#allocation3 + $0x5e8] sm:$0xff] }
 0x7f6   :  { %v3264_v26 = vld [vmem:[#allocation3 + $0x3c8] sm:$0xff] }
 0x7f7   :  { %3389 = vmatpush1.bf16.msra.mxu0 %v3212_v37  ;;  %8352 = vmatpush3.bf16.msra.mxu1 %v3262_v60  ;;  %v3814_v37 = vld [vmem:[#allocation3 + $0x560] sm:$0xff]  ;;  %v3100_v60 = vld [vmem:[#allocation7 + $0xa0] sm:$0xff] }
 0x7f8   :  { %3390 = vmatprep.subr.bf16.mxu0 %v3216_v38  ;;  %8827 = vmatprep.subr.bf16.mxu1 %v9731_v1  ;;  %v3107_v38 = vld [vmem:[#allocation7 + $0xd8] sm:$0xff] }
 0x7fa   :  { %3710 = vmatmul.mubr.bf16.vlgmr.msra.gmra.mrb[80].mxu1 %v10393_v39 }
 0x7fb   :  { %3391 = vmatpush1.bf16.msra.mxu0 %v3215_v42  ;;  %8828 = vmatpush3.bf16.msra.mxu1 %v3289_v47  ;;  %v3246_v42 = vld [vmem:[#allocation3 + $0x338] sm:$0xff] }
 0x7fc   :  { %3392 = vmatprep.subr.bf16.mxu0 %v3219_v48  ;;  %8829 = vmatprep.subr.bf16.mxu1 %v9731_v1  ;;  %v3817_v47 = vld [vmem:[#allocation3 + $0x578] sm:$0xff]  ;;  %v10425_v48 = vpack.c.bf16 %v3107_v38, %v3100_v60  ;;  %v3269_v38 = vld [vmem:[#allocation3 + $0x3f0] sm:$0xff] }
 0x7fd   :  { %3717 = vmatprep.mubr.bf16.mxu1 %v10396_v49  ;;  %v3841_v60 = vld [vmem:[#allocation3 + $0x638] sm:$0xff] }
 0x7ff   :  { %3393 = vmatpush1.bf16.msra.mxu0 %v3218_v44  ;;  %8830 = vmatpush3.bf16.msra.mxu1 %v3292_v46  ;;  %v3249_v44 = vld [vmem:[#allocation3 + $0x350] sm:$0xff] }
 0x800   :  { %3394 = vmatprep.subr.bf16.mxu0 %v3222_v19  ;;  %8831 = vmatprep.subr.bf16.mxu1 %v9731_v1  ;;  %v3820_v46 = vld [vmem:[#allocation3 + $0x590] sm:$0xff]  ;;  %v3114_v19 = vld [vmem:[#allocation7 + $0x110] sm:$0xff] }
 0x801   :  { %v10432_v63 = vpack.c.bf16 %v3121_v53, %v3114_v19  ;;  %v3846_v19 = vld [vmem:[#allocation3 + $0x660] sm:$0xff] }
 0x802   :  { %3718 = vmatmul.mubr.bf16.gmra.mrb[84].mxu1 %v10401_v52  ;;  %v3279_v53 = vld [vmem:[#allocation3 + $0x440] sm:$0xff] }
 0x803   :  { %3395 = vmatpush1.bf16.msra.mxu0 %v3221_v54  ;;  %8832 = vmatpush3.bf16.msra.mxu1 %v3295_v57  ;;  %v3819_v54 = vld [vmem:[#allocation3 + $0x588] sm:$0xff] }
 0x804   :  { %3396 = vmatprep.subr.bf16.mxu0 %v3225_v59  ;;  %8833 = vmatprep.subr.bf16.mxu1 %v9731_v1  ;;  %v3252_v57 = vld [vmem:[#allocation3 + $0x368] sm:$0xff] }
 0x805   :  { %3725 = vmatprep.mubr.bf16.mxu1 %v10404_v30  ;;  %v3823_v59 = vld [vmem:[#allocation3 + $0x5a8] sm:$0xff] }
 0x807   :  { %3397 = vmatpush1.bf16.msra.mxu0 %v3224_v3  ;;  %8834 = vmatpush3.bf16.msra.mxu1 %v3298_v6  ;;  %v3822_v3 = vld [vmem:[#allocation3 + $0x5a0] sm:$0xff] }
 0x808   :  { %3398 = vmatprep.subr.bf16.mxu0 %v3228_v7  ;;  %8835 = vmatprep.subr.bf16.mxu1 %v9731_v1  ;;  %v3255_v6 = vld [vmem:[#allocation3 + $0x380] sm:$0xff] }
 0x809   :  { %v3826_v7 = vld [vmem:[#allocation3 + $0x5c0] sm:$0xff] }
 0x80a   :  { %3726 = vmatmul.mubr.bf16.gmra.mrb[88].mxu1 %v10409_v11 }
 0x80b   :  { %3399 = vmatpush1.bf16.msra.mxu0 %v3227_v12  ;;  %8836 = vmatpush3.bf16.msra.mxu1 %v3301_v9  ;;  %v3254_v12 = vld [vmem:[#allocation3 + $0x378] sm:$0xff] }
 0x80c   :  { %3400 = vmatprep.subr.bf16.mxu0 %v3231_v58  ;;  %8837 = vmatprep.subr.bf16.mxu1 %v9731_v1  ;;  %v3825_v9 = vld [vmem:[#allocation3 + $0x5b8] sm:$0xff] }
 0x80d   :  { %8843 = vmatprep.mubr.msk.bf16.mxu1 %vm9730_vm0, %v9731_v1  ;;  %v3258_v58 = vld [vmem:[#allocation3 + $0x398] sm:$0xff] }
 0x80f   :  { %3401 = vmatpush1.bf16.msra.mxu0 %v3230_v14  ;;  %8838 = vmatpush3.bf16.msra.mxu1 %v3304_v15  ;;  %v3829_v14 = vld [vmem:[#allocation3 + $0x5d8] sm:$0xff]  ;;  %v3257_v15 = vld [vmem:[#allocation3 + $0x390] sm:$0xff] }
 0x810   :  { %3402 = vmatprep.subr.bf16.mxu0 %v3234_v16  ;;  %8839 = vmatprep.subr.bf16.mxu1 %v9731_v1  ;;  %v3828_v16 = vld [vmem:[#allocation3 + $0x5d0] sm:$0xff] }
 0x813   :  { %3403 = vmatpush1.bf16.msra.mxu0 %v3233_v17  ;;  %8840 = vmatpush3.bf16.msra.mxu1 %v3307_v21  ;;  %v3261_v17 = vld [vmem:[#allocation3 + $0x3b0] sm:$0xff] }
 0x814   :  { %3404 = vmatprep.subr.bf16.mxu0 %v3237_v22  ;;  %8841 = vmatprep.subr.bf16.mxu1 %v9731_v1  ;;  %v3832_v21 = vld [vmem:[#allocation3 + $0x5f0] sm:$0xff]  ;;  %v3260_v22 = vld [vmem:[#allocation3 + $0x3a8] sm:$0xff] }
 0x817   :  { %3405 = vmatpush1.bf16.msra.mxu0 %v3236_v27  ;;  %8842 = vmatpush3.bf16.msra.mxu1 %v3310_v31  ;;  %v3835_v27 = vld [vmem:[#allocation3 + $0x608] sm:$0xff]  ;;  %v3263_v31 = vld [vmem:[#allocation3 + $0x3c0] sm:$0xff] }
 0x818   :  { %3437 = vmatprep.subr.bf16.mxu0 %v3240_v32  ;;  %3978 = vmatprep.subr.bf16.mxu1 %v3811_v10  ;;  %v3834_v32 = vld [vmem:[#allocation3 + $0x600] sm:$0xff] }
 0x819   :  { %v3267_v10 = vld [vmem:[#allocation3 + $0x3e0] sm:$0xff] }
 0x81a   :  { %3407 = vmatmul.mubr.bf16.vlgmr.msra.gmra.mrb[52].mxu0 %v10369_v20  ;;  %8844 = vmatmul.mubr.bf16.vlgmr.msra.gmra.mrb[92].mxu1 %v10418_v33 }
 0x81b   :  { %3438 = vmatpush1.bf16.msra.mxu0 %v3239_v34  ;;  %3979 = vmatpush1.bf16.msra.mxu1 %v3810_v36  ;;  %v3838_v34 = vld [vmem:[#allocation3 + $0x620] sm:$0xff]  ;;  %v3266_v36 = vld [vmem:[#allocation3 + $0x3d8] sm:$0xff] }
 0x81c   :  { %3439 = vmatprep.subr.bf16.mxu0 %v3243_v23  ;;  %3980 = vmatprep.subr.bf16.mxu1 %v3814_v37  ;;  %v3837_v23 = vld [vmem:[#allocation3 + $0x618] sm:$0xff] }
 0x81d   :  { %8847 = vmatprep.mubr.msk.bf16.mxu1 %vm9730_vm0, %v9731_v1  ;;  %3416 = vmatprep.mubr.bf16.mxu0 %v10371_v45  ;;  %v3270_v37 = vld [vmem:[#allocation3 + $0x3f8] sm:$0xff] }
 0x81f   :  { %3440 = vmatpush1.bf16.msra.mxu0 %v3242_v40  ;;  %3981 = vmatpush1.bf16.msra.mxu1 %v3813_v41  ;;  %v3840_v40 = vld [vmem:[#allocation3 + $0x630] sm:$0xff] }
 0x820   :  { %3441 = vmatprep.subr.bf16.mxu0 %v3246_v42  ;;  %3982 = vmatprep.subr.bf16.mxu1 %v3817_v47  ;;  %v3273_v41 = vld [vmem:[#allocation3 + $0x410] sm:$0xff]  ;;  %v3272_v47 = vld [vmem:[#allocation3 + $0x408] sm:$0xff] }
 0x821   :  { %v3844_v42 = vld [vmem:[#allocation3 + $0x650] sm:$0xff] }
 0x822   :  { %8848 = vmatmul.mubr.bf16.gmra.mrb[96].mxu1 %v10425_v48  ;;  %3417 = vmatmul.mubr.bf16.gmra.mrb[56].mxu0 %v10377_v55 }
 0x823   :  { %3442 = vmatpush1.bf16.msra.mxu0 %v3245_v43  ;;  %3983 = vmatpush1.bf16.msra.mxu1 %v3816_v50  ;;  %v3843_v43 = vld [vmem:[#allocation3 + $0x648] sm:$0xff] }
 0x824   :  { %3443 = vmatprep.subr.bf16.mxu0 %v3249_v44  ;;  %3984 = vmatprep.subr.bf16.mxu1 %v3820_v46  ;;  %v3276_v50 = vld [vmem:[#allocation3 + $0x428] sm:$0xff]  ;;  %v3275_v46 = vld [vmem:[#allocation3 + $0x420] sm:$0xff] }
 0x825   :  { %8851 = vmatprep.mubr.msk.bf16.mxu1 %vm9730_vm0, %v9731_v1  ;;  %3426 = vmatprep.mubr.bf16.mxu0 %v10379_v5  ;;  %v3847_v44 = vld [vmem:[#allocation3 + $0x668] sm:$0xff] }
 0x827   :  { %3444 = vmatpush1.bf16.msra.mxu0 %v3248_v61  ;;  %3985 = vmatpush1.bf16.msra.mxu1 %v3819_v54  ;;  %v3850_v61 = vld [vmem:[#allocation3 + $0x680] sm:$0xff]  ;;  %v3278_v54 = vld [vmem:[#allocation3 + $0x438] sm:$0xff] }
 0x828   :  { %3445 = vmatprep.subr.bf16.mxu0 %v3252_v57  ;;  %3986 = vmatprep.subr.bf16.mxu1 %v3823_v59  ;;  %v3849_v57 = vld [vmem:[#allocation3 + $0x678] sm:$0xff] }
 0x829   :  { %v3282_v59 = vld [vmem:[#allocation3 + $0x458] sm:$0xff] }
 0x82a   :  { %8852 = vmatmul.mubr.bf16.gmra.mrb[100].mxu1 %v10432_v63  ;;  %3427 = vmatmul.mubr.bf16.gmra.mrb[60].mxu0 %v10385_v13 }
 0x82b   :  { %3446 = vmatpush1.bf16.msra.mxu0 %v3251_v2  ;;  %3987 = vmatpush1.bf16.msra.mxu1 %v3822_v3  ;;  %v3853_v2 = vld [vmem:[#allocation3 + $0x698] sm:$0xff]  ;;  %v3281_v3 = vld [vmem:[#allocation3 + $0x450] sm:$0xff] }
 0x82c   :  { %3447 = vmatprep.subr.bf16.mxu0 %v3255_v6  ;;  %3988 = vmatprep.subr.bf16.mxu1 %v3826_v7  ;;  %v3852_v6 = vld [vmem:[#allocation3 + $0x690] sm:$0xff] }
 0x82d   :  { %3469 = vmatprep.mubr.bf16.mxu0 %v10387_v24  ;;  %4010 = vmatprep.mubr.bf16.mxu1 %v10347_v35  ;;  %v3285_v7 = vld [vmem:[#allocation3 + $0x470] sm:$0xff] }
 0x82f   :  { %3448 = vmatpush1.bf16.msra.mxu0 %v3254_v12  ;;  %3989 = vmatpush1.bf16.msra.mxu1 %v3825_v9  ;;  %v3856_v12 = vld [vmem:[#allocation3 + $0x6b0] sm:$0xff]  ;;  %v3284_v9 = vld [vmem:[#allocation3 + $0x468] sm:$0xff] }
 0x830   :  { %3449 = vmatprep.subr.bf16.mxu0 %v3258_v58  ;;  %3990 = vmatprep.subr.bf16.mxu1 %v3829_v14  ;;  %v3855_v58 = vld [vmem:[#allocation3 + $0x6a8] sm:$0xff] }
 0x831   :  { %v3288_v14 = vld [vmem:[#allocation3 + $0x488] sm:$0xff] }
 0x833   :  { %3450 = vmatpush1.bf16.msra.mxu0 %v3257_v15  ;;  %3991 = vmatpush1.bf16.msra.mxu1 %v3828_v16  ;;  %v3859_v15 = vld [vmem:[#allocation3 + $0x6c8] sm:$0xff]  ;;  %v3287_v16 = vld [vmem:[#allocation3 + $0x480] sm:$0xff] }
 0x834   :  { %3451 = vmatprep.subr.bf16.mxu0 %v3261_v17  ;;  %3992 = vmatprep.subr.bf16.mxu1 %v3832_v21  ;;  %v3858_v17 = vld [vmem:[#allocation3 + $0x6c0] sm:$0xff] }
 0x835   :  { %v3291_v21 = vld [vmem:[#allocation3 + $0x4a0] sm:$0xff] }
 0x837   :  { %3452 = vmatpush1.bf16.msra.mxu0 %v3260_v22  ;;  %3993 = vmatpush1.bf16.msra.mxu1 %v3831_v25  ;;  %v3862_v22 = vld [vmem:[#allocation3 + $0x6e0] sm:$0xff]  ;;  %v3290_v25 = vld [vmem:[#allocation3 + $0x498] sm:$0xff] }
 0x838   :  { %3453 = vmatprep.subr.bf16.mxu0 %v3264_v26  ;;  %3994 = vmatprep.subr.bf16.mxu1 %v3835_v27  ;;  %v3861_v26 = vld [vmem:[#allocation3 + $0x6d8] sm:$0xff] }
 0x839   :  { %v3294_v27 = vld [vmem:[#allocation3 + $0x4b8] sm:$0xff] }
 0x83b   :  { %3454 = vmatpush1.bf16.msra.mxu0 %v3263_v31  ;;  %3995 = vmatpush1.bf16.msra.mxu1 %v3834_v32  ;;  %v3865_v31 = vld [vmem:[#allocation3 + $0x6f8] sm:$0xff]  ;;  %v3293_v32 = vld [vmem:[#allocation3 + $0x4b0] sm:$0xff] }
 0x83c   :  { %3455 = vmatprep.subr.bf16.mxu0 %v3267_v10  ;;  %3996 = vmatprep.subr.bf16.mxu1 %v3838_v34  ;;  %v3864_v10 = vld [vmem:[#allocation3 + $0x6f0] sm:$0xff] }
 0x83d   :  { %v3297_v34 = vld [vmem:[#allocation3 + $0x4d0] sm:$0xff] }
 0x83f   :  { %3456 = vmatpush1.bf16.msra.mxu0 %v3266_v36  ;;  %3997 = vmatpush1.bf16.msra.mxu1 %v3837_v23  ;;  %v3868_v36 = vld [vmem:[#allocation3 + $0x710] sm:$0xff]  ;;  %v3296_v23 = vld [vmem:[#allocation3 + $0x4c8] sm:$0xff] }
 0x840   :  { %3457 = vmatprep.subr.bf16.mxu0 %v3270_v37  ;;  %3998 = vmatprep.subr.bf16.mxu1 %v3841_v60  ;;  %v3867_v37 = vld [vmem:[#allocation3 + $0x708] sm:$0xff] }
 0x841   :  { %v3300_v60 = vld [vmem:[#allocation3 + $0x4e8] sm:$0xff] }
 0x843   :  { %3458 = vmatpush1.bf16.msra.mxu0 %v3269_v38  ;;  %3999 = vmatpush1.bf16.msra.mxu1 %v3840_v40  ;;  %v3871_v38 = vld [vmem:[#allocation3 + $0x728] sm:$0xff]  ;;  %v3299_v40 = vld [vmem:[#allocation3 + $0x4e0] sm:$0xff] }
 0x844   :  { %3459 = vmatprep.subr.bf16.mxu0 %v3273_v41  ;;  %4000 = vmatprep.subr.bf16.mxu1 %v3844_v42  ;;  %v3870_v41 = vld [vmem:[#allocation3 + $0x720] sm:$0xff] }
 0x845   :  { %v3303_v42 = vld [vmem:[#allocation3 + $0x500] sm:$0xff] }
 0x847   :  { %3460 = vmatpush1.bf16.msra.mxu0 %v3272_v47  ;;  %4001 = vmatpush1.bf16.msra.mxu1 %v3843_v43  ;;  %v3874_v47 = vld [vmem:[#allocation3 + $0x740] sm:$0xff]  ;;  %v3302_v43 = vld [vmem:[#allocation3 + $0x4f8] sm:$0xff] }
 0x848   :  { %3461 = vmatprep.subr.bf16.mxu0 %v3276_v50  ;;  %4002 = vmatprep.subr.bf16.mxu1 %v3847_v44  ;;  %v3873_v50 = vld [vmem:[#allocation3 + $0x738] sm:$0xff] }
 0x849   :  { %v3306_v44 = vld [vmem:[#allocation3 + $0x518] sm:$0xff] }
 0x84b   :  { %3462 = vmatpush1.bf16.msra.mxu0 %v3275_v46  ;;  %4003 = vmatpush1.bf16.msra.mxu1 %v3846_v19  ;;  %v3877_v46 = vld [vmem:[#allocation3 + $0x758] sm:$0xff]  ;;  %v9749_v19 = vmov 0  }
 0x84c   :  { %3463 = vmatprep.subr.bf16.mxu0 %v3279_v53  ;;  %4004 = vmatprep.subr.bf16.mxu1 %v3850_v61  ;;  %v3305_v53 = vld [vmem:[#allocation3 + $0x510] sm:$0xff] }
 0x84d   :  { %v3876_v61 = vld [vmem:[#allocation3 + $0x750] sm:$0xff] }
 0x84f   :  { %3464 = vmatpush1.bf16.msra.mxu0 %v3278_v54  ;;  %4005 = vmatpush1.bf16.msra.mxu1 %v3849_v57  ;;  %v3309_v54 = vld [vmem:[#allocation3 + $0x530] sm:$0xff] }
 0x850   :  { %3465 = vmatprep.subr.bf16.mxu0 %v3282_v59  ;;  %4006 = vmatprep.subr.bf16.mxu1 %v3853_v2  ;;  %v3880_v57 = vld [vmem:[#allocation3 + $0x770] sm:$0xff]  ;;  %v3308_v59 = vld [vmem:[#allocation3 + $0x528] sm:$0xff] }
 0x851   :  { %v3879_v2 = vld [vmem:[#allocation3 + $0x768] sm:$0xff] }
 0x853   :  { %3466 = vmatpush1.bf16.msra.mxu0 %v3281_v3  ;;  %4007 = vmatpush1.bf16.msra.mxu1 %v3852_v6  ;;  %v3883_v3 = vld [vmem:[#allocation3 + $0x788] sm:$0xff]  ;;  %v3836_v6 = vld [vmem:[#allocation3 + $0x610] sm:$0xff] }
 0x854   :  { %3467 = vmatprep.subr.bf16.mxu0 %v3285_v7  ;;  %4008 = vmatprep.subr.bf16.mxu1 %v3856_v12  ;;  %v3882_v7 = vld [vmem:[#allocation3 + $0x780] sm:$0xff]  ;;  %v3812_v12 = vld [vmem:[#allocation3 + $0x550] sm:$0xff] }
 0x857   :  { %3468 = vmatpush1.bf16.msra.mxu0 %v3284_v9  ;;  %4009 = vmatpush1.bf16.msra.mxu1 %v3855_v58  ;;  %v3886_v9 = vld [vmem:[#allocation3 + $0x7a0] sm:$0xff]  ;;  %v3839_v58 = vld [vmem:[#allocation3 + $0x628] sm:$0xff] }
 0x858   :  { %3500 = vmatprep.subr.bf16.mxu0 %v3288_v14  ;;  %4041 = vmatprep.subr.bf16.mxu1 %v3859_v15  ;;  %v3885_v14 = vld [vmem:[#allocation3 + $0x798] sm:$0xff]  ;;  %v3815_v15 = vld [vmem:[#allocation3 + $0x568] sm:$0xff] }
 0x85a   :  { %3470 = vmatmul.mubr.bf16.vlgmr.msra.gmra.mrb[52].mxu0 %v10393_v39  ;;  %4011 = vmatmul.mubr.bf16.vlgmr.msra.gmra.mrb[104].mxu1 %v10351_v51 }
 0x85b   :  { %3501 = vmatpush1.bf16.msra.mxu0 %v3287_v16  ;;  %4042 = vmatpush1.bf16.msra.mxu1 %v3858_v17  ;;  %v3889_v16 = vld [vmem:[#allocation3 + $0x7b8] sm:$0xff]  ;;  %v3842_v17 = vld [vmem:[#allocation3 + $0x640] sm:$0xff] }
 0x85c   :  { %3502 = vmatprep.subr.bf16.mxu0 %v3291_v21  ;;  %4043 = vmatprep.subr.bf16.mxu1 %v3862_v22  ;;  %v3888_v21 = vld [vmem:[#allocation3 + $0x7b0] sm:$0xff]  ;;  %v3818_v22 = vld [vmem:[#allocation3 + $0x580] sm:$0xff] }
 0x85d   :  { %3479 = vmatprep.mubr.bf16.mxu0 %v10396_v49  ;;  %4020 = vmatprep.mubr.bf16.mxu1 %v10353_v56 }
 0x85f   :  { %3503 = vmatpush1.bf16.msra.mxu0 %v3290_v25  ;;  %4044 = vmatpush1.bf16.msra.mxu1 %v3861_v26  ;;  %v3892_v25 = vld [vmem:[#allocation3 + $0x7d0] sm:$0xff]  ;;  %v3845_v26 = vld [vmem:[#allocation3 + $0x658] sm:$0xff] }
 0x860   :  { %3504 = vmatprep.subr.bf16.mxu0 %v3294_v27  ;;  %4045 = vmatprep.subr.bf16.mxu1 %v3865_v31  ;;  %v3891_v27 = vld [vmem:[#allocation3 + $0x7c8] sm:$0xff]  ;;  %v3821_v31 = vld [vmem:[#allocation3 + $0x598] sm:$0xff] }
 0x862   :  { %3480 = vmatmul.mubr.bf16.gmra.mrb[56].mxu0 %v10401_v52  ;;  %4021 = vmatmul.mubr.bf16.gmra.mrb[108].mxu1 %v10357_v4 }
 0x863   :  { %3505 = vmatpush1.bf16.msra.mxu0 %v3293_v32  ;;  %4046 = vmatpush1.bf16.msra.mxu1 %v3864_v10  ;;  %v3895_v32 = vld [vmem:[#allocation3 + $0x7e8] sm:$0xff]  ;;  %v3848_v10 = vld [vmem:[#allocation3 + $0x670] sm:$0xff] }
 0x864   :  { %3506 = vmatprep.subr.bf16.mxu0 %v3297_v34  ;;  %4047 = vmatprep.subr.bf16.mxu1 %v3868_v36  ;;  %v3894_v34 = vld [vmem:[#allocation3 + $0x7e0] sm:$0xff]  ;;  %v3824_v36 = vld [vmem:[#allocation3 + $0x5b0] sm:$0xff] }
 0x865   :  { %3489 = vmatprep.mubr.bf16.mxu0 %v10404_v30  ;;  %4030 = vmatprep.mubr.bf16.mxu1 %v10359_v28 }
 0x867   :  { %3507 = vmatpush1.bf16.msra.mxu0 %v3296_v23  ;;  %4048 = vmatpush1.bf16.msra.mxu1 %v3867_v37  ;;  %v3898_v23 = vld [vmem:[#allocation3 + $0x800] sm:$0xff]  ;;  %v3851_v37 = vld [vmem:[#allocation3 + $0x688] sm:$0xff] }
 0x868   :  { %3508 = vmatprep.subr.bf16.mxu0 %v3300_v60  ;;  %4049 = vmatprep.subr.bf16.mxu1 %v3871_v38  ;;  %v3897_v60 = vld [vmem:[#allocation3 + $0x7f8] sm:$0xff]  ;;  %v3827_v38 = vld [vmem:[#allocation3 + $0x5c8] sm:$0xff] }
 0x86a   :  { %3490 = vmatmul.mubr.bf16.gmra.mrb[60].mxu0 %v10409_v11  ;;  %4031 = vmatmul.mubr.bf16.gmra.mrb[112].mxu1 %v10363_v18 }
 0x86b   :  { %3509 = vmatpush1.bf16.msra.mxu0 %v3299_v40  ;;  %4050 = vmatpush1.bf16.msra.mxu1 %v3870_v41  ;;  %v3901_v40 = vld [vmem:[#allocation3 + $0x818] sm:$0xff]  ;;  %v3854_v41 = vld [vmem:[#allocation3 + $0x6a0] sm:$0xff] }
 0x86c   :  { %3510 = vmatprep.subr.bf16.mxu0 %v3303_v42  ;;  %4051 = vmatprep.subr.bf16.mxu1 %v3874_v47 }
 0x86d   :  { %3532 = vmatprep.mubr.bf16.mxu0 %v9749_v19  ;;  %4073 = vmatprep.mubr.bf16.mxu1 %v10365_v29 }
 0x86f   :  { %3511 = vmatpush1.bf16.msra.mxu0 %v3302_v43  ;;  %4052 = vmatpush1.bf16.msra.mxu1 %v3873_v50 }
 0x870   :  { %3512 = vmatprep.subr.bf16.mxu0 %v3306_v44  ;;  %4053 = vmatprep.subr.bf16.mxu1 %v3877_v46  ;;  %v3900_v44 = vld [vmem:[#allocation3 + $0x810] sm:$0xff]  ;;  %v3830_v46 = vld [vmem:[#allocation3 + $0x5e0] sm:$0xff] }
 0x873   :  { %3513 = vmatpush1.bf16.msra.mxu0 %v3305_v53  ;;  %4054 = vmatpush1.bf16.msra.mxu1 %v3876_v61  ;;  %v3904_v61 = vld [vmem:[#allocation3 + $0x830] sm:$0xff] }
 0x874   :  { %3514 = vmatprep.subr.bf16.mxu0 %v3309_v54  ;;  %4055 = vmatprep.subr.bf16.mxu1 %v3880_v57  ;;  %v3857_v54 = vld [vmem:[#allocation3 + $0x6b8] sm:$0xff] }
 0x877   :  { %3515 = vmatpush1.bf16.msra.mxu0 %v3308_v59  ;;  %4056 = vmatpush1.bf16.msra.mxu1 %v3879_v2  ;;  %v3903_v59 = vld [vmem:[#allocation3 + $0x828] sm:$0xff]  ;;  %v3833_v2 = vld [vmem:[#allocation3 + $0x5f8] sm:$0xff] }
 0x878   :  { %4057 = vmatprep.subr.bf16.mxu1 %v3883_v3  ;;  %8382 = vmatprep.subr.bf16.mxu0 %v3836_v6  ;;  %v3907_v3 = vld [vmem:[#allocation3 + $0x848] sm:$0xff]  ;;  %v3884_v6 = vld [vmem:[#allocation3 + $0x790] sm:$0xff] }
 0x87a   :  { %3533 = vmatmul.mubr.bf16.vlgmr.msra.gmra.mrb[52].mxu0 %v10418_v33 }
 0x87b   :  { %4058 = vmatpush1.bf16.msra.mxu1 %v3882_v7  ;;  %8383 = vmatpush3.bf16.msra.mxu0 %v3812_v12 }
 0x87c   :  { %4059 = vmatprep.subr.bf16.mxu1 %v3886_v9  ;;  %8384 = vmatprep.subr.bf16.mxu0 %v3839_v58 }
 0x87d   :  { %3542 = vmatprep.mubr.bf16.mxu0 %v9749_v19 }
 0x87f   :  { %4060 = vmatpush1.bf16.msra.mxu1 %v3885_v14  ;;  %8385 = vmatpush3.bf16.msra.mxu0 %v3815_v15  ;;  %v3906_v14 = vld [vmem:[#allocation3 + $0x840] sm:$0xff]  ;;  %v3860_v15 = vld [vmem:[#allocation3 + $0x6d0] sm:$0xff] }
 0x880   :  { %4061 = vmatprep.subr.bf16.mxu1 %v3889_v16  ;;  %8386 = vmatprep.subr.bf16.mxu0 %v3842_v17  ;;  %v3910_v17 = vld [vmem:[#allocation3 + $0x860] sm:$0xff] }
 0x882   :  { %3543 = vmatmul.mubr.bf16.gmra.mrb[56].mxu0 %v10425_v48 }
 0x883   :  { %4062 = vmatpush1.bf16.msra.mxu1 %v3888_v21  ;;  %8387 = vmatpush3.bf16.msra.mxu0 %v3818_v22  ;;  %v3887_v21 = vld [vmem:[#allocation3 + $0x7a8] sm:$0xff] }
 0x884   :  { %4063 = vmatprep.subr.bf16.mxu1 %v3892_v25  ;;  %8388 = vmatprep.subr.bf16.mxu0 %v3845_v26  ;;  %v3909_v25 = vld [vmem:[#allocation3 + $0x858] sm:$0xff]  ;;  %v3863_v26 = vld [vmem:[#allocation3 + $0x6e8] sm:$0xff] }
 0x885   :  { %3552 = vmatprep.mubr.bf16.mxu0 %v9749_v19 }
 0x887   :  { %4064 = vmatpush1.bf16.msra.mxu1 %v3891_v27  ;;  %8389 = vmatpush3.bf16.msra.mxu0 %v3821_v31  ;;  %v3913_v27 = vld [vmem:[#allocation3 + $0x878] sm:$0xff]  ;;  %v3890_v31 = vld [vmem:[#allocation3 + $0x7c0] sm:$0xff] }
 0x888   :  { %4065 = vmatprep.subr.bf16.mxu1 %v3895_v32  ;;  %8390 = vmatprep.subr.bf16.mxu0 %v3848_v10 }
 0x88a   :  { %3553 = vmatmul.mubr.bf16.gmra.mrb[60].mxu0 %v10432_v63 }
 0x88b   :  { %4066 = vmatpush1.bf16.msra.mxu1 %v3894_v34  ;;  %8391 = vmatpush3.bf16.msra.mxu0 %v3824_v36 }
 0x88c   :  { %4067 = vmatprep.subr.bf16.mxu1 %v3898_v23  ;;  %8392 = vmatprep.subr.bf16.mxu0 %v3851_v37  ;;  %v3912_v23 = vld [vmem:[#allocation3 + $0x870] sm:$0xff]  ;;  %v3866_v37 = vld [vmem:[#allocation3 + $0x700] sm:$0xff] }
 0x88d   :  { %4262 = vmatprep.mubr.bf16.mxu0 %v10347_v35  ;;  %v8285_v42 = vpop.f32.mrb[56].mxu1 }
 0x88e   :  { %v8286_v47 = vpop.f32.mrb[57].mxu1 }
 0x88f   :  { %4068 = vmatpush1.bf16.msra.mxu1 %v3897_v60  ;;  %8393 = vmatpush3.bf16.msra.mxu0 %v3827_v38  ;;  %v10456_v43 = vadd.f32 %v8286_v47, %v8285_v42  ;;  %v8288_v50 = vpop.f32.mrb[58].mxu1  ;;  %v3916_v38 = vld [vmem:[#allocation3 + $0x890] sm:$0xff]  ;;  %v3915_v42 = vld [vmem:[#allocation3 + $0x888] sm:$0xff]  ;;  %v3869_v47 = vld [vmem:[#allocation3 + $0x718] sm:$0xff] }
 0x890   :  { %4069 = vmatprep.subr.bf16.mxu1 %v3901_v40  ;;  %8394 = vmatprep.subr.bf16.mxu0 %v3854_v41  ;;  %v8289_v53 = vpop.f32.mrb[59].mxu1  ;;  %v3893_v40 = vld [vmem:[#allocation3 + $0x7d8] sm:$0xff] }
 0x891   :  { %v10458_v57 = vadd.f32 %v8289_v53, %v8288_v50  ;;  %v3919_v50 = vld [vmem:[#allocation3 + $0x8a8] sm:$0xff]  ;;  %v3872_v53 = vld [vmem:[#allocation3 + $0x730] sm:$0xff] }
 0x893   :  { %4070 = vmatpush1.bf16.msra.mxu1 %v3900_v44  ;;  %8395 = vmatpush3.bf16.msra.mxu0 %v3830_v46  ;;  %v3896_v44 = vld [vmem:[#allocation3 + $0x7f0] sm:$0xff]  ;;  %v3918_v46 = vld [vmem:[#allocation3 + $0x8a0] sm:$0xff] }
 0x894   :  { %4071 = vmatprep.subr.bf16.mxu1 %v3904_v61  ;;  %8396 = vmatprep.subr.bf16.mxu0 %v3857_v54  ;;  %v3922_v61 = vld [vmem:[#allocation3 + $0x8c0] sm:$0xff]  ;;  %v3899_v54 = vld [vmem:[#allocation3 + $0x808] sm:$0xff] }
 0x895   :  { %v8291_v7 = vpop.f32.mrb[60].mxu1 }
 0x896   :  { %v8292_v12 = vpop.f32.mrb[61].mxu1 }
 0x897   :  { %4072 = vmatpush1.bf16.msra.mxu1 %v3903_v59  ;;  %8397 = vmatpush3.bf16.msra.mxu0 %v3833_v2  ;;  %v10460_v9 = vadd.f32 %v8292_v12, %v8291_v7  ;;  %v8294_v58 = vpop.f32.mrb[62].mxu1  ;;  %v3921_v59 = vld [vmem:[#allocation3 + $0x8b8] sm:$0xff]  ;;  %v3875_v2 = vld [vmem:[#allocation3 + $0x748] sm:$0xff] }
 0x898   :  { %4104 = vmatprep.subr.bf16.mxu1 %v3907_v3  ;;  %8416 = vmatprep.subr.bf16.mxu0 %v3884_v6  ;;  %v8295_v16 = vpop.f32.mrb[63].mxu1  ;;  %v3925_v3 = vld [vmem:[#allocation3 + $0x8d8] sm:$0xff]  ;;  %v3902_v6 = vld [vmem:[#allocation3 + $0x820] sm:$0xff] }
 0x899   :  { %v10462_v22 = vadd.f32 %v8295_v16, %v8294_v58  ;;  %v3878_v16 = vld [vmem:[#allocation3 + $0x760] sm:$0xff] }
 0x89a   :  { %4263 = vmatmul.mubr.bf16.vlgmr.msra.gmra.mrb[64].mxu0 %v10351_v51  ;;  %4074 = vmatmul.mubr.bf16.vlgmr.msra.gmra.mrb[104].mxu1 %v10369_v20 }
 0x89b   :  { %4105 = vmatpush1.bf16.msra.mxu1 %v3906_v14  ;;  %8417 = vmatpush3.bf16.msra.mxu0 %v3860_v15  ;;  %v3924_v15 = vld [vmem:[#allocation3 + $0x8d0] sm:$0xff] }
 0x89c   :  { %4106 = vmatprep.subr.bf16.mxu1 %v3910_v17  ;;  %8418 = vmatprep.subr.bf16.mxu0 %v3887_v21  ;;  %v3928_v21 = vld [vmem:[#allocation3 + $0x8f0] sm:$0xff] }
 0x89d   :  { %4270 = vmatprep.mubr.bf16.mxu0 %v10353_v56  ;;  %4083 = vmatprep.mubr.bf16.mxu1 %v10371_v45  ;;  %v8297_v32 = vpop.f32.mrb[64].mxu1 }
 0x89e   :  { %v8298_v10 = vpop.f32.mrb[65].mxu1 }
 0x89f   :  { %4107 = vmatpush1.bf16.msra.mxu1 %v3909_v25  ;;  %8419 = vmatpush3.bf16.msra.mxu0 %v3863_v26  ;;  %v10468_v34 = vadd.f32 %v8298_v10, %v8297_v32  ;;  %v8300_v36 = vpop.f32.mrb[66].mxu1  ;;  %v3905_v25 = vld [vmem:[#allocation3 + $0x838] sm:$0xff]  ;;  %v3927_v32 = vld [vmem:[#allocation3 + $0x8e8] sm:$0xff] }
 0x8a0   :  { %4108 = vmatprep.subr.bf16.mxu1 %v3913_v27  ;;  %8420 = vmatprep.subr.bf16.mxu0 %v3890_v31  ;;  %v8301_v60 = vpop.f32.mrb[67].mxu1  ;;  %v3881_v10 = vld [vmem:[#allocation3 + $0x778] sm:$0xff] }
 0x8a1   :  { %v10470_v41 = vadd.f32 %v8301_v60, %v8300_v36  ;;  %v3931_v36 = vld [vmem:[#allocation3 + $0x908] sm:$0xff] }
 0x8a2   :  { %4271 = vmatmul.mubr.bf16.gmra.mrb[68].mxu0 %v10357_v4  ;;  %4084 = vmatmul.mubr.bf16.gmra.mrb[108].mxu1 %v10377_v55 }
 0x8a3   :  { %4109 = vmatpush1.bf16.msra.mxu1 %v3912_v23  ;;  %8421 = vmatpush3.bf16.msra.mxu0 %v3866_v37  ;;  %v3932_v23 = vld [vmem:[#allocation3 + $0x910] sm:$0xff] }
 0x8a4   :  { %4110 = vmatprep.subr.bf16.mxu1 %v3916_v38  ;;  %8422 = vmatprep.subr.bf16.mxu0 %v3893_v40 }
 0x8a5   :  { %4278 = vmatprep.mubr.bf16.mxu0 %v10359_v28  ;;  %4093 = vmatprep.mubr.bf16.mxu1 %v10379_v5 }
 0x8a7   :  { %4111 = vmatpush1.bf16.msra.mxu1 %v3915_v42  ;;  %8423 = vmatpush3.bf16.msra.mxu0 %v3869_v47  ;;  %v3908_v42 = vld [vmem:[#allocation3 + $0x850] sm:$0xff] }
 0x8a8   :  { %4112 = vmatprep.subr.bf16.mxu1 %v3919_v50  ;;  %8424 = vmatprep.subr.bf16.mxu0 %v3896_v44  ;;  %v3934_v50 = vld [vmem:[#allocation3 + $0x920] sm:$0xff] }
 0x8aa   :  { %4279 = vmatmul.mubr.bf16.gmra.mrb[72].mxu0 %v10363_v18  ;;  %4094 = vmatmul.mubr.bf16.gmra.mrb[112].mxu1 %v10385_v13 }
 0x8ab   :  { %4113 = vmatpush1.bf16.msra.mxu1 %v3918_v46  ;;  %8425 = vmatpush3.bf16.msra.mxu0 %v3872_v53 }
 0x8ac   :  { %4114 = vmatprep.subr.bf16.mxu1 %v3922_v61  ;;  %8426 = vmatprep.subr.bf16.mxu0 %v3899_v54  ;;  %v3933_v61 = vld [vmem:[#allocation3 + $0x918] sm:$0xff]  ;;  %v3911_v54 = vld [vmem:[#allocation3 + $0x868] sm:$0xff] }
 0x8ad   :  { %4319 = vmatprep.mubr.bf16.mxu0 %v10365_v29  ;;  %v8319_v7 = vpop.f32.mrb[68].mxu1  ;;  %4136 = vmatprep.mubr.bf16.mxu1 %v10387_v24 }
 0x8ae   :  { %v8320_v12 = vpop.f32.mrb[69].mxu1 }
 0x8af   :  { %4115 = vmatpush1.bf16.msra.mxu1 %v3921_v59  ;;  %8427 = vmatpush3.bf16.msra.mxu0 %v3875_v2  ;;  %v8321_v58 = vadd.f32 %v8320_v12, %v8319_v7  ;;  %v8322_v14 = vpop.f32.mrb[70].mxu1  ;;  %v3937_v59 = vld [vmem:[#allocation3 + $0x938] sm:$0xff]  ;;  %v3938_v2 = vld [vmem:[#allocation3 + $0x940] sm:$0xff]  ;;  %v3936_v12 = vld [vmem:[#allocation3 + $0x930] sm:$0xff] }
 0x8b0   :  { %4116 = vmatprep.subr.bf16.mxu1 %v3925_v3  ;;  %8428 = vmatprep.subr.bf16.mxu0 %v3902_v6  ;;  %v8323_v17 = vpop.f32.mrb[71].mxu1 }
 0x8b1   :  { %v10481_v26 = vadd.f32 %v8321_v58, %v10456_v43  ;;  %v8324_v27 = vadd.f32 %v8323_v17, %v8322_v14  ;;  %v3930_v43 = vld [vmem:[#allocation3 + $0x900] sm:$0xff]  ;;  %v3940_v14 = vld [vmem:[#allocation3 + $0x950] sm:$0xff] }
 0x8b2   :  { %v3914_v58 = vld [vmem:[#allocation3 + $0x880] sm:$0xff] }
 0x8b3   :  { %4117 = vmatpush1.bf16.msra.mxu1 %v3924_v15  ;;  %8429 = vmatpush3.bf16.msra.mxu0 %v3878_v16  ;;  %v10484_v31 = vadd.f32 %v8324_v27, %v10458_v57  ;;  %v3935_v57 = vld [vmem:[#allocation3 + $0x928] sm:$0xff]  ;;  %v3941_v15 = vld [vmem:[#allocation3 + $0x958] sm:$0xff] }
 0x8b4   :  { %4118 = vmatprep.subr.bf16.mxu1 %v3928_v21  ;;  %8430 = vmatprep.subr.bf16.mxu0 %v3905_v25  ;;  %v3939_v25 = vld [vmem:[#allocation3 + $0x948] sm:$0xff]  ;;  %v3917_v27 = vld [vmem:[#allocation3 + $0x898] sm:$0xff] }
 0x8b5   :  { %v8325_v37 = vpop.f32.mrb[72].mxu1 }
 0x8b6   :  { %v8326_v60 = vpop.f32.mrb[73].mxu1 }
 0x8b7   :  { %4119 = vmatpush1.bf16.msra.mxu1 %v3927_v32  ;;  %8431 = vmatpush3.bf16.msra.mxu0 %v3881_v10  ;;  %v8327_v38 = vadd.f32 %v8326_v60, %v8325_v37  ;;  %v8328_v40 = vpop.f32.mrb[74].mxu1  ;;  %v3943_v32 = vld [vmem:[#allocation3 + $0x968] sm:$0xff]  ;;  %v3944_v10 = vld [vmem:[#allocation3 + $0x970] sm:$0xff] }
 0x8b8   :  { %4120 = vmatprep.subr.bf16.mxu1 %v3931_v36  ;;  %8450 = vmatprep.subr.bf16.mxu0 %v3932_v23  ;;  %v8329_v47 = vpop.f32.mrb[75].mxu1  ;;  %v3920_v36 = vld [vmem:[#allocation3 + $0x8b0] sm:$0xff]  ;;  %v3946_v23 = vld [vmem:[#allocation3 + $0x980] sm:$0xff]  ;;  %v3947_v37 = vld [vmem:[#allocation3 + $0x988] sm:$0xff] }
 0x8b9   :  { %v10487_v44 = vadd.f32 %v8327_v38, %v10460_v9  ;;  %v8330_v46 = vadd.f32 %v8329_v47, %v8328_v40  ;;  %v3923_v60 = vld [vmem:[#allocation3 + $0x8c8] sm:$0xff]  ;;  %v3949_v38 = vld [vmem:[#allocation3 + $0x998] sm:$0xff]  ;;  %v3950_v40 = vld [vmem:[#allocation3 + $0x9a0] sm:$0xff] }
 0x8ba   :  { %4320 = vmatmul.mubr.bf16.vlgmr.msra.gmra.mrb[76].mxu0 %v10369_v20 }
 0x8bb   :  { %4121 = vmatpush1.bf16.msra.mxu1 %v3930_v43  ;;  %8451 = vmatpush3.bf16.msra.mxu0 %v3908_v42  ;;  %v10491_v53 = vadd.f32 %v8330_v46, %v10462_v22  ;;  %v3926_v46 = vld [vmem:[#allocation3 + $0x8e0] sm:$0xff] }
 0x8bc   :  { %4122 = vmatprep.subr.bf16.mxu1 %v3934_v50  ;;  %8452 = vmatprep.subr.bf16.mxu0 %v3935_v57  ;;  %v3948_v57 = vld [vmem:[#allocation3 + $0x990] sm:$0xff] }
 0x8bd   :  { %4327 = vmatprep.mubr.bf16.mxu0 %v10371_v45  ;;  %v8331_v3 = vpop.f32.mrb[76].mxu1 }
 0x8be   :  { %v8332_v6 = vpop.f32.mrb[77].mxu1 }
 0x8bf   :  { %4123 = vmatpush1.bf16.msra.mxu1 %v3933_v61  ;;  %8453 = vmatpush3.bf16.msra.mxu0 %v3911_v54  ;;  %v8333_v9 = vadd.f32 %v8332_v6, %v8331_v3  ;;  %v8334_v7 = vpop.f32.mrb[78].mxu1  ;;  %v3952_v54 = vld [vmem:[#allocation3 + $0x9b0] sm:$0xff] }
 0x8c0   :  { %4124 = vmatprep.subr.bf16.mxu1 %v3937_v59  ;;  %8454 = vmatprep.subr.bf16.mxu0 %v3938_v2  ;;  %v8335_v22 = vpop.f32.mrb[79].mxu1  ;;  %v3953_v59 = vld [vmem:[#allocation3 + $0x9b8] sm:$0xff] }
 0x8c1   :  { %v10495_v16 = vadd.f32 %v8333_v9, %v10468_v34  ;;  %v8336_v17 = vadd.f32 %v8335_v22, %v8334_v7  ;;  %v3942_v34 = vld [vmem:[#allocation3 + $0x960] sm:$0xff]  ;;  %v3951_v9 = vld [vmem:[#allocation3 + $0x9a8] sm:$0xff]  ;;  %v3929_v7 = vld [vmem:[#allocation3 + $0x8f8] sm:$0xff] }
 0x8c2   :  { %4328 = vmatmul.mubr.bf16.gmra.mrb[80].mxu0 %v10377_v55 }
 0x8c3   :  { %4125 = vmatpush1.bf16.msra.mxu1 %v3936_v12  ;;  %8455 = vmatpush3.bf16.msra.mxu0 %v3914_v58  ;;  %v10499_v21 = vadd.f32 %v8336_v17, %v10470_v41  ;;  %v3945_v41 = vld [vmem:[#allocation3 + $0x978] sm:$0xff]  ;;  %v3955_v12 = vld [vmem:[#allocation3 + $0x9c8] sm:$0xff]  ;;  %v10510_v17 = vld [vmem:[#allocation8] sm:$0xff] }
 0x8c4   :  { %4126 = vmatprep.subr.bf16.mxu1 %v3940_v14  ;;  %8456 = vmatprep.subr.bf16.mxu0 %v3941_v15 }
 0x8c5   :  { %4335 = vmatprep.mubr.bf16.mxu0 %v10379_v5 }
 0x8c7   :  { %4127 = vmatpush1.bf16.msra.mxu1 %v3939_v25  ;;  %8457 = vmatpush3.bf16.msra.mxu0 %v3917_v27  ;;  %v3956_v25 = vld [vmem:[#allocation3 + $0x9d0] sm:$0xff]  ;;  %v3958_v27 = vld [vmem:[#allocation3 + $0x9e0] sm:$0xff] }
 0x8c8   :  { %4128 = vmatprep.subr.bf16.mxu1 %v3943_v32  ;;  %8458 = vmatprep.subr.bf16.mxu0 %v3944_v10 }
 0x8ca   :  { %4336 = vmatmul.mubr.bf16.gmra.mrb[84].mxu0 %v10385_v13 }
 0x8cb   :  { %4129 = vmatpush1.bf16.msra.mxu1 %v3942_v34  ;;  %8459 = vmatpush3.bf16.msra.mxu0 %v3920_v36  ;;  %v3957_v36 = vld [vmem:[#allocation3 + $0x9d8] sm:$0xff] }
 0x8cc   :  { %4130 = vmatprep.subr.bf16.mxu1 %v3946_v23  ;;  %8460 = vmatprep.subr.bf16.mxu0 %v3947_v37  ;;  %v3959_v23 = vld [vmem:[#allocation3 + $0x9e8] sm:$0xff]  ;;  %v3961_v37 = vld [vmem:[#allocation3 + $0x9f8] sm:$0xff] }
 0x8cd   :  { %4376 = vmatprep.mubr.bf16.mxu0 %v10387_v24  ;;  %v8353_v43 = vpop.f32.mrb[80].mxu1 }
 0x8ce   :  { %v8354_v42 = vpop.f32.mrb[81].mxu1 }
 0x8cf   :  { %4131 = vmatpush1.bf16.msra.mxu1 %v3945_v41  ;;  %8461 = vmatpush3.bf16.msra.mxu0 %v3923_v60  ;;  %v8355_v47 = vadd.f32 %v8354_v42, %v8353_v43  ;;  %v8356_v50 = vpop.f32.mrb[82].mxu1  ;;  %v3964_v42 = vld [vmem:[#allocation3 + $0xa10] sm:$0xff] }
 0x8d0   :  { %4132 = vmatprep.subr.bf16.mxu1 %v3949_v38  ;;  %8462 = vmatprep.subr.bf16.mxu0 %v3950_v40  ;;  %v8357_v61 = vpop.f32.mrb[83].mxu1  ;;  %v3962_v40 = vld [vmem:[#allocation3 + $0xa00] sm:$0xff] }
 0x8d1   :  { %v8358_v2 = vadd.f32 %v8357_v61, %v8356_v50  ;;  %v10505_v3 = vadd.f32 %v8355_v47, %v10481_v26  ;;  %v3954_v26 = vld [vmem:[#allocation3 + $0x9c0] sm:$0xff]  ;;  %v3965_v61 = vld [vmem:[#allocation3 + $0xa18] sm:$0xff] }
 0x8d3   :  { %4133 = vmatpush1.bf16.msra.mxu1 %v3948_v57  ;;  %8463 = vmatpush3.bf16.msra.mxu0 %v3926_v46  ;;  %v10508_v6 = vadd.f32 %v8358_v2, %v10484_v31  ;;  %v3963_v46 = vld [vmem:[#allocation3 + $0xa08] sm:$0xff]  ;;  %v3970_v2 = vld [vmem:[#allocation3 + $0xa40] sm:$0xff] }
 0x8d4   :  { %4134 = vmatprep.subr.bf16.mxu1 %v3952_v54  ;;  %8464 = vmatprep.subr.bf16.mxu0 %v3953_v59  ;;  %v3967_v54 = vld [vmem:[#allocation3 + $0xa28] sm:$0xff]  ;;  %v3968_v59 = vld [vmem:[#allocation3 + $0xa30] sm:$0xff] }
 0x8d5   :  { %v8359_v58 = vpop.f32.mrb[84].mxu1 }
 0x8d6   :  { %v8360_v22 = vpop.f32.mrb[85].mxu1 }
 0x8d7   :  { %4135 = vmatpush1.bf16.msra.mxu1 %v3951_v9  ;;  %8465 = vmatpush3.bf16.msra.mxu0 %v3929_v7  ;;  %v8361_v14 = vadd.f32 %v8360_v22, %v8359_v58  ;;  %v8362_v15 = vpop.f32.mrb[86].mxu1  ;;  %v3971_v9 = vld [vmem:[#allocation3 + $0xa48] sm:$0xff] }
 0x8d8   :  { %4167 = vmatprep.subr.bf16.mxu1 %v3955_v12  ;;  %8855 = vmatprep.subr.bf16.mxu0 %v10510_v17  ;;  %v8363_v31 = vpop.f32.mrb[87].mxu1  ;;  %v3973_v12 = vld [vmem:[#allocation3 + $0xa58] sm:$0xff] }
 0x8d9   :  { %v8364_v32 = vadd.f32 %v8363_v31, %v8362_v15  ;;  %v10514_v10 = vadd.f32 %v8361_v14, %v10487_v44 }
 0x8da   :  { %4377 = vmatmul.mubr.bf16.vlgmr.msra.gmra.mrb[88].mxu0 %v10393_v39  ;;  %4137 = vmatmul.mubr.bf16.vlgmr.msra.gmra.mrb[104].mxu1 %v10393_v39 }
 0x8db   :  { %4168 = vmatpush1.bf16.msra.mxu1 %v3954_v26  ;;  %8856 = vmatpush3.bf16.msra.mxu0 %v3956_v25  ;;  %v10519_v34 = vadd.f32 %v8364_v32, %v10491_v53  ;;  %v3960_v53 = vld [vmem:[#allocation3 + $0x9f0] sm:$0xff]  ;;  %v3974_v25 = vld [vmem:[#allocation3 + $0xa60] sm:$0xff]  ;;  %v3977_v32 = vld [vmem:[#allocation3 + $0xa78] sm:$0xff] }
 0x8dc   :  { %4169 = vmatprep.subr.bf16.mxu1 %v3958_v27  ;;  %8857 = vmatprep.subr.bf16.mxu0 %v10510_v17  ;;  %v3972_v26 = vld [vmem:[#allocation3 + $0xa50] sm:$0xff] }
 0x8dd   :  { %4384 = vmatprep.mubr.bf16.mxu0 %v10396_v49  ;;  %4146 = vmatprep.mubr.bf16.mxu1 %v10396_v49  ;;  %v8365_v44 = vpop.f32.mrb[88].mxu1  ;;  %v3976_v27 = vld [vmem:[#allocation3 + $0xa70] sm:$0xff] }
 0x8de   :  { %v8366_v41 = vpop.f32.mrb[89].mxu1 }
 0x8df   :  { %4170 = vmatpush1.bf16.msra.mxu1 %v3957_v36  ;;  %8858 = vmatpush3.bf16.msra.mxu0 %v3959_v23  ;;  %v8367_v60 = vadd.f32 %v8366_v41, %v8365_v44  ;;  %v8368_v38 = vpop.f32.mrb[90].mxu1  ;;  %v4545_v36 = vld [vmem:[#allocation3 + $0xa88] sm:$0xff]  ;;  %v4570_v23 = vld [vmem:[#allocation3 + $0xb50] sm:$0xff] }
 0x8e0   :  { %4171 = vmatprep.subr.bf16.mxu1 %v3961_v37  ;;  %8859 = vmatprep.subr.bf16.mxu0 %v10510_v17  ;;  %v8369_v43 = vpop.f32.mrb[91].mxu1 }
 0x8e1   :  { %v8370_v47 = vadd.f32 %v8369_v43, %v8368_v38  ;;  %v10526_v50 = vadd.f32 %v8367_v60, %v10495_v16  ;;  %v3966_v16 = vld [vmem:[#allocation3 + $0xa20] sm:$0xff]  ;;  %v4546_v38 = vld [vmem:[#allocation3 + $0xa90] sm:$0xff] }
 0x8e2   :  { %4385 = vmatmul.mubr.bf16.gmra.mrb[92].mxu0 %v10401_v52  ;;  %4147 = vmatmul.mubr.bf16.gmra.mrb[108].mxu1 %v10401_v52  ;;  %v4544_v60 = vld [vmem:[#allocation3 + $0xa80] sm:$0xff] }
 0x8e3   :  { %4172 = vmatpush1.bf16.msra.mxu1 %v3960_v53  ;;  %8860 = vmatpush3.bf16.msra.mxu0 %v3962_v40  ;;  %v10531_v57 = vadd.f32 %v8370_v47, %v10499_v21  ;;  %v3969_v21 = vld [vmem:[#allocation3 + $0xa38] sm:$0xff]  ;;  %v4548_v43 = vld [vmem:[#allocation3 + $0xaa0] sm:$0xff]  ;;  %v4549_v47 = vld [vmem:[#allocation3 + $0xaa8] sm:$0xff] }
 0x8e4   :  { %4173 = vmatprep.subr.bf16.mxu1 %v3964_v42  ;;  %8861 = vmatprep.subr.bf16.mxu0 %v10510_v17  ;;  %v4573_v42 = vld [vmem:[#allocation3 + $0xb68] sm:$0xff] }
 0x8e5   :  { %4392 = vmatprep.mubr.bf16.mxu0 %v10404_v30  ;;  %4156 = vmatprep.mubr.bf16.mxu1 %v10404_v30 }
 0x8e7   :  { %4174 = vmatpush1.bf16.msra.mxu1 %v3963_v46  ;;  %8862 = vmatpush3.bf16.msra.mxu0 %v3965_v61  ;;  %v4576_v46 = vld [vmem:[#allocation3 + $0xb80] sm:$0xff] }
 0x8e8   :  { %4175 = vmatprep.subr.bf16.mxu1 %v3967_v54  ;;  %8863 = vmatprep.subr.bf16.mxu0 %v10510_v17 }
 0x8ea   :  { %4393 = vmatmul.mubr.bf16.gmra.mrb[96].mxu0 %v10409_v11  ;;  %4157 = vmatmul.mubr.bf16.gmra.mrb[112].mxu1 %v10409_v11 }
 0x8eb   :  { %4176 = vmatpush1.bf16.msra.mxu1 %v3966_v16  ;;  %8864 = vmatpush3.bf16.msra.mxu0 %v3968_v59 }
 0x8ec   :  { %4177 = vmatprep.subr.bf16.mxu1 %v3970_v2  ;;  %8865 = vmatprep.subr.bf16.mxu0 %v10510_v17  ;;  %v4550_v2 = vld [vmem:[#allocation3 + $0xab0] sm:$0xff] }
 0x8ed   :  { %v3768_v7 = vpop.f32.mrb[92].mxu1  ;;  %4199 = vmatprep.mubr.bf16.mxu1 %v9749_v19  ;;  %8871 = vmatprep.mubr.msk.bf16.mxu0 %vm9730_vm0, %v10510_v17 }
 0x8ee   :  { %v10544_v58 = vadd.f32 %v3768_v7, %v10505_v3  ;;  %v8845_v22 = vpop.f32.mrb[93].mxu1  ;;  %v3975_v3 = vld [vmem:[#allocation3 + $0xa68] sm:$0xff] }
 0x8ef   :  { %4178 = vmatpush1.bf16.msra.mxu1 %v3969_v21  ;;  %8866 = vmatpush3.bf16.msra.mxu0 %v3971_v9  ;;  %v3771_v14 = vpop.f32.mrb[94].mxu1  ;;  %v4552_v21 = vld [vmem:[#allocation3 + $0xac0] sm:$0xff]  ;;  %v4579_v22 = vld [vmem:[#allocation3 + $0xb98] sm:$0xff] }
 0x8f0   :  { %4179 = vmatprep.subr.bf16.mxu1 %v3973_v12  ;;  %8867 = vmatprep.subr.bf16.mxu0 %v10510_v17  ;;  %v10548_v15 = vadd.f32 %v3771_v14, %v10508_v6  ;;  %v8846_v31 = vpop.f32.mrb[95].mxu1  ;;  %v4554_v12 = vld [vmem:[#allocation3 + $0xad0] sm:$0xff]  ;;  %v4555_v14 = vld [vmem:[#allocation3 + $0xad8] sm:$0xff] }
 0x8f1   :  { %v4558_v31 = vld [vmem:[#allocation3 + $0xaf0] sm:$0xff] }
 0x8f3   :  { %4180 = vmatpush1.bf16.msra.mxu1 %v3972_v26  ;;  %8868 = vmatpush3.bf16.msra.mxu0 %v3974_v25  ;;  %v4582_v26 = vld [vmem:[#allocation3 + $0xbb0] sm:$0xff]  ;;  %v4556_v25 = vld [vmem:[#allocation3 + $0xae0] sm:$0xff] }
 0x8f4   :  { %4181 = vmatprep.subr.bf16.mxu1 %v3976_v27  ;;  %8869 = vmatprep.subr.bf16.mxu0 %v10510_v17  ;;  %v4560_v27 = vld [vmem:[#allocation3 + $0xb00] sm:$0xff] }
 0x8f5   :  { %v3776_v37 = vpop.f32.mrb[96].mxu1 }
 0x8f6   :  { %v10552_v44 = vadd.f32 %v3776_v37, %v10514_v10  ;;  %v8849_v41 = vpop.f32.mrb[97].mxu1  ;;  %v4547_v10 = vld [vmem:[#allocation3 + $0xa98] sm:$0xff]  ;;  %v4588_v37 = vld [vmem:[#allocation3 + $0xbe0] sm:$0xff] }
 0x8f7   :  { %4182 = vmatpush1.bf16.msra.mxu1 %v3975_v3  ;;  %8870 = vmatpush3.bf16.msra.mxu0 %v3977_v32  ;;  %v3779_v6 = vpop.f32.mrb[98].mxu1  ;;  %v4585_v3 = vld [vmem:[#allocation3 + $0xbc8] sm:$0xff]  ;;  %v4559_v32 = vld [vmem:[#allocation3 + $0xaf8] sm:$0xff]  ;;  %v4562_v41 = vld [vmem:[#allocation3 + $0xb10] sm:$0xff] }
 0x8f8   :  { %4712 = vmatprep.subr.bf16.mxu0 %v4545_v36  ;;  %8495 = vmatprep.subr.bf16.mxu1 %v4570_v23  ;;  %v10555_v53 = vadd.f32 %v3779_v6, %v10519_v34  ;;  %v8850_v40 = vpop.f32.mrb[99].mxu1  ;;  %v4551_v34 = vld [vmem:[#allocation3 + $0xab8] sm:$0xff]  ;;  %v4561_v36 = vld [vmem:[#allocation3 + $0xb08] sm:$0xff]  ;;  %v4564_v6 = vld [vmem:[#allocation3 + $0xb20] sm:$0xff] }
 0x8f9   :  { %v4563_v23 = vld [vmem:[#allocation3 + $0xb18] sm:$0xff]  ;;  %v4565_v40 = vld [vmem:[#allocation3 + $0xb28] sm:$0xff] }
 0x8fa   :  { %4200 = vmatmul.mubr.bf16.vlgmr.msra.gmra.mrb[104].mxu1 %v10418_v33  ;;  %8872 = vmatmul.mubr.bf16.vlgmr.msra.gmra.mrb[100].mxu0 %v10418_v33 }
 0x8fb   :  { %4713 = vmatpush1.bf16.msra.mxu0 %v4544_v60  ;;  %8496 = vmatpush3.bf16.msra.mxu1 %v4546_v38  ;;  %v4566_v60 = vld [vmem:[#allocation3 + $0xb30] sm:$0xff]  ;;  %v4591_v38 = vld [vmem:[#allocation3 + $0xbf8] sm:$0xff] }
 0x8fc   :  { %4714 = vmatprep.subr.bf16.mxu0 %v4548_v43  ;;  %8497 = vmatprep.subr.bf16.mxu1 %v4573_v42  ;;  %v4567_v43 = vld [vmem:[#allocation3 + $0xb38] sm:$0xff]  ;;  %v4569_v42 = vld [vmem:[#allocation3 + $0xb48] sm:$0xff] }
 0x8fd   :  { %4209 = vmatprep.mubr.bf16.mxu1 %v9749_v19  ;;  %8875 = vmatprep.mubr.msk.bf16.mxu0 %vm9730_vm0, %v10510_v17  ;;  %v3784_v61 = vpop.f32.mrb[100].mxu1 }
 0x8fe   :  { %v10563_v54 = vadd.f32 %v3784_v61, %v10526_v50  ;;  %v8853_v16 = vpop.f32.mrb[101].mxu1  ;;  %v4553_v50 = vld [vmem:[#allocation3 + $0xac8] sm:$0xff]  ;;  %v4571_v61 = vld [vmem:[#allocation3 + $0xb58] sm:$0xff] }
 0x8ff   :  { %4715 = vmatpush1.bf16.msra.mxu0 %v4547_v10  ;;  %8498 = vmatpush3.bf16.msra.mxu1 %v4549_v47  ;;  %v3787_v59 = vpop.f32.mrb[102].mxu1  ;;  %v4618_v10 = vld [vmem:[#allocation3 + $0xcd0] sm:$0xff]  ;;  %v4597_v16 = vld [vmem:[#allocation3 + $0xc28] sm:$0xff] }
 0x900   :  { %4716 = vmatprep.subr.bf16.mxu0 %v4551_v34  ;;  %8499 = vmatprep.subr.bf16.mxu1 %v4576_v46  ;;  %v10566_v9 = vadd.f32 %v3787_v59, %v10531_v57  ;;  %v8854_v7 = vpop.f32.mrb[103].mxu1  ;;  %v4557_v57 = vld [vmem:[#allocation3 + $0xae8] sm:$0xff]  ;;  %v4594_v47 = vld [vmem:[#allocation3 + $0xc10] sm:$0xff]  ;;  %v4572_v34 = vld [vmem:[#allocation3 + $0xb60] sm:$0xff] }
 0x901   :  { %v4621_v46 = vld [vmem:[#allocation3 + $0xce8] sm:$0xff]  ;;  %v4575_v59 = vld [vmem:[#allocation3 + $0xb78] sm:$0xff]  ;;  %v4600_v7 = vld [vmem:[#allocation3 + $0xc40] sm:$0xff] }
 0x902   :  { %4210 = vmatmul.mubr.bf16.gmra.mrb[108].mxu1 %v10425_v48  ;;  %8876 = vmatmul.mubr.bf16.gmra.mrb[104].mxu0 %v10425_v48 }
 0x903   :  { %4717 = vmatpush1.bf16.msra.mxu0 %v4550_v2  ;;  %8500 = vmatpush3.bf16.msra.mxu1 %v4552_v21  ;;  %v4624_v2 = vld [vmem:[#allocation3 + $0xd00] sm:$0xff]  ;;  %v4574_v21 = vld [vmem:[#allocation3 + $0xb70] sm:$0xff] }
 0x904   :  { %4718 = vmatprep.subr.bf16.mxu0 %v4554_v12  ;;  %8501 = vmatprep.subr.bf16.mxu1 %v4579_v22  ;;  %v4578_v12 = vld [vmem:[#allocation3 + $0xb90] sm:$0xff]  ;;  %v4627_v22 = vld [vmem:[#allocation3 + $0xd18] sm:$0xff] }
 0x905   :  { %4219 = vmatprep.mubr.bf16.mxu1 %v9749_v19  ;;  %8879 = vmatprep.mubr.msk.bf16.mxu0 %vm9730_vm0, %v10510_v17 }
 0x907   :  { %4719 = vmatpush1.bf16.msra.mxu0 %v4553_v50  ;;  %8502 = vmatpush3.bf16.msra.mxu1 %v4555_v14  ;;  %v4577_v50 = vld [vmem:[#allocation3 + $0xb88] sm:$0xff]  ;;  %v4603_v14 = vld [vmem:[#allocation3 + $0xc58] sm:$0xff] }
 0x908   :  { %4720 = vmatprep.subr.bf16.mxu0 %v4557_v57  ;;  %8503 = vmatprep.subr.bf16.mxu1 %v4582_v26  ;;  %v4581_v57 = vld [vmem:[#allocation3 + $0xba8] sm:$0xff]  ;;  %v4630_v26 = vld [vmem:[#allocation3 + $0xd30] sm:$0xff] }
 0x90a   :  { %4220 = vmatmul.mubr.bf16.gmra.mrb[112].mxu1 %v10432_v63  ;;  %8880 = vmatmul.mubr.bf16.gmra.mrb[108].mxu0 %v10432_v63 }
 0x90b   :  { %4721 = vmatpush1.bf16.msra.mxu0 %v4556_v25  ;;  %8504 = vmatpush3.bf16.msra.mxu1 %v4558_v31  ;;  %v4580_v25 = vld [vmem:[#allocation3 + $0xba0] sm:$0xff]  ;;  %v4606_v31 = vld [vmem:[#allocation3 + $0xc70] sm:$0xff] }
 0x90c   :  { %4722 = vmatprep.subr.bf16.mxu0 %v4560_v27  ;;  %8505 = vmatprep.subr.bf16.mxu1 %v4585_v3  ;;  %v4584_v27 = vld [vmem:[#allocation3 + $0xbc0] sm:$0xff]  ;;  %v4633_v3 = vld [vmem:[#allocation3 + $0xd48] sm:$0xff] }
 0x90d   :  { %4980 = vmatprep.mubr.bf16.mxu1 %v10347_v35  ;;  %4744 = vmatprep.mubr.bf16.mxu0 %v10347_v35  ;;  %v4568_v35 = vld [vmem:[#allocation3 + $0xb40] sm:$0xff] }
 0x90f   :  { %4723 = vmatpush1.bf16.msra.mxu0 %v4559_v32  ;;  %8506 = vmatpush3.bf16.msra.mxu1 %v4561_v36  ;;  %v4583_v32 = vld [vmem:[#allocation3 + $0xbb8] sm:$0xff]  ;;  %v4609_v36 = vld [vmem:[#allocation3 + $0xc88] sm:$0xff] }
 0x910   :  { %4724 = vmatprep.subr.bf16.mxu0 %v4563_v23  ;;  %8507 = vmatprep.subr.bf16.mxu1 %v4588_v37  ;;  %v4587_v23 = vld [vmem:[#allocation3 + $0xbd8] sm:$0xff]  ;;  %v4636_v37 = vld [vmem:[#allocation3 + $0xd60] sm:$0xff] }
 0x913   :  { %4725 = vmatpush1.bf16.msra.mxu0 %v4562_v41  ;;  %8508 = vmatpush3.bf16.msra.mxu1 %v4564_v6  ;;  %v4586_v41 = vld [vmem:[#allocation3 + $0xbd0] sm:$0xff]  ;;  %v4612_v6 = vld [vmem:[#allocation3 + $0xca0] sm:$0xff] }
 0x914   :  { %4726 = vmatprep.subr.bf16.mxu0 %v4566_v60  ;;  %8509 = vmatprep.subr.bf16.mxu1 %v4591_v38  ;;  %v4590_v60 = vld [vmem:[#allocation3 + $0xbf0] sm:$0xff]  ;;  %v4639_v38 = vld [vmem:[#allocation3 + $0xd78] sm:$0xff] }
 0x917   :  { %4727 = vmatpush1.bf16.msra.mxu0 %v4565_v40  ;;  %8510 = vmatpush3.bf16.msra.mxu1 %v4567_v43  ;;  %v4589_v40 = vld [vmem:[#allocation3 + $0xbe8] sm:$0xff]  ;;  %v4615_v43 = vld [vmem:[#allocation3 + $0xcb8] sm:$0xff] }
 0x918   :  { %4728 = vmatprep.subr.bf16.mxu0 %v4569_v42  ;;  %8529 = vmatprep.subr.bf16.mxu1 %v4618_v10  ;;  %v4593_v42 = vld [vmem:[#allocation3 + $0xc08] sm:$0xff]  ;;  %v4666_v10 = vld [vmem:[#allocation3 + $0xe50] sm:$0xff] }
 0x91a   :  { %4981 = vmatmul.mubr.bf16.vlgmr.msra.gmra.mrb[116].mxu1 %v10351_v51 }
 0x91b   :  { %4729 = vmatpush1.bf16.msra.mxu0 %v4568_v35  ;;  %8530 = vmatpush3.bf16.msra.mxu1 %v4594_v47  ;;  %v4592_v35 = vld [vmem:[#allocation3 + $0xc00] sm:$0xff]  ;;  %v4642_v47 = vld [vmem:[#allocation3 + $0xd90] sm:$0xff] }
 0x91c   :  { %4730 = vmatprep.subr.bf16.mxu0 %v4572_v34  ;;  %8531 = vmatprep.subr.bf16.mxu1 %v4621_v46  ;;  %v4596_v34 = vld [vmem:[#allocation3 + $0xc20] sm:$0xff]  ;;  %v4669_v46 = vld [vmem:[#allocation3 + $0xe68] sm:$0xff] }
 0x91d   :  { %4987 = vmatprep.mubr.bf16.mxu1 %v10353_v56 }
 0x91f   :  { %4731 = vmatpush1.bf16.msra.mxu0 %v4571_v61  ;;  %8532 = vmatpush3.bf16.msra.mxu1 %v4597_v16  ;;  %v4595_v61 = vld [vmem:[#allocation3 + $0xc18] sm:$0xff]  ;;  %v4645_v16 = vld [vmem:[#allocation3 + $0xda8] sm:$0xff] }
 0x920   :  { %4732 = vmatprep.subr.bf16.mxu0 %v4575_v59  ;;  %8533 = vmatprep.subr.bf16.mxu1 %v4624_v2  ;;  %v4599_v59 = vld [vmem:[#allocation3 + $0xc38] sm:$0xff]  ;;  %v4672_v2 = vld [vmem:[#allocation3 + $0xe80] sm:$0xff] }
 0x922   :  { %4988 = vmatmul.mubr.bf16.gmra.mrb[120].mxu1 %v10357_v4 }
 0x923   :  { %4733 = vmatpush1.bf16.msra.mxu0 %v4574_v21  ;;  %8534 = vmatpush3.bf16.msra.mxu1 %v4600_v7  ;;  %v4598_v21 = vld [vmem:[#allocation3 + $0xc30] sm:$0xff] }
 0x924   :  { %4734 = vmatprep.subr.bf16.mxu0 %v4578_v12  ;;  %8535 = vmatprep.subr.bf16.mxu1 %v4627_v22  ;;  %v4602_v7 = vld [vmem:[#allocation3 + $0xc50] sm:$0xff]  ;;  %v4675_v12 = vld [vmem:[#allocation3 + $0xe98] sm:$0xff]  ;;  %v4601_v22 = vld [vmem:[#allocation3 + $0xc48] sm:$0xff] }
 0x925   :  { %4994 = vmatprep.mubr.bf16.mxu1 %v10359_v28 }
 0x927   :  { %4735 = vmatpush1.bf16.msra.mxu0 %v4577_v50  ;;  %8536 = vmatpush3.bf16.msra.mxu1 %v4603_v14  ;;  %v4651_v50 = vld [vmem:[#allocation3 + $0xdd8] sm:$0xff]  ;;  %v4605_v14 = vld [vmem:[#allocation3 + $0xc68] sm:$0xff] }
 0x928   :  { %4736 = vmatprep.subr.bf16.mxu0 %v4581_v57  ;;  %8537 = vmatprep.subr.bf16.mxu1 %v4630_v26  ;;  %v4604_v57 = vld [vmem:[#allocation3 + $0xc60] sm:$0xff]  ;;  %v4654_v26 = vld [vmem:[#allocation3 + $0xdf0] sm:$0xff] }
 0x92a   :  { %4995 = vmatmul.mubr.bf16.gmra.mrb[124].mxu1 %v10363_v18 }
 0x92b   :  { %4737 = vmatpush1.bf16.msra.mxu0 %v4580_v25  ;;  %8538 = vmatpush3.bf16.msra.mxu1 %v4606_v31  ;;  %v4608_v25 = vld [vmem:[#allocation3 + $0xc80] sm:$0xff]  ;;  %v4607_v31 = vld [vmem:[#allocation3 + $0xc78] sm:$0xff] }
 0x92c   :  { %4738 = vmatprep.subr.bf16.mxu0 %v4584_v27  ;;  %8539 = vmatprep.subr.bf16.mxu1 %v4633_v3  ;;  %v4657_v27 = vld [vmem:[#allocation3 + $0xe08] sm:$0xff] }
 0x92d   :  { %5035 = vmatprep.mubr.bf16.mxu1 %v10365_v29 }
 0x92f   :  { %4739 = vmatpush1.bf16.msra.mxu0 %v4583_v32  ;;  %8540 = vmatpush3.bf16.msra.mxu1 %v4609_v36  ;;  %v4684_v32 = vld [vmem:[#allocation3 + $0xee0] sm:$0xff] }
 0x930   :  { %4740 = vmatprep.subr.bf16.mxu0 %v4587_v23  ;;  %8541 = vmatprep.subr.bf16.mxu1 %v4636_v37  ;;  %v4610_v37 = vld [vmem:[#allocation3 + $0xc90] sm:$0xff] }
 0x933   :  { %4741 = vmatpush1.bf16.msra.mxu0 %v4586_v41  ;;  %8542 = vmatpush3.bf16.msra.mxu1 %v4612_v6  ;;  %v4660_v41 = vld [vmem:[#allocation3 + $0xe20] sm:$0xff]  ;;  %v4614_v6 = vld [vmem:[#allocation3 + $0xcb0] sm:$0xff] }
 0x934   :  { %4742 = vmatprep.subr.bf16.mxu0 %v4590_v60  ;;  %8543 = vmatprep.subr.bf16.mxu1 %v4639_v38  ;;  %v4687_v60 = vld [vmem:[#allocation3 + $0xef8] sm:$0xff]  ;;  %v4613_v38 = vld [vmem:[#allocation3 + $0xca8] sm:$0xff] }
 0x937   :  { %4743 = vmatpush1.bf16.msra.mxu0 %v4589_v40  ;;  %8544 = vmatpush3.bf16.msra.mxu1 %v4615_v43  ;;  %v4617_v43 = vld [vmem:[#allocation3 + $0xcc8] sm:$0xff] }
 0x938   :  { %4771 = vmatprep.subr.bf16.mxu0 %v4593_v42  ;;  %8563 = vmatprep.subr.bf16.mxu1 %v4666_v10 }
 0x93a   :  { %4745 = vmatmul.mubr.bf16.vlgmr.msra.gmra.mrb[112].mxu0 %v10351_v51  ;;  %5036 = vmatmul.mubr.bf16.vlgmr.msra.gmra.mrb[128].mxu1 %v10369_v20  ;;  %v4648_v51 = vld [vmem:[#allocation3 + $0xdc0] sm:$0xff] }
 0x93b   :  { %4772 = vmatpush1.bf16.msra.mxu0 %v4592_v35  ;;  %8564 = vmatpush3.bf16.msra.mxu1 %v4642_v47  ;;  %v4616_v47 = vld [vmem:[#allocation3 + $0xcc0] sm:$0xff] }
 0x93c   :  { %4773 = vmatprep.subr.bf16.mxu0 %v4596_v34  ;;  %8565 = vmatprep.subr.bf16.mxu1 %v4669_v46  ;;  %v4690_v34 = vld [vmem:[#allocation3 + $0xf10] sm:$0xff]  ;;  %v4620_v46 = vld [vmem:[#allocation3 + $0xce0] sm:$0xff] }
 0x93d   :  { %5042 = vmatprep.mubr.bf16.mxu1 %v10371_v45  ;;  %4752 = vmatprep.mubr.bf16.mxu0 %v10353_v56  ;;  %v4678_v56 = vld [vmem:[#allocation3 + $0xeb0] sm:$0xff] }
 0x93f   :  { %4774 = vmatpush1.bf16.msra.mxu0 %v4595_v61  ;;  %8566 = vmatpush3.bf16.msra.mxu1 %v4645_v16  ;;  %v4619_v61 = vld [vmem:[#allocation3 + $0xcd8] sm:$0xff]  ;;  %v4693_v16 = vld [vmem:[#allocation3 + $0xf28] sm:$0xff] }
 0x940   :  { %4775 = vmatprep.subr.bf16.mxu0 %v4599_v59  ;;  %8567 = vmatprep.subr.bf16.mxu1 %v4672_v2  ;;  %v4623_v2 = vld [vmem:[#allocation3 + $0xcf8] sm:$0xff] }
 0x942   :  { %5043 = vmatmul.mubr.bf16.gmra.mrb[132].mxu1 %v10377_v55  ;;  %4753 = vmatmul.mubr.bf16.gmra.mrb[116].mxu0 %v10357_v4  ;;  %v4681_v4 = vld [vmem:[#allocation3 + $0xec8] sm:$0xff] }
 0x943   :  { %4776 = vmatpush1.bf16.msra.mxu0 %v4598_v21  ;;  %8568 = vmatpush3.bf16.msra.mxu1 %v4648_v51 }
 0x944   :  { %4777 = vmatprep.subr.bf16.mxu0 %v4602_v7  ;;  %8569 = vmatprep.subr.bf16.mxu1 %v4675_v12  ;;  %v4622_v12 = vld [vmem:[#allocation3 + $0xcf0] sm:$0xff] }
 0x945   :  { %5049 = vmatprep.mubr.bf16.mxu1 %v10379_v5  ;;  %4760 = vmatprep.mubr.bf16.mxu0 %v10359_v28  ;;  %v4611_v28 = vld [vmem:[#allocation3 + $0xc98] sm:$0xff] }
 0x947   :  { %4778 = vmatpush1.bf16.msra.mxu0 %v4601_v22  ;;  %8570 = vmatpush3.bf16.msra.mxu1 %v4651_v50  ;;  %v4696_v22 = vld [vmem:[#allocation3 + $0xf40] sm:$0xff]  ;;  %v4626_v50 = vld [vmem:[#allocation3 + $0xd10] sm:$0xff] }
 0x948   :  { %4779 = vmatprep.subr.bf16.mxu0 %v4605_v14  ;;  %8571 = vmatprep.subr.bf16.mxu1 %v4678_v56  ;;  %v4625_v14 = vld [vmem:[#allocation3 + $0xd08] sm:$0xff]  ;;  %v4699_v56 = vld [vmem:[#allocation3 + $0xf58] sm:$0xff] }
 0x94a   :  { %5050 = vmatmul.mubr.bf16.gmra.mrb[136].mxu1 %v10385_v13  ;;  %4761 = vmatmul.mubr.bf16.gmra.mrb[120].mxu0 %v10363_v18 }
 0x94b   :  { %4780 = vmatpush1.bf16.msra.mxu0 %v4604_v57  ;;  %8572 = vmatpush3.bf16.msra.mxu1 %v4654_v26  ;;  %v4629_v57 = vld [vmem:[#allocation3 + $0xd28] sm:$0xff]  ;;  %v4628_v26 = vld [vmem:[#allocation3 + $0xd20] sm:$0xff] }
 0x94c   :  { %4781 = vmatprep.subr.bf16.mxu0 %v4608_v25  ;;  %8573 = vmatprep.subr.bf16.mxu1 %v4681_v4  ;;  %v4702_v25 = vld [vmem:[#allocation3 + $0xf70] sm:$0xff]  ;;  %v4632_v4 = vld [vmem:[#allocation3 + $0xd40] sm:$0xff] }
 0x94d   :  { %v10593_v3 = vpop.f32.mrb[52].mxu0  ;;  %5090 = vmatprep.mubr.bf16.mxu1 %v10387_v24  ;;  %4803 = vmatprep.mubr.bf16.mxu0 %v10365_v29  ;;  %v4663_v29 = vld [vmem:[#allocation3 + $0xe38] sm:$0xff] }
 0x94e   :  { %v10597_v36 = vpop.f32.mrb[53].mxu0 }
 0x94f   :  { %v10599_v23 = vpop.f32.mrb[54].mxu0  ;;  %4782 = vmatpush1.bf16.msra.mxu0 %v4607_v31  ;;  %8574 = vmatpush3.bf16.msra.mxu1 %v4657_v27  ;;  %v4631_v31 = vld [vmem:[#allocation3 + $0xd38] sm:$0xff]  ;;  %v4705_v27 = vld [vmem:[#allocation3 + $0xf88] sm:$0xff] }
 0x950   :  { %v10601_v18 = vpop.f32.mrb[55].mxu0  ;;  %4783 = vmatprep.subr.bf16.mxu0 %v4611_v28  ;;  %8575 = vmatprep.subr.bf16.mxu1 %v4684_v32  ;;  %v4635_v32 = vld [vmem:[#allocation3 + $0xd58] sm:$0xff] }
 0x953   :  { %4784 = vmatpush1.bf16.msra.mxu0 %v4610_v37  ;;  %8576 = vmatpush3.bf16.msra.mxu1 %v4660_v41 }
 0x954   :  { %4785 = vmatprep.subr.bf16.mxu0 %v4614_v6  ;;  %8577 = vmatprep.subr.bf16.mxu1 %v4687_v60 }
 0x955   :  { %v10603_v40 = vpop.f32.mrb[56].mxu0 }
 0x956   :  { %v10605_v42 = vpop.f32.mrb[57].mxu0 }
 0x957   :  { %v10607_v10 = vpop.f32.mrb[58].mxu0  ;;  %4786 = vmatpush1.bf16.msra.mxu0 %v4613_v38  ;;  %8578 = vmatpush3.bf16.msra.mxu1 %v4663_v29  ;;  %v4634_v38 = vld [vmem:[#allocation3 + $0xd50] sm:$0xff]  ;;  %v4708_v29 = vld [vmem:[#allocation3 + $0xfa0] sm:$0xff] }
 0x958   :  { %v10609_v35 = vpop.f32.mrb[59].mxu0  ;;  %4787 = vmatprep.subr.bf16.mxu0 %v4617_v43  ;;  %8883 = vmatprep.subr.bf16.mxu1 %v10510_v17 }
 0x95a   :  { %5091 = vmatmul.mubr.bf16.vlgmr.msra.gmra.mrb[140].mxu1 %v10393_v39 }
 0x95b   :  { %4788 = vmatpush1.bf16.msra.mxu0 %v4616_v47  ;;  %8884 = vmatpush3.bf16.msra.mxu1 %v4690_v34  ;;  %v4638_v47 = vld [vmem:[#allocation3 + $0xd70] sm:$0xff]  ;;  %v4637_v34 = vld [vmem:[#allocation3 + $0xd68] sm:$0xff] }
 0x95c   :  { %4789 = vmatprep.subr.bf16.mxu0 %v4620_v46  ;;  %8885 = vmatprep.subr.bf16.mxu1 %v10510_v17  ;;  %v4711_v46 = vld [vmem:[#allocation3 + $0xfb8] sm:$0xff] }
 0x95d   :  { %v10614_v59 = vpop.f32.mrb[60].mxu0  ;;  %5097 = vmatprep.mubr.bf16.mxu1 %v10396_v49 }
 0x95e   :  { %v10617_v21 = vpop.f32.mrb[61].mxu0 }
 0x95f   :  { %v10619_v51 = vpop.f32.mrb[62].mxu0  ;;  %4790 = vmatpush1.bf16.msra.mxu0 %v4619_v61  ;;  %8886 = vmatpush3.bf16.msra.mxu1 %v4693_v16  ;;  %v4641_v61 = vld [vmem:[#allocation3 + $0xd88] sm:$0xff] }
 0x960   :  { %v10621_v7 = vpop.f32.mrb[63].mxu0  ;;  %4791 = vmatprep.subr.bf16.mxu0 %v4623_v2  ;;  %8887 = vmatprep.subr.bf16.mxu1 %v10510_v17 }
 0x962   :  { %5098 = vmatmul.mubr.bf16.gmra.mrb[144].mxu1 %v10401_v52 }
 0x963   :  { %4792 = vmatpush1.bf16.msra.mxu0 %v4622_v12  ;;  %8888 = vmatpush3.bf16.msra.mxu1 %v4696_v22 }
 0x964   :  { %4793 = vmatprep.subr.bf16.mxu0 %v4626_v50  ;;  %8889 = vmatprep.subr.bf16.mxu1 %v10510_v17  ;;  %v4640_v50 = vld [vmem:[#allocation3 + $0xd80] sm:$0xff] }
 0x965   :  { %5104 = vmatprep.mubr.bf16.mxu1 %v10404_v30 }
 0x967   :  { %4794 = vmatpush1.bf16.msra.mxu0 %v4625_v14  ;;  %8890 = vmatpush3.bf16.msra.mxu1 %v4699_v56 }
 0x968   :  { %4795 = vmatprep.subr.bf16.mxu0 %v4629_v57  ;;  %8891 = vmatprep.subr.bf16.mxu1 %v10510_v17  ;;  %v4644_v57 = vld [vmem:[#allocation3 + $0xda0] sm:$0xff] }
 0x96a   :  { %5105 = vmatmul.mubr.bf16.gmra.mrb[148].mxu1 %v10409_v11 }
 0x96b   :  { %4796 = vmatpush1.bf16.msra.mxu0 %v4628_v26  ;;  %8892 = vmatpush3.bf16.msra.mxu1 %v4702_v25  ;;  %v4643_v26 = vld [vmem:[#allocation3 + $0xd98] sm:$0xff] }
 0x96c   :  { %4797 = vmatprep.subr.bf16.mxu0 %v4632_v4  ;;  %8893 = vmatprep.subr.bf16.mxu1 %v10510_v17  ;;  %v4647_v25 = vld [vmem:[#allocation3 + $0xdb8] sm:$0xff] }
 0x96d   :  { %v8398_v28 = vpop.f32.mrb[64].mxu0  ;;  %8899 = vmatprep.mubr.msk.bf16.mxu1 %vm9730_vm0, %v10510_v17 }
 0x96e   :  { %v8399_v37 = vpop.f32.mrb[65].mxu0 }
 0x96f   :  { %v10632_v41 = vadd.f32 %v8399_v37, %v8398_v28  ;;  %v8401_v6 = vpop.f32.mrb[66].mxu0  ;;  %4798 = vmatpush1.bf16.msra.mxu0 %v4631_v31  ;;  %8894 = vmatpush3.bf16.msra.mxu1 %v4705_v27 }
 0x970   :  { %v8402_v60 = vpop.f32.mrb[67].mxu0  ;;  %4799 = vmatprep.subr.bf16.mxu0 %v4635_v32  ;;  %8895 = vmatprep.subr.bf16.mxu1 %v10510_v17  ;;  %v4646_v32 = vld [vmem:[#allocation3 + $0xdb0] sm:$0xff] }
 0x971   :  { %v10635_v43 = vadd.f32 %v8402_v60, %v8401_v6  ;;  %v4653_v60 = vld [vmem:[#allocation3 + $0xde8] sm:$0xff] }
 0x973   :  { %4800 = vmatpush1.bf16.msra.mxu0 %v4634_v38  ;;  %8896 = vmatpush3.bf16.msra.mxu1 %v4708_v29  ;;  %v4652_v38 = vld [vmem:[#allocation3 + $0xde0] sm:$0xff] }
 0x974   :  { %4801 = vmatprep.subr.bf16.mxu0 %v4638_v47  ;;  %8897 = vmatprep.subr.bf16.mxu1 %v10510_v17  ;;  %v4656_v29 = vld [vmem:[#allocation3 + $0xe00] sm:$0xff] }
 0x975   :  { %v8404_v16 = vpop.f32.mrb[68].mxu0 }
 0x976   :  { %v8405_v2 = vpop.f32.mrb[69].mxu0 }
 0x977   :  { %4802 = vmatpush1.bf16.msra.mxu0 %v4637_v34  ;;  %8898 = vmatpush3.bf16.msra.mxu1 %v4711_v46  ;;  %v10638_v12 = vadd.f32 %v8405_v2, %v8404_v16  ;;  %v8407_v22 = vpop.f32.mrb[70].mxu0  ;;  %v4658_v16 = vld [vmem:[#allocation3 + $0xe10] sm:$0xff] }
 0x978   :  { %4830 = vmatprep.subr.bf16.mxu0 %v4641_v61  ;;  %v8408_v14 = vpop.f32.mrb[71].mxu0 }
 0x979   :  { %v10640_v56 = vadd.f32 %v8408_v14, %v8407_v22 }
 0x97a   :  { %8900 = vmatmul.mubr.bf16.vlgmr.msra.gmra.mrb[152].mxu1 %v10418_v33  ;;  %4804 = vmatmul.mubr.bf16.vlgmr.msra.gmra.mrb[112].mxu0 %v10369_v20  ;;  %v4650_v20 = vld [vmem:[#allocation3 + $0xdd0] sm:$0xff] }
 0x97b   :  { %4831 = vmatpush1.bf16.msra.mxu0 %v4640_v50  ;;  %8903 = vmatprep.mubr.msk.bf16.mxu1 %vm9730_vm0, %v10510_v17  ;;  %v4662_v50 = vld [vmem:[#allocation3 + $0xe30] sm:$0xff] }
 0x97c   :  { %4832 = vmatprep.subr.bf16.mxu0 %v4644_v57  ;;  %4811 = vmatprep.mubr.bf16.mxu0 %v10371_v45  ;;  %v4649_v45 = vld [vmem:[#allocation3 + $0xdc8] sm:$0xff] }
 0x97d   :  { %v8410_v4 = vpop.f32.mrb[72].mxu0  ;;  %v4665_v57 = vld [vmem:[#allocation3 + $0xe48] sm:$0xff] }
 0x97e   :  { %v8411_v31 = vpop.f32.mrb[73].mxu0 }
 0x97f   :  { %4833 = vmatpush1.bf16.msra.mxu0 %v4643_v26  ;;  %v10647_v27 = vadd.f32 %v8411_v31, %v8410_v4  ;;  %v8413_v28 = vpop.f32.mrb[74].mxu0 }
 0x980   :  { %4834 = vmatprep.subr.bf16.mxu0 %v4647_v25  ;;  %v8414_v37 = vpop.f32.mrb[75].mxu0 }
 0x981   :  { %v10649_v6 = vadd.f32 %v8414_v37, %v8413_v28  ;;  %v4664_v28 = vld [vmem:[#allocation3 + $0xe40] sm:$0xff] }
 0x982   :  { %8904 = vmatmul.mubr.bf16.gmra.mrb[156].mxu1 %v10425_v48  ;;  %4812 = vmatmul.mubr.bf16.gmra.mrb[116].mxu0 %v10377_v55  ;;  %v4655_v55 = vld [vmem:[#allocation3 + $0xdf8] sm:$0xff] }
 0x983   :  { %4835 = vmatpush1.bf16.msra.mxu0 %v4646_v32  ;;  %8907 = vmatprep.mubr.msk.bf16.mxu1 %vm9730_vm0, %v10510_v17  ;;  %v4659_v17 = vld [vmem:[#allocation3 + $0xe18] sm:$0xff] }
 0x984   :  { %4836 = vmatprep.subr.bf16.mxu0 %v4650_v20  ;;  %4819 = vmatprep.mubr.bf16.mxu0 %v10379_v5 }
 0x987   :  { %4837 = vmatpush1.bf16.msra.mxu0 %v4649_v45 }
 0x988   :  { %4838 = vmatprep.subr.bf16.mxu0 %v4653_v60  ;;  %v4671_v60 = vld [vmem:[#allocation3 + $0xe78] sm:$0xff] }
 0x98a   :  { %8908 = vmatmul.mubr.bf16.gmra.mrb[160].mxu1 %v10432_v63  ;;  %4820 = vmatmul.mubr.bf16.gmra.mrb[120].mxu0 %v10385_v13 }
 0x98b   :  { %4839 = vmatpush1.bf16.msra.mxu0 %v4652_v38  ;;  %4862 = vmatprep.mubr.bf16.mxu0 %v10387_v24  ;;  %v4661_v24 = vld [vmem:[#allocation3 + $0xe28] sm:$0xff] }
 0x98c   :  { %4840 = vmatprep.subr.bf16.mxu0 %v4656_v29 }
 0x98d   :  { %v8432_v47 = vpop.f32.mrb[76].mxu0 }
 0x98e   :  { %v8433_v34 = vpop.f32.mrb[77].mxu0 }
 0x98f   :  { %v8434_v46 = vadd.f32 %v8433_v34, %v8432_v47  ;;  %v8435_v61 = vpop.f32.mrb[78].mxu0  ;;  %4841 = vmatpush1.bf16.msra.mxu0 %v4655_v55 }
 0x990   :  { %v8436_v5 = vpop.f32.mrb[79].mxu0  ;;  %4842 = vmatprep.subr.bf16.mxu0 %v4659_v17  ;;  %v4670_v17 = vld [vmem:[#allocation3 + $0xe70] sm:$0xff] }
 0x991   :  { %v4322_v2 = vadd.f32 %v8434_v46, %v10632_v41  ;;  %v8437_v22 = vadd.f32 %v8436_v5, %v8435_v61  ;;  %v4668_v41 = vld [vmem:[#allocation3 + $0xe60] sm:$0xff]  ;;  %v4677_v5 = vld [vmem:[#allocation3 + $0xea8] sm:$0xff] }
 0x993   :  { %v4325_v13 = vadd.f32 %v8437_v22, %v10635_v43  ;;  %4843 = vmatpush1.bf16.msra.mxu0 %v4658_v16  ;;  %v4667_v43 = vld [vmem:[#allocation3 + $0xe58] sm:$0xff]  ;;  %v4676_v16 = vld [vmem:[#allocation3 + $0xea0] sm:$0xff] }
 0x994   :  { %4844 = vmatprep.subr.bf16.mxu0 %v4662_v50  ;;  %v4680_v22 = vld [vmem:[#allocation3 + $0xec0] sm:$0xff]  ;;  %v4679_v50 = vld [vmem:[#allocation3 + $0xeb8] sm:$0xff] }
 0x995   :  { %v8438_v14 = vpop.f32.mrb[80].mxu0 }
 0x996   :  { %v8439_v26 = vpop.f32.mrb[81].mxu0 }
 0x997   :  { %v8440_v25 = vadd.f32 %v8439_v26, %v8438_v14  ;;  %v8441_v4 = vpop.f32.mrb[82].mxu0  ;;  %4845 = vmatpush1.bf16.msra.mxu0 %v4661_v24  ;;  %v4683_v14 = vld [vmem:[#allocation3 + $0xed8] sm:$0xff] }
 0x998   :  { %v8442_v31 = vpop.f32.mrb[83].mxu0  ;;  %4846 = vmatprep.subr.bf16.mxu0 %v4665_v57 }
 0x999   :  { %v4330_v32 = vadd.f32 %v8440_v25, %v10638_v12  ;;  %v8443_v37 = vadd.f32 %v8442_v31, %v8441_v4  ;;  %v4674_v12 = vld [vmem:[#allocation3 + $0xe90] sm:$0xff] }
 0x99a   :  { %v4686_v31 = vld [vmem:[#allocation3 + $0xef0] sm:$0xff] }
 0x99b   :  { %v4333_v20 = vadd.f32 %v8443_v37, %v10640_v56  ;;  %4847 = vmatpush1.bf16.msra.mxu0 %v4664_v28  ;;  %v4673_v56 = vld [vmem:[#allocation3 + $0xe88] sm:$0xff] }
 0x99c   :  { %4848 = vmatprep.subr.bf16.mxu0 %v4668_v41  ;;  %v4685_v41 = vld [vmem:[#allocation3 + $0xee8] sm:$0xff] }
 0x99d   :  { %v8444_v45 = vpop.f32.mrb[84].mxu0 }
 0x99e   :  { %v8445_v38 = vpop.f32.mrb[85].mxu0 }
 0x99f   :  { %v8446_v29 = vadd.f32 %v8445_v38, %v8444_v45  ;;  %v8447_v55 = vpop.f32.mrb[86].mxu0  ;;  %4849 = vmatpush1.bf16.msra.mxu0 %v4667_v43  ;;  %v4689_v45 = vld [vmem:[#allocation3 + $0xf08] sm:$0xff] }
 0x9a0   :  { %v8448_v47 = vpop.f32.mrb[87].mxu0  ;;  %4850 = vmatprep.subr.bf16.mxu0 %v4671_v60 }
 0x9a1   :  { %v4338_v34 = vadd.f32 %v8446_v29, %v10647_v27  ;;  %v8449_v46 = vadd.f32 %v8448_v47, %v8447_v55  ;;  %v4688_v47 = vld [vmem:[#allocation3 + $0xf00] sm:$0xff] }
 0x9a3   :  { %v4341_v61 = vadd.f32 %v8449_v46, %v10649_v6  ;;  %4851 = vmatpush1.bf16.msra.mxu0 %v4670_v17  ;;  %v4682_v6 = vld [vmem:[#allocation3 + $0xed0] sm:$0xff]  ;;  %v4692_v46 = vld [vmem:[#allocation3 + $0xf20] sm:$0xff] }
 0x9a4   :  { %4852 = vmatprep.subr.bf16.mxu0 %v4674_v12 }
 0x9a7   :  { %4853 = vmatpush1.bf16.msra.mxu0 %v4673_v56 }
 0x9a8   :  { %4854 = vmatprep.subr.bf16.mxu0 %v4677_v5  ;;  %v4695_v5 = vld [vmem:[#allocation3 + $0xf38] sm:$0xff] }
 0x9ab   :  { %4855 = vmatpush1.bf16.msra.mxu0 %v4676_v16 }
 0x9ac   :  { %4856 = vmatprep.subr.bf16.mxu0 %v4680_v22 }
 0x9ad   :  { %v8466_v24 = vpop.f32.mrb[88].mxu0 }
 0x9ae   :  { %v8467_v57 = vpop.f32.mrb[89].mxu0 }
 0x9af   :  { %v8468_v26 = vadd.f32 %v8467_v57, %v8466_v24  ;;  %v8469_v27 = vpop.f32.mrb[90].mxu0  ;;  %4857 = vmatpush1.bf16.msra.mxu0 %v4679_v50  ;;  %v4698_v57 = vld [vmem:[#allocation3 + $0xf50] sm:$0xff] }
 0x9b0   :  { %v8470_v25 = vpop.f32.mrb[91].mxu0  ;;  %4858 = vmatprep.subr.bf16.mxu0 %v4683_v14  ;;  %v4694_v14 = vld [vmem:[#allocation3 + $0xf30] sm:$0xff] }
 0x9b1   :  { %v8471_v4 = vadd.f32 %v8470_v25, %v8469_v27  ;;  %v4379_v28 = vadd.f32 %v8468_v26, %v4322_v2  ;;  %v4700_v27 = vld [vmem:[#allocation3 + $0xf60] sm:$0xff] }
 0x9b2   :  { %v4704_v25 = vld [vmem:[#allocation3 + $0xf80] sm:$0xff] }
 0x9b3   :  { %4859 = vmatpush1.bf16.msra.mxu0 %v4682_v6  ;;  %v4382_v37 = vadd.f32 %v8471_v4, %v4325_v13  ;;  %v4691_v13 = vld [vmem:[#allocation3 + $0xf18] sm:$0xff] }
 0x9b4   :  { %4860 = vmatprep.subr.bf16.mxu0 %v4686_v31  ;;  %v4707_v4 = vld [vmem:[#allocation3 + $0xf98] sm:$0xff] }
 0x9b5   :  { %v8472_v43 = vpop.f32.mrb[92].mxu0 }
 0x9b6   :  { %v8473_v60 = vpop.f32.mrb[93].mxu0 }
 0x9b7   :  { %v8474_v38 = vadd.f32 %v8473_v60, %v8472_v43  ;;  %v8475_v29 = vpop.f32.mrb[94].mxu0  ;;  %4861 = vmatpush1.bf16.msra.mxu0 %v4685_v41 }
 0x9b8   :  { %v8476_v55 = vpop.f32.mrb[95].mxu0  ;;  %4889 = vmatprep.subr.bf16.mxu0 %v4689_v45 }
 0x9b9   :  { %v8477_v17 = vadd.f32 %v8476_v55, %v8475_v29  ;;  %v10665_v12 = vadd.f32 %v8474_v38, %v4330_v32  ;;  %v4706_v55 = vld [vmem:[#allocation3 + $0xf90] sm:$0xff] }
 0x9ba   :  { %4863 = vmatmul.mubr.bf16.vlgmr.msra.gmra.mrb[112].mxu0 %v10393_v39 }
 0x9bb   :  { %4890 = vmatpush1.bf16.msra.mxu0 %v4688_v47  ;;  %4870 = vmatprep.mubr.bf16.mxu0 %v10396_v49  ;;  %v10669_v2 = vadd.f32 %v8477_v17, %v4333_v20  ;;  %v4697_v49 = vld [vmem:[#allocation3 + $0xf48] sm:$0xff] }
 0x9bc   :  { %4891 = vmatprep.subr.bf16.mxu0 %v4692_v46  ;;  %v4701_v20 = vld [vmem:[#allocation3 + $0xf68] sm:$0xff]  ;;  %v4710_v46 = vld [vmem:[#allocation3 + $0xfb0] sm:$0xff] }
 0x9bd   :  { %v8478_v56 = vpop.f32.mrb[96].mxu0 }
 0x9be   :  { %v8479_v16 = vpop.f32.mrb[97].mxu0 }
 0x9bf   :  { %v8480_v22 = vadd.f32 %v8479_v16, %v8478_v56  ;;  %v8481_v50 = vpop.f32.mrb[98].mxu0  ;;  %4892 = vmatpush1.bf16.msra.mxu0 %v4691_v13 }
 0x9c0   :  { %v8482_v24 = vpop.f32.mrb[99].mxu0  ;;  %4893 = vmatprep.subr.bf16.mxu0 %v4695_v5 }
 0x9c1   :  { %v8483_v32 = vadd.f32 %v8482_v24, %v8481_v50  ;;  %v10671_v26 = vadd.f32 %v8480_v22, %v4338_v34  ;;  %v4703_v34 = vld [vmem:[#allocation3 + $0xf78] sm:$0xff] }
 0x9c2   :  { %4871 = vmatmul.mubr.bf16.gmra.mrb[116].mxu0 %v10401_v52 }
 0x9c3   :  { %4894 = vmatpush1.bf16.msra.mxu0 %v4694_v14  ;;  %4878 = vmatprep.mubr.bf16.mxu0 %v10404_v30  ;;  %v10675_v39 = vadd.f32 %v8483_v32, %v4341_v61 }
 0x9c4   :  { %4895 = vmatprep.subr.bf16.mxu0 %v4698_v57 }
 0x9c7   :  { %4896 = vmatpush1.bf16.msra.mxu0 %v4697_v49 }
 0x9c8   :  { %4897 = vmatprep.subr.bf16.mxu0 %v4701_v20 }
 0x9ca   :  { %4879 = vmatmul.mubr.bf16.gmra.mrb[120].mxu0 %v10409_v11 }
 0x9cb   :  { %4898 = vmatpush1.bf16.msra.mxu0 %v4700_v27  ;;  %4921 = vmatprep.mubr.bf16.mxu0 %v9749_v19 }
 0x9cc   :  { %4899 = vmatprep.subr.bf16.mxu0 %v4704_v25 }
 0x9cd   :  { %v4201_v52 = vpop.f32.mrb[104].mxu1  ;;  %v4435_v6 = vpop.f32.mrb[100].mxu0 }
 0x9ce   :  { %v4436_v30 = vadd.f32 %v4435_v6, %v4379_v28  ;;  %v4203_v61 = vpop.f32.mrb[105].mxu1  ;;  %v8873_v31 = vpop.f32.mrb[101].mxu0  ;;  %v4468_v45 = vrot.slane %v4201_v52, 1 }
 0x9cf   :  { %v4205_v41 = vpop.f32.mrb[106].mxu1  ;;  %v4438_v43 = vpop.f32.mrb[102].mxu0  ;;  %4900 = vmatpush1.bf16.msra.mxu0 %v4703_v34  ;;  %v4471_v47 = vrot.slane %v4203_v61, 1 }
 0x9d0   :  { %v4469_v60 = vrot.slane %v4205_v41, 1  ;;  %v4439_v38 = vadd.f32 %v4438_v43, %v4382_v37  ;;  %v4207_v29 = vpop.f32.mrb[107].mxu1  ;;  %v8874_v11 = vpop.f32.mrb[103].mxu0  ;;  %4901 = vmatprep.subr.bf16.mxu0 %v4707_v4  ;;  %v4474_v13 = vrot.slane %v4436_v30, 1  ;;  %v4709_v37 = vld [vmem:[#allocation3 + $0xfa8] sm:$0xff] }
 0x9d1   :  { %v4472_v17 = vrot.slane %v4207_v29, 1 }
 0x9d2   :  { %v4470_v56 = vsel %vm4467_vm3, %v4468_v45, %v4469_v60  ;;  %v4475_v28 = vrot.slane %v4439_v38, 1 }
 0x9d3   :  { %v4473_v5 = vsel %vm4467_vm3, %v4471_v47, %v4472_v17  ;;  %4902 = vmatpush1.bf16.msra.mxu0 %v4706_v55  ;;  %v10682_v16 = vadd.f32 %v4470_v56, %v10593_v3 }
 0x9d4   :  { %v4476_v22 = vsel %vm4467_vm3, %v4474_v13, %v4475_v28  ;;  %4903 = vmatprep.subr.bf16.mxu0 %v4710_v46  ;;  %v10686_v50 = vadd.f32 %v4473_v5, %v10597_v36 }
 0x9d5   :  { %v4211_v24 = vpop.f32.mrb[108].mxu1  ;;  %v4443_v14 = vpop.f32.mrb[104].mxu0  ;;  %v10689_v32 = vadd.f32 %v4476_v22, %v10544_v58 }
 0x9d6   :  { %v4477_v57 = vrot.slane %v4211_v24, 1  ;;  %v4444_v49 = vadd.f32 %v4443_v14, %v10665_v12  ;;  %v4213_v20 = vpop.f32.mrb[109].mxu1  ;;  %v8877_v27 = vpop.f32.mrb[105].mxu0 }
 0x9d7   :  { %v4479_v25 = vrot.slane %v4213_v20, 1  ;;  %v4215_v3 = vpop.f32.mrb[110].mxu1  ;;  %v4446_v34 = vpop.f32.mrb[106].mxu0  ;;  %4904 = vmatpush1.bf16.msra.mxu0 %v4709_v37 }
 0x9d8   :  { %v4478_v52 = vsel %vm4467_vm3, %v4469_v60, %v4477_v57  ;;  %v10694_v6 = vadd.f32 %v4477_v57, %v10603_v40  ;;  %v4481_v36 = vrot.slane %v4444_v49, 1  ;;  %v4217_v4 = vpop.f32.mrb[111].mxu1  ;;  %v8878_v30 = vpop.f32.mrb[107].mxu0  ;;  %v4447_v31 = vadd.f32 %v4446_v34, %v10669_v2 }
 0x9d9   :  { %v10697_v58 = vadd.f32 %v4478_v52, %v10599_v23  ;;  %v4480_v61 = vsel %vm4467_vm3, %v4472_v17, %v4479_v25  ;;  %v10701_v12 = vadd.f32 %v4479_v25, %v10605_v42  ;;  %v4510_v60 = vrot.slane %v4215_v3, 1 }
 0x9da   :  { %v4482_v41 = vsel %vm4467_vm3, %v4475_v28, %v4481_v36  ;;  %v10706_v43 = vadd.f32 %v4481_v36, %v10552_v44  ;;  %v10709_v40 = vadd.f32 %v4480_v61, %v10601_v18  ;;  %4922 = vmatmul.mubr.bf16.vlgmr.msra.gmra.mrb[112].mxu0 %v10418_v33  ;;  %v4516_v44 = vrot.slane %v4447_v31, 1 }
 0x9db   :  { %v10713_v23 = vadd.f32 %v4482_v41, %v10548_v15  ;;  %4929 = vmatprep.mubr.bf16.mxu0 %v9749_v19  ;;  %v4513_v55 = vrot.slane %v4217_v4, 1 }
 0x9dd   :  { %v4221_v45 = vpop.f32.mrb[112].mxu1  ;;  %v4451_v42 = vpop.f32.mrb[108].mxu0 }
 0x9de   :  { %v4511_v38 = vrot.slane %v4221_v45, 1  ;;  %v4452_v2 = vadd.f32 %v4451_v42, %v10671_v26  ;;  %v4223_v29 = vpop.f32.mrb[113].mxu1  ;;  %v8881_v11 = vpop.f32.mrb[109].mxu0 }
 0x9df   :  { %v4514_v47 = vrot.slane %v4223_v29, 1  ;;  %v4225_v18 = vpop.f32.mrb[114].mxu1  ;;  %v4454_v17 = vpop.f32.mrb[110].mxu0 }
 0x9e0   :  { %v4512_v33 = vsel %vm4467_vm3, %v4510_v60, %v4511_v38  ;;  %v4517_v46 = vrot.slane %v4452_v2, 1  ;;  %v4519_v15 = vrot.slane %v4225_v18, 1  ;;  %v4455_v13 = vadd.f32 %v4454_v17, %v10675_v39  ;;  %v4227_v56 = vpop.f32.mrb[115].mxu1  ;;  %v8882_v28 = vpop.f32.mrb[111].mxu0 }
 0x9e1   :  { %v4515_v5 = vsel %vm4467_vm3, %v4513_v55, %v4514_v47  ;;  %v4521_v22 = vrot.slane %v4227_v56, 1  ;;  %v10721_v26 = vadd.f32 %v4512_v33, %v10607_v10 }
 0x9e2   :  { %v4518_v37 = vsel %vm4467_vm3, %v4516_v44, %v4517_v46  ;;  %v4520_v24 = vsel %vm4467_vm3, %v4511_v38, %v4519_v15  ;;  %v10726_v14 = vadd.f32 %v4519_v15, %v10619_v51  ;;  %v4523_v57 = vrot.slane %v4455_v13, 1  ;;  %4930 = vmatmul.mubr.bf16.gmra.mrb[116].mxu0 %v10425_v48 }
 0x9e3   :  { %v10730_v39 = vadd.f32 %v4520_v24, %v10614_v59  ;;  %v4522_v49 = vsel %vm4467_vm3, %v4514_v47, %v4521_v22  ;;  %v10734_v20 = vadd.f32 %v4521_v22, %v10621_v7  ;;  %4937 = vmatprep.mubr.bf16.mxu0 %v9749_v19  ;;  %v10738_v10 = vadd.f32 %v4518_v37, %v10555_v53 }
 0x9e4   :  { %v4524_v27 = vsel %vm4467_vm3, %v4517_v46, %v4523_v57  ;;  %v10742_v51 = vadd.f32 %v4523_v57, %v10566_v9  ;;  %v10745_v48 = vadd.f32 %v4522_v49, %v10617_v21  ;;  %v10748_v59 = vadd.f32 %v4515_v5, %v10609_v35 }
 0x9e5   :  { %v10751_v25 = vadd.f32 %v4524_v27, %v10563_v54 }
 0x9ea   :  { %4938 = vmatmul.mubr.bf16.gmra.mrb[120].mxu0 %v10432_v63 }
 0x9ed   :  { %v8511_v7 = vpop.f32.mrb[116].mxu1 }
 0x9ee   :  { %v8512_v3 = vpop.f32.mrb[117].mxu1 }
 0x9ef   :  { %v8514_v53 = vpop.f32.mrb[118].mxu1 }
 0x9f0   :  { %v8515_v34 = vpop.f32.mrb[119].mxu1 }
 0x9f1   :  { %v8516_v52 = vadd.f32 %v8515_v34, %v8514_v53 }
 0x9f5   :  { %v8517_v36 = vpop.f32.mrb[120].mxu1 }
 0x9f6   :  { %v8518_v4 = vpop.f32.mrb[121].mxu1 }
 0x9f7   :  { %v8519_v9 = vadd.f32 %v8518_v4, %v8517_v36  ;;  %v8520_v30 = vpop.f32.mrb[122].mxu1 }
 0x9f8   :  { %v8521_v61 = vpop.f32.mrb[123].mxu1 }
 0x9fd   :  { %v8523_v21 = vpop.f32.mrb[124].mxu1 }
 0x9fe   :  { %v8524_v31 = vpop.f32.mrb[125].mxu1 }
 0x9ff   :  { %v8525_v41 = vadd.f32 %v8524_v31, %v8523_v21  ;;  %v8526_v35 = vpop.f32.mrb[126].mxu1 }
 0xa00   :  { %v8527_v45 = vpop.f32.mrb[127].mxu1 }
 0xa01   :  { %v8528_v42 = vadd.f32 %v8527_v45, %v8526_v35 }
 0xa0d   :  { %v8545_v54 = vpop.f32.mrb[128].mxu1 }
 0xa0e   :  { %v8546_v60 = vpop.f32.mrb[129].mxu1 }
 0xa0f   :  { %v8548_v38 = vpop.f32.mrb[130].mxu1 }
 0xa10   :  { %v8549_v63 = vpop.f32.mrb[131].mxu1 }
 0xa11   :  { %v8550_v2 = vadd.f32 %v8549_v63, %v8548_v38 }
 0xa13   :  { %v5040_v29 = vadd.f32 %v8550_v2, %v8516_v52 }
 0xa15   :  { %v8551_v11 = vpop.f32.mrb[132].mxu1 }
 0xa16   :  { %v8552_v44 = vpop.f32.mrb[133].mxu1 }
 0xa17   :  { %v8553_v55 = vadd.f32 %v8552_v44, %v8551_v11  ;;  %v8554_v47 = vpop.f32.mrb[134].mxu1 }
 0xa18   :  { %v8555_v18 = vpop.f32.mrb[135].mxu1 }
 0xa19   :  { %v5045_v17 = vadd.f32 %v8553_v55, %v8519_v9 }
 0xa1d   :  { %v8557_v33 = vpop.f32.mrb[136].mxu1 }
 0xa1e   :  { %v8558_v46 = vpop.f32.mrb[137].mxu1 }
 0xa1f   :  { %v8559_v15 = vadd.f32 %v8558_v46, %v8557_v33  ;;  %v8560_v13 = vpop.f32.mrb[138].mxu1 }
 0xa20   :  { %v8561_v56 = vpop.f32.mrb[139].mxu1 }
 0xa21   :  { %v5052_v28 = vadd.f32 %v8559_v15, %v8525_v41  ;;  %v8562_v5 = vadd.f32 %v8561_v56, %v8560_v13 }
 0xa23   :  { %v5055_v22 = vadd.f32 %v8562_v5, %v8528_v42 }
 0xa2d   :  { %v8579_v37 = vpop.f32.mrb[140].mxu1 }
 0xa2e   :  { %v8580_v24 = vpop.f32.mrb[141].mxu1 }
 0xa2f   :  { %v8582_v57 = vpop.f32.mrb[142].mxu1 }
 0xa30   :  { %v8583_v49 = vpop.f32.mrb[143].mxu1 }
 0xa31   :  { %v8584_v27 = vadd.f32 %v8583_v49, %v8582_v57 }
 0xa33   :  { %v5095_v7 = vadd.f32 %v8584_v27, %v5040_v29  ;;  %v5235_v29 = vld [vmem:[#allocation22] sm:$0x7] }
 0xa34   :  { %v5248_v44 = vrot.slane %v5235_v29, %v10089_v8 }
 0xa35   :  { %v8585_v3 = vpop.f32.mrb[144].mxu1 }
 0xa36   :  { %v8586_v53 = vpop.f32.mrb[145].mxu1 }
 0xa37   :  { %v8587_v34 = vadd.f32 %v8586_v53, %v8585_v3  ;;  %v8588_v52 = vpop.f32.mrb[146].mxu1 }
 0xa38   :  { %v8589_v36 = vpop.f32.mrb[147].mxu1 }
 0xa39   :  { %v5100_v4 = vadd.f32 %v8587_v34, %v5045_v17 }
 0xa3d   :  { %v8591_v9 = vpop.f32.mrb[148].mxu1 }
 0xa3e   :  { %v8592_v30 = vpop.f32.mrb[149].mxu1 }
 0xa3f   :  { %v8593_v61 = vadd.f32 %v8592_v30, %v8591_v9  ;;  %v8594_v21 = vpop.f32.mrb[150].mxu1 }
 0xa40   :  { %v8595_v31 = vpop.f32.mrb[151].mxu1 }
 0xa41   :  { %v8596_v41 = vadd.f32 %v8595_v31, %v8594_v21  ;;  %v5107_v35 = vadd.f32 %v8593_v61, %v5052_v28 }
 0xa43   :  { %v5110_v45 = vadd.f32 %v8596_v41, %v5055_v22 }
 0xa4d   :  { %v5147_v42 = vpop.f32.mrb[152].mxu1 }
 0xa4e   :  { %v8901_v54 = vpop.f32.mrb[153].mxu1 }
 0xa4f   :  { %v5149_v60 = vpop.f32.mrb[154].mxu1 }
 0xa50   :  { %v5150_v38 = vadd.f32 %v5149_v60, %v5095_v7  ;;  %v8902_v63 = vpop.f32.mrb[155].mxu1 }
 0xa52   :  { %v5177_v2 = vrot.slane %v5150_v38, 2 }
 0xa54   :  { %v5195_v11 = vadd.f32 %v5177_v2, %v10689_v32 }
 0xa55   :  { %v5154_v55 = vpop.f32.mrb[156].mxu1 }
 0xa56   :  { %v5155_v47 = vadd.f32 %v5154_v55, %v5100_v4  ;;  %v8905_v18 = vpop.f32.mrb[157].mxu1  ;;  %v5254_v15 = vadd.f32 %v5248_v44, %v5195_v11 }
 0xa57   :  { %v5157_v17 = vpop.f32.mrb[158].mxu1 }
 0xa58   :  { %v5182_v33 = vrot.slane %v5155_v47, 2  ;;  %v8906_v46 = vpop.f32.mrb[159].mxu1  ;;  %v5302_v22 = vmax.f32 %v5254_v15, 0.0 }
 0xa59   :  { %v5244_v46 = vrot.slane %v5235_v29, %v10006_v0 }
 0xa5a   :  { %v5183_v13 = vsel %vm5174_vm4, %v5177_v2, %v5182_v33  ;;  %v5201_v56 = vadd.f32 %v5182_v33, %v10706_v43  ;;  %v5325_v52 = vrot.slane %v5302_v22, 6 }
 0xa5b   :  { %v5198_v28 = vadd.f32 %v5183_v13, %v10713_v23 }
 0xa5c   :  { %v5260_v5 = vadd.f32 %v5248_v44, %v5201_v56 }
 0xa5d   :  { %v5257_v37 = vadd.f32 %v5248_v44, %v5198_v28  ;;  %v5161_v32 = vpop.f32.mrb[160].mxu1 }
 0xa5e   :  { %v5308_v24 = vmax.f32 %v5260_v5, 0.0  ;;  %v5162_v8 = vadd.f32 %v5161_v32, %v5107_v35  ;;  %v8909_v57 = vpop.f32.mrb[161].mxu1 }
 0xa5f   :  { %v5305_v49 = vmax.f32 %v5257_v37, 0.0  ;;  %v5164_v27 = vpop.f32.mrb[162].mxu1 }
 0xa60   :  { %v5332_v7 = vrot.slane %v5308_v24, 6  ;;  %v5210_v3 = vrot.slane %v5162_v8, 2  ;;  %v5165_v53 = vadd.f32 %v5164_v27, %v5110_v45  ;;  %v8910_v34 = vpop.f32.mrb[163].mxu1 }
 0xa61   :  { %v5326_v36 = vrot.slane %v5305_v49, 6 }
 0xa62   :  { %v5228_v43 = vadd.f32 %v5210_v3, %v10738_v10  ;;  %v5215_v4 = vrot.slane %v5165_v53, 2 }
 0xa63   :  { %v5327_v23 = vsel %vm5318_vm5, %v5325_v52, %v5326_v36  ;;  %v5333_v9 = vsel %vm5318_vm5, %v5326_v36, %v5332_v7 }
 0xa64   :  { %5342 = vst [vmem:[#allocation8 + $0x40] sm:$0xff] %v5327_v23  ;;  %5345 = vst [vmem:[#allocation8 + $0x68] sm:$0xf] %v5333_v9  ;;  %v5263_v30 = vadd.f32 %v5248_v44, %v5228_v43  ;;  %v5216_v61 = vsel %vm5174_vm4, %v5210_v3, %v5215_v4  ;;  %v5234_v21 = vadd.f32 %v5215_v4, %v10742_v51 }
 0xa65   :  { %v5231_v31 = vadd.f32 %v5216_v61, %v10751_v25 }
 0xa66   :  { %v5269_v41 = vadd.f32 %v5248_v44, %v5234_v21  ;;  %v5348_v35 = vmax.f32 %v5263_v30, 0.0 }
 0xa67   :  { %v5266_v45 = vadd.f32 %v5248_v44, %v5231_v31  ;;  %v5240_v44 = vrot.slane %v5235_v29, %v10003_v62 }
 0xa68   :  { %v5354_v42 = vmax.f32 %v5269_v41, 0.0  ;;  %v5370_v60 = vrot.slane %v5348_v35, 6 }
 0xa69   :  { %v5351_v54 = vmax.f32 %v5266_v45, 0.0 }
 0xa6a   :  { %v5377_v10 = vrot.slane %v5354_v42, 6 }
 0xa6b   :  { %v5371_v38 = vrot.slane %v5351_v54, 6 }
 0xa6d   :  { %v5372_v63 = vsel %vm5318_vm5, %v5370_v60, %v5371_v38  ;;  %v5378_v2 = vsel %vm5318_vm5, %v5371_v38, %v5377_v10 }
 0xa6e   :  { %5387 = vst [vmem:[#allocation8 + $0xb8] sm:$0xff] %v5372_v63  ;;  %5390 = vst [vmem:[#allocation8 + $0xe0] sm:$0xf] %v5378_v2 }
 0xaad   :  { %v4923_v11 = vpop.f32.mrb[112].mxu0 }
 0xaae   :  { %v4924_v55 = vpop.f32.mrb[113].mxu0 }
 0xaaf   :  { %v4925_v47 = vpop.f32.mrb[114].mxu0 }
 0xab0   :  { %v5175_v51 = vrot.slane %v4925_v47, 2  ;;  %v4927_v18 = vpop.f32.mrb[115].mxu0 }
 0xab1   :  { %v5176_v25 = vrot.slane %v4927_v18, 2 }
 0xab2   :  { %v5193_v17 = vadd.f32 %v5175_v51, %v10682_v16 }
 0xab3   :  { %v5194_v33 = vadd.f32 %v5176_v25, %v10686_v50 }
 0xab4   :  { %v5252_v28 = vadd.f32 %v5240_v44, %v5193_v17 }
 0xab5   :  { %v4931_v15 = vpop.f32.mrb[116].mxu0  ;;  %v5253_v37 = vadd.f32 %v5244_v46, %v5194_v33 }
 0xab6   :  { %v5178_v13 = vrot.slane %v4931_v15, 2  ;;  %v4933_v56 = vpop.f32.mrb[117].mxu0  ;;  %v5300_v27 = vmax.f32 %v5252_v28, 0.0 }
 0xab7   :  { %v5180_v5 = vrot.slane %v4933_v56, 2  ;;  %v4935_v22 = vpop.f32.mrb[118].mxu0  ;;  %v5301_v53 = vmax.f32 %v5253_v37, 0.0 }
 0xab8   :  { %v5179_v32 = vsel %vm5174_vm4, %v5175_v51, %v5178_v13  ;;  %v5199_v24 = vadd.f32 %v5178_v13, %v10694_v6  ;;  %v4936_v8 = vpop.f32.mrb[119].mxu0  ;;  %v5319_v30 = vrot.slane %v5300_v27, 6 }
 0xab9   :  { %v5196_v16 = vadd.f32 %v5179_v32, %v10697_v58  ;;  %v5181_v57 = vsel %vm5174_vm4, %v5176_v25, %v5180_v5  ;;  %v5200_v50 = vadd.f32 %v5180_v5, %v10701_v12  ;;  %v5322_v41 = vrot.slane %v5301_v53, 6 }
 0xaba   :  { %v5258_v49 = vadd.f32 %v5240_v44, %v5199_v24  ;;  %v5197_v29 = vadd.f32 %v5181_v57, %v10709_v40 }
 0xabb   :  { %v5255_v7 = vadd.f32 %v5240_v44, %v5196_v16  ;;  %v5259_v3 = vadd.f32 %v5244_v46, %v5200_v50 }
 0xabc   :  { %v5306_v34 = vmax.f32 %v5258_v49, 0.0  ;;  %v5256_v52 = vadd.f32 %v5244_v46, %v5197_v29 }
 0xabd   :  { %v5303_v36 = vmax.f32 %v5255_v7, 0.0  ;;  %v5307_v43 = vmax.f32 %v5259_v3, 0.0  ;;  %v4939_v4 = vpop.f32.mrb[120].mxu0 }
 0xabe   :  { %v5328_v6 = vrot.slane %v5306_v34, 6  ;;  %v5304_v23 = vmax.f32 %v5256_v52, 0.0  ;;  %v5208_v9 = vrot.slane %v4939_v4, 2  ;;  %v4941_v58 = vpop.f32.mrb[121].mxu0 }
 0xabf   :  { %v5320_v61 = vrot.slane %v5303_v36, 6  ;;  %v5330_v21 = vrot.slane %v5307_v43, 6  ;;  %v5209_v12 = vrot.slane %v4941_v58, 2  ;;  %v4943_v31 = vpop.f32.mrb[122].mxu0 }
 0xac0   :  { %v5323_v40 = vrot.slane %v5304_v23, 6  ;;  %v5226_v35 = vadd.f32 %v5208_v9, %v10721_v26  ;;  %v5211_v45 = vrot.slane %v4943_v31, 2  ;;  %v4945_v42 = vpop.f32.mrb[123].mxu0 }
 0xac1   :  { %v5321_v54 = vsel %vm5318_vm5, %v5319_v30, %v5320_v61  ;;  %v5329_v10 = vsel %vm5318_vm5, %v5320_v61, %v5328_v6  ;;  %v5227_v60 = vadd.f32 %v5209_v12, %v10748_v59  ;;  %v5213_v38 = vrot.slane %v4945_v42, 2 }
 0xac2   :  { %5340 = vst [vmem:[#allocation8 + $0x30] sm:$0xff] %v5321_v54  ;;  %5343 = vst [vmem:[#allocation8 + $0x58] sm:$0xf] %v5329_v10  ;;  %v5324_v63 = vsel %vm5318_vm5, %v5322_v41, %v5323_v40  ;;  %v5331_v2 = vsel %vm5318_vm5, %v5323_v40, %v5330_v21  ;;  %v5261_v11 = vadd.f32 %v5240_v44, %v5226_v35 }
 0xac3   :  { %v5212_v55 = vsel %vm5174_vm4, %v5208_v9, %v5211_v45  ;;  %5341 = vst [vmem:[#allocation8 + $0x38] sm:$0xff] %v5324_v63  ;;  %5344 = vst [vmem:[#allocation8 + $0x60] sm:$0xf] %v5331_v2  ;;  %v5262_v26 = vadd.f32 %v5244_v46, %v5227_v60  ;;  %v5232_v51 = vadd.f32 %v5211_v45, %v10726_v14 }
 0xac4   :  { %v5229_v47 = vadd.f32 %v5212_v55, %v10730_v39  ;;  %v5214_v18 = vsel %vm5174_vm4, %v5209_v12, %v5213_v38  ;;  %v5233_v25 = vadd.f32 %v5213_v38, %v10734_v20  ;;  %v5346_v17 = vmax.f32 %v5261_v11, 0.0 }
 0xac5   :  { %v5230_v59 = vadd.f32 %v5214_v18, %v10745_v48  ;;  %v5267_v15 = vadd.f32 %v5240_v44, %v5232_v51  ;;  %v5347_v13 = vmax.f32 %v5262_v26, 0.0 }
 0xac6   :  { %v5264_v33 = vadd.f32 %v5240_v44, %v5229_v47  ;;  %v5268_v28 = vadd.f32 %v5244_v46, %v5233_v25  ;;  %v5364_v24 = vrot.slane %v5346_v17, 6 }
 0xac7   :  { %v5265_v56 = vadd.f32 %v5244_v46, %v5230_v59  ;;  %v5352_v22 = vmax.f32 %v5267_v15, 0.0  ;;  %v5367_v14 = vrot.slane %v5347_v13, 6 }
 0xac8   :  { %v5349_v5 = vmax.f32 %v5264_v33, 0.0  ;;  %v5353_v32 = vmax.f32 %v5268_v28, 0.0 }
 0xac9   :  { %v5350_v37 = vmax.f32 %v5265_v56, 0.0  ;;  %v5373_v8 = vrot.slane %v5352_v22, 6 }
 0xaca   :  { %v5365_v39 = vrot.slane %v5349_v5, 6  ;;  %v5375_v57 = vrot.slane %v5353_v32, 6 }
 0xacb   :  { %v5368_v16 = vrot.slane %v5350_v37, 6 }
 0xacc   :  { %v5366_v48 = vsel %vm5318_vm5, %v5364_v24, %v5365_v39  ;;  %v5374_v20 = vsel %vm5318_vm5, %v5365_v39, %v5373_v8 }
 0xacd   :  { %5385 = vst [vmem:[#allocation8 + $0xa8] sm:$0xff] %v5366_v48  ;;  %5388 = vst [vmem:[#allocation8 + $0xd0] sm:$0xf] %v5374_v20  ;;  %v5369_v44 = vsel %vm5318_vm5, %v5367_v14, %v5368_v16  ;;  %v5376_v46 = vsel %vm5318_vm5, %v5368_v16, %v5375_v57 }
 0xace   :  { %5386 = vst [vmem:[#allocation8 + $0xb0] sm:$0xff] %v5369_v44  ;;  %5389 = vst [vmem:[#allocation8 + $0xd8] sm:$0xf] %v5376_v46 }
 0xacf   :  { %9710 = dma.done.wait [#allocation10 + $0x2], 51200 }
 0xad0   :  { %9711 = vsyncadd [#allocation10 + $0x2], 4294916096  ;;  %7028 = vst [vmem:[#allocation9] sm:$0xff] %v9731_v1  ;;  %v5442_v50 = vld [vmem:[#allocation4 + $0x8] sm:$0xff]  ;;  %v5441_v29 = vld [vmem:[#allocation4] sm:$0xff]  ;;  %vm6650_vm6 = vcmask 1044480  }
 0xad1   :  { %7029 = vst [vmem:[#allocation9 + $0x8] sm:$0xff] %v9731_v1  ;;  %7030 = vst [vmem:[#allocation9 + $0x10] sm:$0xff] %v9731_v1  ;;  %v5724_v49 = vld [vmem:[#allocation4 + $0x288] sm:$0xff]  ;;  %5521 = vmatprep.subr.bf16.mxu1 %v5442_v50  ;;  %v5723_v27 = vld [vmem:[#allocation4 + $0x280] sm:$0xff]  ;;  %vm6963_vm7 = vcmask 1043456  }
 0xad2   :  { %7031 = vst.msk [vmem:[#allocation9 + $0x18] sm:$0xff] %vm306_vm1, %v9731_v1  ;;  %7032 = vst [vmem:[#allocation9 + $0x20] sm:$0xff] %v9731_v1  ;;  %5803 = vmatprep.subr.bf16.mxu0 %v5724_v49  ;;  %v5444_v7 = vld [vmem:[#allocation4 + $0x18] sm:$0xff]  ;;  %5522 = vmatpush1.bf16.msra.mxu1 %v5441_v29  ;;  %v5443_v53 = vld [vmem:[#allocation4 + $0x10] sm:$0xff] }
 0xad3   :  { %7035 = vst.msk [vmem:[#allocation9 + $0x38] sm:$0xff] %vm306_vm1, %v9731_v1  ;;  %7036 = vst [vmem:[#allocation9 + $0x40] sm:$0xff] %v9731_v1  ;;  %v5726_v3 = vld [vmem:[#allocation4 + $0x298] sm:$0xff]  ;;  %5804 = vmatpush1.bf16.msra.mxu0 %v5723_v27  ;;  %5523 = vmatprep.subr.bf16.mxu1 %v5444_v7  ;;  %v5725_v34 = vld [vmem:[#allocation4 + $0x290] sm:$0xff] }
 0xad4   :  { %7039 = vst.msk [vmem:[#allocation9 + $0x58] sm:$0xff] %vm306_vm1, %v9731_v1  ;;  %7040 = vst [vmem:[#allocation9 + $0x60] sm:$0xff] %v9731_v1  ;;  %5805 = vmatprep.subr.bf16.mxu0 %v5726_v3  ;;  %v5446_v52 = vld [vmem:[#allocation4 + $0x28] sm:$0xff]  ;;  %v5727_v43 = vld [vmem:[#allocation4 + $0x2a0] sm:$0xff] }
 0xad5   :  { %7041 = vst [vmem:[#allocation9 + $0x68] sm:$0xff] %v9731_v1  ;;  %7042 = vst [vmem:[#allocation9 + $0x70] sm:$0xff] %v9731_v1  ;;  %v5728_v36 = vld [vmem:[#allocation4 + $0x2a8] sm:$0xff]  ;;  %v5448_v4 = vld [vmem:[#allocation4 + $0x38] sm:$0xff] }
 0xad6   :  { %7043 = vst.msk [vmem:[#allocation9 + $0x78] sm:$0xff] %vm306_vm1, %v9731_v1  ;;  %7044 = vst [vmem:[#allocation9 + $0x80] sm:$0xff] %v9731_v1  ;;  %5524 = vmatpush1.bf16.msra.mxu1 %v5443_v53  ;;  %v5730_v6 = vld [vmem:[#allocation4 + $0x2b8] sm:$0xff]  ;;  %v5447_v23 = vld [vmem:[#allocation4 + $0x30] sm:$0xff] }
 0xad7   :  { %7045 = vst [vmem:[#allocation9 + $0x88] sm:$0xff] %v9731_v1  ;;  %7046 = vst [vmem:[#allocation9 + $0x90] sm:$0xff] %v9731_v1  ;;  %5806 = vmatpush1.bf16.msra.mxu0 %v5725_v34  ;;  %5525 = vmatprep.subr.bf16.mxu1 %v5446_v52  ;;  %v5729_v9 = vld [vmem:[#allocation4 + $0x2b0] sm:$0xff]  ;;  %v5450_v58 = vld [vmem:[#allocation4 + $0x48] sm:$0xff] }
 0xad8   :  { %7047 = vst.msk [vmem:[#allocation9 + $0x98] sm:$0xff] %vm306_vm1, %v9731_v1  ;;  %7048 = vst [vmem:[#allocation9 + $0xa0] sm:$0xff] %v9731_v1  ;;  %5807 = vmatprep.subr.bf16.mxu0 %v5728_v36  ;;  %v5732_v30 = vld [vmem:[#allocation4 + $0x2c8] sm:$0xff]  ;;  %v5449_v61 = vld [vmem:[#allocation4 + $0x40] sm:$0xff] }
 0xad9   :  { %7051 = vst.msk [vmem:[#allocation9 + $0xb8] sm:$0xff] %vm306_vm1, %v9731_v1  ;;  %7052 = vst [vmem:[#allocation9 + $0xc0] sm:$0xff] %v9731_v1  ;;  %v5731_v21 = vld [vmem:[#allocation4 + $0x2c0] sm:$0xff]  ;;  %v5452_v12 = vld [vmem:[#allocation4 + $0x58] sm:$0xff] }
 0xada   :  { %7055 = vst.msk [vmem:[#allocation9 + $0xd8] sm:$0xff] %vm306_vm1, %v9731_v1  ;;  %7056 = vst [vmem:[#allocation9 + $0xe0] sm:$0xff] %v9731_v1  ;;  %v5734_v31 = vld [vmem:[#allocation4 + $0x2d8] sm:$0xff]  ;;  %v5451_v41 = vld [vmem:[#allocation4 + $0x50] sm:$0xff] }
 0xadb   :  { %7057 = vst [vmem:[#allocation9 + $0xe8] sm:$0xff] %v9731_v1  ;;  %7058 = vst [vmem:[#allocation9 + $0xf0] sm:$0xff] %v9731_v1  ;;  %5808 = vmatpush1.bf16.msra.mxu0 %v5727_v43  ;;  %v5733_v40 = vld [vmem:[#allocation4 + $0x2d0] sm:$0xff]  ;;  %v5454_v35 = vld [vmem:[#allocation4 + $0x68] sm:$0xff] }
 0xadc   :  { %7059 = vst.msk [vmem:[#allocation9 + $0xf8] sm:$0xff] %vm306_vm1, %v9731_v1  ;;  %v5445_v1 = vld [vmem:[#allocation4 + $0x20] sm:$0xff]  ;;  %5809 = vmatprep.subr.bf16.mxu0 %v5730_v6  ;;  %v5736_v45 = vld [vmem:[#allocation4 + $0x2e8] sm:$0xff]  ;;  %v5402_v54 = vld [vmem:[#allocation8 + $0x30] sm:$0xff] }
 0xadd   :  { %5526 = vmatpush1.bf16.msra.mxu1 %v5445_v1  ;;  %v5397_v42 = vld [vmem:[#allocation8 + $0x8] sm:$0xff]  ;;  %v5453_v60 = vld [vmem:[#allocation4 + $0x60] sm:$0xff]  ;;  %v5456_v63 = vld [vmem:[#allocation4 + $0x78] sm:$0xff] }
 0xade   :  { %5527 = vmatprep.subr.bf16.mxu1 %v5448_v4  ;;  %v10825_v10 = vpack.c.bf16 %v5402_v54, %v5397_v42  ;;  %v5735_v38 = vld [vmem:[#allocation4 + $0x2e0] sm:$0xff]  ;;  %v5738_v2 = vld [vmem:[#allocation4 + $0x2f8] sm:$0xff]  ;;  %v5455_v11 = vld [vmem:[#allocation4 + $0x70] sm:$0xff] }
 0xadf   :  { %5810 = vmatpush1.bf16.msra.mxu0 %v5729_v9  ;;  %v5737_v55 = vld [vmem:[#allocation4 + $0x2f0] sm:$0xff]  ;;  %v5458_v26 = vld [vmem:[#allocation4 + $0x88] sm:$0xff]  ;;  %v5457_v51 = vld [vmem:[#allocation4 + $0x80] sm:$0xff] }
 0xae0   :  { %5811 = vmatprep.subr.bf16.mxu0 %v5732_v30  ;;  %5553 = vmatprep.mubr.bf16.mxu1 %v10825_v10  ;;  %v5740_v47 = vld [vmem:[#allocation4 + $0x308] sm:$0xff]  ;;  %v5739_v18 = vld [vmem:[#allocation4 + $0x300] sm:$0xff]  ;;  %v5460_v59 = vld [vmem:[#allocation4 + $0x98] sm:$0xff] }
 0xae1   :  { %5528 = vmatpush1.bf16.msra.mxu1 %v5447_v23  ;;  %5835 = vmatprep.mubr.bf16.mxu0 %v10825_v10  ;;  %v5742_v25 = vld [vmem:[#allocation4 + $0x318] sm:$0xff]  ;;  %v5459_v17 = vld [vmem:[#allocation4 + $0x90] sm:$0xff]  ;;  %v5462_v15 = vld [vmem:[#allocation4 + $0xa8] sm:$0xff] }
 0xae2   :  { %5529 = vmatprep.subr.bf16.mxu1 %v5450_v58  ;;  %v5741_v33 = vld [vmem:[#allocation4 + $0x310] sm:$0xff]  ;;  %v5744_v13 = vld [vmem:[#allocation4 + $0x328] sm:$0xff]  ;;  %v5461_v56 = vld [vmem:[#allocation4 + $0xa0] sm:$0xff] }
 0xae3   :  { %5812 = vmatpush1.bf16.msra.mxu0 %v5731_v21  ;;  %v5743_v28 = vld [vmem:[#allocation4 + $0x320] sm:$0xff]  ;;  %v5464_v5 = vld [vmem:[#allocation4 + $0xb8] sm:$0xff]  ;;  %v5463_v37 = vld [vmem:[#allocation4 + $0xb0] sm:$0xff] }
 0xae4   :  { %5813 = vmatprep.subr.bf16.mxu0 %v5734_v31  ;;  %v5746_v22 = vld [vmem:[#allocation4 + $0x338] sm:$0xff]  ;;  %v5745_v32 = vld [vmem:[#allocation4 + $0x330] sm:$0xff]  ;;  %v5466_v24 = vld [vmem:[#allocation4 + $0xc8] sm:$0xff] }
 0xae5   :  { %5530 = vmatpush1.bf16.msra.mxu1 %v5449_v61  ;;  %v5748_v39 = vld [vmem:[#allocation4 + $0x348] sm:$0xff]  ;;  %v5465_v8 = vld [vmem:[#allocation4 + $0xc0] sm:$0xff]  ;;  %v5468_v16 = vld [vmem:[#allocation4 + $0xd8] sm:$0xff] }
 0xae6   :  { %5531 = vmatprep.subr.bf16.mxu1 %v5452_v12  ;;  %v5747_v14 = vld [vmem:[#allocation4 + $0x340] sm:$0xff]  ;;  %v5750_v57 = vld [vmem:[#allocation4 + $0x358] sm:$0xff]  ;;  %v5467_v48 = vld [vmem:[#allocation4 + $0xd0] sm:$0xff] }
 0xae7   :  { %5814 = vmatpush1.bf16.msra.mxu0 %v5733_v40  ;;  %v5749_v20 = vld [vmem:[#allocation4 + $0x350] sm:$0xff]  ;;  %v5470_v44 = vld [vmem:[#allocation4 + $0xe8] sm:$0xff]  ;;  %v5469_v50 = vld [vmem:[#allocation4 + $0xe0] sm:$0xff] }
 0xae8   :  { %5815 = vmatprep.subr.bf16.mxu0 %v5736_v45  ;;  %v5752_v46 = vld [vmem:[#allocation4 + $0x368] sm:$0xff]  ;;  %v5751_v49 = vld [vmem:[#allocation4 + $0x360] sm:$0xff]  ;;  %v5472_v29 = vld [vmem:[#allocation4 + $0xf8] sm:$0xff] }
 0xae9   :  { %5532 = vmatpush1.bf16.msra.mxu1 %v5451_v41  ;;  %v5754_v27 = vld [vmem:[#allocation4 + $0x378] sm:$0xff]  ;;  %v5396_v7 = vld [vmem:[#allocation8] sm:$0xff]  ;;  %v5401_v3 = vld [vmem:[#allocation8 + $0x28] sm:$0xff] }
 0xaea   :  { %5533 = vmatprep.subr.bf16.mxu1 %v5454_v35  ;;  %v5471_v53 = vld [vmem:[#allocation4 + $0xf0] sm:$0xff]  ;;  %v5474_v52 = vld [vmem:[#allocation4 + $0x108] sm:$0xff]  ;;  %v10829_v1 = vpack.c.bf16 %v5401_v3, %v5396_v7  ;;  %v5407_v43 = vld [vmem:[#allocation8 + $0x58] sm:$0xff] }
 0xaeb   :  { %5816 = vmatpush1.bf16.msra.mxu0 %v5735_v38  ;;  %v5753_v34 = vld [vmem:[#allocation4 + $0x370] sm:$0xff]  ;;  %v5756_v36 = vld [vmem:[#allocation4 + $0x388] sm:$0xff]  ;;  %v5412_v4 = vld [vmem:[#allocation8 + $0x80] sm:$0xff] }
 0xaec   :  { %5817 = vmatprep.subr.bf16.mxu0 %v5738_v2  ;;  %v5473_v6 = vld [vmem:[#allocation4 + $0x100] sm:$0xff]  ;;  %v5476_v9 = vld [vmem:[#allocation4 + $0x118] sm:$0xff]  ;;  %v10831_v30 = vpack.c.bf16 %v5412_v4, %v5407_v43  ;;  %v5406_v61 = vld [vmem:[#allocation8 + $0x50] sm:$0xff] }
 0xaed   :  { %5534 = vmatpush1.bf16.msra.mxu1 %v5453_v60  ;;  %v5755_v23 = vld [vmem:[#allocation4 + $0x380] sm:$0xff]  ;;  %v5758_v58 = vld [vmem:[#allocation4 + $0x398] sm:$0xff]  ;;  %v5475_v12 = vld [vmem:[#allocation4 + $0x110] sm:$0xff] }
 0xaee   :  { %5535 = vmatprep.subr.bf16.mxu1 %v5456_v63  ;;  %v5411_v21 = vld [vmem:[#allocation8 + $0x78] sm:$0xff]  ;;  %v5757_v31 = vld [vmem:[#allocation4 + $0x390] sm:$0xff]  ;;  %v5478_v41 = vld [vmem:[#allocation4 + $0x128] sm:$0xff] }
 0xaef   :  { %5818 = vmatpush1.bf16.msra.mxu0 %v5737_v55  ;;  %v5760_v40 = vld [vmem:[#allocation4 + $0x3a8] sm:$0xff]  ;;  %v10837_v35 = vpack.c.bf16 %v5411_v21, %v5406_v61  ;;  %v5422_v42 = vld [vmem:[#allocation8 + $0xd0] sm:$0xff]  ;;  %v5477_v54 = vld [vmem:[#allocation4 + $0x120] sm:$0xff] }
 0xaf0   :  { %5819 = vmatprep.subr.bf16.mxu0 %v5740_v47  ;;  %v5417_v45 = vld [vmem:[#allocation8 + $0xa8] sm:$0xff]  ;;  %v5759_v60 = vld [vmem:[#allocation4 + $0x3a0] sm:$0xff]  ;;  %v5480_v38 = vld [vmem:[#allocation4 + $0x138] sm:$0xff] }
 0xaf1   :  { %5536 = vmatpush1.bf16.msra.mxu1 %v5455_v11  ;;  %v5762_v63 = vld [vmem:[#allocation4 + $0x3b8] sm:$0xff]  ;;  %v10839_v2 = vpack.c.bf16 %v5422_v42, %v5417_v45  ;;  %v5416_v11 = vld [vmem:[#allocation8 + $0xa0] sm:$0xff]  ;;  %v5421_v55 = vld [vmem:[#allocation8 + $0xc8] sm:$0xff] }
 0xaf2   :  { %5537 = vmatprep.subr.bf16.mxu1 %v5458_v26  ;;  %v5479_v26 = vld [vmem:[#allocation4 + $0x130] sm:$0xff]  ;;  %v5494_v7 = vld [vmem:[#allocation4 + $0x1a8] sm:$0xff]  ;;  %v5500_v61 = vld [vmem:[#allocation4 + $0x1d8] sm:$0xff] }
 0xaf3   :  { %5820 = vmatpush1.bf16.msra.mxu0 %v5739_v18  ;;  %v5761_v47 = vld [vmem:[#allocation4 + $0x3b0] sm:$0xff]  ;;  %v5764_v18 = vld [vmem:[#allocation4 + $0x3c8] sm:$0xff]  ;;  %v5782_v21 = vld [vmem:[#allocation4 + $0x458] sm:$0xff] }
 0xaf4   :  { %5821 = vmatprep.subr.bf16.mxu0 %v5742_v25  ;;  %v5399_v25 = vld [vmem:[#allocation8 + $0x18] sm:$0xff]  ;;  %v5776_v3 = vld [vmem:[#allocation4 + $0x428] sm:$0xff]  ;;  %v5495_v43 = vld [vmem:[#allocation4 + $0x1b0] sm:$0xff] }
 0xaf5   :  { %5538 = vmatpush1.bf16.msra.mxu1 %v5457_v51  ;;  %v5482_v51 = vld [vmem:[#allocation4 + $0x148] sm:$0xff]  ;;  %v5777_v4 = vld [vmem:[#allocation4 + $0x430] sm:$0xff]  ;;  %v5501_v45 = vld [vmem:[#allocation4 + $0x1e0] sm:$0xff] }
 0xaf6   :  { %5539 = vmatprep.subr.bf16.mxu1 %v5460_v59  ;;  %v10845_v59 = vpack.c.bf16 %v5421_v55, %v5416_v11  ;;  %v5783_v42 = vld [vmem:[#allocation4 + $0x460] sm:$0xff]  ;;  %v5503_v11 = vld [vmem:[#allocation4 + $0x1f0] sm:$0xff] }
 0xaf7   :  { %5822 = vmatpush1.bf16.msra.mxu0 %v5741_v33  ;;  %v5481_v33 = vld [vmem:[#allocation4 + $0x140] sm:$0xff]  ;;  %v5785_v55 = vld [vmem:[#allocation4 + $0x470] sm:$0xff] }
 0xaf8   :  { %5823 = vmatprep.subr.bf16.mxu0 %v5744_v13  ;;  %v5484_v13 = vld [vmem:[#allocation4 + $0x158] sm:$0xff] }
 0xaf9   :  { %5540 = vmatpush1.bf16.msra.mxu1 %v5459_v17  ;;  %v5404_v17 = vld [vmem:[#allocation8 + $0x40] sm:$0xff] }
 0xafa   :  { %5541 = vmatprep.subr.bf16.mxu1 %v5462_v15  ;;  %v5763_v15 = vld [vmem:[#allocation4 + $0x3c0] sm:$0xff] }
 0xafb   :  { %5824 = vmatpush1.bf16.msra.mxu0 %v5743_v28  ;;  %v10847_v28 = vpack.c.bf16 %v5404_v17, %v5399_v25  ;;  %v5414_v25 = vld [vmem:[#allocation8 + $0x90] sm:$0xff]  ;;  %v5505_v17 = vld [vmem:[#allocation4 + $0x200] sm:$0xff] }
 0xafc   :  { %5825 = vmatprep.subr.bf16.mxu0 %v5746_v22  ;;  %v5765_v22 = vld [vmem:[#allocation4 + $0x3d0] sm:$0xff] }
 0xafd   :  { %5542 = vmatpush1.bf16.msra.mxu1 %v5461_v56  ;;  %v5766_v56 = vld [vmem:[#allocation4 + $0x3d8] sm:$0xff] }
 0xafe   :  { %5543 = vmatprep.subr.bf16.mxu1 %v5464_v5  ;;  %v5483_v5 = vld [vmem:[#allocation4 + $0x150] sm:$0xff] }
 0xaff   :  { %5826 = vmatpush1.bf16.msra.mxu0 %v5745_v32  ;;  %v5768_v32 = vld [vmem:[#allocation4 + $0x3e8] sm:$0xff] }
 0xb00   :  { %5827 = vmatprep.subr.bf16.mxu0 %v5748_v39  ;;  %v5767_v39 = vld [vmem:[#allocation4 + $0x3e0] sm:$0xff] }
 0xb01   :  { %5544 = vmatpush1.bf16.msra.mxu1 %v5463_v37  ;;  %v5486_v37 = vld [vmem:[#allocation4 + $0x168] sm:$0xff] }
 0xb02   :  { %5545 = vmatprep.subr.bf16.mxu1 %v5466_v24  ;;  %v5485_v24 = vld [vmem:[#allocation4 + $0x160] sm:$0xff] }
 0xb03   :  { %5828 = vmatpush1.bf16.msra.mxu0 %v5747_v14  ;;  %v5770_v14 = vld [vmem:[#allocation4 + $0x3f8] sm:$0xff] }
 0xb04   :  { %5829 = vmatprep.subr.bf16.mxu0 %v5750_v57  ;;  %v5769_v57 = vld [vmem:[#allocation4 + $0x3f0] sm:$0xff] }
 0xb05   :  { %5546 = vmatpush1.bf16.msra.mxu1 %v5465_v8  ;;  %v5488_v8 = vld [vmem:[#allocation4 + $0x178] sm:$0xff] }
 0xb06   :  { %5547 = vmatprep.subr.bf16.mxu1 %v5468_v16  ;;  %v5487_v16 = vld [vmem:[#allocation4 + $0x170] sm:$0xff] }
 0xb07   :  { %5830 = vmatpush1.bf16.msra.mxu0 %v5749_v20  ;;  %v5772_v20 = vld [vmem:[#allocation4 + $0x408] sm:$0xff] }
 0xb08   :  { %5831 = vmatprep.subr.bf16.mxu0 %v5752_v46  ;;  %v5771_v46 = vld [vmem:[#allocation4 + $0x400] sm:$0xff] }
 0xb09   :  { %5548 = vmatpush1.bf16.msra.mxu1 %v5467_v48  ;;  %v5490_v48 = vld [vmem:[#allocation4 + $0x188] sm:$0xff] }
 0xb0a   :  { %5549 = vmatprep.subr.bf16.mxu1 %v5470_v44  ;;  %v5489_v44 = vld [vmem:[#allocation4 + $0x180] sm:$0xff] }
 0xb0b   :  { %5832 = vmatpush1.bf16.msra.mxu0 %v5751_v49  ;;  %v5774_v49 = vld [vmem:[#allocation4 + $0x418] sm:$0xff] }
 0xb0c   :  { %5833 = vmatprep.subr.bf16.mxu0 %v5754_v27  ;;  %v5773_v27 = vld [vmem:[#allocation4 + $0x410] sm:$0xff] }
 0xb0d   :  { %5550 = vmatpush1.bf16.msra.mxu1 %v5469_v50  ;;  %v5492_v50 = vld [vmem:[#allocation4 + $0x198] sm:$0xff] }
 0xb0e   :  { %5551 = vmatprep.subr.bf16.mxu1 %v5472_v29  ;;  %v5491_v29 = vld [vmem:[#allocation4 + $0x190] sm:$0xff] }
 0xb0f   :  { %5834 = vmatpush1.bf16.msra.mxu0 %v5753_v34  ;;  %v5775_v34 = vld [vmem:[#allocation4 + $0x420] sm:$0xff] }
 0xb10   :  { %5866 = vmatprep.subr.bf16.mxu0 %v5756_v36  ;;  %v5778_v36 = vld [vmem:[#allocation4 + $0x438] sm:$0xff] }
 0xb11   :  { %5552 = vmatpush1.bf16.msra.mxu1 %v5471_v53  ;;  %v5493_v53 = vld [vmem:[#allocation4 + $0x1a0] sm:$0xff] }
 0xb12   :  { %5584 = vmatprep.subr.bf16.mxu1 %v5474_v52  ;;  %5836 = vmatmul.mubr.bf16.vlgmr.msra.gmra.mrb[124].mxu0 %v10829_v1  ;;  %v5496_v52 = vld [vmem:[#allocation4 + $0x1b8] sm:$0xff] }
 0xb13   :  { %5867 = vmatpush1.bf16.msra.mxu0 %v5755_v23  ;;  %5845 = vmatprep.mubr.bf16.mxu0 %v10831_v30  ;;  %v5780_v23 = vld [vmem:[#allocation4 + $0x448] sm:$0xff] }
 0xb14   :  { %5554 = vmatmul.mubr.bf16.vlgmr.msra.gmra.mrb[164].mxu1 %v10829_v1  ;;  %5868 = vmatprep.subr.bf16.mxu0 %v5758_v58  ;;  %v5779_v58 = vld [vmem:[#allocation4 + $0x440] sm:$0xff] }
 0xb15   :  { %5585 = vmatpush1.bf16.msra.mxu1 %v5473_v6  ;;  %5563 = vmatprep.mubr.bf16.mxu1 %v10831_v30  ;;  %v5498_v6 = vld [vmem:[#allocation4 + $0x1c8] sm:$0xff] }
 0xb16   :  { %5586 = vmatprep.subr.bf16.mxu1 %v5476_v9  ;;  %v5497_v9 = vld [vmem:[#allocation4 + $0x1c0] sm:$0xff] }
 0xb17   :  { %5869 = vmatpush1.bf16.msra.mxu0 %v5757_v31  ;;  %v5781_v31 = vld [vmem:[#allocation4 + $0x450] sm:$0xff] }
 0xb18   :  { %5870 = vmatprep.subr.bf16.mxu0 %v5760_v40  ;;  %v5784_v40 = vld [vmem:[#allocation4 + $0x468] sm:$0xff] }
 0xb19   :  { %5587 = vmatpush1.bf16.msra.mxu1 %v5475_v12  ;;  %v5499_v12 = vld [vmem:[#allocation4 + $0x1d0] sm:$0xff] }
 0xb1a   :  { %5588 = vmatprep.subr.bf16.mxu1 %v5478_v41  ;;  %5846 = vmatmul.mubr.bf16.gmra.mrb[128].mxu0 %v10837_v35  ;;  %v5502_v41 = vld [vmem:[#allocation4 + $0x1e8] sm:$0xff] }
 0xb1b   :  { %5871 = vmatpush1.bf16.msra.mxu0 %v5759_v60  ;;  %5855 = vmatprep.mubr.bf16.mxu0 %v10839_v2  ;;  %v5786_v60 = vld [vmem:[#allocation4 + $0x478] sm:$0xff] }
 0xb1c   :  { %5564 = vmatmul.mubr.bf16.gmra.mrb[168].mxu1 %v10837_v35  ;;  %5872 = vmatprep.subr.bf16.mxu0 %v5762_v63  ;;  %v5403_v63 = vld [vmem:[#allocation8 + $0x38] sm:$0xff] }
 0xb1d   :  { %5589 = vmatpush1.bf16.msra.mxu1 %v5477_v54  ;;  %5573 = vmatprep.mubr.bf16.mxu1 %v10839_v2  ;;  %v5504_v54 = vld [vmem:[#allocation4 + $0x1f8] sm:$0xff] }
 0xb1e   :  { %5590 = vmatprep.subr.bf16.mxu1 %v5480_v38  ;;  %v5398_v38 = vld [vmem:[#allocation8 + $0x10] sm:$0xff] }
 0xb1f   :  { %5873 = vmatpush1.bf16.msra.mxu0 %v5761_v47  ;;  %v5788_v47 = vld [vmem:[#allocation4 + $0x488] sm:$0xff] }
 0xb20   :  { %5874 = vmatprep.subr.bf16.mxu0 %v5764_v18  ;;  %v5409_v18 = vld [vmem:[#allocation8 + $0x68] sm:$0xff] }
 0xb21   :  { %5591 = vmatpush1.bf16.msra.mxu1 %v5479_v26  ;;  %v5506_v26 = vld [vmem:[#allocation4 + $0x208] sm:$0xff] }
 0xb22   :  { %5592 = vmatprep.subr.bf16.mxu1 %v5482_v51  ;;  %5856 = vmatmul.mubr.bf16.gmra.mrb[132].mxu0 %v10845_v59  ;;  %v10853_v51 = vpack.c.bf16 %v5403_v63, %v5398_v38  ;;  %v6049_v38 = vld [vmem:[#allocation4 + $0x500] sm:$0xff] }
 0xb23   :  { %5875 = vmatpush1.bf16.msra.mxu0 %v5763_v15  ;;  %5898 = vmatprep.mubr.bf16.mxu0 %v10847_v28  ;;  %v5508_v15 = vld [vmem:[#allocation4 + $0x218] sm:$0xff]  ;;  %v6375_v63 = vld [vmem:[#allocation4 + $0x780] sm:$0xff] }
 0xb24   :  { %5574 = vmatmul.mubr.bf16.gmra.mrb[172].mxu1 %v10845_v59  ;;  %5876 = vmatprep.subr.bf16.mxu0 %v5766_v56  ;;  %v10855_v56 = vpack.c.bf16 %v5414_v25, %v5409_v18  ;;  %v6051_v18 = vld [vmem:[#allocation4 + $0x510] sm:$0xff] }
 0xb25   :  { %5593 = vmatpush1.bf16.msra.mxu1 %v5481_v33  ;;  %5616 = vmatprep.mubr.bf16.mxu1 %v10847_v28  ;;  %v5787_v33 = vld [vmem:[#allocation4 + $0x480] sm:$0xff]  ;;  %v6377_v25 = vld [vmem:[#allocation4 + $0x790] sm:$0xff] }
 0xb26   :  { %5594 = vmatprep.subr.bf16.mxu1 %v5484_v13  ;;  %v5790_v13 = vld [vmem:[#allocation4 + $0x498] sm:$0xff] }
 0xb27   :  { %5877 = vmatpush1.bf16.msra.mxu0 %v5765_v22  ;;  %v5413_v22 = vld [vmem:[#allocation8 + $0x88] sm:$0xff] }
 0xb28   :  { %5878 = vmatprep.subr.bf16.mxu0 %v5768_v32  ;;  %v5789_v32 = vld [vmem:[#allocation4 + $0x490] sm:$0xff] }
 0xb29   :  { %5595 = vmatpush1.bf16.msra.mxu1 %v5483_v5  ;;  %v5408_v5 = vld [vmem:[#allocation8 + $0x60] sm:$0xff] }
 0xb2a   :  { %5596 = vmatprep.subr.bf16.mxu1 %v5486_v37  ;;  %v5507_v37 = vld [vmem:[#allocation4 + $0x210] sm:$0xff] }
 0xb2b   :  { %5879 = vmatpush1.bf16.msra.mxu0 %v5767_v39  ;;  %v5792_v39 = vld [vmem:[#allocation4 + $0x4a8] sm:$0xff] }
 0xb2c   :  { %5880 = vmatprep.subr.bf16.mxu0 %v5770_v14  ;;  %v5419_v14 = vld [vmem:[#allocation8 + $0xb8] sm:$0xff] }
 0xb2d   :  { %5597 = vmatpush1.bf16.msra.mxu1 %v5485_v24  ;;  %v5510_v24 = vld [vmem:[#allocation4 + $0x228] sm:$0xff] }
 0xb2e   :  { %5598 = vmatprep.subr.bf16.mxu1 %v5488_v8  ;;  %v10861_v8 = vpack.c.bf16 %v5413_v22, %v5408_v5  ;;  %v6379_v5 = vld [vmem:[#allocation4 + $0x7a0] sm:$0xff]  ;;  %v6056_v22 = vld [vmem:[#allocation4 + $0x538] sm:$0xff] }
 0xb2f   :  { %5881 = vmatpush1.bf16.msra.mxu0 %v5769_v57  ;;  %v5509_v57 = vld [vmem:[#allocation4 + $0x220] sm:$0xff] }
 0xb30   :  { %5882 = vmatprep.subr.bf16.mxu0 %v5772_v20  ;;  %v5512_v20 = vld [vmem:[#allocation4 + $0x238] sm:$0xff] }
 0xb31   :  { %5599 = vmatpush1.bf16.msra.mxu1 %v5487_v16  ;;  %v5424_v16 = vld [vmem:[#allocation8 + $0xe0] sm:$0xff] }
 0xb32   :  { %5600 = vmatprep.subr.bf16.mxu1 %v5490_v48  ;;  %v5791_v48 = vld [vmem:[#allocation4 + $0x4a0] sm:$0xff] }
 0xb33   :  { %5883 = vmatpush1.bf16.msra.mxu0 %v5771_v46  ;;  %v10863_v46 = vpack.c.bf16 %v5424_v16, %v5419_v14  ;;  %v6381_v14 = vld [vmem:[#allocation4 + $0x7b0] sm:$0xff]  ;;  %v6058_v16 = vld [vmem:[#allocation4 + $0x548] sm:$0xff] }
 0xb34   :  { %5884 = vmatprep.subr.bf16.mxu0 %v5774_v49  ;;  %v5423_v49 = vld [vmem:[#allocation8 + $0xd8] sm:$0xff] }
 0xb35   :  { %5601 = vmatpush1.bf16.msra.mxu1 %v5489_v44  ;;  %v5794_v44 = vld [vmem:[#allocation4 + $0x4b8] sm:$0xff] }
 0xb36   :  { %5602 = vmatprep.subr.bf16.mxu1 %v5492_v50  ;;  %v5418_v50 = vld [vmem:[#allocation8 + $0xb0] sm:$0xff] }
 0xb37   :  { %5885 = vmatpush1.bf16.msra.mxu0 %v5773_v27  ;;  %v5793_v27 = vld [vmem:[#allocation4 + $0x4b0] sm:$0xff] }
 0xb38   :  { %5886 = vmatprep.subr.bf16.mxu0 %v5776_v3  ;;  %v5796_v3 = vld [vmem:[#allocation4 + $0x4c8] sm:$0xff] }
 0xb39   :  { %5603 = vmatpush1.bf16.msra.mxu1 %v5491_v29  ;;  %v5511_v29 = vld [vmem:[#allocation4 + $0x230] sm:$0xff] }
 0xb3a   :  { %5604 = vmatprep.subr.bf16.mxu1 %v5494_v7  ;;  %v5514_v7 = vld [vmem:[#allocation4 + $0x248] sm:$0xff] }
 0xb3b   :  { %5887 = vmatpush1.bf16.msra.mxu0 %v5775_v34  ;;  %v5513_v34 = vld [vmem:[#allocation4 + $0x240] sm:$0xff] }
 0xb3c   :  { %5888 = vmatprep.subr.bf16.mxu0 %v5778_v36  ;;  %v5516_v36 = vld [vmem:[#allocation4 + $0x258] sm:$0xff] }
 0xb3d   :  { %5605 = vmatpush1.bf16.msra.mxu1 %v5493_v53  ;;  %v10869_v53 = vpack.c.bf16 %v5423_v49, %v5418_v50  ;;  %v6060_v50 = vld [vmem:[#allocation4 + $0x558] sm:$0xff] }
 0xb3e   :  { %5606 = vmatprep.subr.bf16.mxu1 %v5496_v52  ;;  %v5795_v52 = vld [vmem:[#allocation4 + $0x4c0] sm:$0xff]  ;;  %v6386_v49 = vld [vmem:[#allocation4 + $0x7d8] sm:$0xff] }
 0xb3f   :  { %5889 = vmatpush1.bf16.msra.mxu0 %v5777_v4  ;;  %v5515_v4 = vld [vmem:[#allocation4 + $0x250] sm:$0xff] }
 0xb40   :  { %5890 = vmatprep.subr.bf16.mxu0 %v5780_v23  ;;  %v5518_v23 = vld [vmem:[#allocation4 + $0x268] sm:$0xff] }
 0xb41   :  { %5607 = vmatpush1.bf16.msra.mxu1 %v5495_v43  ;;  %v5798_v43 = vld [vmem:[#allocation4 + $0x4d8] sm:$0xff] }
 0xb42   :  { %5608 = vmatprep.subr.bf16.mxu1 %v5498_v6  ;;  %v5797_v6 = vld [vmem:[#allocation4 + $0x4d0] sm:$0xff] }
 0xb43   :  { %5891 = vmatpush1.bf16.msra.mxu0 %v5779_v58  ;;  %v5517_v58 = vld [vmem:[#allocation4 + $0x260] sm:$0xff] }
 0xb44   :  { %5892 = vmatprep.subr.bf16.mxu0 %v5782_v21  ;;  %v5520_v21 = vld [vmem:[#allocation4 + $0x278] sm:$0xff] }
 0xb45   :  { %5609 = vmatpush1.bf16.msra.mxu1 %v5497_v9  ;;  %v5800_v9 = vld [vmem:[#allocation4 + $0x4e8] sm:$0xff] }
 0xb46   :  { %5610 = vmatprep.subr.bf16.mxu1 %v5500_v61  ;;  %v5799_v61 = vld [vmem:[#allocation4 + $0x4e0] sm:$0xff] }
 0xb47   :  { %5893 = vmatpush1.bf16.msra.mxu0 %v5781_v31  ;;  %v5400_v31 = vld [vmem:[#allocation8 + $0x20] sm:$0xff] }
 0xb48   :  { %5894 = vmatprep.subr.bf16.mxu0 %v5784_v40  ;;  %v5519_v40 = vld [vmem:[#allocation4 + $0x270] sm:$0xff] }
 0xb49   :  { %5611 = vmatpush1.bf16.msra.mxu1 %v5499_v12  ;;  %v5802_v12 = vld [vmem:[#allocation4 + $0x4f8] sm:$0xff] }
 0xb4a   :  { %5612 = vmatprep.subr.bf16.mxu1 %v5502_v41  ;;  %v5405_v41 = vld [vmem:[#allocation8 + $0x48] sm:$0xff] }
 0xb4b   :  { %5895 = vmatpush1.bf16.msra.mxu0 %v5783_v42  ;;  %v6050_v42 = vld [vmem:[#allocation4 + $0x508] sm:$0xff] }
 0xb4c   :  { %5896 = vmatprep.subr.bf16.mxu0 %v5786_v60  ;;  %v10875_v60 = vpack.c.bf16 %v5405_v41, %v5400_v31  ;;  %v6067_v31 = vld [vmem:[#allocation4 + $0x590] sm:$0xff] }
 0xb4d   :  { %5613 = vmatpush1.bf16.msra.mxu1 %v5501_v45  ;;  %v5801_v45 = vld [vmem:[#allocation4 + $0x4f0] sm:$0xff] }
 0xb4e   :  { %5614 = vmatprep.subr.bf16.mxu1 %v5504_v54  ;;  %v6376_v54 = vld [vmem:[#allocation4 + $0x788] sm:$0xff]  ;;  %v6393_v41 = vld [vmem:[#allocation4 + $0x810] sm:$0xff] }
 0xb4f   :  { %5897 = vmatpush1.bf16.msra.mxu0 %v5785_v55  ;;  %v6378_v55 = vld [vmem:[#allocation4 + $0x798] sm:$0xff] }
 0xb50   :  { %5929 = vmatprep.subr.bf16.mxu0 %v5788_v47  ;;  %v5415_v47 = vld [vmem:[#allocation8 + $0x98] sm:$0xff] }
 0xb51   :  { %5615 = vmatpush1.bf16.msra.mxu1 %v5503_v11  ;;  %v6052_v11 = vld [vmem:[#allocation4 + $0x518] sm:$0xff] }
 0xb52   :  { %5647 = vmatprep.subr.bf16.mxu1 %v5506_v26  ;;  %5899 = vmatmul.mubr.bf16.vlgmr.msra.gmra.mrb[124].mxu0 %v10853_v51  ;;  %v5410_v26 = vld [vmem:[#allocation8 + $0x70] sm:$0xff] }
 0xb53   :  { %5930 = vmatpush1.bf16.msra.mxu0 %v5787_v33  ;;  %5908 = vmatprep.mubr.bf16.mxu0 %v10855_v56  ;;  %v6380_v33 = vld [vmem:[#allocation4 + $0x7a8] sm:$0xff] }
 0xb54   :  { %5617 = vmatmul.mubr.bf16.vlgmr.msra.gmra.mrb[164].mxu1 %v10853_v51  ;;  %5931 = vmatprep.subr.bf16.mxu0 %v5790_v13  ;;  %v6053_v13 = vld [vmem:[#allocation4 + $0x520] sm:$0xff] }
 0xb55   :  { %5648 = vmatpush1.bf16.msra.mxu1 %v5505_v17  ;;  %5626 = vmatprep.mubr.bf16.mxu1 %v10855_v56  ;;  %v6054_v17 = vld [vmem:[#allocation4 + $0x528] sm:$0xff] }
 0xb56   :  { %5649 = vmatprep.subr.bf16.mxu1 %v5508_v15  ;;  %v10881_v15 = vpack.c.bf16 %v5415_v47, %v5410_v26  ;;  %v6074_v26 = vld [vmem:[#allocation4 + $0x5c8] sm:$0xff] }
 0xb57   :  { %5932 = vmatpush1.bf16.msra.mxu0 %v5789_v32  ;;  %v5420_v32 = vld [vmem:[#allocation8 + $0xc0] sm:$0xff]  ;;  %v6400_v47 = vld [vmem:[#allocation4 + $0x848] sm:$0xff] }
 0xb58   :  { %5933 = vmatprep.subr.bf16.mxu0 %v5792_v39  ;;  %v6055_v39 = vld [vmem:[#allocation4 + $0x530] sm:$0xff] }
 0xb59   :  { %5650 = vmatpush1.bf16.msra.mxu1 %v5507_v37  ;;  %v6382_v37 = vld [vmem:[#allocation4 + $0x7b8] sm:$0xff] }
 0xb5a   :  { %5651 = vmatprep.subr.bf16.mxu1 %v5510_v24  ;;  %5909 = vmatmul.mubr.bf16.gmra.mrb[128].mxu0 %v10861_v8  ;;  %v5425_v24 = vld [vmem:[#allocation8 + $0xe8] sm:$0xff] }
 0xb5b   :  { %5934 = vmatpush1.bf16.msra.mxu0 %v5791_v48  ;;  %5918 = vmatprep.mubr.bf16.mxu0 %v10863_v46  ;;  %v10887_v48 = vpack.c.bf16 %v5425_v24, %v5420_v32  ;;  %v6077_v32 = vld [vmem:[#allocation4 + $0x5e0] sm:$0xff] }
 0xb5c   :  { %5627 = vmatmul.mubr.bf16.gmra.mrb[168].mxu1 %v10861_v8  ;;  %5935 = vmatprep.subr.bf16.mxu0 %v5794_v44  ;;  %v6383_v44 = vld [vmem:[#allocation4 + $0x7c0] sm:$0xff] }
 0xb5d   :  { %5652 = vmatpush1.bf16.msra.mxu1 %v5509_v57  ;;  %5636 = vmatprep.mubr.bf16.mxu1 %v10863_v46  ;;  %v6384_v57 = vld [vmem:[#allocation4 + $0x7c8] sm:$0xff]  ;;  %v6403_v24 = vld [vmem:[#allocation4 + $0x860] sm:$0xff] }
 0xb5e   :  { %5653 = vmatprep.subr.bf16.mxu1 %v5512_v20  ;;  %v6057_v20 = vld [vmem:[#allocation4 + $0x540] sm:$0xff] }
 0xb5f   :  { %5936 = vmatpush1.bf16.msra.mxu0 %v5793_v27  ;;  %v6385_v27 = vld [vmem:[#allocation4 + $0x7d0] sm:$0xff] }
 0xb60   :  { %5937 = vmatprep.subr.bf16.mxu0 %v5796_v3  ;;  %v6388_v3 = vld [vmem:[#allocation4 + $0x7e8] sm:$0xff] }
 0xb61   :  { %5654 = vmatpush1.bf16.msra.mxu1 %v5511_v29  ;;  %v6059_v29 = vld [vmem:[#allocation4 + $0x550] sm:$0xff] }
 0xb62   :  { %5655 = vmatprep.subr.bf16.mxu1 %v5514_v7  ;;  %5919 = vmatmul.mubr.bf16.gmra.mrb[132].mxu0 %v10869_v53  ;;  %v6062_v7 = vld [vmem:[#allocation4 + $0x568] sm:$0xff] }
 0xb63   :  { %5938 = vmatpush1.bf16.msra.mxu0 %v5795_v52  ;;  %5961 = vmatprep.mubr.bf16.mxu0 %v9749_v19  ;;  %v6387_v52 = vld [vmem:[#allocation4 + $0x7e0] sm:$0xff] }
 0xb64   :  { %5637 = vmatmul.mubr.bf16.gmra.mrb[172].mxu1 %v10869_v53  ;;  %5939 = vmatprep.subr.bf16.mxu0 %v5798_v43  ;;  %v6390_v43 = vld [vmem:[#allocation4 + $0x7f8] sm:$0xff] }
 0xb65   :  { %5656 = vmatpush1.bf16.msra.mxu1 %v5513_v34  ;;  %5679 = vmatprep.mubr.bf16.mxu1 %v9749_v19  ;;  %v6061_v34 = vld [vmem:[#allocation4 + $0x560] sm:$0xff] }
 0xb66   :  { %5657 = vmatprep.subr.bf16.mxu1 %v5516_v36  ;;  %v6064_v36 = vld [vmem:[#allocation4 + $0x578] sm:$0xff] }
 0xb67   :  { %5940 = vmatpush1.bf16.msra.mxu0 %v5797_v6  ;;  %v6389_v6 = vld [vmem:[#allocation4 + $0x7f0] sm:$0xff] }
 0xb68   :  { %5941 = vmatprep.subr.bf16.mxu0 %v5800_v9  ;;  %v6392_v9 = vld [vmem:[#allocation4 + $0x808] sm:$0xff] }
 0xb69   :  { %5658 = vmatpush1.bf16.msra.mxu1 %v5515_v4  ;;  %v6063_v4 = vld [vmem:[#allocation4 + $0x570] sm:$0xff] }
 0xb6a   :  { %5659 = vmatprep.subr.bf16.mxu1 %v5518_v23  ;;  %v6066_v23 = vld [vmem:[#allocation4 + $0x588] sm:$0xff] }
 0xb6b   :  { %5942 = vmatpush1.bf16.msra.mxu0 %v5799_v61  ;;  %v6391_v61 = vld [vmem:[#allocation4 + $0x800] sm:$0xff] }
 0xb6c   :  { %5943 = vmatprep.subr.bf16.mxu0 %v5802_v12  ;;  %v6394_v12 = vld [vmem:[#allocation4 + $0x818] sm:$0xff] }
 0xb6d   :  { %5660 = vmatpush1.bf16.msra.mxu1 %v5517_v58  ;;  %v6065_v58 = vld [vmem:[#allocation4 + $0x580] sm:$0xff] }
 0xb6e   :  { %5661 = vmatprep.subr.bf16.mxu1 %v5520_v21  ;;  %v6068_v21 = vld [vmem:[#allocation4 + $0x598] sm:$0xff] }
 0xb6f   :  { %5944 = vmatpush1.bf16.msra.mxu0 %v5801_v45  ;;  %v6396_v45 = vld [vmem:[#allocation4 + $0x828] sm:$0xff] }
 0xb70   :  { %6455 = vmatprep.subr.bf16.mxu0 %v6376_v54  ;;  %v6395_v54 = vld [vmem:[#allocation4 + $0x820] sm:$0xff] }
 0xb71   :  { %5662 = vmatpush1.bf16.msra.mxu1 %v5519_v40  ;;  %v6070_v40 = vld [vmem:[#allocation4 + $0x5a8] sm:$0xff] }
 0xb72   :  { %6129 = vmatprep.subr.bf16.mxu1 %v6050_v42  ;;  %5962 = vmatmul.mubr.bf16.vlgmr.msra.gmra.mrb[124].mxu0 %v10875_v60  ;;  %v6069_v42 = vld [vmem:[#allocation4 + $0x5a0] sm:$0xff] }
 0xb73   :  { %6456 = vmatpush1.bf16.msra.mxu0 %v6375_v63  ;;  %5971 = vmatprep.mubr.bf16.mxu0 %v9749_v19  ;;  %v6398_v63 = vld [vmem:[#allocation4 + $0x838] sm:$0xff] }
 0xb74   :  { %5680 = vmatmul.mubr.bf16.vlgmr.msra.gmra.mrb[164].mxu1 %v10875_v60  ;;  %6457 = vmatprep.subr.bf16.mxu0 %v6378_v55  ;;  %v6397_v55 = vld [vmem:[#allocation4 + $0x830] sm:$0xff] }
 0xb75   :  { %6130 = vmatpush1.bf16.msra.mxu1 %v6049_v38  ;;  %5689 = vmatprep.mubr.bf16.mxu1 %v9749_v19  ;;  %v6072_v38 = vld [vmem:[#allocation4 + $0x5b8] sm:$0xff] }
 0xb76   :  { %6131 = vmatprep.subr.bf16.mxu1 %v6052_v11  ;;  %v6071_v11 = vld [vmem:[#allocation4 + $0x5b0] sm:$0xff] }
 0xb77   :  { %6458 = vmatpush1.bf16.msra.mxu0 %v6377_v25  ;;  %v6399_v25 = vld [vmem:[#allocation4 + $0x840] sm:$0xff] }
 0xb78   :  { %6459 = vmatprep.subr.bf16.mxu0 %v6380_v33  ;;  %v6402_v33 = vld [vmem:[#allocation4 + $0x858] sm:$0xff] }
 0xb79   :  { %6132 = vmatpush1.bf16.msra.mxu1 %v6051_v18  ;;  %v6073_v18 = vld [vmem:[#allocation4 + $0x5c0] sm:$0xff] }
 0xb7a   :  { %6133 = vmatprep.subr.bf16.mxu1 %v6054_v17  ;;  %5972 = vmatmul.mubr.bf16.gmra.mrb[128].mxu0 %v10881_v15  ;;  %v6076_v17 = vld [vmem:[#allocation4 + $0x5d8] sm:$0xff] }
 0xb7b   :  { %6460 = vmatpush1.bf16.msra.mxu0 %v6379_v5  ;;  %5981 = vmatprep.mubr.bf16.mxu0 %v9749_v19  ;;  %v6401_v5 = vld [vmem:[#allocation4 + $0x850] sm:$0xff] }
 0xb7c   :  { %5690 = vmatmul.mubr.bf16.gmra.mrb[168].mxu1 %v10881_v15  ;;  %6461 = vmatprep.subr.bf16.mxu0 %v6382_v37  ;;  %v6404_v37 = vld [vmem:[#allocation4 + $0x868] sm:$0xff] }
 0xb7d   :  { %6134 = vmatpush1.bf16.msra.mxu1 %v6053_v13  ;;  %5699 = vmatprep.mubr.bf16.mxu1 %v9749_v19  ;;  %v6075_v13 = vld [vmem:[#allocation4 + $0x5d0] sm:$0xff] }
 0xb7e   :  { %6135 = vmatprep.subr.bf16.mxu1 %v6056_v22  ;;  %v6078_v22 = vld [vmem:[#allocation4 + $0x5e8] sm:$0xff] }
 0xb7f   :  { %6462 = vmatpush1.bf16.msra.mxu0 %v6381_v14  ;;  %v6406_v14 = vld [vmem:[#allocation4 + $0x878] sm:$0xff] }
 0xb80   :  { %6463 = vmatprep.subr.bf16.mxu0 %v6384_v57  ;;  %v6405_v57 = vld [vmem:[#allocation4 + $0x870] sm:$0xff] }
 0xb81   :  { %6136 = vmatpush1.bf16.msra.mxu1 %v6055_v39  ;;  %v6080_v39 = vld [vmem:[#allocation4 + $0x5f8] sm:$0xff] }
 0xb82   :  { %6137 = vmatprep.subr.bf16.mxu1 %v6058_v16  ;;  %5982 = vmatmul.mubr.bf16.gmra.mrb[132].mxu0 %v10887_v48  ;;  %v6079_v16 = vld [vmem:[#allocation4 + $0x5f0] sm:$0xff] }
 0xb83   :  { %6464 = vmatpush1.bf16.msra.mxu0 %v6383_v44  ;;  %6487 = vmatprep.mubr.bf16.mxu0 %v10825_v10  ;;  %v6408_v44 = vld [vmem:[#allocation4 + $0x888] sm:$0xff] }
 0xb84   :  { %5700 = vmatmul.mubr.bf16.gmra.mrb[172].mxu1 %v10887_v48  ;;  %6465 = vmatprep.subr.bf16.mxu0 %v6386_v49  ;;  %v6407_v49 = vld [vmem:[#allocation4 + $0x880] sm:$0xff] }
 0xb85   :  { %6138 = vmatpush1.bf16.msra.mxu1 %v6057_v20  ;;  %6161 = vmatprep.mubr.bf16.mxu1 %v10825_v10  ;;  %v6082_v20 = vld [vmem:[#allocation4 + $0x608] sm:$0xff] }
 0xb86   :  { %6139 = vmatprep.subr.bf16.mxu1 %v6060_v50  ;;  %v6081_v50 = vld [vmem:[#allocation4 + $0x600] sm:$0xff] }
 0xb87   :  { %6466 = vmatpush1.bf16.msra.mxu0 %v6385_v27  ;;  %v6410_v27 = vld [vmem:[#allocation4 + $0x898] sm:$0xff] }
 0xb88   :  { %6467 = vmatprep.subr.bf16.mxu0 %v6388_v3  ;;  %v6409_v3 = vld [vmem:[#allocation4 + $0x890] sm:$0xff] }
 0xb89   :  { %6140 = vmatpush1.bf16.msra.mxu1 %v6059_v29  ;;  %v6084_v29 = vld [vmem:[#allocation4 + $0x618] sm:$0xff] }
 0xb8a   :  { %6141 = vmatprep.subr.bf16.mxu1 %v6062_v7  ;;  %v6083_v7 = vld [vmem:[#allocation4 + $0x610] sm:$0xff] }
 0xb8b   :  { %6468 = vmatpush1.bf16.msra.mxu0 %v6387_v52  ;;  %v6412_v52 = vld [vmem:[#allocation4 + $0x8a8] sm:$0xff] }
 0xb8c   :  { %6469 = vmatprep.subr.bf16.mxu0 %v6390_v43  ;;  %v6411_v43 = vld [vmem:[#allocation4 + $0x8a0] sm:$0xff] }
 0xb8d   :  { %6142 = vmatpush1.bf16.msra.mxu1 %v6061_v34  ;;  %v6086_v34 = vld [vmem:[#allocation4 + $0x628] sm:$0xff] }
 0xb8e   :  { %6143 = vmatprep.subr.bf16.mxu1 %v6064_v36  ;;  %v6085_v36 = vld [vmem:[#allocation4 + $0x620] sm:$0xff] }
 0xb8f   :  { %6470 = vmatpush1.bf16.msra.mxu0 %v6389_v6  ;;  %v6414_v6 = vld [vmem:[#allocation4 + $0x8b8] sm:$0xff] }
 0xb90   :  { %6471 = vmatprep.subr.bf16.mxu0 %v6392_v9  ;;  %v6413_v9 = vld [vmem:[#allocation4 + $0x8b0] sm:$0xff] }
 0xb91   :  { %6144 = vmatpush1.bf16.msra.mxu1 %v6063_v4  ;;  %v6088_v4 = vld [vmem:[#allocation4 + $0x638] sm:$0xff] }
 0xb92   :  { %6145 = vmatprep.subr.bf16.mxu1 %v6066_v23  ;;  %v6087_v23 = vld [vmem:[#allocation4 + $0x630] sm:$0xff] }
 0xb93   :  { %6472 = vmatpush1.bf16.msra.mxu0 %v6391_v61  ;;  %v6416_v61 = vld [vmem:[#allocation4 + $0x8c8] sm:$0xff] }
 0xb94   :  { %6473 = vmatprep.subr.bf16.mxu0 %v6394_v12  ;;  %v6415_v12 = vld [vmem:[#allocation4 + $0x8c0] sm:$0xff] }
 0xb95   :  { %6146 = vmatpush1.bf16.msra.mxu1 %v6065_v58  ;;  %v6090_v58 = vld [vmem:[#allocation4 + $0x648] sm:$0xff] }
 0xb96   :  { %6147 = vmatprep.subr.bf16.mxu1 %v6068_v21  ;;  %v6089_v21 = vld [vmem:[#allocation4 + $0x640] sm:$0xff] }
 0xb97   :  { %6474 = vmatpush1.bf16.msra.mxu0 %v6393_v41  ;;  %v6418_v41 = vld [vmem:[#allocation4 + $0x8d8] sm:$0xff] }
 0xb98   :  { %6475 = vmatprep.subr.bf16.mxu0 %v6396_v45  ;;  %v6417_v45 = vld [vmem:[#allocation4 + $0x8d0] sm:$0xff] }
 0xb99   :  { %6148 = vmatpush1.bf16.msra.mxu1 %v6067_v31  ;;  %v6092_v31 = vld [vmem:[#allocation4 + $0x658] sm:$0xff] }
 0xb9a   :  { %6149 = vmatprep.subr.bf16.mxu1 %v6070_v40  ;;  %v6091_v40 = vld [vmem:[#allocation4 + $0x650] sm:$0xff] }
 0xb9b   :  { %6476 = vmatpush1.bf16.msra.mxu0 %v6395_v54  ;;  %v6420_v54 = vld [vmem:[#allocation4 + $0x8e8] sm:$0xff] }
 0xb9c   :  { %6477 = vmatprep.subr.bf16.mxu0 %v6398_v63  ;;  %v6419_v63 = vld [vmem:[#allocation4 + $0x8e0] sm:$0xff] }
 0xb9d   :  { %6150 = vmatpush1.bf16.msra.mxu1 %v6069_v42  ;;  %v6094_v42 = vld [vmem:[#allocation4 + $0x668] sm:$0xff] }
 0xb9e   :  { %6151 = vmatprep.subr.bf16.mxu1 %v6072_v38  ;;  %v6093_v38 = vld [vmem:[#allocation4 + $0x660] sm:$0xff] }
 0xb9f   :  { %6478 = vmatpush1.bf16.msra.mxu0 %v6397_v55  ;;  %v6422_v55 = vld [vmem:[#allocation4 + $0x8f8] sm:$0xff] }
 0xba0   :  { %6479 = vmatprep.subr.bf16.mxu0 %v6400_v47  ;;  %v6421_v47 = vld [vmem:[#allocation4 + $0x8f0] sm:$0xff] }
 0xba1   :  { %6152 = vmatpush1.bf16.msra.mxu1 %v6071_v11  ;;  %v6096_v11 = vld [vmem:[#allocation4 + $0x678] sm:$0xff] }
 0xba2   :  { %6153 = vmatprep.subr.bf16.mxu1 %v6074_v26  ;;  %v6095_v26 = vld [vmem:[#allocation4 + $0x670] sm:$0xff] }
 0xba3   :  { %6480 = vmatpush1.bf16.msra.mxu0 %v6399_v25  ;;  %v6424_v25 = vld [vmem:[#allocation4 + $0x908] sm:$0xff] }
 0xba4   :  { %6481 = vmatprep.subr.bf16.mxu0 %v6402_v33  ;;  %v6423_v33 = vld [vmem:[#allocation4 + $0x900] sm:$0xff] }
 0xba5   :  { %6154 = vmatpush1.bf16.msra.mxu1 %v6073_v18  ;;  %v6098_v18 = vld [vmem:[#allocation4 + $0x688] sm:$0xff] }
 0xba6   :  { %6155 = vmatprep.subr.bf16.mxu1 %v6076_v17  ;;  %v6097_v17 = vld [vmem:[#allocation4 + $0x680] sm:$0xff] }
 0xba7   :  { %6482 = vmatpush1.bf16.msra.mxu0 %v6401_v5  ;;  %v6426_v5 = vld [vmem:[#allocation4 + $0x918] sm:$0xff] }
 0xba8   :  { %6483 = vmatprep.subr.bf16.mxu0 %v6404_v37  ;;  %v6425_v37 = vld [vmem:[#allocation4 + $0x910] sm:$0xff] }
 0xba9   :  { %6156 = vmatpush1.bf16.msra.mxu1 %v6075_v13  ;;  %v6100_v13 = vld [vmem:[#allocation4 + $0x698] sm:$0xff] }
 0xbaa   :  { %6157 = vmatprep.subr.bf16.mxu1 %v6078_v22  ;;  %v6099_v22 = vld [vmem:[#allocation4 + $0x690] sm:$0xff] }
 0xbab   :  { %6484 = vmatpush1.bf16.msra.mxu0 %v6403_v24  ;;  %v6428_v24 = vld [vmem:[#allocation4 + $0x928] sm:$0xff] }
 0xbac   :  { %6485 = vmatprep.subr.bf16.mxu0 %v6406_v14  ;;  %v6427_v14 = vld [vmem:[#allocation4 + $0x920] sm:$0xff] }
 0xbad   :  { %6158 = vmatpush1.bf16.msra.mxu1 %v6077_v32  ;;  %v6102_v32 = vld [vmem:[#allocation4 + $0x6a8] sm:$0xff] }
 0xbae   :  { %6159 = vmatprep.subr.bf16.mxu1 %v6080_v39  ;;  %v6101_v39 = vld [vmem:[#allocation4 + $0x6a0] sm:$0xff] }
 0xbaf   :  { %6486 = vmatpush1.bf16.msra.mxu0 %v6405_v57  ;;  %v6430_v57 = vld [vmem:[#allocation4 + $0x938] sm:$0xff] }
 0xbb0   :  { %6518 = vmatprep.subr.bf16.mxu0 %v6408_v44  ;;  %v6429_v44 = vld [vmem:[#allocation4 + $0x930] sm:$0xff] }
 0xbb1   :  { %6160 = vmatpush1.bf16.msra.mxu1 %v6079_v16  ;;  %v6104_v16 = vld [vmem:[#allocation4 + $0x6b8] sm:$0xff] }
 0xbb2   :  { %6192 = vmatprep.subr.bf16.mxu1 %v6082_v20  ;;  %6488 = vmatmul.mubr.bf16.vlgmr.msra.gmra.mrb[136].mxu0 %v10829_v1  ;;  %v6103_v20 = vld [vmem:[#allocation4 + $0x6b0] sm:$0xff] }
 0xbb3   :  { %6519 = vmatpush1.bf16.msra.mxu0 %v6407_v49  ;;  %6497 = vmatprep.mubr.bf16.mxu0 %v10831_v30  ;;  %v6432_v49 = vld [vmem:[#allocation4 + $0x948] sm:$0xff] }
 0xbb4   :  { %6162 = vmatmul.mubr.bf16.vlgmr.msra.gmra.mrb[176].mxu1 %v10829_v1  ;;  %6520 = vmatprep.subr.bf16.mxu0 %v6410_v27  ;;  %v6431_v27 = vld [vmem:[#allocation4 + $0x940] sm:$0xff] }
 0xbb5   :  { %6193 = vmatpush1.bf16.msra.mxu1 %v6081_v50  ;;  %6171 = vmatprep.mubr.bf16.mxu1 %v10831_v30  ;;  %v6106_v50 = vld [vmem:[#allocation4 + $0x6c8] sm:$0xff] }
 0xbb6   :  { %6194 = vmatprep.subr.bf16.mxu1 %v6084_v29  ;;  %v6105_v29 = vld [vmem:[#allocation4 + $0x6c0] sm:$0xff] }
 0xbb7   :  { %6521 = vmatpush1.bf16.msra.mxu0 %v6409_v3  ;;  %v6434_v3 = vld [vmem:[#allocation4 + $0x958] sm:$0xff] }
 0xbb8   :  { %6522 = vmatprep.subr.bf16.mxu0 %v6412_v52  ;;  %v6433_v52 = vld [vmem:[#allocation4 + $0x950] sm:$0xff] }
 0xbb9   :  { %6195 = vmatpush1.bf16.msra.mxu1 %v6083_v7  ;;  %v6108_v7 = vld [vmem:[#allocation4 + $0x6d8] sm:$0xff] }
 0xbba   :  { %6196 = vmatprep.subr.bf16.mxu1 %v6086_v34  ;;  %6498 = vmatmul.mubr.bf16.gmra.mrb[140].mxu0 %v10837_v35  ;;  %v6107_v34 = vld [vmem:[#allocation4 + $0x6d0] sm:$0xff] }
 0xbbb   :  { %6523 = vmatpush1.bf16.msra.mxu0 %v6411_v43  ;;  %6507 = vmatprep.mubr.bf16.mxu0 %v10839_v2  ;;  %v6436_v43 = vld [vmem:[#allocation4 + $0x968] sm:$0xff] }
 0xbbc   :  { %6172 = vmatmul.mubr.bf16.gmra.mrb[180].mxu1 %v10837_v35  ;;  %6524 = vmatprep.subr.bf16.mxu0 %v6414_v6  ;;  %v6435_v6 = vld [vmem:[#allocation4 + $0x960] sm:$0xff] }
 0xbbd   :  { %6197 = vmatpush1.bf16.msra.mxu1 %v6085_v36  ;;  %6181 = vmatprep.mubr.bf16.mxu1 %v10839_v2  ;;  %v6110_v36 = vld [vmem:[#allocation4 + $0x6e8] sm:$0xff] }
 0xbbe   :  { %6198 = vmatprep.subr.bf16.mxu1 %v6088_v4  ;;  %v6109_v4 = vld [vmem:[#allocation4 + $0x6e0] sm:$0xff] }
 0xbbf   :  { %6525 = vmatpush1.bf16.msra.mxu0 %v6413_v9  ;;  %v6438_v9 = vld [vmem:[#allocation4 + $0x978] sm:$0xff] }
 0xbc0   :  { %6526 = vmatprep.subr.bf16.mxu0 %v6416_v61  ;;  %v6437_v61 = vld [vmem:[#allocation4 + $0x970] sm:$0xff] }
 0xbc1   :  { %6199 = vmatpush1.bf16.msra.mxu1 %v6087_v23  ;;  %v6112_v23 = vld [vmem:[#allocation4 + $0x6f8] sm:$0xff] }
 0xbc2   :  { %6200 = vmatprep.subr.bf16.mxu1 %v6090_v58  ;;  %6508 = vmatmul.mubr.bf16.gmra.mrb[144].mxu0 %v10845_v59  ;;  %v6111_v58 = vld [vmem:[#allocation4 + $0x6f0] sm:$0xff] }
 0xbc3   :  { %6527 = vmatpush1.bf16.msra.mxu0 %v6415_v12  ;;  %6550 = vmatprep.mubr.bf16.mxu0 %v10847_v28  ;;  %v6440_v12 = vld [vmem:[#allocation4 + $0x988] sm:$0xff] }
 0xbc4   :  { %6182 = vmatmul.mubr.bf16.gmra.mrb[184].mxu1 %v10845_v59  ;;  %6528 = vmatprep.subr.bf16.mxu0 %v6418_v41  ;;  %v6439_v41 = vld [vmem:[#allocation4 + $0x980] sm:$0xff] }
 0xbc5   :  { %6201 = vmatpush1.bf16.msra.mxu1 %v6089_v21  ;;  %6224 = vmatprep.mubr.bf16.mxu1 %v10847_v28  ;;  %v6114_v21 = vld [vmem:[#allocation4 + $0x708] sm:$0xff] }
 0xbc6   :  { %6202 = vmatprep.subr.bf16.mxu1 %v6092_v31  ;;  %v6113_v31 = vld [vmem:[#allocation4 + $0x700] sm:$0xff] }
 0xbc7   :  { %6529 = vmatpush1.bf16.msra.mxu0 %v6417_v45  ;;  %v6442_v45 = vld [vmem:[#allocation4 + $0x998] sm:$0xff] }
 0xbc8   :  { %6530 = vmatprep.subr.bf16.mxu0 %v6420_v54  ;;  %v6441_v54 = vld [vmem:[#allocation4 + $0x990] sm:$0xff] }
 0xbc9   :  { %6203 = vmatpush1.bf16.msra.mxu1 %v6091_v40  ;;  %v6116_v40 = vld [vmem:[#allocation4 + $0x718] sm:$0xff] }
 0xbca   :  { %6204 = vmatprep.subr.bf16.mxu1 %v6094_v42  ;;  %v6115_v42 = vld [vmem:[#allocation4 + $0x710] sm:$0xff] }
 0xbcb   :  { %6531 = vmatpush1.bf16.msra.mxu0 %v6419_v63  ;;  %v6444_v63 = vld [vmem:[#allocation4 + $0x9a8] sm:$0xff] }
 0xbcc   :  { %6532 = vmatprep.subr.bf16.mxu0 %v6422_v55  ;;  %v6443_v55 = vld [vmem:[#allocation4 + $0x9a0] sm:$0xff] }
 0xbcd   :  { %6205 = vmatpush1.bf16.msra.mxu1 %v6093_v38  ;;  %v6118_v38 = vld [vmem:[#allocation4 + $0x728] sm:$0xff] }
 0xbce   :  { %6206 = vmatprep.subr.bf16.mxu1 %v6096_v11  ;;  %v6117_v11 = vld [vmem:[#allocation4 + $0x720] sm:$0xff] }
 0xbcf   :  { %6533 = vmatpush1.bf16.msra.mxu0 %v6421_v47  ;;  %v6446_v47 = vld [vmem:[#allocation4 + $0x9b8] sm:$0xff] }
 0xbd0   :  { %6534 = vmatprep.subr.bf16.mxu0 %v6424_v25  ;;  %v6445_v25 = vld [vmem:[#allocation4 + $0x9b0] sm:$0xff] }
 0xbd1   :  { %6207 = vmatpush1.bf16.msra.mxu1 %v6095_v26  ;;  %v6120_v26 = vld [vmem:[#allocation4 + $0x738] sm:$0xff] }
 0xbd2   :  { %6208 = vmatprep.subr.bf16.mxu1 %v6098_v18  ;;  %v6119_v18 = vld [vmem:[#allocation4 + $0x730] sm:$0xff] }
 0xbd3   :  { %6535 = vmatpush1.bf16.msra.mxu0 %v6423_v33  ;;  %v6448_v33 = vld [vmem:[#allocation4 + $0x9c8] sm:$0xff] }
 0xbd4   :  { %6536 = vmatprep.subr.bf16.mxu0 %v6426_v5  ;;  %v6447_v5 = vld [vmem:[#allocation4 + $0x9c0] sm:$0xff] }
 0xbd5   :  { %6209 = vmatpush1.bf16.msra.mxu1 %v6097_v17  ;;  %v6122_v17 = vld [vmem:[#allocation4 + $0x748] sm:$0xff] }
 0xbd6   :  { %6210 = vmatprep.subr.bf16.mxu1 %v6100_v13  ;;  %v6121_v13 = vld [vmem:[#allocation4 + $0x740] sm:$0xff] }
 0xbd7   :  { %6537 = vmatpush1.bf16.msra.mxu0 %v6425_v37  ;;  %v6450_v37 = vld [vmem:[#allocation4 + $0x9d8] sm:$0xff] }
 0xbd8   :  { %6538 = vmatprep.subr.bf16.mxu0 %v6428_v24  ;;  %v6449_v24 = vld [vmem:[#allocation4 + $0x9d0] sm:$0xff] }
 0xbd9   :  { %6211 = vmatpush1.bf16.msra.mxu1 %v6099_v22  ;;  %v6124_v22 = vld [vmem:[#allocation4 + $0x758] sm:$0xff] }
 0xbda   :  { %6212 = vmatprep.subr.bf16.mxu1 %v6102_v32  ;;  %v6123_v32 = vld [vmem:[#allocation4 + $0x750] sm:$0xff] }
 0xbdb   :  { %6539 = vmatpush1.bf16.msra.mxu0 %v6427_v14  ;;  %v6452_v14 = vld [vmem:[#allocation4 + $0x9e8] sm:$0xff] }
 0xbdc   :  { %6540 = vmatprep.subr.bf16.mxu0 %v6430_v57  ;;  %v6451_v57 = vld [vmem:[#allocation4 + $0x9e0] sm:$0xff] }
 0xbdd   :  { %6213 = vmatpush1.bf16.msra.mxu1 %v6101_v39  ;;  %v6126_v39 = vld [vmem:[#allocation4 + $0x768] sm:$0xff] }
 0xbde   :  { %6214 = vmatprep.subr.bf16.mxu1 %v6104_v16  ;;  %v6125_v16 = vld [vmem:[#allocation4 + $0x760] sm:$0xff] }
 0xbdf   :  { %6541 = vmatpush1.bf16.msra.mxu0 %v6429_v44  ;;  %v6454_v44 = vld [vmem:[#allocation4 + $0x9f8] sm:$0xff] }
 0xbe0   :  { %6542 = vmatprep.subr.bf16.mxu0 %v6432_v49  ;;  %v6453_v49 = vld [vmem:[#allocation4 + $0x9f0] sm:$0xff] }
 0xbe1   :  { %6215 = vmatpush1.bf16.msra.mxu1 %v6103_v20  ;;  %v6128_v20 = vld [vmem:[#allocation4 + $0x778] sm:$0xff] }
 0xbe2   :  { %6216 = vmatprep.subr.bf16.mxu1 %v6106_v50  ;;  %v6127_v50 = vld [vmem:[#allocation4 + $0x770] sm:$0xff] }
 0xbe3   :  { %6543 = vmatpush1.bf16.msra.mxu0 %v6431_v27  ;;  %v6702_v27 = vld [vmem:[#allocation4 + $0xa00] sm:$0xff] }
 0xbe4   :  { %6544 = vmatprep.subr.bf16.mxu0 %v6434_v3  ;;  %v6704_v3 = vld [vmem:[#allocation4 + $0xa10] sm:$0xff] }
 0xbe5   :  { %6217 = vmatpush1.bf16.msra.mxu1 %v6105_v29  ;;  %v6703_v29 = vld [vmem:[#allocation4 + $0xa08] sm:$0xff] }
 0xbe6   :  { %6218 = vmatprep.subr.bf16.mxu1 %v6108_v7  ;;  %v6705_v7 = vld [vmem:[#allocation4 + $0xa18] sm:$0xff] }
 0xbe7   :  { %6545 = vmatpush1.bf16.msra.mxu0 %v6433_v52  ;;  %v6706_v52 = vld [vmem:[#allocation4 + $0xa20] sm:$0xff] }
 0xbe8   :  { %6546 = vmatprep.subr.bf16.mxu0 %v6436_v43  ;;  %v6708_v43 = vld [vmem:[#allocation4 + $0xa30] sm:$0xff] }
 0xbe9   :  { %6219 = vmatpush1.bf16.msra.mxu1 %v6107_v34  ;;  %v6707_v34 = vld [vmem:[#allocation4 + $0xa28] sm:$0xff] }
 0xbea   :  { %6220 = vmatprep.subr.bf16.mxu1 %v6110_v36  ;;  %v6709_v36 = vld [vmem:[#allocation4 + $0xa38] sm:$0xff] }
 0xbeb   :  { %6547 = vmatpush1.bf16.msra.mxu0 %v6435_v6  ;;  %v6710_v6 = vld [vmem:[#allocation4 + $0xa40] sm:$0xff] }
 0xbec   :  { %6548 = vmatprep.subr.bf16.mxu0 %v6438_v9  ;;  %v6712_v9 = vld [vmem:[#allocation4 + $0xa50] sm:$0xff] }
 0xbed   :  { %6221 = vmatpush1.bf16.msra.mxu1 %v6109_v4  ;;  %v6711_v4 = vld [vmem:[#allocation4 + $0xa48] sm:$0xff] }
 0xbee   :  { %6222 = vmatprep.subr.bf16.mxu1 %v6112_v23  ;;  %v6713_v23 = vld [vmem:[#allocation4 + $0xa58] sm:$0xff] }
 0xbef   :  { %6549 = vmatpush1.bf16.msra.mxu0 %v6437_v61  ;;  %v6714_v61 = vld [vmem:[#allocation4 + $0xa60] sm:$0xff] }
 0xbf0   :  { %6581 = vmatprep.subr.bf16.mxu0 %v6440_v12  ;;  %v6716_v12 = vld [vmem:[#allocation4 + $0xa70] sm:$0xff] }
 0xbf1   :  { %6223 = vmatpush1.bf16.msra.mxu1 %v6111_v58  ;;  %v6715_v58 = vld [vmem:[#allocation4 + $0xa68] sm:$0xff] }
 0xbf2   :  { %6255 = vmatprep.subr.bf16.mxu1 %v6114_v21  ;;  %6551 = vmatmul.mubr.bf16.vlgmr.msra.gmra.mrb[136].mxu0 %v10853_v51  ;;  %v6717_v21 = vld [vmem:[#allocation4 + $0xa78] sm:$0xff] }
 0xbf3   :  { %6582 = vmatpush1.bf16.msra.mxu0 %v6439_v41  ;;  %6560 = vmatprep.mubr.bf16.mxu0 %v10855_v56  ;;  %v6718_v41 = vld [vmem:[#allocation4 + $0xa80] sm:$0xff] }
 0xbf4   :  { %6225 = vmatmul.mubr.bf16.vlgmr.msra.gmra.mrb[176].mxu1 %v10853_v51  ;;  %6583 = vmatprep.subr.bf16.mxu0 %v6442_v45  ;;  %v6720_v45 = vld [vmem:[#allocation4 + $0xa90] sm:$0xff] }
 0xbf5   :  { %6256 = vmatpush1.bf16.msra.mxu1 %v6113_v31  ;;  %6234 = vmatprep.mubr.bf16.mxu1 %v10855_v56  ;;  %v6719_v31 = vld [vmem:[#allocation4 + $0xa88] sm:$0xff] }
 0xbf6   :  { %6257 = vmatprep.subr.bf16.mxu1 %v6116_v40  ;;  %v6721_v40 = vld [vmem:[#allocation4 + $0xa98] sm:$0xff] }
 0xbf7   :  { %6584 = vmatpush1.bf16.msra.mxu0 %v6441_v54  ;;  %v6725_v54 = vld [vmem:[#allocation4 + $0xab8] sm:$0xff] }
 0xbf8   :  { %6585 = vmatprep.subr.bf16.mxu0 %v6444_v63  ;;  %v6727_v63 = vld [vmem:[#allocation4 + $0xac8] sm:$0xff] }
 0xbf9   :  { %6258 = vmatpush1.bf16.msra.mxu1 %v6115_v42  ;;  %v6723_v42 = vld [vmem:[#allocation4 + $0xaa8] sm:$0xff] }
 0xbfa   :  { %6259 = vmatprep.subr.bf16.mxu1 %v6118_v38  ;;  %6561 = vmatmul.mubr.bf16.gmra.mrb[140].mxu0 %v10861_v8  ;;  %v6724_v38 = vld [vmem:[#allocation4 + $0xab0] sm:$0xff] }
 0xbfb   :  { %6586 = vmatpush1.bf16.msra.mxu0 %v6443_v55  ;;  %6570 = vmatprep.mubr.bf16.mxu0 %v10863_v46  ;;  %v6729_v55 = vld [vmem:[#allocation4 + $0xad8] sm:$0xff] }
 0xbfc   :  { %6235 = vmatmul.mubr.bf16.gmra.mrb[180].mxu1 %v10861_v8  ;;  %6587 = vmatprep.subr.bf16.mxu0 %v6446_v47 }
 0xbfd   :  { %6260 = vmatpush1.bf16.msra.mxu1 %v6117_v11  ;;  %6244 = vmatprep.mubr.bf16.mxu1 %v10863_v46  ;;  %v6726_v11 = vld [vmem:[#allocation4 + $0xac0] sm:$0xff] }
 0xbfe   :  { %6261 = vmatprep.subr.bf16.mxu1 %v6120_v26  ;;  %v6728_v26 = vld [vmem:[#allocation4 + $0xad0] sm:$0xff] }
 0xbff   :  { %6588 = vmatpush1.bf16.msra.mxu0 %v6445_v25  ;;  %v6731_v25 = vld [vmem:[#allocation4 + $0xae8] sm:$0xff] }
 0xc00   :  { %6589 = vmatprep.subr.bf16.mxu0 %v6448_v33 }
 0xc01   :  { %6262 = vmatpush1.bf16.msra.mxu1 %v6119_v18 }
 0xc02   :  { %6263 = vmatprep.subr.bf16.mxu1 %v6122_v17  ;;  %6571 = vmatmul.mubr.bf16.gmra.mrb[144].mxu0 %v10869_v53 }
 0xc03   :  { %6590 = vmatpush1.bf16.msra.mxu0 %v6447_v5  ;;  %6613 = vmatprep.mubr.bf16.mxu0 %v9749_v19 }
 0xc04   :  { %6245 = vmatmul.mubr.bf16.gmra.mrb[184].mxu1 %v10869_v53  ;;  %6591 = vmatprep.subr.bf16.mxu0 %v6450_v37 }
 0xc05   :  { %6264 = vmatpush1.bf16.msra.mxu1 %v6121_v13  ;;  %6287 = vmatprep.mubr.bf16.mxu1 %v9749_v19 }
 0xc06   :  { %6265 = vmatprep.subr.bf16.mxu1 %v6124_v22 }
 0xc07   :  { %6592 = vmatpush1.bf16.msra.mxu0 %v6449_v24 }
 0xc08   :  { %6593 = vmatprep.subr.bf16.mxu0 %v6452_v14  ;;  %v6730_v14 = vld [vmem:[#allocation4 + $0xae0] sm:$0xff] }
 0xc09   :  { %6266 = vmatpush1.bf16.msra.mxu1 %v6123_v32 }
 0xc0a   :  { %6267 = vmatprep.subr.bf16.mxu1 %v6126_v39 }
 0xc0b   :  { %6594 = vmatpush1.bf16.msra.mxu0 %v6451_v57  ;;  %v6733_v57 = vld [vmem:[#allocation4 + $0xaf8] sm:$0xff] }
 0xc0c   :  { %6595 = vmatprep.subr.bf16.mxu0 %v6454_v44 }
 0xc0d   :  { %6268 = vmatpush1.bf16.msra.mxu1 %v6125_v16 }
 0xc0e   :  { %6269 = vmatprep.subr.bf16.mxu1 %v6128_v20 }
 0xc0f   :  { %6596 = vmatpush1.bf16.msra.mxu0 %v6453_v49 }
 0xc11   :  { %6270 = vmatpush1.bf16.msra.mxu1 %v6127_v50 }
 0xc12   :  { %6782 = vmatprep.subr.bf16.mxu1 %v6703_v29  ;;  %6614 = vmatmul.mubr.bf16.vlgmr.msra.gmra.mrb[136].mxu0 %v10875_v60  ;;  %v6732_v29 = vld [vmem:[#allocation4 + $0xaf0] sm:$0xff] }
 0xc13   :  { %6623 = vmatprep.mubr.bf16.mxu0 %v9749_v19 }
 0xc14   :  { %6288 = vmatmul.mubr.bf16.vlgmr.msra.gmra.mrb[176].mxu1 %v10875_v60 }
 0xc15   :  { %6783 = vmatpush1.bf16.msra.mxu1 %v6702_v27  ;;  %6297 = vmatprep.mubr.bf16.mxu1 %v9749_v19 }
 0xc16   :  { %6784 = vmatprep.subr.bf16.mxu1 %v6705_v7 }
 0xc19   :  { %6785 = vmatpush1.bf16.msra.mxu1 %v6704_v3  ;;  %v6735_v3 = vld [vmem:[#allocation4 + $0xb08] sm:$0xff] }
 0xc1a   :  { %6786 = vmatprep.subr.bf16.mxu1 %v6707_v34  ;;  %6624 = vmatmul.mubr.bf16.gmra.mrb[140].mxu0 %v10881_v15 }
 0xc1b   :  { %6633 = vmatprep.mubr.bf16.mxu0 %v9749_v19 }
 0xc1c   :  { %6298 = vmatmul.mubr.bf16.gmra.mrb[180].mxu1 %v10881_v15 }
 0xc1d   :  { %6787 = vmatpush1.bf16.msra.mxu1 %v6706_v52  ;;  %6307 = vmatprep.mubr.bf16.mxu1 %v9749_v19 }
 0xc1e   :  { %6788 = vmatprep.subr.bf16.mxu1 %v6709_v36 }
 0xc21   :  { %6789 = vmatpush1.bf16.msra.mxu1 %v6708_v43 }
 0xc22   :  { %6790 = vmatprep.subr.bf16.mxu1 %v6711_v4  ;;  %6634 = vmatmul.mubr.bf16.gmra.mrb[144].mxu0 %v10887_v48 }
 0xc24   :  { %6308 = vmatmul.mubr.bf16.gmra.mrb[184].mxu1 %v10887_v48 }
 0xc25   :  { %6791 = vmatpush1.bf16.msra.mxu1 %v6710_v6  ;;  %6814 = vmatprep.mubr.bf16.mxu1 %v10825_v10  ;;  %v6722_v10 = vld [vmem:[#allocation4 + $0xaa0] sm:$0xff] }
 0xc26   :  { %6792 = vmatprep.subr.bf16.mxu1 %v6713_v23 }
 0xc29   :  { %6793 = vmatpush1.bf16.msra.mxu1 %v6712_v9 }
 0xc2a   :  { %6794 = vmatprep.subr.bf16.mxu1 %v6715_v58 }
 0xc2d   :  { %6795 = vmatpush1.bf16.msra.mxu1 %v6714_v61  ;;  %v6734_v61 = vld [vmem:[#allocation4 + $0xb00] sm:$0xff] }
 0xc2e   :  { %6796 = vmatprep.subr.bf16.mxu1 %v6717_v21 }
 0xc31   :  { %6797 = vmatpush1.bf16.msra.mxu1 %v6716_v12 }
 0xc32   :  { %6798 = vmatprep.subr.bf16.mxu1 %v6719_v31 }
 0xc35   :  { %6799 = vmatpush1.bf16.msra.mxu1 %v6718_v41 }
 0xc36   :  { %6800 = vmatprep.subr.bf16.mxu1 %v6721_v40  ;;  %v6737_v40 = vld [vmem:[#allocation4 + $0xb18] sm:$0xff] }
 0xc39   :  { %6801 = vmatpush1.bf16.msra.mxu1 %v6720_v45 }
 0xc3a   :  { %6802 = vmatprep.subr.bf16.mxu1 %v6723_v42 }
 0xc3d   :  { %6803 = vmatpush1.bf16.msra.mxu1 %v6722_v10  ;;  %v6736_v10 = vld [vmem:[#allocation4 + $0xb10] sm:$0xff] }
 0xc3e   :  { %6804 = vmatprep.subr.bf16.mxu1 %v6725_v54 }
 0xc41   :  { %6805 = vmatpush1.bf16.msra.mxu1 %v6724_v38 }
 0xc42   :  { %6806 = vmatprep.subr.bf16.mxu1 %v6727_v63 }
 0xc45   :  { %6807 = vmatpush1.bf16.msra.mxu1 %v6726_v11  ;;  %v5963_v18 = vpop.f32.mrb[124].mxu0  ;;  %v6739_v11 = vld [vmem:[#allocation4 + $0xb28] sm:$0xff] }
 0xc46   :  { %6808 = vmatprep.subr.bf16.mxu1 %v6729_v55  ;;  %v5998_v17 = vrot.slane %v5963_v18, 1  ;;  %v5965_v13 = vpop.f32.mrb[125].mxu0 }
 0xc47   :  { %v5681_v47 = vpop.f32.mrb[164].mxu1  ;;  %v6001_v5 = vrot.slane %v5965_v13, 1  ;;  %v5967_v37 = vpop.f32.mrb[126].mxu0 }
 0xc48   :  { %v5683_v33 = vpop.f32.mrb[165].mxu1  ;;  %v5999_v32 = vrot.slane %v5967_v37, 1  ;;  %v5969_v39 = vpop.f32.mrb[127].mxu0 }
 0xc49   :  { %v5685_v22 = vpop.f32.mrb[166].mxu1  ;;  %6809 = vmatpush1.bf16.msra.mxu1 %v6728_v26  ;;  %v6002_v16 = vrot.slane %v5969_v39, 1 }
 0xc4a   :  { %v5687_v24 = vpop.f32.mrb[167].mxu1  ;;  %6810 = vmatprep.subr.bf16.mxu1 %v6731_v25  ;;  %v6000_v20 = vsel %vm4467_vm3, %v5998_v17, %v5999_v32 }
 0xc4b   :  { %v10929_v44 = vadd.f32 %v6000_v20, %v5681_v47  ;;  %v6003_v50 = vsel %vm4467_vm3, %v6001_v5, %v6002_v16 }
 0xc4c   :  { %v10932_v49 = vadd.f32 %v6003_v50, %v5683_v33 }
 0xc4d   :  { %6811 = vmatpush1.bf16.msra.mxu1 %v6730_v14  ;;  %v5973_v7 = vpop.f32.mrb[128].mxu0 }
 0xc4e   :  { %6812 = vmatprep.subr.bf16.mxu1 %v6733_v57  ;;  %v6004_v34 = vrot.slane %v5973_v7, 1  ;;  %v5975_v36 = vpop.f32.mrb[129].mxu0  ;;  %v6743_v7 = vld [vmem:[#allocation4 + $0xb48] sm:$0xff] }
 0xc4f   :  { %v5691_v27 = vpop.f32.mrb[168].mxu1  ;;  %v6006_v43 = vrot.slane %v5975_v36, 1  ;;  %v5977_v6 = vpop.f32.mrb[130].mxu0  ;;  %v6749_v36 = vld [vmem:[#allocation4 + $0xb78] sm:$0xff] }
 0xc50   :  { %v5693_v52 = vpop.f32.mrb[169].mxu1  ;;  %v6005_v23 = vsel %vm4467_vm3, %v5999_v32, %v6004_v34  ;;  %v10935_v9 = vadd.f32 %v6004_v34, %v5691_v27  ;;  %v5979_v21 = vpop.f32.mrb[131].mxu0  ;;  %v6026_v42 = vrot.slane %v5977_v6, 1  ;;  %v6740_v27 = vld [vmem:[#allocation4 + $0xb30] sm:$0xff]  ;;  %v6745_v34 = vld [vmem:[#allocation4 + $0xb58] sm:$0xff]  ;;  %v6750_v6 = vld [vmem:[#allocation4 + $0xb80] sm:$0xff] }
 0xc51   :  { %v5695_v4 = vpop.f32.mrb[170].mxu1  ;;  %6813 = vmatpush1.bf16.msra.mxu1 %v6732_v29  ;;  %v10937_v12 = vadd.f32 %v6005_v23, %v5685_v22  ;;  %v6007_v31 = vsel %vm4467_vm3, %v6002_v16, %v6006_v43  ;;  %v10940_v41 = vadd.f32 %v6006_v43, %v5693_v52  ;;  %v6029_v54 = vrot.slane %v5979_v21, 1  ;;  %v6747_v52 = vld [vmem:[#allocation4 + $0xb68] sm:$0xff]  ;;  %v6748_v43 = vld [vmem:[#allocation4 + $0xb70] sm:$0xff]  ;;  %v6753_v23 = vld [vmem:[#allocation4 + $0xb98] sm:$0xff] }
 0xc52   :  { %v5697_v58 = vpop.f32.mrb[171].mxu1  ;;  %6841 = vmatprep.subr.bf16.mxu1 %v6735_v3  ;;  %v10942_v45 = vadd.f32 %v6007_v31, %v5687_v24  ;;  %v6741_v24 = vld [vmem:[#allocation4 + $0xb38] sm:$0xff]  ;;  %v6742_v3 = vld [vmem:[#allocation4 + $0xb40] sm:$0xff]  ;;  %v6756_v21 = vld [vmem:[#allocation4 + $0xbb0] sm:$0xff] }
 0xc53   :  { %v6759_v31 = vld [vmem:[#allocation4 + $0xbc8] sm:$0xff] }
 0xc54   :  { %6815 = vmatmul.mubr.bf16.vlgmr.msra.gmra.mrb[188].mxu1 %v10829_v1 }
 0xc55   :  { %6842 = vmatpush1.bf16.msra.mxu1 %v6734_v61  ;;  %6822 = vmatprep.mubr.bf16.mxu1 %v10831_v30  ;;  %v5983_v63 = vpop.f32.mrb[132].mxu0  ;;  %v6738_v30 = vld [vmem:[#allocation4 + $0xb20] sm:$0xff]  ;;  %v6757_v61 = vld [vmem:[#allocation4 + $0xbb8] sm:$0xff] }
 0xc56   :  { %6843 = vmatprep.subr.bf16.mxu1 %v6737_v40  ;;  %v6027_v55 = vrot.slane %v5983_v63, 1  ;;  %v5985_v47 = vpop.f32.mrb[133].mxu0  ;;  %v6758_v40 = vld [vmem:[#allocation4 + $0xbc0] sm:$0xff]  ;;  %v6765_v63 = vld [vmem:[#allocation4 + $0xbf8] sm:$0xff] }
 0xc57   :  { %v5701_v38 = vpop.f32.mrb[172].mxu1  ;;  %v6030_v18 = vrot.slane %v5985_v47, 1  ;;  %v5987_v17 = vpop.f32.mrb[134].mxu0  ;;  %v6769_v47 = vld [vmem:[#allocation4 + $0xc18] sm:$0xff] }
 0xc58   :  { %v5703_v26 = vpop.f32.mrb[173].mxu1  ;;  %v6028_v33 = vsel %vm4467_vm3, %v6026_v42, %v6027_v55  ;;  %v6032_v1 = vrot.slane %v5987_v17, 1  ;;  %v5989_v5 = vpop.f32.mrb[135].mxu0  ;;  %v6761_v42 = vld [vmem:[#allocation4 + $0xbd8] sm:$0xff]  ;;  %v6770_v17 = vld [vmem:[#allocation4 + $0xc20] sm:$0xff] }
 0xc59   :  { %v5705_v25 = vpop.f32.mrb[174].mxu1  ;;  %6844 = vmatpush1.bf16.msra.mxu1 %v6736_v10  ;;  %v10947_v22 = vadd.f32 %v6028_v33, %v5695_v4  ;;  %v6031_v37 = vsel %vm4467_vm3, %v6029_v54, %v6030_v18  ;;  %v6034_v32 = vrot.slane %v5989_v5, 1  ;;  %v6751_v4 = vld [vmem:[#allocation4 + $0xb88] sm:$0xff]  ;;  %v6760_v10 = vld [vmem:[#allocation4 + $0xbd0] sm:$0xff]  ;;  %v6773_v33 = vld [vmem:[#allocation4 + $0xc38] sm:$0xff] }
 0xc5a   :  { %v5707_v13 = vpop.f32.mrb[175].mxu1  ;;  %6845 = vmatprep.subr.bf16.mxu1 %v6739_v11  ;;  %v10950_v39 = vadd.f32 %v6031_v37, %v5697_v58  ;;  %v6033_v14 = vsel %vm4467_vm3, %v6027_v55, %v6032_v1  ;;  %v10953_v16 = vadd.f32 %v6032_v1, %v5705_v25  ;;  %v6755_v58 = vld [vmem:[#allocation4 + $0xba8] sm:$0xff]  ;;  %v6764_v11 = vld [vmem:[#allocation4 + $0xbf0] sm:$0xff]  ;;  %v6777_v5 = vld [vmem:[#allocation4 + $0xc58] sm:$0xff] }
 0xc5b   :  { %v10956_v57 = vadd.f32 %v6033_v14, %v5701_v38  ;;  %v6035_v20 = vsel %vm4467_vm3, %v6030_v18, %v6034_v32  ;;  %v10959_v50 = vadd.f32 %v6034_v32, %v5707_v13  ;;  %v6763_v54 = vld [vmem:[#allocation4 + $0xbe8] sm:$0xff]  ;;  %v6762_v38 = vld [vmem:[#allocation4 + $0xbe0] sm:$0xff]  ;;  %v6768_v18 = vld [vmem:[#allocation4 + $0xc10] sm:$0xff] }
 0xc5c   :  { %6823 = vmatmul.mubr.bf16.gmra.mrb[192].mxu1 %v10837_v35  ;;  %v10962_v29 = vadd.f32 %v6035_v20, %v5703_v26  ;;  %v6744_v35 = vld [vmem:[#allocation4 + $0xb50] sm:$0xff]  ;;  %v6767_v55 = vld [vmem:[#allocation4 + $0xc08] sm:$0xff]  ;;  %v6766_v26 = vld [vmem:[#allocation4 + $0xc00] sm:$0xff] }
 0xc5d   :  { %6846 = vmatpush1.bf16.msra.mxu1 %v6738_v30  ;;  %6830 = vmatprep.mubr.bf16.mxu1 %v10839_v2  ;;  %v6746_v2 = vld [vmem:[#allocation4 + $0xb60] sm:$0xff]  ;;  %v6771_v25 = vld [vmem:[#allocation4 + $0xc28] sm:$0xff]  ;;  %v6772_v1 = vld [vmem:[#allocation4 + $0xc30] sm:$0xff] }
 0xc5e   :  { %6847 = vmatprep.subr.bf16.mxu1 %v6741_v24  ;;  %v6775_v13 = vld [vmem:[#allocation4 + $0xc48] sm:$0xff]  ;;  %v6781_v37 = vld [vmem:[#allocation4 + $0xc78] sm:$0xff] }
 0xc5f   :  { %v6779_v30 = vld [vmem:[#allocation4 + $0xc68] sm:$0xff] }
 0xc61   :  { %6848 = vmatpush1.bf16.msra.mxu1 %v6740_v27 }
 0xc62   :  { %6849 = vmatprep.subr.bf16.mxu1 %v6743_v7 }
 0xc64   :  { %6831 = vmatmul.mubr.bf16.gmra.mrb[196].mxu1 %v10845_v59  ;;  %v6752_v59 = vld [vmem:[#allocation4 + $0xb90] sm:$0xff] }
 0xc65   :  { %6850 = vmatpush1.bf16.msra.mxu1 %v6742_v3  ;;  %6873 = vmatprep.mubr.bf16.mxu1 %v10847_v28  ;;  %v6754_v28 = vld [vmem:[#allocation4 + $0xba0] sm:$0xff] }
 0xc66   :  { %6851 = vmatprep.subr.bf16.mxu1 %v6745_v34 }
 0xc69   :  { %6852 = vmatpush1.bf16.msra.mxu1 %v6744_v35 }
 0xc6a   :  { %6853 = vmatprep.subr.bf16.mxu1 %v6747_v52 }
 0xc6d   :  { %6854 = vmatpush1.bf16.msra.mxu1 %v6746_v2 }
 0xc6e   :  { %6855 = vmatprep.subr.bf16.mxu1 %v6749_v36 }
 0xc71   :  { %6856 = vmatpush1.bf16.msra.mxu1 %v6748_v43 }
 0xc72   :  { %6857 = vmatprep.subr.bf16.mxu1 %v6751_v4 }
 0xc75   :  { %6858 = vmatpush1.bf16.msra.mxu1 %v6750_v6 }
 0xc76   :  { %6859 = vmatprep.subr.bf16.mxu1 %v6753_v23 }
 0xc79   :  { %6860 = vmatpush1.bf16.msra.mxu1 %v6752_v59 }
 0xc7a   :  { %6861 = vmatprep.subr.bf16.mxu1 %v6755_v58 }
 0xc7d   :  { %6862 = vmatpush1.bf16.msra.mxu1 %v6754_v28 }
 0xc7e   :  { %6863 = vmatprep.subr.bf16.mxu1 %v6757_v61 }
 0xc81   :  { %6864 = vmatpush1.bf16.msra.mxu1 %v6756_v21 }
 0xc82   :  { %6865 = vmatprep.subr.bf16.mxu1 %v6759_v31 }
 0xc85   :  { %6866 = vmatpush1.bf16.msra.mxu1 %v6758_v40 }
 0xc86   :  { %6867 = vmatprep.subr.bf16.mxu1 %v6761_v42 }
 0xc89   :  { %6868 = vmatpush1.bf16.msra.mxu1 %v6760_v10 }
 0xc8a   :  { %6869 = vmatprep.subr.bf16.mxu1 %v6763_v54 }
 0xc8d   :  { %6870 = vmatpush1.bf16.msra.mxu1 %v6762_v38 }
 0xc8e   :  { %6871 = vmatprep.subr.bf16.mxu1 %v6765_v63 }
 0xc91   :  { %6872 = vmatpush1.bf16.msra.mxu1 %v6764_v11 }
 0xc92   :  { %6900 = vmatprep.subr.bf16.mxu1 %v6767_v55 }
 0xc94   :  { %6874 = vmatmul.mubr.bf16.vlgmr.msra.gmra.mrb[188].mxu1 %v10853_v51  ;;  %v6774_v51 = vld [vmem:[#allocation4 + $0xc40] sm:$0xff] }
 0xc95   :  { %6901 = vmatpush1.bf16.msra.mxu1 %v6766_v26  ;;  %6881 = vmatprep.mubr.bf16.mxu1 %v10855_v56  ;;  %v6776_v56 = vld [vmem:[#allocation4 + $0xc50] sm:$0xff] }
 0xc96   :  { %6902 = vmatprep.subr.bf16.mxu1 %v6769_v47 }
 0xc99   :  { %6903 = vmatpush1.bf16.msra.mxu1 %v6768_v18 }
 0xc9a   :  { %6904 = vmatprep.subr.bf16.mxu1 %v6771_v25 }
 0xc9c   :  { %6882 = vmatmul.mubr.bf16.gmra.mrb[192].mxu1 %v10861_v8  ;;  %v6778_v8 = vld [vmem:[#allocation4 + $0xc60] sm:$0xff] }
 0xc9d   :  { %6905 = vmatpush1.bf16.msra.mxu1 %v6770_v17  ;;  %6889 = vmatprep.mubr.bf16.mxu1 %v10863_v46  ;;  %v6780_v46 = vld [vmem:[#allocation4 + $0xc70] sm:$0xff] }
 0xc9e   :  { %6906 = vmatprep.subr.bf16.mxu1 %v6773_v33 }
 0xca1   :  { %6907 = vmatpush1.bf16.msra.mxu1 %v6772_v1 }
 0xca2   :  { %6908 = vmatprep.subr.bf16.mxu1 %v6775_v13 }
 0xca4   :  { %6890 = vmatmul.mubr.bf16.gmra.mrb[196].mxu1 %v10869_v53 }
 0xca5   :  { %6909 = vmatpush1.bf16.msra.mxu1 %v6774_v51  ;;  %6932 = vmatprep.mubr.bf16.mxu1 %v9749_v19 }
 0xca6   :  { %6910 = vmatprep.subr.bf16.mxu1 %v6777_v5 }
 0xca9   :  { %6911 = vmatpush1.bf16.msra.mxu1 %v6776_v56 }
 0xcaa   :  { %6912 = vmatprep.subr.bf16.mxu1 %v6779_v30 }
 0xcad   :  { %6913 = vmatpush1.bf16.msra.mxu1 %v6778_v8 }
 0xcae   :  { %6914 = vmatprep.subr.bf16.mxu1 %v6781_v37 }
 0xcb1   :  { %6915 = vmatpush1.bf16.msra.mxu1 %v6780_v46 }
 0xcb4   :  { %6933 = vmatmul.mubr.bf16.vlgmr.msra.gmra.mrb[188].mxu1 %v10875_v60 }
 0xcb5   :  { %6940 = vmatprep.mubr.bf16.mxu1 %v9749_v19 }
 0xcbc   :  { %6941 = vmatmul.mubr.bf16.gmra.mrb[192].mxu1 %v10881_v15 }
 0xcbd   :  { %6948 = vmatprep.mubr.bf16.mxu1 %v9749_v19 }
 0xcc4   :  { %6949 = vmatmul.mubr.bf16.gmra.mrb[196].mxu1 %v10887_v48 }
 0xce5   :  { %v6615_v32 = vpop.f32.mrb[136].mxu0 }
 0xce6   :  { %v6651_v14 = vrot.slane %v6615_v32, 3  ;;  %v6617_v20 = vpop.f32.mrb[137].mxu0 }
 0xce7   :  { %v6289_v53 = vpop.f32.mrb[176].mxu1  ;;  %v6654_v7 = vrot.slane %v6617_v20, 3  ;;  %v6619_v3 = vpop.f32.mrb[138].mxu0 }
 0xce8   :  { %v6291_v24 = vpop.f32.mrb[177].mxu1  ;;  %v6324_v34 = vrot.slane %v6289_v53, 2  ;;  %v6652_v52 = vrot.slane %v6619_v3, 3  ;;  %v6621_v2 = vpop.f32.mrb[139].mxu0 }
 0xce9   :  { %v6293_v27 = vpop.f32.mrb[178].mxu1  ;;  %v6327_v36 = vrot.slane %v6291_v24, 2  ;;  %v6655_v43 = vrot.slane %v6621_v2, 3 }
 0xcea   :  { %v6325_v35 = vrot.slane %v6293_v27, 2  ;;  %v6295_v60 = vpop.f32.mrb[179].mxu1  ;;  %v6653_v48 = vsel %vm6650_vm6, %v6651_v14, %v6652_v52 }
 0xceb   :  { %v6328_v15 = vrot.slane %v6295_v60, 2  ;;  %v6656_v59 = vsel %vm6650_vm6, %v6654_v7, %v6655_v43 }
 0xcec   :  { %v6326_v4 = vsel %vm5174_vm4, %v6324_v34, %v6325_v35 }
 0xced   :  { %v6340_v6 = vadd.f32 %v6326_v4, %v10929_v44  ;;  %v6329_v23 = vsel %vm5174_vm4, %v6327_v36, %v6328_v15  ;;  %v6625_v61 = vpop.f32.mrb[140].mxu0 }
 0xcee   :  { %v6341_v58 = vadd.f32 %v6329_v23, %v10932_v49  ;;  %v6657_v42 = vrot.slane %v6625_v61, 3  ;;  %v6627_v10 = vpop.f32.mrb[141].mxu0 }
 0xcef   :  { %v6299_v28 = vpop.f32.mrb[180].mxu1  ;;  %v10983_v21 = vadd.f32 %v6653_v48, %v6340_v6  ;;  %v6659_v11 = vrot.slane %v6627_v10, 3  ;;  %v6629_v44 = vpop.f32.mrb[142].mxu0 }
 0xcf0   :  { %v6330_v31 = vrot.slane %v6299_v28, 2  ;;  %v6301_v40 = vpop.f32.mrb[181].mxu1  ;;  %v10985_v54 = vadd.f32 %v6656_v59, %v6341_v58  ;;  %v6658_v49 = vsel %vm6650_vm6, %v6652_v52, %v6657_v42  ;;  %v6631_v18 = vpop.f32.mrb[143].mxu0  ;;  %v6679_v30 = vrot.slane %v6629_v44, 3 }
 0xcf1   :  { %v6332_v38 = vrot.slane %v6301_v40, 2  ;;  %v6303_v63 = vpop.f32.mrb[182].mxu1  ;;  %v6660_v51 = vsel %vm6650_vm6, %v6655_v43, %v6659_v11  ;;  %v6682_v37 = vrot.slane %v6631_v18, 3 }
 0xcf2   :  { %v6331_v55 = vsel %vm5174_vm4, %v6325_v35, %v6330_v31  ;;  %v6344_v26 = vadd.f32 %v6330_v31, %v10935_v9  ;;  %v6305_v47 = vpop.f32.mrb[183].mxu1  ;;  %v6352_v46 = vrot.slane %v6303_v63, 2 }
 0xcf3   :  { %v6342_v25 = vadd.f32 %v6331_v55, %v10937_v12  ;;  %v6333_v17 = vsel %vm5174_vm4, %v6328_v15, %v6332_v38  ;;  %v6345_v33 = vadd.f32 %v6332_v38, %v10940_v41 }
 0xcf4   :  { %v6343_v1 = vadd.f32 %v6333_v17, %v10942_v45  ;;  %v10994_v13 = vadd.f32 %v6657_v42, %v6344_v26  ;;  %v6355_v45 = vrot.slane %v6305_v47, 2 }
 0xcf5   :  { %v10997_v5 = vadd.f32 %v6658_v49, %v6342_v25  ;;  %v10999_v56 = vadd.f32 %v6659_v11, %v6345_v33  ;;  %v6635_v12 = vpop.f32.mrb[144].mxu0 }
 0xcf6   :  { %v11001_v9 = vadd.f32 %v6660_v51, %v6343_v1  ;;  %v6680_v41 = vrot.slane %v6635_v12, 3  ;;  %v6637_v24 = vpop.f32.mrb[145].mxu0 }
 0xcf7   :  { %v6309_v8 = vpop.f32.mrb[184].mxu1  ;;  %v6683_v27 = vrot.slane %v6637_v24, 3  ;;  %v6639_v7 = vpop.f32.mrb[146].mxu0 }
 0xcf8   :  { %v6353_v53 = vrot.slane %v6309_v8, 2  ;;  %v6311_v32 = vpop.f32.mrb[185].mxu1  ;;  %v6681_v35 = vsel %vm6650_vm6, %v6679_v30, %v6680_v41  ;;  %v6685_v52 = vrot.slane %v6639_v7, 3  ;;  %v6641_v2 = vpop.f32.mrb[147].mxu0 }
 0xcf9   :  { %v6356_v14 = vrot.slane %v6311_v32, 2  ;;  %v6313_v20 = vpop.f32.mrb[186].mxu1  ;;  %v6684_v4 = vsel %vm6650_vm6, %v6682_v37, %v6683_v27 }
 0xcfa   :  { %v6354_v3 = vsel %vm5174_vm4, %v6352_v46, %v6353_v53  ;;  %v6358_v34 = vrot.slane %v6313_v20, 2  ;;  %v6315_v60 = vpop.f32.mrb[187].mxu1  ;;  %v6686_v59 = vsel %vm6650_vm6, %v6680_v41, %v6685_v52 }
 0xcfb   :  { %v6368_v36 = vadd.f32 %v6354_v3, %v10947_v22  ;;  %v6357_v15 = vsel %vm5174_vm4, %v6355_v45, %v6356_v14  ;;  %v6360_v43 = vrot.slane %v6315_v60, 2  ;;  %v6687_v22 = vrot.slane %v6641_v2, 3 }
 0xcfc   :  { %v6369_v48 = vadd.f32 %v6357_v15, %v10950_v39  ;;  %v6359_v6 = vsel %vm5174_vm4, %v6353_v53, %v6358_v34  ;;  %v6372_v23 = vadd.f32 %v6358_v34, %v10953_v16 }
 0xcfd   :  { %v6370_v58 = vadd.f32 %v6359_v6, %v10956_v57  ;;  %v6361_v28 = vsel %vm5174_vm4, %v6356_v14, %v6360_v43  ;;  %v6373_v61 = vadd.f32 %v6360_v43, %v10959_v50  ;;  %v6695_v42 = vadd.f32 %v6681_v35, %v6368_v36  ;;  %v7004_v50 = vld [vmem:[#allocation24] sm:$0x3] }
 0xcfe   :  { %v6371_v31 = vadd.f32 %v6361_v28, %v10962_v29  ;;  %v11016_v40 = vadd.f32 %v6685_v52, %v6372_v23  ;;  %v6696_v10 = vadd.f32 %v6684_v4, %v6369_v48  ;;  %v6688_v38 = vsel %vm6650_vm6, %v6683_v27, %v6687_v22 }
 0xcff   :  { %v11018_v39 = vadd.f32 %v6686_v59, %v6370_v58  ;;  %v11021_v16 = vadd.f32 %v6687_v22, %v6373_v61  ;;  %v7009_v47 = vrot.slane %v7004_v50, %v10003_v62  ;;  %v11029_v25 = vrot.slane %v7004_v50, %v10006_v0 }
 0xd00   :  { %v11023_v63 = vadd.f32 %v6688_v38, %v6371_v31 }
 0xd87   :  { %v6934_v57 = vpop.f32.mrb[188].mxu1 }
 0xd88   :  { %v6935_v11 = vpop.f32.mrb[189].mxu1 }
 0xd89   :  { %v6936_v44 = vpop.f32.mrb[190].mxu1 }
 0xd8a   :  { %v6964_v55 = vrot.slane %v6936_v44, 4  ;;  %v6938_v26 = vpop.f32.mrb[191].mxu1 }
 0xd8b   :  { %v6965_v49 = vrot.slane %v6938_v26, 4 }
 0xd8c   :  { %v6976_v29 = vadd.f32 %v6964_v55, %v10983_v21 }
 0xd8d   :  { %v6977_v18 = vadd.f32 %v6965_v49, %v10985_v54 }
 0xd8e   :  { %v7016_v51 = vadd.f32 %v7009_v47, %v6976_v29 }
 0xd8f   :  { %v6942_v17 = vpop.f32.mrb[192].mxu1  ;;  %v7017_v37 = vadd.f32 %v11029_v25, %v6977_v18 }
 0xd90   :  { %v6966_v33 = vrot.slane %v6942_v17, 4  ;;  %v6944_v1 = vpop.f32.mrb[193].mxu1  ;;  %v7060_v41 = vmax.f32 %v7016_v51, 0.0 }
 0xd91   :  { %v6968_v30 = vrot.slane %v6944_v1, 4  ;;  %v6946_v8 = vpop.f32.mrb[194].mxu1  ;;  %v7061_v14 = vmax.f32 %v7017_v37, 0.0 }
 0xd92   :  { %v6967_v12 = vsel %vm6963_vm7, %v6964_v55, %v6966_v33  ;;  %v6980_v21 = vadd.f32 %v6966_v33, %v10994_v13  ;;  %v6947_v46 = vpop.f32.mrb[195].mxu1  ;;  %v7072_v52 = vrot.slane %v7060_v41, 4 }
 0xd93   :  { %v6978_v62 = vadd.f32 %v6967_v12, %v10997_v5  ;;  %v6969_v54 = vsel %vm6963_vm7, %v6965_v49, %v6968_v30  ;;  %v6981_v0 = vadd.f32 %v6968_v30, %v10999_v56  ;;  %v7075_v15 = vrot.slane %v7061_v14, 4 }
 0xd94   :  { %v7020_v53 = vadd.f32 %v7009_v47, %v6980_v21  ;;  %v6979_v32 = vadd.f32 %v6969_v54, %v11001_v9 }
 0xd95   :  { %v7018_v24 = vadd.f32 %v7009_v47, %v6978_v62  ;;  %v7021_v45 = vadd.f32 %v11029_v25, %v6981_v0 }
 0xd96   :  { %v7064_v20 = vmax.f32 %v7020_v53, 0.0  ;;  %v7019_v27 = vadd.f32 %v11029_v25, %v6979_v32 }
 0xd97   :  { %v7062_v7 = vmax.f32 %v7018_v24, 0.0  ;;  %v7065_v13 = vmax.f32 %v7021_v45, 0.0  ;;  %v6950_v3 = vpop.f32.mrb[196].mxu1 }
 0xd98   :  { %v7078_v34 = vrot.slane %v7064_v20, 4  ;;  %v7063_v5 = vmax.f32 %v7019_v27, 0.0  ;;  %v6986_v35 = vrot.slane %v6950_v3, 4  ;;  %v6952_v60 = vpop.f32.mrb[197].mxu1 }
 0xd99   :  { %v7073_v56 = vrot.slane %v7062_v7, 4  ;;  %v7080_v2 = vrot.slane %v7065_v13, 4  ;;  %v6987_v36 = vrot.slane %v6952_v60, 4  ;;  %v6954_v9 = vpop.f32.mrb[198].mxu1 }
 0xd9a   :  { %v7076_v43 = vrot.slane %v7063_v5, 4  ;;  %v6998_v4 = vadd.f32 %v6986_v35, %v6695_v42  ;;  %v6988_v48 = vrot.slane %v6954_v9, 4  ;;  %v6956_v6 = vpop.f32.mrb[199].mxu1 }
 0xd9b   :  { %v7074_v23 = vsel %vm6963_vm7, %v7072_v52, %v7073_v56  ;;  %v7079_v59 = vsel %vm6963_vm7, %v7073_v56, %v7078_v34  ;;  %v6999_v58 = vadd.f32 %v6987_v36, %v6696_v10  ;;  %v6990_v28 = vrot.slane %v6956_v6, 4 }
 0xd9c   :  { %7086 = vst [vmem:[#allocation9 + $0x28] sm:$0xff] %v7074_v23  ;;  %7088 = vst [vmem:[#allocation9 + $0x48] sm:$0xff] %v7079_v59  ;;  %v7077_v61 = vsel %vm6963_vm7, %v7075_v15, %v7076_v43  ;;  %v7081_v22 = vsel %vm6963_vm7, %v7076_v43, %v7080_v2  ;;  %v7022_v31 = vadd.f32 %v7009_v47, %v6998_v4 }
 0xd9d   :  { %v6989_v38 = vsel %vm6963_vm7, %v6986_v35, %v6988_v48  ;;  %7087 = vst [vmem:[#allocation9 + $0x30] sm:$0xff] %v7077_v61  ;;  %7089 = vst [vmem:[#allocation9 + $0x50] sm:$0xff] %v7081_v22  ;;  %v7023_v42 = vadd.f32 %v11029_v25, %v6999_v58  ;;  %v7002_v11 = vadd.f32 %v6988_v48, %v11016_v40 }
 0xd9e   :  { %v7000_v57 = vadd.f32 %v6989_v38, %v11018_v39  ;;  %v6991_v10 = vsel %vm6963_vm7, %v6987_v36, %v6990_v28  ;;  %v7003_v55 = vadd.f32 %v6990_v28, %v11021_v16  ;;  %v7090_v50 = vmax.f32 %v7022_v31, 0.0 }
 0xd9f   :  { %v7001_v44 = vadd.f32 %v6991_v10, %v11023_v63  ;;  %v7026_v49 = vadd.f32 %v7009_v47, %v7002_v11  ;;  %v7091_v29 = vmax.f32 %v7023_v42, 0.0 }
 0xda0   :  { %v7024_v26 = vadd.f32 %v7009_v47, %v7000_v57  ;;  %v7027_v17 = vadd.f32 %v11029_v25, %v7003_v55  ;;  %v7102_v30 = vrot.slane %v7090_v50, 4 }
 0xda1   :  { %v7025_v18 = vadd.f32 %v11029_v25, %v7001_v44  ;;  %v7094_v1 = vmax.f32 %v7026_v49, 0.0  ;;  %v7105_v37 = vrot.slane %v7091_v29, 4 }
 0xda2   :  { %v7092_v33 = vmax.f32 %v7024_v26, 0.0  ;;  %v7095_v39 = vmax.f32 %v7027_v17, 0.0 }
 0xda3   :  { %v7093_v51 = vmax.f32 %v7025_v18, 0.0  ;;  %v7108_v8 = vrot.slane %v7094_v1, 4 }
 0xda4   :  { %v7103_v40 = vrot.slane %v7092_v33, 4  ;;  %v7110_v63 = vrot.slane %v7095_v39, 4 }
 0xda5   :  { %v7106_v12 = vrot.slane %v7093_v51, 4 }
 0xda6   :  { %v7104_v16 = vsel %vm6963_vm7, %v7102_v30, %v7103_v40  ;;  %v7109_v21 = vsel %vm6963_vm7, %v7103_v40, %v7108_v8 }
 0xda7   :  { %7116 = vst [vmem:[#allocation9 + $0xa8] sm:$0xff] %v7104_v16  ;;  %7118 = vst [vmem:[#allocation9 + $0xc8] sm:$0xff] %v7109_v21  ;;  %v7107_v47 = vsel %vm6963_vm7, %v7105_v37, %v7106_v12  ;;  %v7111_v25 = vsel %vm6963_vm7, %v7106_v12, %v7110_v63 }
 0xda8   :  { %7117 = vst [vmem:[#allocation9 + $0xb0] sm:$0xff] %v7107_v47  ;;  %7119 = vst [vmem:[#allocation9 + $0xd0] sm:$0xff] %v7111_v25 }
 0xda9   :  { %9712 = dma.done.wait [#allocation10 + $0x3], 17920 }
 0xdaa   :  { %9713 = vsyncadd [#allocation10 + $0x3], 4294949376  ;;  %7438 = vmatprep.subr.bf16.mxu1 %v9749_v19  ;;  %v7180_v46 = vld [vmem:[#allocation5 + $0x40] sm:$0xff]  ;;  %v7181_v54 = vld [vmem:[#allocation5 + $0x48] sm:$0xff] }
 0xdab   :  { %v7172_v62 = vld [vmem:[#allocation5] sm:$0xff]  ;;  %8608 = vmatprep.subr.bf16.mxu0 %v7180_v46  ;;  %v7173_v0 = vld [vmem:[#allocation5 + $0x8] sm:$0xff]  ;;  %v7182_v53 = vld [vmem:[#allocation5 + $0x50] sm:$0xff] }
 0xdac   :  { %8609 = vmatpush3.bf16.msra.mxu0 %v7172_v62  ;;  %v7125_v32 = vld [vmem:[#allocation9 + $0x8] sm:$0xff]  ;;  %v7174_v45 = vld [vmem:[#allocation5 + $0x10] sm:$0xff]  ;;  %v7361_v20 = vld [vmem:[#allocation5 + $0x160] sm:$0xff] }
 0xdad   :  { %8610 = vmatprep.subr.bf16.mxu0 %v7181_v54  ;;  %v7129_v41 = vld [vmem:[#allocation9 + $0x28] sm:$0xff]  ;;  %7439 = vmatpush1.bf16.msra.mxu1 %v7361_v20  ;;  %v7362_v27 = vld [vmem:[#allocation5 + $0x168] sm:$0xff]  ;;  %v7184_v13 = vld [vmem:[#allocation5 + $0x60] sm:$0xff] }
 0xdae   :  { %v11058_v24 = vpack.c.bf16 %v7129_v41, %v7125_v32  ;;  %v7183_v14 = vld [vmem:[#allocation5 + $0x58] sm:$0xff]  ;;  %7440 = vmatprep.subr.bf16.mxu1 %v9749_v19  ;;  %v7363_v3 = vld [vmem:[#allocation5 + $0x170] sm:$0xff]  ;;  %v7176_v34 = vld [vmem:[#allocation5 + $0x20] sm:$0xff] }
 0xdaf   :  { %v7175_v7 = vld [vmem:[#allocation5 + $0x18] sm:$0xff]  ;;  %v7185_v5 = vld [vmem:[#allocation5 + $0x68] sm:$0xff]  ;;  %v7186_v36 = vld [vmem:[#allocation5 + $0x70] sm:$0xff] }
 0xdb0   :  { %8611 = vmatpush3.bf16.msra.mxu0 %v7173_v0  ;;  %7244 = vmatprep.mubr.bf16.mxu0 %v11058_v24  ;;  %v7127_v35 = vld [vmem:[#allocation9 + $0x18] sm:$0xff]  ;;  %v7364_v52 = vld [vmem:[#allocation5 + $0x178] sm:$0xff]  ;;  %v7365_v9 = vld [vmem:[#allocation5 + $0x180] sm:$0xff] }
 0xdb1   :  { %8612 = vmatprep.subr.bf16.mxu0 %v7182_v53  ;;  %7441 = vmatpush1.bf16.msra.mxu1 %v7362_v27  ;;  %v7131_v60 = vld [vmem:[#allocation9 + $0x38] sm:$0xff]  ;;  %v7178_v15 = vld [vmem:[#allocation5 + $0x30] sm:$0xff]  ;;  %v7187_v43 = vld [vmem:[#allocation5 + $0x78] sm:$0xff] }
 0xdb2   :  { %7442 = vmatprep.subr.bf16.mxu1 %v9749_v19  ;;  %v11064_v56 = vpack.c.bf16 %v7131_v60, %v7127_v35  ;;  %v7177_v2 = vld [vmem:[#allocation5 + $0x28] sm:$0xff]  ;;  %v7124_v4 = vld [vmem:[#allocation9] sm:$0xff]  ;;  %v7179_v23 = vld [vmem:[#allocation5 + $0x38] sm:$0xff] }
 0xdb3   :  { %v7128_v48 = vld [vmem:[#allocation9 + $0x20] sm:$0xff]  ;;  %v7366_v6 = vld [vmem:[#allocation5 + $0x188] sm:$0xff]  ;;  %v7133_v59 = vld [vmem:[#allocation9 + $0x48] sm:$0xff] }
 0xdb4   :  { %8613 = vmatpush3.bf16.msra.mxu0 %v7174_v45  ;;  %8211 = vmatprep.mubr.msk.bf16.mxu1 %vm306_vm1, %v11064_v56  ;;  %v7137_v58 = vld [vmem:[#allocation9 + $0x68] sm:$0xff]  ;;  %v11070_v28 = vpack.c.bf16 %v7128_v48, %v7124_v4  ;;  %v7367_v22 = vld [vmem:[#allocation5 + $0x190] sm:$0xff]  ;;  %v7188_v31 = vld [vmem:[#allocation5 + $0x80] sm:$0xff] }
 0xdb5   :  { %8614 = vmatprep.subr.bf16.mxu0 %v7183_v14  ;;  %7443 = vmatpush1.bf16.msra.mxu1 %v7363_v3  ;;  %v11072_v61 = vpack.c.bf16 %v7137_v58, %v7133_v59  ;;  %v7132_v38 = vld [vmem:[#allocation9 + $0x40] sm:$0xff]  ;;  %v7368_v57 = vld [vmem:[#allocation5 + $0x198] sm:$0xff]  ;;  %v7189_v11 = vld [vmem:[#allocation5 + $0x88] sm:$0xff] }
 0xdb6   :  { %7444 = vmatprep.subr.bf16.mxu1 %v9749_v19  ;;  %v7136_v42 = vld [vmem:[#allocation9 + $0x60] sm:$0xff]  ;;  %v7141_v10 = vld [vmem:[#allocation9 + $0x88] sm:$0xff]  ;;  %v7369_v26 = vld [vmem:[#allocation5 + $0x1a0] sm:$0xff] }
 0xdb7   :  { %v7145_v44 = vld [vmem:[#allocation9 + $0xa8] sm:$0xff]  ;;  %v11080_v55 = vpack.c.bf16 %v7136_v42, %v7132_v38  ;;  %v7190_v49 = vld [vmem:[#allocation5 + $0x90] sm:$0xff]  ;;  %v7370_v17 = vld [vmem:[#allocation5 + $0x1a8] sm:$0xff] }
 0xdb8   :  { %8615 = vmatpush3.bf16.msra.mxu0 %v7175_v7  ;;  %v11082_v50 = vpack.c.bf16 %v7145_v44, %v7141_v10  ;;  %v7140_v29 = vld [vmem:[#allocation9 + $0x80] sm:$0xff]  ;;  %v7191_v33 = vld [vmem:[#allocation5 + $0x98] sm:$0xff]  ;;  %v7192_v8 = vld [vmem:[#allocation5 + $0xa0] sm:$0xff] }
 0xdb9   :  { %8616 = vmatprep.subr.bf16.mxu0 %v7184_v13  ;;  %7445 = vmatpush1.bf16.msra.mxu1 %v7364_v52  ;;  %v7144_v18 = vld [vmem:[#allocation9 + $0xa0] sm:$0xff]  ;;  %v7149_v1 = vld [vmem:[#allocation9 + $0xc8] sm:$0xff]  ;;  %v7193_v16 = vld [vmem:[#allocation5 + $0xa8] sm:$0xff] }
 0xdba   :  { %7446 = vmatprep.subr.bf16.mxu1 %v9749_v19  ;;  %v7153_v51 = vld [vmem:[#allocation9 + $0xe8] sm:$0xff]  ;;  %v11090_v39 = vpack.c.bf16 %v7144_v18, %v7140_v29  ;;  %v7371_v40 = vld [vmem:[#allocation5 + $0x1b0] sm:$0xff]  ;;  %v7126_v21 = vld [vmem:[#allocation9 + $0x10] sm:$0xff] }
 0xdbb   :  { %v11092_v30 = vpack.c.bf16 %v7153_v51, %v7149_v1  ;;  %v7148_v37 = vld [vmem:[#allocation9 + $0xc0] sm:$0xff]  ;;  %v7372_v63 = vld [vmem:[#allocation5 + $0x1b8] sm:$0xff]  ;;  %v7130_v47 = vld [vmem:[#allocation9 + $0x30] sm:$0xff] }
 0xdbc   :  { %8617 = vmatpush3.bf16.msra.mxu0 %v7176_v34  ;;  %v7152_v12 = vld [vmem:[#allocation9 + $0xe0] sm:$0xff]  ;;  %v11102_v46 = vpack.c.bf16 %v7130_v47, %v7126_v21  ;;  %v7554_v62 = vld [vmem:[#allocation5 + $0x240] sm:$0xff]  ;;  %v7135_v0 = vld [vmem:[#allocation9 + $0x58] sm:$0xff] }
 0xdbd   :  { %8618 = vmatprep.subr.bf16.mxu0 %v7185_v5  ;;  %7447 = vmatpush1.bf16.msra.mxu1 %v7365_v9  ;;  %v11100_v25 = vpack.c.bf16 %v7152_v12, %v7148_v37  ;;  %v7194_v54 = vld [vmem:[#allocation5 + $0xb0] sm:$0xff]  ;;  %v7139_v53 = vld [vmem:[#allocation9 + $0x78] sm:$0xff]  ;;  %v7195_v45 = vld [vmem:[#allocation5 + $0xb8] sm:$0xff] }
 0xdbe   :  { %7448 = vmatprep.subr.bf16.mxu1 %v9749_v19  ;;  %v11110_v32 = vpack.c.bf16 %v7139_v53, %v7135_v0  ;;  %v7555_v41 = vld [vmem:[#allocation5 + $0x248] sm:$0xff]  ;;  %v7134_v14 = vld [vmem:[#allocation9 + $0x50] sm:$0xff]  ;;  %v7556_v3 = vld [vmem:[#allocation5 + $0x250] sm:$0xff] }
 0xdbf   :  { %v7138_v20 = vld [vmem:[#allocation9 + $0x70] sm:$0xff]  ;;  %v7143_v27 = vld [vmem:[#allocation9 + $0x98] sm:$0xff]  ;;  %v7557_v35 = vld [vmem:[#allocation5 + $0x258] sm:$0xff] }
 0xdc0   :  { %8619 = vmatpush3.bf16.msra.mxu0 %v7177_v2  ;;  %v7147_v7 = vld [vmem:[#allocation9 + $0xb8] sm:$0xff]  ;;  %v11116_v13 = vpack.c.bf16 %v7138_v20, %v7134_v14  ;;  %v7196_v34 = vld [vmem:[#allocation5 + $0xc0] sm:$0xff]  ;;  %v7198_v4 = vld [vmem:[#allocation5 + $0xd0] sm:$0xff] }
 0xdc1   :  { %8620 = vmatprep.subr.bf16.mxu0 %v7186_v36  ;;  %7449 = vmatpush1.bf16.msra.mxu1 %v7366_v6  ;;  %v11120_v5 = vpack.c.bf16 %v7147_v7, %v7143_v27  ;;  %v7197_v60 = vld [vmem:[#allocation5 + $0xc8] sm:$0xff]  ;;  %v7142_v52 = vld [vmem:[#allocation9 + $0x90] sm:$0xff]  ;;  %v7560_v38 = vld [vmem:[#allocation5 + $0x270] sm:$0xff] }
 0xdc2   :  { %7450 = vmatprep.subr.bf16.mxu1 %v9749_v19  ;;  %v7146_v2 = vld [vmem:[#allocation9 + $0xb0] sm:$0xff]  ;;  %v7151_v36 = vld [vmem:[#allocation9 + $0xd8] sm:$0xff]  ;;  %v7355_v44 = vld [vmem:[#allocation5 + $0x130] sm:$0xff] }
 0xdc3   :  { %v7155_v9 = vld [vmem:[#allocation9 + $0xf8] sm:$0xff]  ;;  %v7150_v59 = vld [vmem:[#allocation9 + $0xd0] sm:$0xff]  ;;  %v7356_v29 = vld [vmem:[#allocation5 + $0x138] sm:$0xff] }
 0xdc4   :  { %8621 = vmatpush3.bf16.msra.mxu0 %v7178_v15  ;;  %v11127_v15 = vpack.c.bf16 %v7146_v2, %v7142_v52  ;;  %v11131_v48 = vpack.c.bf16 %v7155_v9, %v7151_v36  ;;  %v7559_v6 = vld [vmem:[#allocation5 + $0x268] sm:$0xff]  ;;  %v7154_v58 = vld [vmem:[#allocation9 + $0xf0] sm:$0xff]  ;;  %v7564_v1 = vld [vmem:[#allocation5 + $0x290] sm:$0xff] }
 0xdc5   :  { %8622 = vmatprep.subr.bf16.mxu0 %v7187_v43  ;;  %7451 = vmatpush1.bf16.msra.mxu1 %v7367_v22  ;;  %v7558_v43 = vld [vmem:[#allocation5 + $0x260] sm:$0xff]  ;;  %v7346_v10 = vld [vmem:[#allocation5 + $0xe8] sm:$0xff]  ;;  %v7351_v21 = vld [vmem:[#allocation5 + $0x110] sm:$0xff] }
 0xdc6   :  { %7452 = vmatprep.subr.bf16.mxu1 %v9749_v19  ;;  %v7353_v22 = vld [vmem:[#allocation5 + $0x120] sm:$0xff]  ;;  %v7563_v18 = vld [vmem:[#allocation5 + $0x288] sm:$0xff]  ;;  %v7360_v47 = vld [vmem:[#allocation5 + $0x158] sm:$0xff] }
 0xdc7   :  { %v7345_v42 = vld [vmem:[#allocation5 + $0xe0] sm:$0xff]  ;;  %v7350_v37 = vld [vmem:[#allocation5 + $0x108] sm:$0xff]  ;;  %v7352_v0 = vld [vmem:[#allocation5 + $0x118] sm:$0xff] }
 0xdc8   :  { %8623 = vmatpush3.bf16.msra.mxu0 %v7179_v23  ;;  %v7199_v23 = vld [vmem:[#allocation5 + $0xd8] sm:$0xff]  ;;  %v7349_v51 = vld [vmem:[#allocation5 + $0x100] sm:$0xff]  ;;  %v7934_v53 = vld [vmem:[#allocation5 + $0x3d0] sm:$0xff] }
 0xdc9   :  { %7275 = vmatprep.subr.bf16.mxu0 %v9749_v19  ;;  %7453 = vmatpush1.bf16.msra.mxu1 %v7368_v57  ;;  %v7354_v57 = vld [vmem:[#allocation5 + $0x128] sm:$0xff]  ;;  %v7932_v12 = vld [vmem:[#allocation5 + $0x3c0] sm:$0xff]  ;;  %v7935_v27 = vld [vmem:[#allocation5 + $0x3d8] sm:$0xff] }
 0xdca   :  { %7454 = vmatprep.subr.bf16.mxu1 %v9749_v19  ;;  %v7538_v14 = vld [vmem:[#allocation5 + $0x1c0] sm:$0xff]  ;;  %v7547_v20 = vld [vmem:[#allocation5 + $0x208] sm:$0xff]  ;;  %v7927_v7 = vld [vmem:[#allocation5 + $0x398] sm:$0xff] }
 0xdcb   :  { %7245 = vmatmul.mubr.bf16.vlgmr.msra.gmra.mrb[148].mxu0 %v11070_v28  ;;  %v7540_v52 = vld [vmem:[#allocation5 + $0x1d0] sm:$0xff]  ;;  %v7549_v2 = vld [vmem:[#allocation5 + $0x218] sm:$0xff]  ;;  %v7937_v36 = vld [vmem:[#allocation5 + $0x3e8] sm:$0xff] }
 0xdcc   :  { %7276 = vmatpush1.bf16.msra.mxu0 %v7188_v31  ;;  %7252 = vmatprep.mubr.bf16.mxu0 %v11072_v61  ;;  %v11138_v31 = vpack.c.bf16 %v7154_v58, %v7150_v59  ;;  %v7929_v9 = vld [vmem:[#allocation5 + $0x3a8] sm:$0xff]  ;;  %v7542_v59 = vld [vmem:[#allocation5 + $0x1e0] sm:$0xff] }
 0xdcd   :  { %7277 = vmatprep.subr.bf16.mxu0 %v9749_v19  ;;  %7455 = vmatpush1.bf16.msra.mxu1 %v7369_v26  ;;  %v7562_v26 = vld [vmem:[#allocation5 + $0x280] sm:$0xff]  ;;  %v7551_v58 = vld [vmem:[#allocation5 + $0x228] sm:$0xff] }
 0xdce   :  { %7456 = vmatprep.subr.bf16.mxu1 %v9749_v19 }
 0xdd0   :  { %7278 = vmatpush1.bf16.msra.mxu0 %v7189_v11  ;;  %v7561_v11 = vld [vmem:[#allocation5 + $0x278] sm:$0xff] }
 0xdd1   :  { %7279 = vmatprep.subr.bf16.mxu0 %v9749_v19  ;;  %7457 = vmatpush1.bf16.msra.mxu1 %v7370_v17  ;;  %v7348_v17 = vld [vmem:[#allocation5 + $0xf8] sm:$0xff] }
 0xdd2   :  { %7458 = vmatprep.subr.bf16.mxu1 %v9749_v19 }
 0xdd3   :  { %7253 = vmatmul.mubr.bf16.gmra.mrb[152].mxu0 %v11080_v55 }
 0xdd4   :  { %7280 = vmatpush1.bf16.msra.mxu0 %v7190_v49  ;;  %7259 = vmatprep.mubr.bf16.mxu0 %v11082_v50  ;;  %v7347_v49 = vld [vmem:[#allocation5 + $0xf0] sm:$0xff] }
 0xdd5   :  { %7281 = vmatprep.subr.bf16.mxu0 %v9749_v19  ;;  %7459 = vmatpush1.bf16.msra.mxu1 %v7371_v40  ;;  %v7358_v40 = vld [vmem:[#allocation5 + $0x148] sm:$0xff] }
 0xdd6   :  { %7460 = vmatprep.subr.bf16.mxu1 %v9749_v19 }
 0xdd8   :  { %7282 = vmatpush1.bf16.msra.mxu0 %v7191_v33  ;;  %v7357_v33 = vld [vmem:[#allocation5 + $0x140] sm:$0xff] }
 0xdd9   :  { %7283 = vmatprep.subr.bf16.mxu0 %v9749_v19  ;;  %7461 = vmatpush1.bf16.msra.mxu1 %v7372_v63  ;;  %v7359_v63 = vld [vmem:[#allocation5 + $0x150] sm:$0xff] }
 0xdda   :  { %7631 = vmatprep.subr.bf16.mxu1 %v9749_v19 }
 0xddb   :  { %7260 = vmatmul.mubr.bf16.gmra.mrb[156].mxu0 %v11090_v39 }
 0xddc   :  { %7284 = vmatpush1.bf16.msra.mxu0 %v7192_v8  ;;  %7267 = vmatprep.mubr.bf16.mxu0 %v11092_v30  ;;  %v7565_v8 = vld [vmem:[#allocation5 + $0x298] sm:$0xff] }
 0xddd   :  { %7285 = vmatprep.subr.bf16.mxu0 %v9749_v19  ;;  %7471 = vmatmul.mubr.bf16.vlgmr.msra.gmra.mrb[200].mxu1 %v11102_v46 }
 0xdde   :  { %7632 = vmatpush1.bf16.msra.mxu1 %v7554_v62  ;;  %8212 = vmatprep.mubr.msk.bf16.mxu1 %vm306_vm1, %v11110_v32  ;;  %v7933_v62 = vld [vmem:[#allocation5 + $0x3c8] sm:$0xff] }
 0xddf   :  { %7633 = vmatprep.subr.bf16.mxu1 %v9749_v19 }
 0xde0   :  { %7286 = vmatpush1.bf16.msra.mxu0 %v7193_v16  ;;  %v7924_v16 = vld [vmem:[#allocation5 + $0x380] sm:$0xff] }
 0xde1   :  { %7287 = vmatprep.subr.bf16.mxu0 %v9749_v19 }
 0xde2   :  { %7634 = vmatpush1.bf16.msra.mxu1 %v7555_v41  ;;  %v7546_v41 = vld [vmem:[#allocation5 + $0x200] sm:$0xff] }
 0xde3   :  { %7268 = vmatmul.mubr.bf16.gmra.mrb[160].mxu0 %v11100_v25  ;;  %7635 = vmatprep.subr.bf16.mxu1 %v9749_v19 }
 0xde4   :  { %7288 = vmatpush1.bf16.msra.mxu0 %v7194_v54  ;;  %8207 = vmatprep.mubr.msk.bf16.mxu0 %vm306_vm1, %v11064_v56  ;;  %v7925_v54 = vld [vmem:[#allocation5 + $0x388] sm:$0xff] }
 0xde5   :  { %7289 = vmatprep.subr.bf16.mxu0 %v9749_v19  ;;  %7479 = vmatmul.mubr.bf16.gmra.mrb[204].mxu1 %v11116_v13 }
 0xde6   :  { %7636 = vmatpush1.bf16.msra.mxu1 %v7556_v3  ;;  %8213 = vmatprep.mubr.msk.bf16.mxu1 %vm306_vm1, %v11120_v5  ;;  %v7539_v3 = vld [vmem:[#allocation5 + $0x1c8] sm:$0xff] }
 0xde7   :  { %7637 = vmatprep.subr.bf16.mxu1 %v9749_v19 }
 0xde8   :  { %7290 = vmatpush1.bf16.msra.mxu0 %v7195_v45  ;;  %v7926_v45 = vld [vmem:[#allocation5 + $0x390] sm:$0xff] }
 0xde9   :  { %7291 = vmatprep.subr.bf16.mxu0 %v9749_v19 }
 0xdea   :  { %7638 = vmatpush1.bf16.msra.mxu1 %v7557_v35  ;;  %v7548_v35 = vld [vmem:[#allocation5 + $0x210] sm:$0xff] }
 0xdeb   :  { %7639 = vmatprep.subr.bf16.mxu1 %v9749_v19 }
 0xdec   :  { %7292 = vmatpush1.bf16.msra.mxu0 %v7196_v34  ;;  %v7936_v34 = vld [vmem:[#allocation5 + $0x3e0] sm:$0xff] }
 0xded   :  { %7293 = vmatprep.subr.bf16.mxu0 %v9749_v19  ;;  %7487 = vmatmul.mubr.bf16.gmra.mrb[208].mxu1 %v11127_v15 }
 0xdee   :  { %7640 = vmatpush1.bf16.msra.mxu1 %v7558_v43  ;;  %8214 = vmatprep.mubr.msk.bf16.mxu1 %vm306_vm1, %v11131_v48  ;;  %v7541_v43 = vld [vmem:[#allocation5 + $0x1d8] sm:$0xff] }
 0xdef   :  { %7641 = vmatprep.subr.bf16.mxu1 %v9749_v19 }
 0xdf0   :  { %7294 = vmatpush1.bf16.msra.mxu0 %v7197_v60  ;;  %v7928_v60 = vld [vmem:[#allocation5 + $0x3a0] sm:$0xff] }
 0xdf1   :  { %7295 = vmatprep.subr.bf16.mxu0 %v9749_v19 }
 0xdf2   :  { %7642 = vmatpush1.bf16.msra.mxu1 %v7559_v6  ;;  %v7550_v6 = vld [vmem:[#allocation5 + $0x220] sm:$0xff] }
 0xdf3   :  { %7643 = vmatprep.subr.bf16.mxu1 %v9749_v19 }
 0xdf4   :  { %7296 = vmatpush1.bf16.msra.mxu0 %v7198_v4  ;;  %v7938_v4 = vld [vmem:[#allocation5 + $0x3f0] sm:$0xff] }
 0xdf5   :  { %7297 = vmatprep.subr.bf16.mxu0 %v9749_v19  ;;  %7495 = vmatmul.mubr.bf16.gmra.mrb[212].mxu1 %v11138_v31 }
 0xdf6   :  { %7644 = vmatpush1.bf16.msra.mxu1 %v7560_v38  ;;  %8215 = vmatprep.mubr.msk.bf16.mxu1 %vm306_vm1, %v11064_v56  ;;  %v7931_v38 = vld [vmem:[#allocation5 + $0x3b8] sm:$0xff] }
 0xdf7   :  { %7645 = vmatprep.subr.bf16.mxu1 %v9749_v19 }
 0xdf8   :  { %7298 = vmatpush1.bf16.msra.mxu0 %v7199_v23  ;;  %v7930_v23 = vld [vmem:[#allocation5 + $0x3b0] sm:$0xff] }
 0xdf9   :  { %8648 = vmatprep.subr.bf16.mxu0 %v7353_v22  ;;  %v7939_v22 = vld [vmem:[#allocation5 + $0x3f8] sm:$0xff] }
 0xdfa   :  { %7646 = vmatpush1.bf16.msra.mxu1 %v7561_v11  ;;  %v11178_v11 = vld [vmem:[#allocation5 + $0x400] sm:$0xff] }
 0xdfb   :  { %7308 = vmatmul.mubr.bf16.vlgmr.msra.gmra.mrb[164].mxu0 %v11102_v46  ;;  %7647 = vmatprep.subr.bf16.mxu1 %v9749_v19 }
 0xdfc   :  { %8649 = vmatpush3.bf16.msra.mxu0 %v7345_v42  ;;  %8208 = vmatprep.mubr.msk.bf16.mxu0 %vm306_vm1, %v11110_v32  ;;  %v7543_v42 = vld [vmem:[#allocation5 + $0x1e8] sm:$0xff] }
 0xdfd   :  { %8650 = vmatprep.subr.bf16.mxu0 %v7354_v57  ;;  %v7552_v57 = vld [vmem:[#allocation5 + $0x230] sm:$0xff] }
 0xdfe   :  { %7648 = vmatpush1.bf16.msra.mxu1 %v7562_v26  ;;  %v11184_v26 = vld [vmem:[#allocation5 + $0x408] sm:$0xff] }
 0xdff   :  { %7649 = vmatprep.subr.bf16.mxu1 %v9749_v19 }
 0xe00   :  { %8651 = vmatpush3.bf16.msra.mxu0 %v7346_v10  ;;  %v7544_v10 = vld [vmem:[#allocation5 + $0x1f0] sm:$0xff] }
 0xe01   :  { %8652 = vmatprep.subr.bf16.mxu0 %v7355_v44  ;;  %v7553_v44 = vld [vmem:[#allocation5 + $0x238] sm:$0xff] }
 0xe02   :  { %7650 = vmatpush1.bf16.msra.mxu1 %v7563_v18  ;;  %v11190_v18 = vld [vmem:[#allocation5 + $0x410] sm:$0xff] }
 0xe03   :  { %7316 = vmatmul.mubr.bf16.gmra.mrb[168].mxu0 %v11116_v13  ;;  %7651 = vmatprep.subr.bf16.mxu1 %v9749_v19 }
 0xe04   :  { %8653 = vmatpush3.bf16.msra.mxu0 %v7347_v49  ;;  %8209 = vmatprep.mubr.msk.bf16.mxu0 %vm306_vm1, %v11120_v5  ;;  %v7545_v49 = vld [vmem:[#allocation5 + $0x1f8] sm:$0xff] }
 0xe05   :  { %8654 = vmatprep.subr.bf16.mxu0 %v7356_v29  ;;  %v7739_v29 = vld [vmem:[#allocation5 + $0x2e0] sm:$0xff] }
 0xe06   :  { %7652 = vmatpush1.bf16.msra.mxu1 %v7564_v1  ;;  %v11196_v1 = vld [vmem:[#allocation5 + $0x418] sm:$0xff] }
 0xe07   :  { %7653 = vmatprep.subr.bf16.mxu1 %v9749_v19 }
 0xe08   :  { %8655 = vmatpush3.bf16.msra.mxu0 %v7348_v17  ;;  %v7731_v17 = vld [vmem:[#allocation5 + $0x2a0] sm:$0xff] }
 0xe09   :  { %8656 = vmatprep.subr.bf16.mxu0 %v7357_v33  ;;  %v7740_v33 = vld [vmem:[#allocation5 + $0x2e8] sm:$0xff] }
 0xe0a   :  { %7654 = vmatpush1.bf16.msra.mxu1 %v7565_v8  ;;  %v11202_v8 = vld [vmem:[#allocation5 + $0x420] sm:$0xff] }
 0xe0b   :  { %7323 = vmatmul.mubr.bf16.gmra.mrb[172].mxu0 %v11127_v15  ;;  %8768 = vmatprep.subr.bf16.mxu1 %v7932_v12  ;;  %v7742_v12 = vld [vmem:[#allocation5 + $0x2f8] sm:$0xff] }
 0xe0c   :  { %8657 = vmatpush3.bf16.msra.mxu0 %v7349_v51  ;;  %8210 = vmatprep.mubr.msk.bf16.mxu0 %vm306_vm1, %v11131_v48  ;;  %v7732_v51 = vld [vmem:[#allocation5 + $0x2a8] sm:$0xff] }
 0xe0d   :  { %8658 = vmatprep.subr.bf16.mxu0 %v7358_v40  ;;  %7664 = vmatmul.mubr.bf16.vlgmr.msra.gmra.mrb[216].mxu1 %v11102_v46  ;;  %v7741_v40 = vld [vmem:[#allocation5 + $0x2f0] sm:$0xff] }
 0xe0e   :  { %8769 = vmatpush3.bf16.msra.mxu1 %v7924_v16  ;;  %8216 = vmatprep.mubr.msk.bf16.mxu1 %vm306_vm1, %v11110_v32  ;;  %v7734_v16 = vld [vmem:[#allocation5 + $0x2b8] sm:$0xff] }
 0xe0f   :  { %8770 = vmatprep.subr.bf16.mxu1 %v7933_v62  ;;  %v7735_v62 = vld [vmem:[#allocation5 + $0x2c0] sm:$0xff] }
 0xe10   :  { %8659 = vmatpush3.bf16.msra.mxu0 %v7350_v37  ;;  %v7733_v37 = vld [vmem:[#allocation5 + $0x2b0] sm:$0xff] }
 0xe11   :  { %8660 = vmatprep.subr.bf16.mxu0 %v7359_v63  ;;  %v11208_v63 = vld [vmem:[#allocation5 + $0x428] sm:$0xff] }
 0xe12   :  { %8771 = vmatpush3.bf16.msra.mxu1 %v7925_v54  ;;  %v7744_v54 = vld [vmem:[#allocation5 + $0x308] sm:$0xff] }
 0xe13   :  { %7331 = vmatmul.mubr.bf16.gmra.mrb[176].mxu0 %v11138_v31  ;;  %8772 = vmatprep.subr.bf16.mxu1 %v7934_v53  ;;  %v7736_v53 = vld [vmem:[#allocation5 + $0x2c8] sm:$0xff] }
 0xe14   :  { %8661 = vmatpush3.bf16.msra.mxu0 %v7351_v21  ;;  %7405 = vmatprep.mubr.bf16.mxu0 %v11058_v24  ;;  %v7743_v21 = vld [vmem:[#allocation5 + $0x300] sm:$0xff] }
 0xe15   :  { %8662 = vmatprep.subr.bf16.mxu0 %v7360_v47  ;;  %7672 = vmatmul.mubr.bf16.gmra.mrb[220].mxu1 %v11116_v13  ;;  %v11214_v47 = vld [vmem:[#allocation5 + $0x430] sm:$0xff] }
 0xe16   :  { %8773 = vmatpush3.bf16.msra.mxu1 %v7926_v45  ;;  %8217 = vmatprep.mubr.msk.bf16.mxu1 %vm306_vm1, %v11120_v5  ;;  %v11227_v45 = vld [vmem:[#allocation5 + $0x440] sm:$0xff] }
 0xe17   :  { %8774 = vmatprep.subr.bf16.mxu1 %v7935_v27  ;;  %v11232_v27 = vld [vmem:[#allocation5 + $0x448] sm:$0xff] }
 0xe18   :  { %8663 = vmatpush3.bf16.msra.mxu0 %v7352_v0  ;;  %v11220_v0 = vld [vmem:[#allocation5 + $0x438] sm:$0xff] }
 0xe19   :  { %8688 = vmatprep.subr.bf16.mxu0 %v7546_v41  ;;  %v7745_v41 = vld [vmem:[#allocation5 + $0x310] sm:$0xff] }
 0xe1a   :  { %8775 = vmatpush3.bf16.msra.mxu1 %v7927_v7  ;;  %v7738_v7 = vld [vmem:[#allocation5 + $0x2d8] sm:$0xff] }
 0xe1b   :  { %7406 = vmatmul.mubr.bf16.vlgmr.msra.gmra.mrb[180].mxu0 %v11070_v28  ;;  %8776 = vmatprep.subr.bf16.mxu1 %v7936_v34  ;;  %v7747_v34 = vld [vmem:[#allocation5 + $0x320] sm:$0xff] }
 0xe1c   :  { %8689 = vmatpush3.bf16.msra.mxu0 %v7538_v14  ;;  %7413 = vmatprep.mubr.bf16.mxu0 %v11072_v61  ;;  %v7737_v14 = vld [vmem:[#allocation5 + $0x2d0] sm:$0xff] }
 0xe1d   :  { %8690 = vmatprep.subr.bf16.mxu0 %v7547_v20  ;;  %7680 = vmatmul.mubr.bf16.gmra.mrb[224].mxu1 %v11127_v15  ;;  %v7746_v20 = vld [vmem:[#allocation5 + $0x318] sm:$0xff] }
 0xe1e   :  { %8777 = vmatpush3.bf16.msra.mxu1 %v7928_v60  ;;  %8218 = vmatprep.mubr.msk.bf16.mxu1 %vm306_vm1, %v11131_v48  ;;  %v7749_v60 = vld [vmem:[#allocation5 + $0x330] sm:$0xff] }
 0xe1f   :  { %8778 = vmatprep.subr.bf16.mxu1 %v7937_v36 }
 0xe20   :  { %8691 = vmatpush3.bf16.msra.mxu0 %v7539_v3  ;;  %v11237_v3 = vld [vmem:[#allocation5 + $0x450] sm:$0xff] }
 0xe21   :  { %8692 = vmatprep.subr.bf16.mxu0 %v7548_v35  ;;  %v7748_v35 = vld [vmem:[#allocation5 + $0x328] sm:$0xff] }
 0xe22   :  { %8779 = vmatpush3.bf16.msra.mxu1 %v7929_v9 }
 0xe23   :  { %7414 = vmatmul.mubr.bf16.gmra.mrb[184].mxu0 %v11080_v55  ;;  %8780 = vmatprep.subr.bf16.mxu1 %v7938_v4 }
 0xe24   :  { %8693 = vmatpush3.bf16.msra.mxu0 %v7540_v52  ;;  %7421 = vmatprep.mubr.bf16.mxu0 %v11082_v50  ;;  %v7756_v52 = vld [vmem:[#allocation5 + $0x368] sm:$0xff] }
 0xe25   :  { %8694 = vmatprep.subr.bf16.mxu0 %v7549_v2  ;;  %7688 = vmatmul.mubr.bf16.gmra.mrb[228].mxu1 %v11138_v31  ;;  %v7757_v2 = vld [vmem:[#allocation5 + $0x370] sm:$0xff] }
 0xe26   :  { %8781 = vmatpush3.bf16.msra.mxu1 %v7930_v23  ;;  %7984 = vmatprep.mubr.bf16.mxu1 %v11058_v24 }
 0xe27   :  { %8782 = vmatprep.subr.bf16.mxu1 %v7939_v22 }
 0xe28   :  { %8695 = vmatpush3.bf16.msra.mxu0 %v7541_v43 }
 0xe29   :  { %8696 = vmatprep.subr.bf16.mxu0 %v7550_v6 }
 0xe2a   :  { %8783 = vmatpush3.bf16.msra.mxu1 %v7931_v38 }
 0xe2b   :  { %7422 = vmatmul.mubr.bf16.gmra.mrb[188].mxu0 %v11090_v39  ;;  %9019 = vmatprep.subr.bf16.mxu1 %v9749_v19 }
 0xe2c   :  { %8697 = vmatpush3.bf16.msra.mxu0 %v7542_v59  ;;  %7429 = vmatprep.mubr.bf16.mxu0 %v11092_v30 }
 0xe2d   :  { %8698 = vmatprep.subr.bf16.mxu0 %v7551_v58  ;;  %7985 = vmatmul.mubr.bf16.vlgmr.msra.gmra.mrb[232].mxu1 %v11070_v28 }
 0xe2e   :  { %9031 = vmatpush1.bf16.msra.mxu1 %v11178_v11  ;;  %7991 = vmatprep.mubr.bf16.mxu1 %v11072_v61 }
 0xe2f   :  { %9020 = vmatprep.subr.bf16.mxu1 %v9749_v19 }
 0xe30   :  { %8699 = vmatpush3.bf16.msra.mxu0 %v7543_v42 }
 0xe31   :  { %8700 = vmatprep.subr.bf16.mxu0 %v7552_v57 }
 0xe32   :  { %9032 = vmatpush1.bf16.msra.mxu1 %v11184_v26 }
 0xe33   :  { %7430 = vmatmul.mubr.bf16.gmra.mrb[192].mxu0 %v11100_v25  ;;  %9021 = vmatprep.subr.bf16.mxu1 %v9749_v19 }
 0xe34   :  { %8701 = vmatpush3.bf16.msra.mxu0 %v7544_v10  ;;  %7598 = vmatprep.mubr.bf16.mxu0 %v11058_v24 }
 0xe35   :  { %8702 = vmatprep.subr.bf16.mxu0 %v7553_v44  ;;  %7992 = vmatmul.mubr.bf16.gmra.mrb[236].mxu1 %v11080_v55 }
 0xe36   :  { %9033 = vmatpush1.bf16.msra.mxu1 %v11190_v18  ;;  %7999 = vmatprep.mubr.bf16.mxu1 %v11082_v50 }
 0xe37   :  { %9022 = vmatprep.subr.bf16.mxu1 %v9749_v19 }
 0xe38   :  { %8703 = vmatpush3.bf16.msra.mxu0 %v7545_v49 }
 0xe39   :  { %8728 = vmatprep.subr.bf16.mxu0 %v7739_v29 }
 0xe3a   :  { %9034 = vmatpush1.bf16.msra.mxu1 %v11196_v1 }
 0xe3b   :  { %7599 = vmatmul.mubr.bf16.vlgmr.msra.gmra.mrb[196].mxu0 %v11070_v28  ;;  %9023 = vmatprep.subr.bf16.mxu1 %v9749_v19 }
 0xe3c   :  { %8729 = vmatpush3.bf16.msra.mxu0 %v7731_v17  ;;  %7606 = vmatprep.mubr.bf16.mxu0 %v11072_v61 }
 0xe3d   :  { %8730 = vmatprep.subr.bf16.mxu0 %v7740_v33  ;;  %8000 = vmatmul.mubr.bf16.gmra.mrb[240].mxu1 %v11090_v39 }
 0xe3e   :  { %9035 = vmatpush1.bf16.msra.mxu1 %v11202_v8  ;;  %8006 = vmatprep.mubr.bf16.mxu1 %v11092_v30 }
 0xe3f   :  { %9024 = vmatprep.subr.bf16.mxu1 %v9749_v19 }
 0xe40   :  { %8731 = vmatpush3.bf16.msra.mxu0 %v7732_v51 }
 0xe41   :  { %8732 = vmatprep.subr.bf16.mxu0 %v7741_v40 }
 0xe42   :  { %9036 = vmatpush1.bf16.msra.mxu1 %v11208_v63 }
 0xe43   :  { %7607 = vmatmul.mubr.bf16.gmra.mrb[200].mxu0 %v11080_v55  ;;  %9025 = vmatprep.subr.bf16.mxu1 %v9749_v19 }
 0xe44   :  { %8733 = vmatpush3.bf16.msra.mxu0 %v7733_v37  ;;  %7614 = vmatprep.mubr.bf16.mxu0 %v11082_v50 }
 0xe45   :  { %8734 = vmatprep.subr.bf16.mxu0 %v7742_v12  ;;  %8007 = vmatmul.mubr.bf16.gmra.mrb[244].mxu1 %v11100_v25 }
 0xe46   :  { %9037 = vmatpush1.bf16.msra.mxu1 %v11214_v47  ;;  %8224 = vmatprep.mubr.msk.bf16.mxu1 %vm306_vm1, %v11110_v32 }
 0xe47   :  { %9026 = vmatprep.subr.bf16.mxu1 %v9749_v19 }
 0xe48   :  { %8735 = vmatpush3.bf16.msra.mxu0 %v7734_v16 }
 0xe49   :  { %8736 = vmatprep.subr.bf16.mxu0 %v7743_v21 }
 0xe4a   :  { %9038 = vmatpush1.bf16.msra.mxu1 %v11220_v0 }
 0xe4b   :  { %7615 = vmatmul.mubr.bf16.gmra.mrb[204].mxu0 %v11090_v39  ;;  %9027 = vmatprep.subr.bf16.mxu1 %v9749_v19 }
 0xe4c   :  { %8737 = vmatpush3.bf16.msra.mxu0 %v7735_v62  ;;  %7622 = vmatprep.mubr.bf16.mxu0 %v11092_v30 }
 0xe4d   :  { %8738 = vmatprep.subr.bf16.mxu0 %v7744_v54 }
 0xe4e   :  { %9039 = vmatpush1.bf16.msra.mxu1 %v11227_v45 }
 0xe4f   :  { %9028 = vmatprep.subr.bf16.mxu1 %v9749_v19 }
 0xe50   :  { %8739 = vmatpush3.bf16.msra.mxu0 %v7736_v53 }
 0xe51   :  { %8740 = vmatprep.subr.bf16.mxu0 %v7745_v41 }
 0xe52   :  { %9040 = vmatpush1.bf16.msra.mxu1 %v11232_v27 }
 0xe53   :  { %7623 = vmatmul.mubr.bf16.gmra.mrb[208].mxu0 %v11100_v25  ;;  %9029 = vmatprep.subr.bf16.mxu1 %v9749_v19 }
 0xe54   :  { %8741 = vmatpush3.bf16.msra.mxu0 %v7737_v14  ;;  %7791 = vmatprep.mubr.bf16.mxu0 %v11058_v24  ;;  %v11243_v24 = vld [vmem:[#allocation5 + $0x458] sm:$0xff] }
 0xe55   :  { %8742 = vmatprep.subr.bf16.mxu0 %v7746_v20 }
 0xe56   :  { %9041 = vmatpush1.bf16.msra.mxu1 %v11237_v3 }
 0xe57   :  { %9030 = vmatprep.subr.bf16.mxu1 %v9749_v19 }
 0xe58   :  { %8743 = vmatpush3.bf16.msra.mxu0 %v7738_v7 }
 0xe59   :  { %7824 = vmatprep.subr.bf16.mxu0 %v9749_v19 }
 0xe5a   :  { %9042 = vmatpush1.bf16.msra.mxu1 %v11243_v24 }
 0xe5b   :  { %7792 = vmatmul.mubr.bf16.vlgmr.msra.gmra.mrb[212].mxu0 %v11070_v28  ;;  %v7750_v28 = vld [vmem:[#allocation5 + $0x338] sm:$0xff] }
 0xe5c   :  { %7825 = vmatpush1.bf16.msra.mxu0 %v7747_v34  ;;  %7799 = vmatprep.mubr.bf16.mxu0 %v11072_v61  ;;  %v7751_v61 = vld [vmem:[#allocation5 + $0x340] sm:$0xff] }
 0xe5d   :  { %7826 = vmatprep.subr.bf16.mxu0 %v9749_v19  ;;  %8055 = vmatmul.mubr.bf16.vlgmr.msra.gmra.mrb[248].mxu1 %v11116_v13 }
 0xe5e   :  { %8225 = vmatprep.mubr.msk.bf16.mxu1 %vm306_vm1, %v11120_v5 }
 0xe60   :  { %7827 = vmatpush1.bf16.msra.mxu0 %v7748_v35 }
 0xe61   :  { %7828 = vmatprep.subr.bf16.mxu0 %v9749_v19 }
 0xe63   :  { %7800 = vmatmul.mubr.bf16.gmra.mrb[216].mxu0 %v11080_v55  ;;  %v7752_v55 = vld [vmem:[#allocation5 + $0x348] sm:$0xff] }
 0xe64   :  { %7829 = vmatpush1.bf16.msra.mxu0 %v7749_v60  ;;  %7807 = vmatprep.mubr.bf16.mxu0 %v11082_v50  ;;  %v7753_v50 = vld [vmem:[#allocation5 + $0x350] sm:$0xff] }
 0xe65   :  { %7830 = vmatprep.subr.bf16.mxu0 %v9749_v19  ;;  %8063 = vmatmul.mubr.bf16.gmra.mrb[252].mxu1 %v11127_v15 }
 0xe66   :  { %8226 = vmatprep.mubr.msk.bf16.mxu1 %vm306_vm1, %v11131_v48 }
 0xe68   :  { %7831 = vmatpush1.bf16.msra.mxu0 %v7750_v28 }
 0xe69   :  { %7832 = vmatprep.subr.bf16.mxu0 %v9749_v19 }
 0xe6b   :  { %7808 = vmatmul.mubr.bf16.gmra.mrb[220].mxu0 %v11090_v39  ;;  %v7754_v39 = vld [vmem:[#allocation5 + $0x358] sm:$0xff] }
 0xe6c   :  { %7833 = vmatpush1.bf16.msra.mxu0 %v7751_v61  ;;  %7815 = vmatprep.mubr.bf16.mxu0 %v11092_v30  ;;  %v7755_v30 = vld [vmem:[#allocation5 + $0x360] sm:$0xff] }
 0xe6d   :  { %7834 = vmatprep.subr.bf16.mxu0 %v9749_v19  ;;  %8070 = vmatmul.mubr.bf16.gmra.mrb[0].mxu1 %v11138_v31 }
 0xe70   :  { %7835 = vmatpush1.bf16.msra.mxu0 %v7752_v55 }
 0xe71   :  { %7836 = vmatprep.subr.bf16.mxu0 %v9749_v19 }
 0xe73   :  { %7816 = vmatmul.mubr.bf16.gmra.mrb[224].mxu0 %v11100_v25  ;;  %v7758_v25 = vld [vmem:[#allocation5 + $0x378] sm:$0xff] }
 0xe74   :  { %7837 = vmatpush1.bf16.msra.mxu0 %v7753_v50  ;;  %8219 = vmatprep.mubr.msk.bf16.mxu0 %vm306_vm1, %v11064_v56 }
 0xe75   :  { %7838 = vmatprep.subr.bf16.mxu0 %v9749_v19 }
 0xe78   :  { %7839 = vmatpush1.bf16.msra.mxu0 %v7754_v39 }
 0xe79   :  { %7840 = vmatprep.subr.bf16.mxu0 %v9749_v19 }
 0xe7c   :  { %7841 = vmatpush1.bf16.msra.mxu0 %v7755_v30 }
 0xe7d   :  { %7842 = vmatprep.subr.bf16.mxu0 %v9749_v19 }
 0xe80   :  { %7843 = vmatpush1.bf16.msra.mxu0 %v7756_v52 }
 0xe81   :  { %7844 = vmatprep.subr.bf16.mxu0 %v9749_v19 }
 0xe84   :  { %7845 = vmatpush1.bf16.msra.mxu0 %v7757_v2 }
 0xe85   :  { %7846 = vmatprep.subr.bf16.mxu0 %v9749_v19 }
 0xe88   :  { %7847 = vmatpush1.bf16.msra.mxu0 %v7758_v25 }
 0xe89   :  { %8015 = vmatprep.subr.bf16.mxu0 %v9749_v19 }
 0xe8b   :  { %7857 = vmatmul.mubr.bf16.vlgmr.msra.gmra.mrb[228].mxu0 %v11102_v46 }
 0xe8c   :  { %8016 = vmatpush1.bf16.msra.mxu0 %v11178_v11  ;;  %8220 = vmatprep.mubr.msk.bf16.mxu0 %vm306_vm1, %v11110_v32 }
 0xe8d   :  { %8017 = vmatprep.subr.bf16.mxu0 %v9749_v19 }
 0xe90   :  { %8018 = vmatpush1.bf16.msra.mxu0 %v11184_v26 }
 0xe91   :  { %8019 = vmatprep.subr.bf16.mxu0 %v9749_v19 }
 0xe93   :  { %7865 = vmatmul.mubr.bf16.gmra.mrb[232].mxu0 %v11116_v13 }
 0xe94   :  { %8020 = vmatpush1.bf16.msra.mxu0 %v11190_v18  ;;  %8221 = vmatprep.mubr.msk.bf16.mxu0 %vm306_vm1, %v11120_v5 }
 0xe95   :  { %8021 = vmatprep.subr.bf16.mxu0 %v9749_v19 }
 0xe98   :  { %8022 = vmatpush1.bf16.msra.mxu0 %v11196_v1 }
 0xe99   :  { %8023 = vmatprep.subr.bf16.mxu0 %v9749_v19 }
 0xe9b   :  { %7873 = vmatmul.mubr.bf16.gmra.mrb[236].mxu0 %v11127_v15 }
 0xe9c   :  { %8024 = vmatpush1.bf16.msra.mxu0 %v11202_v8  ;;  %8222 = vmatprep.mubr.msk.bf16.mxu0 %vm306_vm1, %v11131_v48 }
 0xe9d   :  { %8025 = vmatprep.subr.bf16.mxu0 %v9749_v19 }
 0xe9e   :  { %v8624_v32 = vpop.f32.mrb[148].mxu0 }
 0xe9f   :  { %v8625_v13 = vpop.f32.mrb[149].mxu0 }
 0xea0   :  { %v8626_v36 = vadd.f32 %v8625_v13, %v8624_v32  ;;  %v8627_v9 = vpop.f32.mrb[150].mxu0  ;;  %8026 = vmatpush1.bf16.msra.mxu0 %v11208_v63 }
 0xea1   :  { %v8628_v5 = vpop.f32.mrb[151].mxu0  ;;  %8027 = vmatprep.subr.bf16.mxu0 %v9749_v19 }
 0xea2   :  { %v8629_v43 = vadd.f32 %v8628_v5, %v8627_v9 }
 0xea3   :  { %7881 = vmatmul.mubr.bf16.gmra.mrb[240].mxu0 %v11138_v31 }
 0xea4   :  { %8028 = vmatpush1.bf16.msra.mxu0 %v11214_v47  ;;  %8223 = vmatprep.mubr.msk.bf16.mxu0 %vm306_vm1, %v11064_v56 }
 0xea5   :  { %8029 = vmatprep.subr.bf16.mxu0 %v9749_v19 }
 0xea6   :  { %v8630_v15 = vpop.f32.mrb[152].mxu0 }
 0xea7   :  { %v8631_v48 = vpop.f32.mrb[153].mxu0 }
 0xea8   :  { %8030 = vmatpush1.bf16.msra.mxu0 %v11220_v0  ;;  %v8632_v4 = vadd.f32 %v8631_v48, %v8630_v15  ;;  %v8633_v6 = vpop.f32.mrb[154].mxu0 }
 0xea9   :  { %8031 = vmatprep.subr.bf16.mxu0 %v9749_v19  ;;  %v8634_v23 = vpop.f32.mrb[155].mxu0 }
 0xeac   :  { %8032 = vmatpush1.bf16.msra.mxu0 %v11227_v45 }
 0xead   :  { %8033 = vmatprep.subr.bf16.mxu0 %v9749_v19 }
 0xeae   :  { %v8636_v31 = vpop.f32.mrb[156].mxu0 }
 0xeaf   :  { %v8637_v59 = vpop.f32.mrb[157].mxu0 }
 0xeb0   :  { %8034 = vmatpush1.bf16.msra.mxu0 %v11232_v27  ;;  %v8638_v56 = vadd.f32 %v8637_v59, %v8636_v31  ;;  %v8639_v58 = vpop.f32.mrb[158].mxu0  ;;  %v7472_v42 = vpop.f32.mrb[200].mxu1 }
 0xeb1   :  { %8035 = vmatprep.subr.bf16.mxu0 %v9749_v19  ;;  %v8640_v22 = vpop.f32.mrb[159].mxu0  ;;  %v7474_v11 = vpop.f32.mrb[201].mxu1 }
 0xeb2   :  { %v8641_v38 = vadd.f32 %v8640_v22, %v8639_v58  ;;  %v7475_v44 = vpop.f32.mrb[202].mxu1 }
 0xeb3   :  { %v7477_v29 = vpop.f32.mrb[203].mxu1 }
 0xeb4   :  { %8036 = vmatpush1.bf16.msra.mxu0 %v11237_v3 }
 0xeb5   :  { %8037 = vmatprep.subr.bf16.mxu0 %v9749_v19 }
 0xeb6   :  { %v8642_v57 = vpop.f32.mrb[160].mxu0 }
 0xeb7   :  { %v8643_v10 = vpop.f32.mrb[161].mxu0 }
 0xeb8   :  { %8038 = vmatpush1.bf16.msra.mxu0 %v11243_v24  ;;  %v8644_v26 = vadd.f32 %v8643_v10, %v8642_v57  ;;  %v8645_v49 = vpop.f32.mrb[162].mxu0  ;;  %v11309_v17 = vpop.f32.mrb[204].mxu1 }
 0xeb9   :  { %v8646_v18 = vpop.f32.mrb[163].mxu0  ;;  %v7482_v33 = vpop.f32.mrb[205].mxu1 }
 0xeba   :  { %v11311_v1 = vpop.f32.mrb[206].mxu1 }
 0xebb   :  { %8048 = vmatmul.mubr.bf16.vlgmr.msra.gmra.mrb[244].mxu0 %v11102_v46  ;;  %v7485_v51 = vpop.f32.mrb[207].mxu1 }
 0xec0   :  { %v11313_v19 = vpop.f32.mrb[208].mxu1 }
 0xec1   :  { %v7490_v40 = vpop.f32.mrb[209].mxu1 }
 0xec2   :  { %v11315_v8 = vpop.f32.mrb[210].mxu1 }
 0xec3   :  { %v7493_v37 = vpop.f32.mrb[211].mxu1 }
 0xec8   :  { %v11317_v12 = vpop.f32.mrb[212].mxu1 }
 0xec9   :  { %v7498_v16 = vpop.f32.mrb[213].mxu1 }
 0xeca   :  { %v11319_v62 = vpop.f32.mrb[214].mxu1 }
 0xecb   :  { %v7501_v54 = vpop.f32.mrb[215].mxu1 }
 0xece   :  { %v7309_v63 = vpop.f32.mrb[164].mxu0 }
 0xecf   :  { %v7310_v21 = vadd.f32 %v8626_v36, %v7309_v63  ;;  %v7311_v47 = vpop.f32.mrb[165].mxu0 }
 0xed0   :  { %v7312_v46 = vpop.f32.mrb[166].mxu0 }
 0xed1   :  { %v7313_v0 = vadd.f32 %v8629_v43, %v7312_v46  ;;  %v7314_v53 = vpop.f32.mrb[167].mxu0 }
 0xed6   :  { %v7317_v41 = vpop.f32.mrb[168].mxu0 }
 0xed7   :  { %v7318_v45 = vadd.f32 %v8632_v4, %v7317_v41  ;;  %v7319_v14 = vpop.f32.mrb[169].mxu0 }
 0xed8   :  { %v7320_v20 = vpop.f32.mrb[170].mxu0 }
 0xed9   :  { %v7321_v27 = vpop.f32.mrb[171].mxu0 }
 0xede   :  { %v7324_v7 = vpop.f32.mrb[172].mxu0 }
 0xedf   :  { %v11321_v3 = vadd.f32 %v8638_v56, %v7324_v7  ;;  %v7326_v34 = vpop.f32.mrb[173].mxu0 }
 0xee0   :  { %v7327_v24 = vpop.f32.mrb[174].mxu0  ;;  %v11325_v28 = vpop.f32.mrb[216].mxu1 }
 0xee1   :  { %v11323_v35 = vadd.f32 %v8641_v38, %v7327_v24  ;;  %v7329_v60 = vpop.f32.mrb[175].mxu0  ;;  %v7667_v55 = vpop.f32.mrb[217].mxu1 }
 0xee2   :  { %v11329_v30 = vpop.f32.mrb[218].mxu1 }
 0xee3   :  { %v7670_v2 = vpop.f32.mrb[219].mxu1 }
 0xee6   :  { %v7332_v61 = vpop.f32.mrb[176].mxu0 }
 0xee7   :  { %v11327_v50 = vadd.f32 %v8644_v26, %v7332_v61  ;;  %v7334_v39 = vpop.f32.mrb[177].mxu0 }
 0xee8   :  { %v7335_v52 = vpop.f32.mrb[178].mxu0  ;;  %v11331_v32 = vpop.f32.mrb[220].mxu1 }
 0xee9   :  { %v7336_v25 = vpop.f32.mrb[179].mxu0  ;;  %v7675_v36 = vpop.f32.mrb[221].mxu1 }
 0xeea   :  { %v11333_v5 = vpop.f32.mrb[222].mxu1 }
 0xeeb   :  { %v7678_v48 = vpop.f32.mrb[223].mxu1 }
 0xeee   :  { %v8664_v13 = vpop.f32.mrb[180].mxu0 }
 0xeef   :  { %v8665_v9 = vpop.f32.mrb[181].mxu0 }
 0xef0   :  { %v8666_v43 = vadd.f32 %v8665_v9, %v8664_v13  ;;  %v8667_v15 = vpop.f32.mrb[182].mxu0  ;;  %v11335_v59 = vpop.f32.mrb[224].mxu1 }
 0xef1   :  { %v8668_v4 = vpop.f32.mrb[183].mxu0  ;;  %v7683_v38 = vpop.f32.mrb[225].mxu1 }
 0xef2   :  { %v8669_v6 = vadd.f32 %v8668_v4, %v8667_v15  ;;  %v7473_v23 = vadd.f32 %v8666_v43, %v7472_v42  ;;  %v11337_v11 = vpop.f32.mrb[226].mxu1 }
 0xef3   :  { %v7686_v29 = vpop.f32.mrb[227].mxu1 }
 0xef4   :  { %v7476_v31 = vadd.f32 %v8669_v6, %v7475_v44  ;;  %v7507_v56 = vrot.slane %v7473_v23, 1 }
 0xef6   :  { %v7508_v58 = vrot.slane %v7476_v31, 1  ;;  %v8670_v22 = vpop.f32.mrb[184].mxu0 }
 0xef7   :  { %v8671_v57 = vpop.f32.mrb[185].mxu0 }
 0xef8   :  { %v7509_v10 = vsel %vm4467_vm3, %v7507_v56, %v7508_v58  ;;  %v8672_v26 = vadd.f32 %v8671_v57, %v8670_v22  ;;  %v8673_v49 = vpop.f32.mrb[186].mxu0  ;;  %v11344_v37 = vpop.f32.mrb[228].mxu1 }
 0xef9   :  { %v11340_v18 = vadd.f32 %v7509_v10, %v7310_v21  ;;  %v8674_v33 = vpop.f32.mrb[187].mxu0  ;;  %v7691_v46 = vpop.f32.mrb[229].mxu1 }
 0xefa   :  { %v8675_v51 = vadd.f32 %v8674_v33, %v8673_v49  ;;  %v7481_v42 = vadd.f32 %v8672_v26, %v11309_v17  ;;  %v11349_v41 = vpop.f32.mrb[230].mxu1 }
 0xefb   :  { %v7694_v17 = vpop.f32.mrb[231].mxu1 }
 0xefc   :  { %v7510_v44 = vrot.slane %v7481_v42, 1  ;;  %v7484_v40 = vadd.f32 %v8675_v51, %v11311_v1 }
 0xefe   :  { %v7511_v63 = vsel %vm4467_vm3, %v7508_v58, %v7510_v44  ;;  %v7512_v16 = vrot.slane %v7484_v40, 1  ;;  %v8676_v47 = vpop.f32.mrb[188].mxu0 }
 0xeff   :  { %v11347_v54 = vadd.f32 %v7511_v63, %v7313_v0  ;;  %v8677_v53 = vpop.f32.mrb[189].mxu0 }
 0xf00   :  { %v7513_v21 = vsel %vm4467_vm3, %v7510_v44, %v7512_v16  ;;  %v8678_v14 = vadd.f32 %v8677_v53, %v8676_v47  ;;  %v8679_v20 = vpop.f32.mrb[190].mxu0  ;;  %v8784_v60 = vpop.f32.mrb[232].mxu1 }
 0xf01   :  { %v11352_v27 = vadd.f32 %v7513_v21, %v7318_v45  ;;  %v8680_v1 = vpop.f32.mrb[191].mxu0  ;;  %v8785_v39 = vpop.f32.mrb[233].mxu1 }
 0xf02   :  { %v8681_v7 = vadd.f32 %v8680_v1, %v8679_v20  ;;  %v7489_v34 = vadd.f32 %v8678_v14, %v11313_v19  ;;  %v8787_v2 = vpop.f32.mrb[234].mxu1 }
 0xf03   :  { %v8788_v9 = vpop.f32.mrb[235].mxu1 }
 0xf04   :  { %v7492_v24 = vadd.f32 %v8681_v7, %v11315_v8  ;;  %v7524_v61 = vrot.slane %v7489_v34, 1  ;;  %v11360_v15 = vadd.f32 %v8788_v9, %v8787_v2 }
 0xf06   :  { %v7525_v0 = vrot.slane %v7492_v24, 1  ;;  %v8682_v55 = vpop.f32.mrb[192].mxu0 }
 0xf07   :  { %v8683_v52 = vpop.f32.mrb[193].mxu0 }
 0xf08   :  { %v7526_v25 = vsel %vm4467_vm3, %v7524_v61, %v7525_v0  ;;  %v8684_v13 = vadd.f32 %v8683_v52, %v8682_v55  ;;  %v8685_v36 = vpop.f32.mrb[194].mxu0  ;;  %v8790_v6 = vpop.f32.mrb[236].mxu1 }
 0xf09   :  { %v11358_v45 = vadd.f32 %v7526_v25, %v11321_v3  ;;  %v8686_v43 = vpop.f32.mrb[195].mxu0  ;;  %v8791_v58 = vpop.f32.mrb[237].mxu1 }
 0xf0a   :  { %v8687_v19 = vadd.f32 %v8686_v43, %v8685_v36  ;;  %v7497_v8 = vadd.f32 %v8684_v13, %v11317_v12  ;;  %v11368_v38 = vadd.f32 %v8791_v58, %v8790_v6  ;;  %v8793_v57 = vpop.f32.mrb[238].mxu1 }
 0xf0b   :  { %v8794_v49 = vpop.f32.mrb[239].mxu1 }
 0xf0c   :  { %v7527_v48 = vrot.slane %v7497_v8, 1  ;;  %v7500_v4 = vadd.f32 %v8687_v19, %v11319_v62  ;;  %v11374_v33 = vadd.f32 %v8794_v49, %v8793_v57 }
 0xf0e   :  { %v7528_v23 = vsel %vm4467_vm3, %v7525_v0, %v7527_v48  ;;  %v7529_v31 = vrot.slane %v7500_v4, 1  ;;  %v8704_v56 = vpop.f32.mrb[196].mxu0 }
 0xf0f   :  { %v11366_v22 = vadd.f32 %v7528_v23, %v11323_v35  ;;  %v8705_v3 = vpop.f32.mrb[197].mxu0 }
 0xf10   :  { %v7530_v10 = vsel %vm4467_vm3, %v7527_v48, %v7529_v31  ;;  %v8706_v26 = vadd.f32 %v8705_v3, %v8704_v56  ;;  %v8707_v12 = vpop.f32.mrb[198].mxu0  ;;  %v8796_v44 = vpop.f32.mrb[240].mxu1 }
 0xf11   :  { %v11372_v62 = vadd.f32 %v7530_v10, %v11327_v50  ;;  %v8708_v29 = vpop.f32.mrb[199].mxu0  ;;  %v8797_v47 = vpop.f32.mrb[241].mxu1 }
 0xf12   :  { %v8709_v51 = vadd.f32 %v8708_v29, %v8707_v12  ;;  %v7666_v42 = vadd.f32 %v8706_v26, %v11325_v28  ;;  %v8799_v53 = vpop.f32.mrb[242].mxu1 }
 0xf13   :  { %v8800_v20 = vpop.f32.mrb[243].mxu1 }
 0xf14   :  { %v7669_v35 = vadd.f32 %v8709_v51, %v11329_v30  ;;  %v7700_v40 = vrot.slane %v7666_v42, 2  ;;  %v11382_v7 = vadd.f32 %v8800_v20, %v8799_v53 }
 0xf16   :  { %v7701_v63 = vrot.slane %v7669_v35, 2  ;;  %v8710_v16 = vpop.f32.mrb[200].mxu0 }
 0xf17   :  { %v8711_v46 = vpop.f32.mrb[201].mxu0 }
 0xf18   :  { %v7702_v21 = vsel %vm5174_vm4, %v7700_v40, %v7701_v63  ;;  %v8712_v14 = vadd.f32 %v8711_v46, %v8710_v16  ;;  %v8713_v50 = vpop.f32.mrb[202].mxu0  ;;  %v8802_v60 = vpop.f32.mrb[244].mxu1 }
 0xf19   :  { %v11380_v17 = vadd.f32 %v7702_v21, %v11340_v18  ;;  %v8714_v1 = vpop.f32.mrb[203].mxu0  ;;  %v8803_v39 = vpop.f32.mrb[245].mxu1 }
 0xf1a   :  { %v8715_v28 = vadd.f32 %v8714_v1, %v8713_v50  ;;  %v7674_v30 = vadd.f32 %v8712_v14, %v11331_v32  ;;  %v11390_v2 = vadd.f32 %v8803_v39, %v8802_v60  ;;  %v8805_v25 = vpop.f32.mrb[246].mxu1 }
 0xf1b   :  { %v8806_v9 = vpop.f32.mrb[247].mxu1 }
 0xf1c   :  { %v7703_v34 = vrot.slane %v7674_v30, 2  ;;  %v7677_v24 = vadd.f32 %v8715_v28, %v11333_v5  ;;  %v11396_v19 = vadd.f32 %v8806_v9, %v8805_v25 }
 0xf1e   :  { %v7704_v61 = vsel %vm5174_vm4, %v7701_v63, %v7703_v34  ;;  %v7705_v0 = vrot.slane %v7677_v24, 2  ;;  %v8716_v55 = vpop.f32.mrb[204].mxu0 }
 0xf1f   :  { %v11388_v52 = vadd.f32 %v7704_v61, %v11347_v54  ;;  %v8717_v18 = vpop.f32.mrb[205].mxu0 }
 0xf20   :  { %v7706_v13 = vsel %vm5174_vm4, %v7703_v34, %v7705_v0  ;;  %v8718_v36 = vadd.f32 %v8717_v18, %v8716_v55  ;;  %v8719_v32 = vpop.f32.mrb[206].mxu0 }
 0xf21   :  { %v11394_v5 = vadd.f32 %v7706_v13, %v11352_v27  ;;  %v8720_v43 = vpop.f32.mrb[207].mxu0 }
 0xf22   :  { %v8721_v8 = vadd.f32 %v8720_v43, %v8719_v32  ;;  %v7682_v48 = vadd.f32 %v8718_v36, %v11335_v59 }
 0xf24   :  { %v7685_v54 = vadd.f32 %v8721_v8, %v11337_v11  ;;  %v7717_v4 = vrot.slane %v7682_v48, 2 }
 0xf26   :  { %v7718_v6 = vrot.slane %v7685_v54, 2  ;;  %v8722_v23 = vpop.f32.mrb[208].mxu0 }
 0xf27   :  { %v8723_v31 = vpop.f32.mrb[209].mxu0 }
 0xf28   :  { %v7719_v56 = vsel %vm5174_vm4, %v7717_v4, %v7718_v6  ;;  %v8724_v58 = vadd.f32 %v8723_v31, %v8722_v23  ;;  %v8725_v3 = vpop.f32.mrb[210].mxu0 }
 0xf29   :  { %v11402_v57 = vadd.f32 %v7719_v56, %v11358_v45  ;;  %v8726_v27 = vpop.f32.mrb[211].mxu0 }
 0xf2a   :  { %v8727_v10 = vadd.f32 %v8726_v27, %v8725_v3  ;;  %v7690_v26 = vadd.f32 %v8724_v58, %v11344_v37 }
 0xf2c   :  { %v7720_v12 = vrot.slane %v7690_v26, 2  ;;  %v7693_v59 = vadd.f32 %v8727_v10, %v11349_v41 }
 0xf2e   :  { %v7721_v11 = vsel %vm5174_vm4, %v7718_v6, %v7720_v12  ;;  %v7722_v49 = vrot.slane %v7693_v59, 2  ;;  %v8744_v29 = vpop.f32.mrb[212].mxu0 }
 0xf2f   :  { %v11408_v51 = vadd.f32 %v7721_v11, %v11366_v22  ;;  %v8745_v42 = vpop.f32.mrb[213].mxu0 }
 0xf30   :  { %v7723_v35 = vsel %vm5174_vm4, %v7720_v12, %v7722_v49  ;;  %v8746_v44 = vadd.f32 %v8745_v42, %v8744_v29  ;;  %v8747_v45 = vpop.f32.mrb[214].mxu0  ;;  %v8056_v16 = vpop.f32.mrb[248].mxu1 }
 0xf31   :  { %v11412_v40 = vadd.f32 %v7723_v35, %v11372_v62  ;;  %v8748_v63 = vpop.f32.mrb[215].mxu0  ;;  %v11415_v41 = vadd.f32 %v11368_v38, %v8056_v16  ;;  %v8058_v46 = vpop.f32.mrb[249].mxu1 }
 0xf32   :  { %v8749_v37 = vadd.f32 %v8748_v63, %v8747_v45  ;;  %v8059_v21 = vpop.f32.mrb[250].mxu1 }
 0xf33   :  { %v8082_v50 = vrot.slane %v11415_v41, 4  ;;  %v8060_v20 = vadd.f32 %v11374_v33, %v8059_v21  ;;  %v8061_v1 = vpop.f32.mrb[251].mxu1 }
 0xf35   :  { %v8084_v30 = vrot.slane %v8060_v20, 4 }
 0xf36   :  { %v8750_v47 = vpop.f32.mrb[216].mxu0 }
 0xf37   :  { %v8751_v53 = vpop.f32.mrb[217].mxu0  ;;  %v8085_v34 = vsel %vm6963_vm7, %v8082_v50, %v8084_v30 }
 0xf38   :  { %v8752_v22 = vadd.f32 %v8751_v53, %v8750_v47  ;;  %v8753_v14 = vpop.f32.mrb[218].mxu0  ;;  %v8064_v24 = vpop.f32.mrb[252].mxu1 }
 0xf39   :  { %v8754_v28 = vpop.f32.mrb[219].mxu0  ;;  %v8065_v60 = vpop.f32.mrb[253].mxu1 }
 0xf3a   :  { %v8755_v62 = vadd.f32 %v8754_v28, %v8753_v14  ;;  %v8066_v0 = vpop.f32.mrb[254].mxu1 }
 0xf3b   :  { %v8067_v18 = vadd.f32 %v11382_v7, %v8066_v0  ;;  %v8068_v25 = vpop.f32.mrb[255].mxu1 }
 0xf3d   :  { %v8095_v9 = vrot.slane %v8067_v18, 4 }
 0xf3e   :  { %v8756_v38 = vpop.f32.mrb[220].mxu0 }
 0xf3f   :  { %v8757_v61 = vpop.f32.mrb[221].mxu0 }
 0xf40   :  { %v8758_v55 = vadd.f32 %v8757_v61, %v8756_v38  ;;  %v8759_v39 = vpop.f32.mrb[222].mxu0  ;;  %v8071_v36 = vpop.f32.mrb[0].mxu1 }
 0xf41   :  { %v8760_v13 = vpop.f32.mrb[223].mxu0  ;;  %v8072_v43 = vadd.f32 %v11390_v2, %v8071_v36  ;;  %v8073_v8 = vpop.f32.mrb[1].mxu1 }
 0xf42   :  { %v8761_v33 = vadd.f32 %v8760_v13, %v8759_v39  ;;  %v8074_v54 = vpop.f32.mrb[2].mxu1 }
 0xf43   :  { %v8096_v23 = vrot.slane %v8072_v43, 4  ;;  %v8075_v31 = vadd.f32 %v11396_v19, %v8074_v54  ;;  %v8076_v56 = vpop.f32.mrb[3].mxu1 }
 0xf45   :  { %v8097_v7 = vsel %vm6963_vm7, %v8095_v9, %v8096_v23  ;;  %v8098_v27 = vrot.slane %v8075_v31, 4 }
 0xf46   :  { %v8762_v32 = vpop.f32.mrb[224].mxu0 }
 0xf47   :  { %v8763_v48 = vpop.f32.mrb[225].mxu0  ;;  %v8099_v10 = vsel %vm6963_vm7, %v8096_v23, %v8098_v27 }
 0xf48   :  { %v8764_v4 = vadd.f32 %v8763_v48, %v8762_v32  ;;  %v8765_v6 = vpop.f32.mrb[226].mxu0 }
 0xf49   :  { %v8766_v58 = vpop.f32.mrb[227].mxu0 }
 0xf4a   :  { %v8767_v3 = vadd.f32 %v8766_v58, %v8765_v6 }
 0xf5e   :  { %v7858_v26 = vpop.f32.mrb[228].mxu0 }
 0xf5f   :  { %v7859_v12 = vadd.f32 %v8746_v44, %v7858_v26  ;;  %v7860_v59 = vpop.f32.mrb[229].mxu0 }
 0xf60   :  { %v7861_v2 = vpop.f32.mrb[230].mxu0 }
 0xf61   :  { %v7862_v11 = vadd.f32 %v8749_v37, %v7861_v2  ;;  %v7863_v49 = vpop.f32.mrb[231].mxu0  ;;  %v7893_v29 = vrot.slane %v7859_v12, 3 }
 0xf63   :  { %v7894_v42 = vrot.slane %v7862_v11, 3 }
 0xf65   :  { %v7895_v35 = vsel %vm6650_vm6, %v7893_v29, %v7894_v42 }
 0xf66   :  { %v11429_v19 = vadd.f32 %v7895_v35, %v11380_v17  ;;  %v7866_v45 = vpop.f32.mrb[232].mxu0  ;;  %v11437_v17 = vld [vmem:[#allocation25] ss:$0 sm:$0xff] }
 0xf67   :  { %v7867_v63 = vadd.f32 %v8752_v22, %v7866_v45  ;;  %v7868_v16 = vpop.f32.mrb[233].mxu0 }
 0xf68   :  { %v7869_v47 = vpop.f32.mrb[234].mxu0 }
 0xf69   :  { %v7896_v46 = vrot.slane %v7867_v63, 3  ;;  %v7870_v53 = vadd.f32 %v8755_v62, %v7869_v47  ;;  %v7871_v21 = vpop.f32.mrb[235].mxu0 }
 0xf6b   :  { %v7897_v44 = vsel %vm6650_vm6, %v7894_v42, %v7896_v46  ;;  %v7898_v14 = vrot.slane %v7870_v53, 3 }
 0xf6c   :  { %v11433_v37 = vadd.f32 %v7897_v44, %v11388_v52 }
 0xf6d   :  { %v7899_v20 = vsel %vm6650_vm6, %v7896_v46, %v7898_v14 }
 0xf6e   :  { %v7905_v1 = vadd.f32 %v7899_v20, %v11394_v5  ;;  %v7874_v28 = vpop.f32.mrb[236].mxu0 }
 0xf6f   :  { %v7875_v30 = vadd.f32 %v8758_v55, %v7874_v28  ;;  %v7876_v22 = vpop.f32.mrb[237].mxu0 }
 0xf70   :  { %v8091_v24 = vadd.f32 %v8085_v34, %v7905_v1  ;;  %v7877_v38 = vpop.f32.mrb[238].mxu0 }
 0xf71   :  { %v7878_v60 = vadd.f32 %v8761_v33, %v7877_v38  ;;  %v7879_v62 = vpop.f32.mrb[239].mxu0  ;;  %v7910_v0 = vrot.slane %v7875_v30, 3 }
 0xf72   :  { %v8115_v61 = vadd.f32 %v11437_v17, %v8091_v24 }
 0xf73   :  { %v7911_v39 = vrot.slane %v7878_v60, 3 }
 0xf74   :  { %v8230_v18 = vmul.f32 -1.442695, %v8115_v61 }
 0xf75   :  { %v7912_v52 = vsel %vm6650_vm6, %v7910_v0, %v7911_v39 }
 0xf76   :  { %9428 = vpow2.f32 %v8230_v18  ;;  %v7920_v25 = vadd.f32 %v7912_v52, %v11402_v57  ;;  %v7882_v5 = vpop.f32.mrb[240].mxu0 }
 0xf77   :  { %v7883_v13 = vadd.f32 %v8764_v4, %v7882_v5  ;;  %v7884_v36 = vpop.f32.mrb[241].mxu0 }
 0xf78   :  { %v8103_v32 = vadd.f32 %v8095_v9, %v7920_v25  ;;  %v7885_v55 = vpop.f32.mrb[242].mxu0 }
 0xf79   :  { %v7913_v43 = vrot.slane %v7883_v13, 3  ;;  %v7886_v34 = vadd.f32 %v8767_v3, %v7885_v55  ;;  %v7887_v8 = vpop.f32.mrb[243].mxu0 }
 0xf7a   :  { %v8116_v33 = vadd.f32 %v11437_v17, %v8103_v32 }
 0xf7b   :  { %v7914_v48 = vsel %vm6650_vm6, %v7911_v39, %v7913_v43  ;;  %v7915_v54 = vrot.slane %v7886_v34, 3 }
 0xf7c   :  { %v8231_v6 = vmul.f32 -1.442695, %v8116_v33  ;;  %v7921_v23 = vadd.f32 %v7914_v48, %v11408_v51 }
 0xf7d   :  { %v7916_v31 = vsel %vm6650_vm6, %v7913_v43, %v7915_v54 }
 0xf7e   :  { %9430 = vpow2.f32 %v8231_v6  ;;  %v8104_v57 = vadd.f32 %v8097_v7, %v7921_v23  ;;  %v7922_v4 = vadd.f32 %v7916_v31, %v11412_v40 }
 0xf80   :  { %v9429_v56 = vpop.eup %9428  ;;  %v8117_v9 = vadd.f32 %v11437_v17, %v8104_v57  ;;  %v8105_v58 = vadd.f32 %v8099_v10, %v7922_v4 }
 0xf81   :  { %v8130_v3 = vadd.f32 1.0, %v9429_v56 }
 0xf82   :  { %v8232_v27 = vmul.f32 -1.442695, %v8117_v9  ;;  %v8118_v26 = vadd.f32 %v11437_v17, %v8105_v58 }
 0xf83   :  { %9432 = vrcp.f32 %v8130_v3 }
 0xf84   :  { %9434 = vpow2.f32 %v8232_v27  ;;  %v8233_v12 = vmul.f32 -1.442695, %v8118_v26 }
 0xf86   :  { %9436 = vpow2.f32 %v8233_v12 }
 0xf88   :  { %v9431_v59 = vpop.eup %9430 }
 0xf89   :  { %v8149_v51 = vadd.f32 1.0, %v9431_v59 }
 0xf8b   :  { %9438 = vrcp.f32 %v8149_v51 }
 0xf8d   :  { %v9433_v2 = vpop.eup %9432 }
 0xf8e   :  { %v9435_v11 = vpop.eup %9434  ;;  %8139 = vst [vmem:[%s11490_s15 + $0xc] sm:$0xff] %v9433_v2  ;;  %v8049_v40 = vpop.f32.mrb[244].mxu0 }
 0xf8f   :  { %v8150_v7 = vadd.f32 1.0, %v9435_v11  ;;  %v8050_v10 = vpop.f32.mrb[245].mxu0 }
 0xf90   :  { %v9437_v49 = vpop.eup %9436  ;;  %v8051_v29 = vpop.f32.mrb[246].mxu0 }
 0xf91   :  { %9440 = vrcp.f32 %v8150_v7  ;;  %v8151_v42 = vadd.f32 1.0, %v9437_v49  ;;  %v8052_v35 = vadd.f32 %v11360_v15, %v8051_v29  ;;  %v8053_v45 = vpop.f32.mrb[247].mxu0 }
 0xf93   :  { %9442 = vrcp.f32 %v8151_v42  ;;  %v8081_v63 = vrot.slane %v8052_v35, 4 }
 0xf95   :  { %v9439_v16 = vpop.eup %9438  ;;  %v8083_v47 = vsel %vm6963_vm7, %v8081_v63, %v8082_v50  ;;  %v8089_v46 = vadd.f32 %v8081_v63, %v11429_v19 }
 0xf96   :  { %8234 = vst [vmem:[%s11490_s15 + $0x14] sm:$0xf0] %v9439_v16  ;;  %v8090_v53 = vadd.f32 %v8083_v47, %v11433_v37 }
 0xf97   :  { %v8113_v21 = vadd.f32 %v11437_v17, %v8089_v46 }
 0xf98   :  { %v8114_v15 = vadd.f32 %v11437_v17, %v8090_v53 }
 0xf99   :  { %v8228_v44 = vmul.f32 -1.442695, %v8113_v21 }
 0xf9a   :  { %v8229_v14 = vmul.f32 -1.442695, %v8114_v15 }
 0xf9b   :  { %v9441_v20 = vpop.eup %9440  ;;  %9444 = vpow2.f32 %v8228_v44 }
 0xf9c   :  { %8235 = vst [vmem:[%s11490_s15 + $0x1c] sm:$0xff] %v9441_v20  ;;  %9446 = vpow2.f32 %v8229_v14 }
 0xf9d   :  { %v9443_v41 = vpop.eup %9442 }
 0xf9e   :  { %8236 = vst [vmem:[%s11490_s15 + $0x24] sm:$0xff] %v9443_v41 }
 0xfa5   :  { %v9445_v50 = vpop.eup %9444 }
 0xfa6   :  { %v9447_v19 = vpop.eup %9446  ;;  %v8128_v37 = vadd.f32 1.0, %v9445_v50 }
 0xfa7   :  { %v8129_v1 = vadd.f32 1.0, %v9447_v19 }
 0xfa8   :  { %9448 = vrcp.f32 %v8128_v37 }
 0xfa9   :  { %9450 = vrcp.f32 %v8129_v1 }
 0xfb2   :  { %v9449_v28 = vpop.eup %9448 }
 0xfb3   :  { %v9451_v17 = vpop.eup %9450  ;;  %8137 = vst [vmem:[%s11490_s15 - $0x4] sm:$0xf0] %v9449_v28 }
 0xfb4   :  { %8138 = vst [vmem:[%s11490_s15 + $0x4] sm:$0xff] %v9451_v17 }
 0xfb5   :  { %8166 = vsyncpa [#allocation12], 1 }
 0xfb6   :  { %8167 = vsyncpa [#allocation14], 1 }
 0xfb7   :  { %8168 = vsyncpa [#allocation17], 1 }
 0xfb8   :  { %8169 = vsyncpa [#allocation20], 1 }
 0xfb9   :  { %8170 = vsyncpa [#allocation23], 1 }
 0xfba   :  { %8171 = vsyncpa [#allocation26], 1 }
 0xfbb   :  { %8172 = vsyncmov [#allocation10] }
 0xfbe   :  { %s8173_s9 = vpop.sfrf %8172 }
 0xfbf   :  { %p8237_p4 = scmp.ne.s32.totalorder %s8173_s9, 0 }
 0xfc1   :  { %8177 = shalt.err (%p8237_p4)  }
 0xfc2   :  { %8179 = vsyncmov [#allocation10 + $0x1] }
 0xfc5   :  { %s8180_s14 = vpop.sfrf %8179 }
 0xfc6   :  { %p8238_p5 = scmp.ne.s32.totalorder %s8180_s14, 0 }
 0xfc8   :  { %8184 = shalt.err (%p8238_p5)  }
 0xfc9   :  { %8186 = vsyncmov [#allocation10 + $0x2] }
 0xfcc   :  { %s8187_s25 = vpop.sfrf %8186 }
 0xfcd   :  { %p8239_p6 = scmp.ne.s32.totalorder %s8187_s25, 0 }
 0xfcf   :  { %8191 = shalt.err (%p8239_p6)  }
 0xfd0   :  { %8193 = vsyncmov [#allocation10 + $0x3] }
 0xfd3   :  { %s8194_s15 = vpop.sfrf %8193 }
 0xfd4   :  { %p8240_p7 = scmp.ne.s32.totalorder %s8194_s15, 0 }
 0xfd6   :  { %8198 = shalt.err (%p8240_p7)  }

</bundles_post_ra>
